<compile_context>
chip_gen: v6e
topology: v6e:2x2x1
jax: 0.10.0
libtpu: 0.0.40
codegen_flags: <defaults>
</compile_context>

<pallas_src>
import jax
import jax.numpy as jnp
import numpy as np
from jax.experimental import pallas as pl
from jax.experimental.pallas import tpu as pltpu

# ---- NormalCNN 'fact' configuration (hard-coded inside the PyTorch module) ----
KERNEL_SIZES = [(4, 512), (3, 512), (3, 256), (2, 256), (4, 512)]
OUT_CHANNELS = [512, 256, 256, 512, 512]
STRIDES = [(2, 1), (2, 1), (2, 1), (2, 1), (1, 1)]
MAXPOOL_KH = 4

EMBED_DIM = 512          # forced by the first conv kernel width (4, 512)
HIDDEN_SIZE = 64         # config.hidden_size
VOCAB = 100              # synthetic vocab size


# ----------------------------- fused Pallas kernel ------------------------------

def _fused_forward_kernel(*refs):
    # refs = (ids, emb, w1, b1, ..., w5, b5, lin_w, lin_b, out)
    ids_ref, emb_ref = refs[0], refs[1]
    lw_ref, lb_ref = refs[-3], refs[-2]
    o_ref = refs[-1]
    conv_refs = refs[2:-3]

    f32, bf16 = jnp.float32, jnp.bfloat16

    # ---- embedding lookup as an exact one-hot matmul (stays on-chip) ----
    ids = ids_ref[0]                                    # [L, 1] int32
    L = ids.shape[0]
    vocab = emb_ref.shape[0]
    vocab_iota = jax.lax.broadcasted_iota(jnp.int32, (L, vocab), 1)
    onehot = jnp.where(vocab_iota == ids, 1.0, 0.0).astype(bf16)        # [L, V]
    x = jnp.dot(onehot, emb_ref[...], preferred_element_type=f32).astype(bf16)  # [L, 512]

    # ---- 5 conv + ReLU layers:  relu( sum_k Sel_k @ x @ W[k] + b ) ----
    for layer, ((kh, _kw), (sh, _sw)) in enumerate(zip(KERNEL_SIZES, STRIDES)):
        w_ref = conv_refs[2 * layer]        # [kh, D_in, C] bf16
        b_ref = conv_refs[2 * layer + 1]    # [1, C]        f32
        h_in = x.shape[0]
        h_out = (h_in - kh) // sh + 1
        c = w_ref.shape[2]

        row_iota = jax.lax.broadcasted_iota(jnp.int32, (h_out, h_in), 0)
        col_iota = jax.lax.broadcasted_iota(jnp.int32, (h_out, h_in), 1)

        acc = jnp.zeros((h_out, c), f32)
        for k in range(kh):
            # Exact 0/1 selection matrix picking input rows sh*i + k (row gather on MXU).
            sel = jnp.where(col_iota == sh * row_iota + k, 1.0, 0.0).astype(bf16)
            xk = jnp.dot(sel, x, preferred_element_type=f32).astype(bf16)   # [h_out, D_in]
            acc = acc + jnp.dot(xk, w_ref[k], preferred_element_type=f32)   # [h_out, C]
        x = jnp.maximum(acc + b_ref[...], 0.0).astype(bf16)                 # [h_out, C]

    # ---- MaxPool2d((4,1)): single window over the 4 remaining rows ----
    pooled = jnp.max(x.astype(f32), axis=0, keepdims=True)                  # [1, 512]

    # ---- output Linear ----
    out = jnp.dot(pooled.astype(bf16), lw_ref[...],
                  preferred_element_type=f32) + lb_ref[...]                 # [1, 64]
    o_ref[0] = out


def normal_cnn_forward(inputs, params):
    """inputs: [B, L] int token ids  ->  ([1, B, hidden_size], None)"""
    B, L = inputs.shape

    # Static shape chain implied by the module (MaxPool2d((4,1)) + squeeze(2)).
    h = L
    for (kh, _kw), (sh, _sw) in zip(KERNEL_SIZES, STRIDES):
        h = (h - kh) // sh + 1
    assert h == MAXPOOL_KH, "squeeze(2) in the PyTorch forward needs one pool window"

    ids3 = inputs.astype(jnp.int32)[..., None]                 # [B, L, 1]

    in_specs = [
        pl.BlockSpec((1, L, 1), lambda b: (b, 0, 0)),                  # token ids
        pl.BlockSpec(params["embedding"].shape, lambda b: (0, 0)),     # embedding table
    ]
    args = [ids3, params["embedding"]]
    for w, bias in zip(params["conv_ws"], params["conv_bs"]):
        in_specs.append(pl.BlockSpec(w.shape, lambda b_: (0, 0, 0)))   # [kh, D_in, C]
        in_specs.append(pl.BlockSpec((1, w.shape[2]), lambda b_: (0, 0)))
        args += [w, bias.reshape(1, -1)]
    in_specs.append(pl.BlockSpec(params["lin_w"].shape, lambda b: (0, 0)))
    in_specs.append(pl.BlockSpec((1, HIDDEN_SIZE), lambda b: (0, 0)))
    args += [params["lin_w"], params["lin_b"].reshape(1, -1)]

    out = pl.pallas_call(
        _fused_forward_kernel,
        out_shape=jax.ShapeDtypeStruct((B, 1, HIDDEN_SIZE), jnp.float32),
        grid=(B,),
        in_specs=in_specs,
        out_specs=pl.BlockSpec((1, 1, HIDDEN_SIZE), lambda b: (b, 0, 0)),
        compiler_params=pltpu.CompilerParams(
            dimension_semantics=("parallel",),        # v7x: one batch per TensorCore
            vmem_limit_bytes=48 * 1024 * 1024,        # all weights resident, fits v7x 64 MiB
        ),
    )(*args)
    return jnp.transpose(out, (1, 0, 2)), None        # [1, B, hidden] (== .transpose(0,1))


# ------------------------------- parameters -------------------------------------

def init_params(key):
    n_conv = len(OUT_CHANNELS)
    keys = jax.random.split(key, 3 + 2 * n_conv)
    params = {
        # weights stored in bf16 (MXU-native); biases kept f32 (added to f32 accumulators)
        "embedding": jax.random.normal(keys[0], (VOCAB, EMBED_DIM), jnp.float32)
                     .astype(jnp.bfloat16),
    }
    conv_ws, conv_bs = [], []
    for i, ((kh, kw), c) in enumerate(zip(KERNEL_SIZES, OUT_CHANNELS)):
        # weight stored as [kh, kw, C] (== torch OIHW weight[c, 0, kh, kw] transposed)
        w = 0.05 * jax.random.normal(keys[1 + 2 * i], (kh, kw, c), jnp.float32)
        conv_ws.append(w.astype(jnp.bfloat16))
        conv_bs.append(0.05 * jax.random.normal(keys[2 + 2 * i], (c,), jnp.float32))
    params["conv_ws"] = conv_ws
    params["conv_bs"] = conv_bs
    params["lin_w"] = (0.05 * jax.random.normal(
        keys[-2], (OUT_CHANNELS[-1], HIDDEN_SIZE), jnp.float32)).astype(jnp.bfloat16)
    params["lin_b"] = 0.05 * jax.random.normal(keys[-1], (HIDDEN_SIZE,), jnp.float32)
    return params


# --------------------- pure-JAX f32 reference (NCHW, like PyTorch) ---------------

def reference_forward(inputs, params):
    emb = params["embedding"].astype(jnp.float32)
    x = emb[inputs]                               # [B, L, 512]
    out = x[:, None, :, :]                        # NCHW: [B, 1, L, 512]
    for (kh, kw), (sh, sw), w, b in zip(
            KERNEL_SIZES, STRIDES, params["conv_ws"], params["conv_bs"]):
        w_oihw = jnp.transpose(w.astype(jnp.float32), (2, 0, 1))[:, None, :, :]
        out = jax.lax.conv_general_dilated(
            out, w_oihw, (sh, sw), "VALID",
            dimension_numbers=("NCHW", "OIHW", "NCHW"),
            precision=jax.lax.Precision.HIGHEST)
        out = jnp.maximum(out + b[None, :, None, None], 0.0)
        out = jnp.transpose(out, (0, 3, 2, 1))                # transpose(1, 3)
    out = jax.lax.reduce_window(
        out, -jnp.inf, jax.lax.max,
        (1, 1, MAXPOOL_KH, 1), (1, 1, MAXPOOL_KH, 1), "VALID")
    out = jnp.squeeze(out, 2)                    # [B, 1, 512]
    out = jnp.transpose(out, (1, 0, 2))          # [1, B, 512]
    return jnp.matmul(out, params["lin_w"].astype(jnp.float32),
                      precision=jax.lax.Precision.HIGHEST) + params["lin_b"]


# ------------------------------------ main ---------------------------------------

if __name__ == "__main__":
    key = jax.random.PRNGKey(0)
    pkey, ikey = jax.random.split(key)
    params = init_params(pkey)

    B, L = 2, 120   # L chosen so the 5 strided convs + MaxPool2d((4,1)) + squeeze(2) are valid
    inputs = jax.random.randint(ikey, (B, L), 0, VOCAB, dtype=jnp.int32)

    fwd = jax.jit(lambda t: normal_cnn_forward(t, params))
    out, _ = fwd(inputs)
    out = jax.block_until_ready(out)
    assert out.shape == (1, B, HIDDEN_SIZE), out.shape

    ref = np.asarray(reference_forward(inputs, params))
    scale = max(float(np.max(np.abs(ref))), 1.0)
    # 2% of output scale: kernel uses bf16 MXU inputs with f32 accumulation vs f32 reference.
    np.testing.assert_allclose(np.asarray(out), ref, rtol=2e-2, atol=2e-2 * scale)

    print("KERNEL_OK")
</pallas_src>

<mosaic_0001>
module attributes {stable_mosaic.version = 11 : i64} {
  func.func @_fused_forward_kernel(%arg0: i32, %arg1: memref<1x120x1xi32, #tpu.memory_space<vmem>>, %arg2: memref<100x512xbf16, #tpu.memory_space<vmem>>, %arg3: memref<4x512x512xbf16, #tpu.memory_space<vmem>>, %arg4: memref<1x512xf32, #tpu.memory_space<vmem>>, %arg5: memref<3x512x256xbf16, #tpu.memory_space<vmem>>, %arg6: memref<1x256xf32, #tpu.memory_space<vmem>>, %arg7: memref<3x256x256xbf16, #tpu.memory_space<vmem>>, %arg8: memref<1x256xf32, #tpu.memory_space<vmem>>, %arg9: memref<2x256x512xbf16, #tpu.memory_space<vmem>>, %arg10: memref<1x512xf32, #tpu.memory_space<vmem>>, %arg11: memref<4x512x512xbf16, #tpu.memory_space<vmem>>, %arg12: memref<1x512xf32, #tpu.memory_space<vmem>>, %arg13: memref<512x64xbf16, #tpu.memory_space<vmem>>, %arg14: memref<1x64xf32, #tpu.memory_space<vmem>>, %arg15: memref<1x1x64xf32, #tpu.memory_space<vmem>>) attributes {dimension_semantics = [#tpu.dimension_semantics<parallel>], iteration_bounds = array<i64: 2>, scalar_prefetch = 0 : i64, scratch_operands = 0 : i64, tpu.core_type = #tpu.core_type<tc>, window_params = [{transform_indices = @transform_0, window_bounds = array<i64: 1, 120, 1>}, {pipeline_mode = #tpu.pipeline_mode<synchronous>, transform_indices = @transform_1, window_bounds = array<i64: 100, 512>}, {pipeline_mode = #tpu.pipeline_mode<synchronous>, transform_indices = @transform_2, window_bounds = array<i64: 4, 512, 512>}, {pipeline_mode = #tpu.pipeline_mode<synchronous>, transform_indices = @transform_3, window_bounds = array<i64: 1, 512>}, {pipeline_mode = #tpu.pipeline_mode<synchronous>, transform_indices = @transform_4, window_bounds = array<i64: 3, 512, 256>}, {pipeline_mode = #tpu.pipeline_mode<synchronous>, transform_indices = @transform_5, window_bounds = array<i64: 1, 256>}, {pipeline_mode = #tpu.pipeline_mode<synchronous>, transform_indices = @transform_6, window_bounds = array<i64: 3, 256, 256>}, {pipeline_mode = #tpu.pipeline_mode<synchronous>, transform_indices = @transform_7, window_bounds = array<i64: 1, 256>}, {pipeline_mode = #tpu.pipeline_mode<synchronous>, transform_indices = @transform_8, window_bounds = array<i64: 2, 256, 512>}, {pipeline_mode = #tpu.pipeline_mode<synchronous>, transform_indices = @transform_9, window_bounds = array<i64: 1, 512>}, {pipeline_mode = #tpu.pipeline_mode<synchronous>, transform_indices = @transform_10, window_bounds = array<i64: 4, 512, 512>}, {pipeline_mode = #tpu.pipeline_mode<synchronous>, transform_indices = @transform_11, window_bounds = array<i64: 1, 512>}, {pipeline_mode = #tpu.pipeline_mode<synchronous>, transform_indices = @transform_12, window_bounds = array<i64: 512, 64>}, {pipeline_mode = #tpu.pipeline_mode<synchronous>, transform_indices = @transform_13, window_bounds = array<i64: 1, 64>}, {transform_indices = @transform_14, window_bounds = array<i64: 1, 1, 64>}]} {
    %c0 = arith.constant 0 : index
    %c0_0 = arith.constant 0 : index
    %c0_1 = arith.constant 0 : index
    %0 = vector.load %arg1[%c0, %c0_0, %c0_1] : memref<1x120x1xi32, #tpu.memory_space<vmem>>, vector<1x120x1xi32>
    %1 = vector.shape_cast %0 : vector<1x120x1xi32> to vector<120x1xi32>
    %2 = tpu.iota {dimensions = array<i32: 1>} : vector<120x100xi32>
    %3 = vector.broadcast %1 : vector<120x1xi32> to vector<120x100xi32>
    %4 = arith.cmpi eq, %2, %3 : vector<120x100xi32>
    %cst = arith.constant 1.000000e+00 : f32
    %cst_2 = arith.constant 0.000000e+00 : f32
    %5 = vector.broadcast %cst : f32 to vector<120x100xf32>
    %6 = vector.broadcast %cst_2 : f32 to vector<120x100xf32>
    %7 = arith.select %4, %5, %6 : vector<120x100xi1>, vector<120x100xf32>
    %8 = arith.truncf %7 : vector<120x100xf32> to vector<120x100xbf16>
    %c0_3 = arith.constant 0 : index
    %c0_4 = arith.constant 0 : index
    %9 = vector.load %arg2[%c0_3, %c0_4] : memref<100x512xbf16, #tpu.memory_space<vmem>>, vector<100x512xbf16>
    %cst_5 = arith.constant dense<0.000000e+00> : vector<120x512xf32>
    %10 = tpu.matmul %8, %9, %cst_5 {dimension_numbers = #tpu.dot_dimension_numbers<[1], [0], [0], [1], [0, 0, 1, 1], [], []>} : vector<120x100xbf16>, vector<100x512xbf16>, vector<120x512xf32> -> vector<120x512xf32>
    %11 = arith.truncf %10 : vector<120x512xf32> to vector<120x512xbf16>
    %12 = tpu.iota {dimensions = array<i32: 0>} : vector<59x120xi32>
    %13 = tpu.iota {dimensions = array<i32: 1>} : vector<59x120xi32>
    %cst_6 = arith.constant 0.000000e+00 : f32
    %14 = vector.broadcast %cst_6 : f32 to vector<59x512xf32>
    %c2_i32 = arith.constant 2 : i32
    %15 = vector.broadcast %c2_i32 : i32 to vector<59x120xi32>
    %16 = arith.muli %15, %12 : vector<59x120xi32>
    %c0_i32 = arith.constant 0 : i32
    %17 = vector.broadcast %c0_i32 : i32 to vector<59x120xi32>
    %18 = arith.addi %16, %17 : vector<59x120xi32>
    %19 = arith.cmpi eq, %13, %18 : vector<59x120xi32>
    %cst_7 = arith.constant 1.000000e+00 : f32
    %cst_8 = arith.constant 0.000000e+00 : f32
    %20 = vector.broadcast %cst_7 : f32 to vector<59x120xf32>
    %21 = vector.broadcast %cst_8 : f32 to vector<59x120xf32>
    %22 = arith.select %19, %20, %21 : vector<59x120xi1>, vector<59x120xf32>
    %23 = arith.truncf %22 : vector<59x120xf32> to vector<59x120xbf16>
    %cst_9 = arith.constant dense<0.000000e+00> : vector<59x512xf32>
    %24 = tpu.matmul %23, %11, %cst_9 {dimension_numbers = #tpu.dot_dimension_numbers<[1], [0], [0], [1], [0, 0, 1, 1], [], []>} : vector<59x120xbf16>, vector<120x512xbf16>, vector<59x512xf32> -> vector<59x512xf32>
    %25 = arith.truncf %24 : vector<59x512xf32> to vector<59x512xbf16>
    %c0_10 = arith.constant 0 : index
    %c0_11 = arith.constant 0 : index
    %c0_12 = arith.constant 0 : index
    %26 = vector.load %arg3[%c0_10, %c0_11, %c0_12] : memref<4x512x512xbf16, #tpu.memory_space<vmem>>, vector<1x512x512xbf16>
    %27 = vector.shape_cast %26 : vector<1x512x512xbf16> to vector<512x512xbf16>
    %cst_13 = arith.constant dense<0.000000e+00> : vector<59x512xf32>
    %28 = tpu.matmul %25, %27, %cst_13 {dimension_numbers = #tpu.dot_dimension_numbers<[1], [0], [0], [1], [0, 0, 1, 1], [], []>} : vector<59x512xbf16>, vector<512x512xbf16>, vector<59x512xf32> -> vector<59x512xf32>
    %29 = arith.addf %14, %28 : vector<59x512xf32>
    %c2_i32_14 = arith.constant 2 : i32
    %30 = vector.broadcast %c2_i32_14 : i32 to vector<59x120xi32>
    %31 = arith.muli %30, %12 : vector<59x120xi32>
    %c1_i32 = arith.constant 1 : i32
    %32 = vector.broadcast %c1_i32 : i32 to vector<59x120xi32>
    %33 = arith.addi %31, %32 : vector<59x120xi32>
    %34 = arith.cmpi eq, %13, %33 : vector<59x120xi32>
    %cst_15 = arith.constant 1.000000e+00 : f32
    %cst_16 = arith.constant 0.000000e+00 : f32
    %35 = vector.broadcast %cst_15 : f32 to vector<59x120xf32>
    %36 = vector.broadcast %cst_16 : f32 to vector<59x120xf32>
    %37 = arith.select %34, %35, %36 : vector<59x120xi1>, vector<59x120xf32>
    %38 = arith.truncf %37 : vector<59x120xf32> to vector<59x120xbf16>
    %cst_17 = arith.constant dense<0.000000e+00> : vector<59x512xf32>
    %39 = tpu.matmul %38, %11, %cst_17 {dimension_numbers = #tpu.dot_dimension_numbers<[1], [0], [0], [1], [0, 0, 1, 1], [], []>} : vector<59x120xbf16>, vector<120x512xbf16>, vector<59x512xf32> -> vector<59x512xf32>
    %40 = arith.truncf %39 : vector<59x512xf32> to vector<59x512xbf16>
    %c1 = arith.constant 1 : index
    %c0_18 = arith.constant 0 : index
    %c0_19 = arith.constant 0 : index
    %41 = vector.load %arg3[%c1, %c0_18, %c0_19] : memref<4x512x512xbf16, #tpu.memory_space<vmem>>, vector<1x512x512xbf16>
    %42 = vector.shape_cast %41 : vector<1x512x512xbf16> to vector<512x512xbf16>
    %cst_20 = arith.constant dense<0.000000e+00> : vector<59x512xf32>
    %43 = tpu.matmul %40, %42, %cst_20 {dimension_numbers = #tpu.dot_dimension_numbers<[1], [0], [0], [1], [0, 0, 1, 1], [], []>} : vector<59x512xbf16>, vector<512x512xbf16>, vector<59x512xf32> -> vector<59x512xf32>
    %44 = arith.addf %29, %43 : vector<59x512xf32>
    %c2_i32_21 = arith.constant 2 : i32
    %45 = vector.broadcast %c2_i32_21 : i32 to vector<59x120xi32>
    %46 = arith.muli %45, %12 : vector<59x120xi32>
    %c2_i32_22 = arith.constant 2 : i32
    %47 = vector.broadcast %c2_i32_22 : i32 to vector<59x120xi32>
    %48 = arith.addi %46, %47 : vector<59x120xi32>
    %49 = arith.cmpi eq, %13, %48 : vector<59x120xi32>
    %cst_23 = arith.constant 1.000000e+00 : f32
    %cst_24 = arith.constant 0.000000e+00 : f32
    %50 = vector.broadcast %cst_23 : f32 to vector<59x120xf32>
    %51 = vector.broadcast %cst_24 : f32 to vector<59x120xf32>
    %52 = arith.select %49, %50, %51 : vector<59x120xi1>, vector<59x120xf32>
    %53 = arith.truncf %52 : vector<59x120xf32> to vector<59x120xbf16>
    %cst_25 = arith.constant dense<0.000000e+00> : vector<59x512xf32>
    %54 = tpu.matmul %53, %11, %cst_25 {dimension_numbers = #tpu.dot_dimension_numbers<[1], [0], [0], [1], [0, 0, 1, 1], [], []>} : vector<59x120xbf16>, vector<120x512xbf16>, vector<59x512xf32> -> vector<59x512xf32>
    %55 = arith.truncf %54 : vector<59x512xf32> to vector<59x512xbf16>
    %c2 = arith.constant 2 : index
    %c0_26 = arith.constant 0 : index
    %c0_27 = arith.constant 0 : index
    %56 = vector.load %arg3[%c2, %c0_26, %c0_27] : memref<4x512x512xbf16, #tpu.memory_space<vmem>>, vector<1x512x512xbf16>
    %57 = vector.shape_cast %56 : vector<1x512x512xbf16> to vector<512x512xbf16>
    %cst_28 = arith.constant dense<0.000000e+00> : vector<59x512xf32>
    %58 = tpu.matmul %55, %57, %cst_28 {dimension_numbers = #tpu.dot_dimension_numbers<[1], [0], [0], [1], [0, 0, 1, 1], [], []>} : vector<59x512xbf16>, vector<512x512xbf16>, vector<59x512xf32> -> vector<59x512xf32>
    %59 = arith.addf %44, %58 : vector<59x512xf32>
    %c2_i32_29 = arith.constant 2 : i32
    %60 = vector.broadcast %c2_i32_29 : i32 to vector<59x120xi32>
    %61 = arith.muli %60, %12 : vector<59x120xi32>
    %c3_i32 = arith.constant 3 : i32
    %62 = vector.broadcast %c3_i32 : i32 to vector<59x120xi32>
    %63 = arith.addi %61, %62 : vector<59x120xi32>
    %64 = arith.cmpi eq, %13, %63 : vector<59x120xi32>
    %cst_30 = arith.constant 1.000000e+00 : f32
    %cst_31 = arith.constant 0.000000e+00 : f32
    %65 = vector.broadcast %cst_30 : f32 to vector<59x120xf32>
    %66 = vector.broadcast %cst_31 : f32 to vector<59x120xf32>
    %67 = arith.select %64, %65, %66 : vector<59x120xi1>, vector<59x120xf32>
    %68 = arith.truncf %67 : vector<59x120xf32> to vector<59x120xbf16>
    %cst_32 = arith.constant dense<0.000000e+00> : vector<59x512xf32>
    %69 = tpu.matmul %68, %11, %cst_32 {dimension_numbers = #tpu.dot_dimension_numbers<[1], [0], [0], [1], [0, 0, 1, 1], [], []>} : vector<59x120xbf16>, vector<120x512xbf16>, vector<59x512xf32> -> vector<59x512xf32>
    %70 = arith.truncf %69 : vector<59x512xf32> to vector<59x512xbf16>
    %c3 = arith.constant 3 : index
    %c0_33 = arith.constant 0 : index
    %c0_34 = arith.constant 0 : index
    %71 = vector.load %arg3[%c3, %c0_33, %c0_34] : memref<4x512x512xbf16, #tpu.memory_space<vmem>>, vector<1x512x512xbf16>
    %72 = vector.shape_cast %71 : vector<1x512x512xbf16> to vector<512x512xbf16>
    %cst_35 = arith.constant dense<0.000000e+00> : vector<59x512xf32>
    %73 = tpu.matmul %70, %72, %cst_35 {dimension_numbers = #tpu.dot_dimension_numbers<[1], [0], [0], [1], [0, 0, 1, 1], [], []>} : vector<59x512xbf16>, vector<512x512xbf16>, vector<59x512xf32> -> vector<59x512xf32>
    %74 = arith.addf %59, %73 : vector<59x512xf32>
    %c0_36 = arith.constant 0 : index
    %c0_37 = arith.constant 0 : index
    %75 = vector.load %arg4[%c0_36, %c0_37] : memref<1x512xf32, #tpu.memory_space<vmem>>, vector<1x512xf32>
    %76 = vector.broadcast %75 : vector<1x512xf32> to vector<59x512xf32>
    %77 = arith.addf %74, %76 : vector<59x512xf32>
    %cst_38 = arith.constant 0.000000e+00 : f32
    %78 = vector.broadcast %cst_38 : f32 to vector<59x512xf32>
    %79 = arith.maximumf %77, %78 : vector<59x512xf32>
    %80 = arith.truncf %79 : vector<59x512xf32> to vector<59x512xbf16>
    %81 = tpu.iota {dimensions = array<i32: 0>} : vector<29x59xi32>
    %82 = tpu.iota {dimensions = array<i32: 1>} : vector<29x59xi32>
    %cst_39 = arith.constant 0.000000e+00 : f32
    %83 = vector.broadcast %cst_39 : f32 to vector<29x256xf32>
    %c2_i32_40 = arith.constant 2 : i32
    %84 = vector.broadcast %c2_i32_40 : i32 to vector<29x59xi32>
    %85 = arith.muli %84, %81 : vector<29x59xi32>
    %c0_i32_41 = arith.constant 0 : i32
    %86 = vector.broadcast %c0_i32_41 : i32 to vector<29x59xi32>
    %87 = arith.addi %85, %86 : vector<29x59xi32>
    %88 = arith.cmpi eq, %82, %87 : vector<29x59xi32>
    %cst_42 = arith.constant 1.000000e+00 : f32
    %cst_43 = arith.constant 0.000000e+00 : f32
    %89 = vector.broadcast %cst_42 : f32 to vector<29x59xf32>
    %90 = vector.broadcast %cst_43 : f32 to vector<29x59xf32>
    %91 = arith.select %88, %89, %90 : vector<29x59xi1>, vector<29x59xf32>
    %92 = arith.truncf %91 : vector<29x59xf32> to vector<29x59xbf16>
    %cst_44 = arith.constant dense<0.000000e+00> : vector<29x512xf32>
    %93 = tpu.matmul %92, %80, %cst_44 {dimension_numbers = #tpu.dot_dimension_numbers<[1], [0], [0], [1], [0, 0, 1, 1], [], []>} : vector<29x59xbf16>, vector<59x512xbf16>, vector<29x512xf32> -> vector<29x512xf32>
    %94 = arith.truncf %93 : vector<29x512xf32> to vector<29x512xbf16>
    %c0_45 = arith.constant 0 : index
    %c0_46 = arith.constant 0 : index
    %c0_47 = arith.constant 0 : index
    %95 = vector.load %arg5[%c0_45, %c0_46, %c0_47] : memref<3x512x256xbf16, #tpu.memory_space<vmem>>, vector<1x512x256xbf16>
    %96 = vector.shape_cast %95 : vector<1x512x256xbf16> to vector<512x256xbf16>
    %cst_48 = arith.constant dense<0.000000e+00> : vector<29x256xf32>
    %97 = tpu.matmul %94, %96, %cst_48 {dimension_numbers = #tpu.dot_dimension_numbers<[1], [0], [0], [1], [0, 0, 1, 1], [], []>} : vector<29x512xbf16>, vector<512x256xbf16>, vector<29x256xf32> -> vector<29x256xf32>
    %98 = arith.addf %83, %97 : vector<29x256xf32>
    %c2_i32_49 = arith.constant 2 : i32
    %99 = vector.broadcast %c2_i32_49 : i32 to vector<29x59xi32>
    %100 = arith.muli %99, %81 : vector<29x59xi32>
    %c1_i32_50 = arith.constant 1 : i32
    %101 = vector.broadcast %c1_i32_50 : i32 to vector<29x59xi32>
    %102 = arith.addi %100, %101 : vector<29x59xi32>
    %103 = arith.cmpi eq, %82, %102 : vector<29x59xi32>
    %cst_51 = arith.constant 1.000000e+00 : f32
    %cst_52 = arith.constant 0.000000e+00 : f32
    %104 = vector.broadcast %cst_51 : f32 to vector<29x59xf32>
    %105 = vector.broadcast %cst_52 : f32 to vector<29x59xf32>
    %106 = arith.select %103, %104, %105 : vector<29x59xi1>, vector<29x59xf32>
    %107 = arith.truncf %106 : vector<29x59xf32> to vector<29x59xbf16>
    %cst_53 = arith.constant dense<0.000000e+00> : vector<29x512xf32>
    %108 = tpu.matmul %107, %80, %cst_53 {dimension_numbers = #tpu.dot_dimension_numbers<[1], [0], [0], [1], [0, 0, 1, 1], [], []>} : vector<29x59xbf16>, vector<59x512xbf16>, vector<29x512xf32> -> vector<29x512xf32>
    %109 = arith.truncf %108 : vector<29x512xf32> to vector<29x512xbf16>
    %c1_54 = arith.constant 1 : index
    %c0_55 = arith.constant 0 : index
    %c0_56 = arith.constant 0 : index
    %110 = vector.load %arg5[%c1_54, %c0_55, %c0_56] : memref<3x512x256xbf16, #tpu.memory_space<vmem>>, vector<1x512x256xbf16>
    %111 = vector.shape_cast %110 : vector<1x512x256xbf16> to vector<512x256xbf16>
    %cst_57 = arith.constant dense<0.000000e+00> : vector<29x256xf32>
    %112 = tpu.matmul %109, %111, %cst_57 {dimension_numbers = #tpu.dot_dimension_numbers<[1], [0], [0], [1], [0, 0, 1, 1], [], []>} : vector<29x512xbf16>, vector<512x256xbf16>, vector<29x256xf32> -> vector<29x256xf32>
    %113 = arith.addf %98, %112 : vector<29x256xf32>
    %c2_i32_58 = arith.constant 2 : i32
    %114 = vector.broadcast %c2_i32_58 : i32 to vector<29x59xi32>
    %115 = arith.muli %114, %81 : vector<29x59xi32>
    %c2_i32_59 = arith.constant 2 : i32
    %116 = vector.broadcast %c2_i32_59 : i32 to vector<29x59xi32>
    %117 = arith.addi %115, %116 : vector<29x59xi32>
    %118 = arith.cmpi eq, %82, %117 : vector<29x59xi32>
    %cst_60 = arith.constant 1.000000e+00 : f32
    %cst_61 = arith.constant 0.000000e+00 : f32
    %119 = vector.broadcast %cst_60 : f32 to vector<29x59xf32>
    %120 = vector.broadcast %cst_61 : f32 to vector<29x59xf32>
    %121 = arith.select %118, %119, %120 : vector<29x59xi1>, vector<29x59xf32>
    %122 = arith.truncf %121 : vector<29x59xf32> to vector<29x59xbf16>
    %cst_62 = arith.constant dense<0.000000e+00> : vector<29x512xf32>
    %123 = tpu.matmul %122, %80, %cst_62 {dimension_numbers = #tpu.dot_dimension_numbers<[1], [0], [0], [1], [0, 0, 1, 1], [], []>} : vector<29x59xbf16>, vector<59x512xbf16>, vector<29x512xf32> -> vector<29x512xf32>
    %124 = arith.truncf %123 : vector<29x512xf32> to vector<29x512xbf16>
    %c2_63 = arith.constant 2 : index
    %c0_64 = arith.constant 0 : index
    %c0_65 = arith.constant 0 : index
    %125 = vector.load %arg5[%c2_63, %c0_64, %c0_65] : memref<3x512x256xbf16, #tpu.memory_space<vmem>>, vector<1x512x256xbf16>
    %126 = vector.shape_cast %125 : vector<1x512x256xbf16> to vector<512x256xbf16>
    %cst_66 = arith.constant dense<0.000000e+00> : vector<29x256xf32>
    %127 = tpu.matmul %124, %126, %cst_66 {dimension_numbers = #tpu.dot_dimension_numbers<[1], [0], [0], [1], [0, 0, 1, 1], [], []>} : vector<29x512xbf16>, vector<512x256xbf16>, vector<29x256xf32> -> vector<29x256xf32>
    %128 = arith.addf %113, %127 : vector<29x256xf32>
    %c0_67 = arith.constant 0 : index
    %c0_68 = arith.constant 0 : index
    %129 = vector.load %arg6[%c0_67, %c0_68] : memref<1x256xf32, #tpu.memory_space<vmem>>, vector<1x256xf32>
    %130 = vector.broadcast %129 : vector<1x256xf32> to vector<29x256xf32>
    %131 = arith.addf %128, %130 : vector<29x256xf32>
    %cst_69 = arith.constant 0.000000e+00 : f32
    %132 = vector.broadcast %cst_69 : f32 to vector<29x256xf32>
    %133 = arith.maximumf %131, %132 : vector<29x256xf32>
    %134 = arith.truncf %133 : vector<29x256xf32> to vector<29x256xbf16>
    %135 = tpu.iota {dimensions = array<i32: 0>} : vector<14x29xi32>
    %136 = tpu.iota {dimensions = array<i32: 1>} : vector<14x29xi32>
    %cst_70 = arith.constant 0.000000e+00 : f32
    %137 = vector.broadcast %cst_70 : f32 to vector<14x256xf32>
    %c2_i32_71 = arith.constant 2 : i32
    %138 = vector.broadcast %c2_i32_71 : i32 to vector<14x29xi32>
    %139 = arith.muli %138, %135 : vector<14x29xi32>
    %c0_i32_72 = arith.constant 0 : i32
    %140 = vector.broadcast %c0_i32_72 : i32 to vector<14x29xi32>
    %141 = arith.addi %139, %140 : vector<14x29xi32>
    %142 = arith.cmpi eq, %136, %141 : vector<14x29xi32>
    %cst_73 = arith.constant 1.000000e+00 : f32
    %cst_74 = arith.constant 0.000000e+00 : f32
    %143 = vector.broadcast %cst_73 : f32 to vector<14x29xf32>
    %144 = vector.broadcast %cst_74 : f32 to vector<14x29xf32>
    %145 = arith.select %142, %143, %144 : vector<14x29xi1>, vector<14x29xf32>
    %146 = arith.truncf %145 : vector<14x29xf32> to vector<14x29xbf16>
    %cst_75 = arith.constant dense<0.000000e+00> : vector<14x256xf32>
    %147 = tpu.matmul %146, %134, %cst_75 {dimension_numbers = #tpu.dot_dimension_numbers<[1], [0], [0], [1], [0, 0, 1, 1], [], []>} : vector<14x29xbf16>, vector<29x256xbf16>, vector<14x256xf32> -> vector<14x256xf32>
    %148 = arith.truncf %147 : vector<14x256xf32> to vector<14x256xbf16>
    %c0_76 = arith.constant 0 : index
    %c0_77 = arith.constant 0 : index
    %c0_78 = arith.constant 0 : index
    %149 = vector.load %arg7[%c0_76, %c0_77, %c0_78] : memref<3x256x256xbf16, #tpu.memory_space<vmem>>, vector<1x256x256xbf16>
    %150 = vector.shape_cast %149 : vector<1x256x256xbf16> to vector<256x256xbf16>
    %cst_79 = arith.constant dense<0.000000e+00> : vector<14x256xf32>
    %151 = tpu.matmul %148, %150, %cst_79 {dimension_numbers = #tpu.dot_dimension_numbers<[1], [0], [0], [1], [0, 0, 1, 1], [], []>} : vector<14x256xbf16>, vector<256x256xbf16>, vector<14x256xf32> -> vector<14x256xf32>
    %152 = arith.addf %137, %151 : vector<14x256xf32>
    %c2_i32_80 = arith.constant 2 : i32
    %153 = vector.broadcast %c2_i32_80 : i32 to vector<14x29xi32>
    %154 = arith.muli %153, %135 : vector<14x29xi32>
    %c1_i32_81 = arith.constant 1 : i32
    %155 = vector.broadcast %c1_i32_81 : i32 to vector<14x29xi32>
    %156 = arith.addi %154, %155 : vector<14x29xi32>
    %157 = arith.cmpi eq, %136, %156 : vector<14x29xi32>
    %cst_82 = arith.constant 1.000000e+00 : f32
    %cst_83 = arith.constant 0.000000e+00 : f32
    %158 = vector.broadcast %cst_82 : f32 to vector<14x29xf32>
    %159 = vector.broadcast %cst_83 : f32 to vector<14x29xf32>
    %160 = arith.select %157, %158, %159 : vector<14x29xi1>, vector<14x29xf32>
    %161 = arith.truncf %160 : vector<14x29xf32> to vector<14x29xbf16>
    %cst_84 = arith.constant dense<0.000000e+00> : vector<14x256xf32>
    %162 = tpu.matmul %161, %134, %cst_84 {dimension_numbers = #tpu.dot_dimension_numbers<[1], [0], [0], [1], [0, 0, 1, 1], [], []>} : vector<14x29xbf16>, vector<29x256xbf16>, vector<14x256xf32> -> vector<14x256xf32>
    %163 = arith.truncf %162 : vector<14x256xf32> to vector<14x256xbf16>
    %c1_85 = arith.constant 1 : index
    %c0_86 = arith.constant 0 : index
    %c0_87 = arith.constant 0 : index
    %164 = vector.load %arg7[%c1_85, %c0_86, %c0_87] : memref<3x256x256xbf16, #tpu.memory_space<vmem>>, vector<1x256x256xbf16>
    %165 = vector.shape_cast %164 : vector<1x256x256xbf16> to vector<256x256xbf16>
    %cst_88 = arith.constant dense<0.000000e+00> : vector<14x256xf32>
    %166 = tpu.matmul %163, %165, %cst_88 {dimension_numbers = #tpu.dot_dimension_numbers<[1], [0], [0], [1], [0, 0, 1, 1], [], []>} : vector<14x256xbf16>, vector<256x256xbf16>, vector<14x256xf32> -> vector<14x256xf32>
    %167 = arith.addf %152, %166 : vector<14x256xf32>
    %c2_i32_89 = arith.constant 2 : i32
    %168 = vector.broadcast %c2_i32_89 : i32 to vector<14x29xi32>
    %169 = arith.muli %168, %135 : vector<14x29xi32>
    %c2_i32_90 = arith.constant 2 : i32
    %170 = vector.broadcast %c2_i32_90 : i32 to vector<14x29xi32>
    %171 = arith.addi %169, %170 : vector<14x29xi32>
    %172 = arith.cmpi eq, %136, %171 : vector<14x29xi32>
    %cst_91 = arith.constant 1.000000e+00 : f32
    %cst_92 = arith.constant 0.000000e+00 : f32
    %173 = vector.broadcast %cst_91 : f32 to vector<14x29xf32>
    %174 = vector.broadcast %cst_92 : f32 to vector<14x29xf32>
    %175 = arith.select %172, %173, %174 : vector<14x29xi1>, vector<14x29xf32>
    %176 = arith.truncf %175 : vector<14x29xf32> to vector<14x29xbf16>
    %cst_93 = arith.constant dense<0.000000e+00> : vector<14x256xf32>
    %177 = tpu.matmul %176, %134, %cst_93 {dimension_numbers = #tpu.dot_dimension_numbers<[1], [0], [0], [1], [0, 0, 1, 1], [], []>} : vector<14x29xbf16>, vector<29x256xbf16>, vector<14x256xf32> -> vector<14x256xf32>
    %178 = arith.truncf %177 : vector<14x256xf32> to vector<14x256xbf16>
    %c2_94 = arith.constant 2 : index
    %c0_95 = arith.constant 0 : index
    %c0_96 = arith.constant 0 : index
    %179 = vector.load %arg7[%c2_94, %c0_95, %c0_96] : memref<3x256x256xbf16, #tpu.memory_space<vmem>>, vector<1x256x256xbf16>
    %180 = vector.shape_cast %179 : vector<1x256x256xbf16> to vector<256x256xbf16>
    %cst_97 = arith.constant dense<0.000000e+00> : vector<14x256xf32>
    %181 = tpu.matmul %178, %180, %cst_97 {dimension_numbers = #tpu.dot_dimension_numbers<[1], [0], [0], [1], [0, 0, 1, 1], [], []>} : vector<14x256xbf16>, vector<256x256xbf16>, vector<14x256xf32> -> vector<14x256xf32>
    %182 = arith.addf %167, %181 : vector<14x256xf32>
    %c0_98 = arith.constant 0 : index
    %c0_99 = arith.constant 0 : index
    %183 = vector.load %arg8[%c0_98, %c0_99] : memref<1x256xf32, #tpu.memory_space<vmem>>, vector<1x256xf32>
    %184 = vector.broadcast %183 : vector<1x256xf32> to vector<14x256xf32>
    %185 = arith.addf %182, %184 : vector<14x256xf32>
    %cst_100 = arith.constant 0.000000e+00 : f32
    %186 = vector.broadcast %cst_100 : f32 to vector<14x256xf32>
    %187 = arith.maximumf %185, %186 : vector<14x256xf32>
    %188 = arith.truncf %187 : vector<14x256xf32> to vector<14x256xbf16>
    %189 = tpu.iota {dimensions = array<i32: 0>} : vector<7x14xi32>
    %190 = tpu.iota {dimensions = array<i32: 1>} : vector<7x14xi32>
    %cst_101 = arith.constant 0.000000e+00 : f32
    %191 = vector.broadcast %cst_101 : f32 to vector<7x512xf32>
    %c2_i32_102 = arith.constant 2 : i32
    %192 = vector.broadcast %c2_i32_102 : i32 to vector<7x14xi32>
    %193 = arith.muli %192, %189 : vector<7x14xi32>
    %c0_i32_103 = arith.constant 0 : i32
    %194 = vector.broadcast %c0_i32_103 : i32 to vector<7x14xi32>
    %195 = arith.addi %193, %194 : vector<7x14xi32>
    %196 = arith.cmpi eq, %190, %195 : vector<7x14xi32>
    %cst_104 = arith.constant 1.000000e+00 : f32
    %cst_105 = arith.constant 0.000000e+00 : f32
    %197 = vector.broadcast %cst_104 : f32 to vector<7x14xf32>
    %198 = vector.broadcast %cst_105 : f32 to vector<7x14xf32>
    %199 = arith.select %196, %197, %198 : vector<7x14xi1>, vector<7x14xf32>
    %200 = arith.truncf %199 : vector<7x14xf32> to vector<7x14xbf16>
    %cst_106 = arith.constant dense<0.000000e+00> : vector<7x256xf32>
    %201 = tpu.matmul %200, %188, %cst_106 {dimension_numbers = #tpu.dot_dimension_numbers<[1], [0], [0], [1], [0, 0, 1, 1], [], []>} : vector<7x14xbf16>, vector<14x256xbf16>, vector<7x256xf32> -> vector<7x256xf32>
    %202 = arith.truncf %201 : vector<7x256xf32> to vector<7x256xbf16>
    %c0_107 = arith.constant 0 : index
    %c0_108 = arith.constant 0 : index
    %c0_109 = arith.constant 0 : index
    %203 = vector.load %arg9[%c0_107, %c0_108, %c0_109] : memref<2x256x512xbf16, #tpu.memory_space<vmem>>, vector<1x256x512xbf16>
    %204 = vector.shape_cast %203 : vector<1x256x512xbf16> to vector<256x512xbf16>
    %cst_110 = arith.constant dense<0.000000e+00> : vector<7x512xf32>
    %205 = tpu.matmul %202, %204, %cst_110 {dimension_numbers = #tpu.dot_dimension_numbers<[1], [0], [0], [1], [0, 0, 1, 1], [], []>} : vector<7x256xbf16>, vector<256x512xbf16>, vector<7x512xf32> -> vector<7x512xf32>
    %206 = arith.addf %191, %205 : vector<7x512xf32>
    %c2_i32_111 = arith.constant 2 : i32
    %207 = vector.broadcast %c2_i32_111 : i32 to vector<7x14xi32>
    %208 = arith.muli %207, %189 : vector<7x14xi32>
    %c1_i32_112 = arith.constant 1 : i32
    %209 = vector.broadcast %c1_i32_112 : i32 to vector<7x14xi32>
    %210 = arith.addi %208, %209 : vector<7x14xi32>
    %211 = arith.cmpi eq, %190, %210 : vector<7x14xi32>
    %cst_113 = arith.constant 1.000000e+00 : f32
    %cst_114 = arith.constant 0.000000e+00 : f32
    %212 = vector.broadcast %cst_113 : f32 to vector<7x14xf32>
    %213 = vector.broadcast %cst_114 : f32 to vector<7x14xf32>
    %214 = arith.select %211, %212, %213 : vector<7x14xi1>, vector<7x14xf32>
    %215 = arith.truncf %214 : vector<7x14xf32> to vector<7x14xbf16>
    %cst_115 = arith.constant dense<0.000000e+00> : vector<7x256xf32>
    %216 = tpu.matmul %215, %188, %cst_115 {dimension_numbers = #tpu.dot_dimension_numbers<[1], [0], [0], [1], [0, 0, 1, 1], [], []>} : vector<7x14xbf16>, vector<14x256xbf16>, vector<7x256xf32> -> vector<7x256xf32>
    %217 = arith.truncf %216 : vector<7x256xf32> to vector<7x256xbf16>
    %c1_116 = arith.constant 1 : index
    %c0_117 = arith.constant 0 : index
    %c0_118 = arith.constant 0 : index
    %218 = vector.load %arg9[%c1_116, %c0_117, %c0_118] : memref<2x256x512xbf16, #tpu.memory_space<vmem>>, vector<1x256x512xbf16>
    %219 = vector.shape_cast %218 : vector<1x256x512xbf16> to vector<256x512xbf16>
    %cst_119 = arith.constant dense<0.000000e+00> : vector<7x512xf32>
    %220 = tpu.matmul %217, %219, %cst_119 {dimension_numbers = #tpu.dot_dimension_numbers<[1], [0], [0], [1], [0, 0, 1, 1], [], []>} : vector<7x256xbf16>, vector<256x512xbf16>, vector<7x512xf32> -> vector<7x512xf32>
    %221 = arith.addf %206, %220 : vector<7x512xf32>
    %c0_120 = arith.constant 0 : index
    %c0_121 = arith.constant 0 : index
    %222 = vector.load %arg10[%c0_120, %c0_121] : memref<1x512xf32, #tpu.memory_space<vmem>>, vector<1x512xf32>
    %223 = vector.broadcast %222 : vector<1x512xf32> to vector<7x512xf32>
    %224 = arith.addf %221, %223 : vector<7x512xf32>
    %cst_122 = arith.constant 0.000000e+00 : f32
    %225 = vector.broadcast %cst_122 : f32 to vector<7x512xf32>
    %226 = arith.maximumf %224, %225 : vector<7x512xf32>
    %227 = arith.truncf %226 : vector<7x512xf32> to vector<7x512xbf16>
    %228 = tpu.iota {dimensions = array<i32: 0>} : vector<4x7xi32>
    %229 = tpu.iota {dimensions = array<i32: 1>} : vector<4x7xi32>
    %cst_123 = arith.constant 0.000000e+00 : f32
    %230 = vector.broadcast %cst_123 : f32 to vector<4x512xf32>
    %c1_i32_124 = arith.constant 1 : i32
    %231 = vector.broadcast %c1_i32_124 : i32 to vector<4x7xi32>
    %232 = arith.muli %231, %228 : vector<4x7xi32>
    %c0_i32_125 = arith.constant 0 : i32
    %233 = vector.broadcast %c0_i32_125 : i32 to vector<4x7xi32>
    %234 = arith.addi %232, %233 : vector<4x7xi32>
    %235 = arith.cmpi eq, %229, %234 : vector<4x7xi32>
    %cst_126 = arith.constant 1.000000e+00 : f32
    %cst_127 = arith.constant 0.000000e+00 : f32
    %236 = vector.broadcast %cst_126 : f32 to vector<4x7xf32>
    %237 = vector.broadcast %cst_127 : f32 to vector<4x7xf32>
    %238 = arith.select %235, %236, %237 : vector<4x7xi1>, vector<4x7xf32>
    %239 = arith.truncf %238 : vector<4x7xf32> to vector<4x7xbf16>
    %cst_128 = arith.constant dense<0.000000e+00> : vector<4x512xf32>
    %240 = tpu.matmul %239, %227, %cst_128 {dimension_numbers = #tpu.dot_dimension_numbers<[1], [0], [0], [1], [0, 0, 1, 1], [], []>} : vector<4x7xbf16>, vector<7x512xbf16>, vector<4x512xf32> -> vector<4x512xf32>
    %241 = arith.truncf %240 : vector<4x512xf32> to vector<4x512xbf16>
    %c0_129 = arith.constant 0 : index
    %c0_130 = arith.constant 0 : index
    %c0_131 = arith.constant 0 : index
    %242 = vector.load %arg11[%c0_129, %c0_130, %c0_131] : memref<4x512x512xbf16, #tpu.memory_space<vmem>>, vector<1x512x512xbf16>
    %243 = vector.shape_cast %242 : vector<1x512x512xbf16> to vector<512x512xbf16>
    %cst_132 = arith.constant dense<0.000000e+00> : vector<4x512xf32>
    %244 = tpu.matmul %241, %243, %cst_132 {dimension_numbers = #tpu.dot_dimension_numbers<[1], [0], [0], [1], [0, 0, 1, 1], [], []>} : vector<4x512xbf16>, vector<512x512xbf16>, vector<4x512xf32> -> vector<4x512xf32>
    %245 = arith.addf %230, %244 : vector<4x512xf32>
    %c1_i32_133 = arith.constant 1 : i32
    %246 = vector.broadcast %c1_i32_133 : i32 to vector<4x7xi32>
    %247 = arith.muli %246, %228 : vector<4x7xi32>
    %c1_i32_134 = arith.constant 1 : i32
    %248 = vector.broadcast %c1_i32_134 : i32 to vector<4x7xi32>
    %249 = arith.addi %247, %248 : vector<4x7xi32>
    %250 = arith.cmpi eq, %229, %249 : vector<4x7xi32>
    %cst_135 = arith.constant 1.000000e+00 : f32
    %cst_136 = arith.constant 0.000000e+00 : f32
    %251 = vector.broadcast %cst_135 : f32 to vector<4x7xf32>
    %252 = vector.broadcast %cst_136 : f32 to vector<4x7xf32>
    %253 = arith.select %250, %251, %252 : vector<4x7xi1>, vector<4x7xf32>
    %254 = arith.truncf %253 : vector<4x7xf32> to vector<4x7xbf16>
    %cst_137 = arith.constant dense<0.000000e+00> : vector<4x512xf32>
    %255 = tpu.matmul %254, %227, %cst_137 {dimension_numbers = #tpu.dot_dimension_numbers<[1], [0], [0], [1], [0, 0, 1, 1], [], []>} : vector<4x7xbf16>, vector<7x512xbf16>, vector<4x512xf32> -> vector<4x512xf32>
    %256 = arith.truncf %255 : vector<4x512xf32> to vector<4x512xbf16>
    %c1_138 = arith.constant 1 : index
    %c0_139 = arith.constant 0 : index
    %c0_140 = arith.constant 0 : index
    %257 = vector.load %arg11[%c1_138, %c0_139, %c0_140] : memref<4x512x512xbf16, #tpu.memory_space<vmem>>, vector<1x512x512xbf16>
    %258 = vector.shape_cast %257 : vector<1x512x512xbf16> to vector<512x512xbf16>
    %cst_141 = arith.constant dense<0.000000e+00> : vector<4x512xf32>
    %259 = tpu.matmul %256, %258, %cst_141 {dimension_numbers = #tpu.dot_dimension_numbers<[1], [0], [0], [1], [0, 0, 1, 1], [], []>} : vector<4x512xbf16>, vector<512x512xbf16>, vector<4x512xf32> -> vector<4x512xf32>
    %260 = arith.addf %245, %259 : vector<4x512xf32>
    %c1_i32_142 = arith.constant 1 : i32
    %261 = vector.broadcast %c1_i32_142 : i32 to vector<4x7xi32>
    %262 = arith.muli %261, %228 : vector<4x7xi32>
    %c2_i32_143 = arith.constant 2 : i32
    %263 = vector.broadcast %c2_i32_143 : i32 to vector<4x7xi32>
    %264 = arith.addi %262, %263 : vector<4x7xi32>
    %265 = arith.cmpi eq, %229, %264 : vector<4x7xi32>
    %cst_144 = arith.constant 1.000000e+00 : f32
    %cst_145 = arith.constant 0.000000e+00 : f32
    %266 = vector.broadcast %cst_144 : f32 to vector<4x7xf32>
    %267 = vector.broadcast %cst_145 : f32 to vector<4x7xf32>
    %268 = arith.select %265, %266, %267 : vector<4x7xi1>, vector<4x7xf32>
    %269 = arith.truncf %268 : vector<4x7xf32> to vector<4x7xbf16>
    %cst_146 = arith.constant dense<0.000000e+00> : vector<4x512xf32>
    %270 = tpu.matmul %269, %227, %cst_146 {dimension_numbers = #tpu.dot_dimension_numbers<[1], [0], [0], [1], [0, 0, 1, 1], [], []>} : vector<4x7xbf16>, vector<7x512xbf16>, vector<4x512xf32> -> vector<4x512xf32>
    %271 = arith.truncf %270 : vector<4x512xf32> to vector<4x512xbf16>
    %c2_147 = arith.constant 2 : index
    %c0_148 = arith.constant 0 : index
    %c0_149 = arith.constant 0 : index
    %272 = vector.load %arg11[%c2_147, %c0_148, %c0_149] : memref<4x512x512xbf16, #tpu.memory_space<vmem>>, vector<1x512x512xbf16>
    %273 = vector.shape_cast %272 : vector<1x512x512xbf16> to vector<512x512xbf16>
    %cst_150 = arith.constant dense<0.000000e+00> : vector<4x512xf32>
    %274 = tpu.matmul %271, %273, %cst_150 {dimension_numbers = #tpu.dot_dimension_numbers<[1], [0], [0], [1], [0, 0, 1, 1], [], []>} : vector<4x512xbf16>, vector<512x512xbf16>, vector<4x512xf32> -> vector<4x512xf32>
    %275 = arith.addf %260, %274 : vector<4x512xf32>
    %c1_i32_151 = arith.constant 1 : i32
    %276 = vector.broadcast %c1_i32_151 : i32 to vector<4x7xi32>
    %277 = arith.muli %276, %228 : vector<4x7xi32>
    %c3_i32_152 = arith.constant 3 : i32
    %278 = vector.broadcast %c3_i32_152 : i32 to vector<4x7xi32>
    %279 = arith.addi %277, %278 : vector<4x7xi32>
    %280 = arith.cmpi eq, %229, %279 : vector<4x7xi32>
    %cst_153 = arith.constant 1.000000e+00 : f32
    %cst_154 = arith.constant 0.000000e+00 : f32
    %281 = vector.broadcast %cst_153 : f32 to vector<4x7xf32>
    %282 = vector.broadcast %cst_154 : f32 to vector<4x7xf32>
    %283 = arith.select %280, %281, %282 : vector<4x7xi1>, vector<4x7xf32>
    %284 = arith.truncf %283 : vector<4x7xf32> to vector<4x7xbf16>
    %cst_155 = arith.constant dense<0.000000e+00> : vector<4x512xf32>
    %285 = tpu.matmul %284, %227, %cst_155 {dimension_numbers = #tpu.dot_dimension_numbers<[1], [0], [0], [1], [0, 0, 1, 1], [], []>} : vector<4x7xbf16>, vector<7x512xbf16>, vector<4x512xf32> -> vector<4x512xf32>
    %286 = arith.truncf %285 : vector<4x512xf32> to vector<4x512xbf16>
    %c3_156 = arith.constant 3 : index
    %c0_157 = arith.constant 0 : index
    %c0_158 = arith.constant 0 : index
    %287 = vector.load %arg11[%c3_156, %c0_157, %c0_158] : memref<4x512x512xbf16, #tpu.memory_space<vmem>>, vector<1x512x512xbf16>
    %288 = vector.shape_cast %287 : vector<1x512x512xbf16> to vector<512x512xbf16>
    %cst_159 = arith.constant dense<0.000000e+00> : vector<4x512xf32>
    %289 = tpu.matmul %286, %288, %cst_159 {dimension_numbers = #tpu.dot_dimension_numbers<[1], [0], [0], [1], [0, 0, 1, 1], [], []>} : vector<4x512xbf16>, vector<512x512xbf16>, vector<4x512xf32> -> vector<4x512xf32>
    %290 = arith.addf %275, %289 : vector<4x512xf32>
    %c0_160 = arith.constant 0 : index
    %c0_161 = arith.constant 0 : index
    %291 = vector.load %arg12[%c0_160, %c0_161] : memref<1x512xf32, #tpu.memory_space<vmem>>, vector<1x512xf32>
    %292 = vector.broadcast %291 : vector<1x512xf32> to vector<4x512xf32>
    %293 = arith.addf %290, %292 : vector<4x512xf32>
    %cst_162 = arith.constant 0.000000e+00 : f32
    %294 = vector.broadcast %cst_162 : f32 to vector<4x512xf32>
    %295 = arith.maximumf %293, %294 : vector<4x512xf32>
    %296 = arith.truncf %295 : vector<4x512xf32> to vector<4x512xbf16>
    %297 = arith.extf %296 : vector<4x512xbf16> to vector<4x512xf32>
    %cst_163 = arith.constant dense<0xFF800000> : vector<512xf32>
    %298 = vector.multi_reduction <maximumf>, %297, %cst_163 [0] : vector<4x512xf32> to vector<512xf32>
    %299 = vector.shape_cast %298 : vector<512xf32> to vector<1x512xf32>
    %300 = arith.truncf %299 : vector<1x512xf32> to vector<1x512xbf16>
    %c0_164 = arith.constant 0 : index
    %c0_165 = arith.constant 0 : index
    %301 = vector.load %arg13[%c0_164, %c0_165] : memref<512x64xbf16, #tpu.memory_space<vmem>>, vector<512x64xbf16>
    %cst_166 = arith.constant dense<0.000000e+00> : vector<1x64xf32>
    %302 = tpu.matmul %300, %301, %cst_166 {dimension_numbers = #tpu.dot_dimension_numbers<[1], [0], [0], [1], [0, 0, 1, 1], [], []>} : vector<1x512xbf16>, vector<512x64xbf16>, vector<1x64xf32> -> vector<1x64xf32>
    %c0_167 = arith.constant 0 : index
    %c0_168 = arith.constant 0 : index
    %303 = vector.load %arg14[%c0_167, %c0_168] : memref<1x64xf32, #tpu.memory_space<vmem>>, vector<1x64xf32>
    %304 = arith.addf %302, %303 : vector<1x64xf32>
    %c0_169 = arith.constant 0 : index
    %c0_170 = arith.constant 0 : index
    %c0_171 = arith.constant 0 : index
    %305 = vector.load %arg15[%c0_169, %c0_170, %c0_171] : memref<1x1x64xf32, #tpu.memory_space<vmem>>, vector<1x1x64xf32>
    %306 = vector.shape_cast %305 : vector<1x1x64xf32> to vector<1x64xf32>
    %307 = vector.shape_cast %304 : vector<1x64xf32> to vector<1x1x64xf32>
    tpu.vector_store %arg15[%c0_169, %c0_170, %c0_171], %307 {strides = array<i32>} : memref<1x1x64xf32, #tpu.memory_space<vmem>>, vector<1x1x64xf32>,
    return
  }
  func.func @transform_0(%arg0: i32) -> (i32, i32, i32) {
    %c0_i32 = arith.constant 0 : i32
    %c0_i32_0 = arith.constant 0 : i32
    %c0_i32_1 = arith.constant 0 : i32
    return %arg0, %c0_i32, %c0_i32_0 : i32, i32, i32
  }
  func.func @transform_1(%arg0: i32) -> (i32, i32) {
    %c0_i32 = arith.constant 0 : i32
    %c0_i32_0 = arith.constant 0 : i32
    %c0_i32_1 = arith.constant 0 : i32
    return %c0_i32, %c0_i32_0 : i32, i32
  }
  func.func @transform_2(%arg0: i32) -> (i32, i32, i32) {
    %c0_i32 = arith.constant 0 : i32
    %c0_i32_0 = arith.constant 0 : i32
    %c0_i32_1 = arith.constant 0 : i32
    %c0_i32_2 = arith.constant 0 : i32
    return %c0_i32, %c0_i32_0, %c0_i32_1 : i32, i32, i32
  }
  func.func @transform_3(%arg0: i32) -> (i32, i32) {
    %c0_i32 = arith.constant 0 : i32
    %c0_i32_0 = arith.constant 0 : i32
    %c0_i32_1 = arith.constant 0 : i32
    return %c0_i32, %c0_i32_0 : i32, i32
  }
  func.func @transform_4(%arg0: i32) -> (i32, i32, i32) {
    %c0_i32 = arith.constant 0 : i32
    %c0_i32_0 = arith.constant 0 : i32
    %c0_i32_1 = arith.constant 0 : i32
    %c0_i32_2 = arith.constant 0 : i32
    return %c0_i32, %c0_i32_0, %c0_i32_1 : i32, i32, i32
  }
  func.func @transform_5(%arg0: i32) -> (i32, i32) {
    %c0_i32 = arith.constant 0 : i32
    %c0_i32_0 = arith.constant 0 : i32
    %c0_i32_1 = arith.constant 0 : i32
    return %c0_i32, %c0_i32_0 : i32, i32
  }
  func.func @transform_6(%arg0: i32) -> (i32, i32, i32) {
    %c0_i32 = arith.constant 0 : i32
    %c0_i32_0 = arith.constant 0 : i32
    %c0_i32_1 = arith.constant 0 : i32
    %c0_i32_2 = arith.constant 0 : i32
    return %c0_i32, %c0_i32_0, %c0_i32_1 : i32, i32, i32
  }
  func.func @transform_7(%arg0: i32) -> (i32, i32) {
    %c0_i32 = arith.constant 0 : i32
    %c0_i32_0 = arith.constant 0 : i32
    %c0_i32_1 = arith.constant 0 : i32
    return %c0_i32, %c0_i32_0 : i32, i32
  }
  func.func @transform_8(%arg0: i32) -> (i32, i32, i32) {
    %c0_i32 = arith.constant 0 : i32
    %c0_i32_0 = arith.constant 0 : i32
    %c0_i32_1 = arith.constant 0 : i32
    %c0_i32_2 = arith.constant 0 : i32
    return %c0_i32, %c0_i32_0, %c0_i32_1 : i32, i32, i32
  }
  func.func @transform_9(%arg0: i32) -> (i32, i32) {
    %c0_i32 = arith.constant 0 : i32
    %c0_i32_0 = arith.constant 0 : i32
    %c0_i32_1 = arith.constant 0 : i32
    return %c0_i32, %c0_i32_0 : i32, i32
  }
  func.func @transform_10(%arg0: i32) -> (i32, i32, i32) {
    %c0_i32 = arith.constant 0 : i32
    %c0_i32_0 = arith.constant 0 : i32
    %c0_i32_1 = arith.constant 0 : i32
    %c0_i32_2 = arith.constant 0 : i32
    return %c0_i32, %c0_i32_0, %c0_i32_1 : i32, i32, i32
  }
  func.func @transform_11(%arg0: i32) -> (i32, i32) {
    %c0_i32 = arith.constant 0 : i32
    %c0_i32_0 = arith.constant 0 : i32
    %c0_i32_1 = arith.constant 0 : i32
    return %c0_i32, %c0_i32_0 : i32, i32
  }
  func.func @transform_12(%arg0: i32) -> (i32, i32) {
    %c0_i32 = arith.constant 0 : i32
    %c0_i32_0 = arith.constant 0 : i32
    %c0_i32_1 = arith.constant 0 : i32
    return %c0_i32, %c0_i32_0 : i32, i32
  }
  func.func @transform_13(%arg0: i32) -> (i32, i32) {
    %c0_i32 = arith.constant 0 : i32
    %c0_i32_0 = arith.constant 0 : i32
    %c0_i32_1 = arith.constant 0 : i32
    return %c0_i32, %c0_i32_0 : i32, i32
  }
  func.func @transform_14(%arg0: i32) -> (i32, i32, i32) {
    %c0_i32 = arith.constant 0 : i32
    %c0_i32_0 = arith.constant 0 : i32
    %c0_i32_1 = arith.constant 0 : i32
    return %arg0, %c0_i32, %c0_i32_0 : i32, i32, i32
  }
}

</mosaic_0001>

<bundles_post_ra>
// kernel: _lambda_.1
= control target key start
LH: loop header
LB: loop body
LE: loop exit
PB: predicated region body
PF: predicated region fallthrough
CT: control target
= control target key end

     0   :  { %s21570_s0 = inlined_call_operand.vmem [shape: s32[2,120,1], index: 0, kind: input, shape index: {}]   ;;  %s21571_s1 = inlined_call_operand.hbm [shape: bf16[100,512], index: 1, kind: input, shape index: {}]   ;;  %s21572_s2 = inlined_call_operand.hbm [shape: bf16[4,512,512], index: 2, kind: input, shape index: {}]   ;;  %s21573_s3 = inlined_call_operand.hbm [shape: f32[1,512], index: 3, kind: input, shape index: {}]   ;;  %s21574_s4 = inlined_call_operand.hbm [shape: bf16[3,512,256], index: 4, kind: input, shape index: {}]   ;;  %s21575_s5 = inlined_call_operand.hbm [shape: f32[1,256], index: 5, kind: input, shape index: {}]   ;;  %s21576_s6 = inlined_call_operand.hbm [shape: bf16[3,256,256], index: 6, kind: input, shape index: {}]   ;;  %s21577_s7 = inlined_call_operand.hbm [shape: f32[1,256], index: 7, kind: input, shape index: {}]   ;;  %s21578_s8 = inlined_call_operand.hbm [shape: bf16[2,256,512], index: 8, kind: input, shape index: {}]   ;;  %s21579_s9 = inlined_call_operand.hbm [shape: f32[1,512], index: 9, kind: input, shape index: {}]   ;;  %s21580_s10 = inlined_call_operand.hbm [shape: bf16[4,512,512], index: 10, kind: input, shape index: {}]   ;;  %s21581_s11 = inlined_call_operand.hbm [shape: f32[1,512], index: 11, kind: input, shape index: {}]   ;;  %s21582_s12 = inlined_call_operand.hbm [shape: bf16[512,64], index: 12, kind: input, shape index: {}]   ;;  %s21583_s13 = inlined_call_operand.hbm [shape: f32[1,64], index: 13, kind: input, shape index: {}]   ;;  %s21584_s14 = inlined_call_operand.hbm [shape: f32[2,1,64], index: 14, kind: output, shape index: {}]  }
   0x1   :  { %21698 = sst [smem:[#allocation112_spill]] %s21572_s2 }
   0x2   :  { %21699 = sst [smem:[#allocation113_spill]] %s21574_s4 }
   0x3   :  { %21700 = sst [smem:[#allocation114_spill]] %s21584_s14 }
   0x4   :  { %19 = vsyncpa [#allocation3], 0 }
   0x5   :  { %20 = vsyncpa [#allocation6], 0 }
   0x6   :  { %21 = vsyncpa [#allocation9], 0 }
   0x7   :  { %22 = vsyncpa [#allocation12], 0 }
   0x8   :  { %23 = vsyncpa [#allocation15], 0 }
   0x9   :  { %24 = vsyncpa [#allocation18], 0 }
   0xa   :  { %25 = vsyncpa [#allocation21], 0 }
   0xb   :  { %26 = vsyncpa [#allocation4], 0 }
   0xc   :  { %28 = vsyncpa [#allocation4 + $0x1], 0  ;;  %s19598_s29 = smov 0   ;;  %s19600_s30 = smov 0  }
   0xd   :  { %s19602_s15 = smov 0   ;;  %s19604_s16 = smov 0  }
   0xe LB: > { %21701 = sst [smem:[#allocation32_spill]] %s19486_s29  ;;  %s19619_s17 = sadd.s32 4294967295, %s19498_s16   ;;  %s19498_s16 = sphi %s19604_s16, %s21973_s16   ;;  %s19494_s15 = sphi %s19602_s15, %s21975_s15   ;;  %s19490_s30 = sphi %s19600_s30, %s21977_s30   ;;  %s19486_s29 = sphi %s19598_s29, %s21976_s29  }
   0xf   : > { %21702 = sst [smem:[#allocation33_spill]] %s19494_s15  ;;  %s14995_s18 = sadd.s32 4294967294, %s19498_s16  }
  0x10   : > { %21703 = sst [smem:[#allocation34_spill]] %s19498_s16  ;;  %s19623_s19 = sadd.s32 1, %s19498_s16  }
  0x11   : > { %21704 = sst [smem:[#allocation35_spill]] %s19623_s19  ;;  %s340_s20 = sadd.s32 1, %s19494_s15 }
  0x12   : > { %s337_s21 = ssub.s32 %s19498_s16, %s19623_s19  ;;  %p350_p0 = scmp.ne.s32.totalorder %s19494_s15, %s19490_s30 }
  0x13   : > { %p338_p1 = scmp.eq.s32.totalorder %s337_s21, 0  ;;  %p351_p2 = scmp.eq.s32.totalorder %s19619_s17, 1 }
  0x14   : > { %p356_p3 = scmp.ne.s32.totalorder %s19490_s30, %s19486_s29  ;;  %p357_p4 = scmp.eq.s32.totalorder %s14995_s18, 1 }
  0x15   : > { %s19634_s22 = scalar_select %p338_p1, %s19494_s15, %s340_s20  }
  0x16   : > { %p19636_p5 = por %p351_p2, %p350_p0  ;;  %p19640_p6 = por %p357_p4, %p356_p3 }
  0x17   : > { %21705 = sst [smem:[#allocation36_spill]] %s19634_s22  ;;  %p14996_p7 = scmp.ge.s32.totalorder %s19498_s16, 1 }
  0x18   : > { %s21706_s23 = scalar_select %p19636_p5, 1, 0 }
  0x19   : > { %s21707_s24 = scalar_select %p19640_p6, 1, 0 }
  0x1a   : > { %p364_p8 = scmp.lt.s32.totalorder %s19498_s16, 3  ;;  %p21596_p9 = scmp.eq.s32.totalorder %s19619_s17, 0 }
  0x1b   : > { %21708 = sst [smem:[#allocation37_spill]] %s21707_s24  ;;  %s19500_s26 = smov [#allocation5]  }
  0x1c   : > { %p19647_p10 = pnand %p14996_p7, %p364_p8  ;;  %s389_s27 = sshll.u32 %s19500_s26, 4  ;;  %s390_s27 = int_to_ptr.vmem [resolvable:$true] %s389_s27 }
  0x1d   : > { %s19501_s18 = smov [#allocation8]   ;;  %s19083_s22 = scalar_lea.vmem %s390_s27, 65536 }
  0x1e   : > { %s21709_s25 = scalar_select %p19647_p10, 1, 0 }
  0x1f   : > { %p16713_p11 = pneg %p19647_p10  ;;  %s413_s20 = sshll.u32 %s19501_s18, 4  ;;  %s414_s20 = int_to_ptr.vmem [resolvable:$true] %s413_s20 }
  0x20   : > { %p19084_p0 = scmp.ne.s32.totalorder %s390_s27, %s19083_s22  ;;  %p19091_p3 = scmp.lt.s32.totalorder %s390_s27, %s390_s27 }
  0x21   : > { %p19655_p12 = pnand %p21596_p9, %p16713_p11  ;;  %p19092_p4 = scmp.lt.s32.totalorder %s19083_s22, %s19083_s22 }
  0x23   : > { %p19661_p13 = pneg %p19655_p12  ;;  %p19093_p7 = por %p19092_p4, %p19091_p3 }
  0x25   : > { %p19086_p1 = pnand %p19084_p0, %p19661_p13 }
  0x27   : > { %p19087_p2 = pneg %p19086_p1 }
  0x29   : > { %p19094_p8 = pnand %p19093_p7, %p19087_p2 }
  0x2b   : > { %19097 = shalt.err (!%p19094_p8)
}
  0x2c   : > { %s21592_s26 = smov 256   ;;  %s21594_s18 = smov 16  }
  0x2d   : > { %s21712_s2 = sld [smem:[#allocation112_spill]]  ;;  %s19109_s24 = scalar_lea.vmem %s414_s20, 24576 }
  0x2e   : > { %p19110_p11 = scmp.ne.s32.totalorder %s414_s20, %s19109_s24  ;;  %p19117_p3 = scmp.lt.s32.totalorder %s414_s20, %s414_s20 }
  0x2f   : > { %p19118_p2 = scmp.lt.s32.totalorder %s19109_s24, %s19109_s24 }
  0x30   : > { %p19112_p0 = pnand %p19110_p11, %p19661_p13 }
  0x31   : > { %p19119_p4 = por %p19118_p2, %p19117_p3 }
  0x32   : > { %p19113_p1 = pneg %p19112_p0 }
  0x33   : > { %16719 = dma.hbm_to_vmem [thread:$0]  (!%p19655_p12), %s21712_s2, 65536, %s390_s27, [#allocation6], %s21592_s26, %s21592_s26, %s21594_s18  }
  0x34   : > { %p19120_p7 = pnand %p19119_p4, %p19113_p1 }
  0x36   : > { %19123 = shalt.err (!%p19120_p7)
}
  0x37   : > { %s19504_s22 = smov 128   ;;  %s19505_s29 = smov 8  }
  0x38   : > { %s21713_s4 = sld [smem:[#allocation113_spill]]  ;;  %s19506_s15 = smov [#allocation11]  }
  0x39   : > { %s437_s19 = sshll.u32 %s19506_s15, 4  ;;  %s19507_s27 = smov [#allocation14]   ;;  %s438_s19 = int_to_ptr.vmem [resolvable:$true] %s437_s19 }
  0x3a   : > { %s461_s26 = sshll.u32 %s19507_s27, 4  ;;  %s19135_s18 = scalar_lea.vmem %s438_s19, 12288  ;;  %s462_s26 = int_to_ptr.vmem [resolvable:$true] %s461_s26 }
  0x3b   : > { %p19136_p8 = scmp.ne.s32.totalorder %s438_s19, %s19135_s18  ;;  %p19143_p1 = scmp.lt.s32.totalorder %s438_s19, %s438_s19 }
  0x3c   : > { %p19144_p3 = scmp.lt.s32.totalorder %s19135_s18, %s19135_s18 }
  0x3d   : > { %p19138_p11 = pnand %p19136_p8, %p19661_p13 }
  0x3e   : > { %16725 = dma.hbm_to_vmem [thread:$0]  (!%p19655_p12), %s21713_s4, 24576, %s414_s20, [#allocation9], %s19504_s22, %s19504_s22, %s19505_s29  }
  0x3f   : > { %p19139_p0 = pneg %p19138_p11  ;;  %p19145_p2 = por %p19144_p3, %p19143_p1 }
  0x41   : > { %p19146_p4 = pnand %p19145_p2, %p19139_p0 }
  0x43   : > { %19149 = shalt.err (!%p19146_p4)
}
  0x44   : > { %16731 = dma.hbm_to_vmem [thread:$0]  (!%p19655_p12), %s21576_s6, 12288, %s438_s19, [#allocation12], %s19504_s22, %s19504_s22, %s19505_s29  }
  0x45   : > { %s19161_s24 = scalar_lea.vmem %s462_s26, 16384  ;;  %p19169_p5 = scmp.lt.s32.totalorder %s462_s26, %s462_s26 }
  0x46   : > { %p19162_p7 = scmp.ne.s32.totalorder %s462_s26, %s19161_s24  ;;  %p19170_p8 = scmp.lt.s32.totalorder %s19161_s24, %s19161_s24 }
  0x48   : > { %p19164_p9 = pnand %p19162_p7, %p19661_p13  ;;  %p19171_p11 = por %p19170_p8, %p19169_p5 }
  0x4a   : > { %p19165_p6 = pneg %p19164_p9 }
  0x4c   : > { %p19172_p10 = pnand %p19171_p11, %p19165_p6 }
  0x4e   : > { %19175 = shalt.err (!%p19172_p10)
}
  0x4f   : > { %s21714_s20 = smov 16   ;;  %s21715_s18 = smov 256  }
  0x50   : > { %16737 = dma.hbm_to_vmem [thread:$0]  (!%p19655_p12), %s21578_s8, 16384, %s462_s26, [#allocation15], %s21715_s18, %s21715_s18, %s21714_s20  }
  0x51   : > { %s19508_s29 = smov [#allocation17]   ;;  %s19509_s19 = smov [#allocation20]  }
  0x52   : > { %s485_s22 = sshll.u32 %s19508_s29, 4  ;;  %s509_s14 = sshll.u32 %s19509_s19, 4  ;;  %s486_s22 = int_to_ptr.vmem [resolvable:$true] %s485_s22  ;;  %s510_s14 = int_to_ptr.vmem [resolvable:$true] %s509_s14 }
  0x53   : > { %s19187_s16 = scalar_lea.vmem %s486_s22, 65536  ;;  %p19195_p10 = scmp.lt.s32.totalorder %s486_s22, %s486_s22 }
  0x54   : > { %p19188_p5 = scmp.ne.s32.totalorder %s486_s22, %s19187_s16  ;;  %p19196_p0 = scmp.lt.s32.totalorder %s19187_s16, %s19187_s16 }
  0x56   : > { %p19190_p6 = pnand %p19188_p5, %p19661_p13  ;;  %p19197_p1 = por %p19196_p0, %p19195_p10 }
  0x58   : > { %p19191_p9 = pneg %p19190_p6 }
  0x5a   : > { %p19198_p3 = pnand %p19197_p1, %p19191_p9 }
  0x5c   : > { %19201 = shalt.err (!%p19198_p3)
}
  0x5d   : > { %16743 = dma.hbm_to_vmem [thread:$0]  (!%p19655_p12), %s21580_s10, 65536, %s486_s22, [#allocation18], %s21715_s18, %s21715_s18, %s21714_s20  }
  0x5e   : > { %s19213_s15 = scalar_lea.vmem %s510_s14, 4096  ;;  %p19221_p8 = scmp.lt.s32.totalorder %s510_s14, %s510_s14 }
  0x5f   : > { %p19214_p2 = scmp.ne.s32.totalorder %s510_s14, %s19213_s15  ;;  %p19222_p11 = scmp.lt.s32.totalorder %s19213_s15, %s19213_s15 }
  0x61   : > { %p19216_p4 = pnand %p19214_p2, %p19661_p13  ;;  %p19223_p5 = por %p19222_p11, %p19221_p8 }
  0x63   : > { %p19217_p7 = pneg %p19216_p4 }
  0x65   : > { %p19224_p6 = pnand %p19223_p5, %p19217_p7 }
  0x67   : > { %19227 = shalt.err (!%p19224_p6)
}
  0x68   : > { %s19510_s27 = smov 64   ;;  %s19511_s29 = smov 4  }
  0x69   : > { %16749 = dma.hbm_to_vmem [thread:$0]  (!%p19655_p12), %s21582_s12, 4096, %s510_s14, [#allocation21], %s19510_s27, %s19510_s27, %s19511_s29  }
  0x6a   : > { %s19512_s22 = smov [#allocation2]   ;;  %s19513_s24 = smov [#allocation7]  }
  0x6b   : > { %s376_s26 = sshll.u32 %s19512_s22, 4  ;;  %s403_s2 = sshll.u32 %s19513_s24, 4  ;;  %s377_s26 = int_to_ptr.vmem [resolvable:$true] %s376_s26  ;;  %s404_s2 = int_to_ptr.vmem [resolvable:$true] %s403_s2 }
  0x6c   : > { %s19239_s4 = scalar_lea.vmem %s377_s26, 3328  ;;  %p19247_p1 = scmp.lt.s32.totalorder %s377_s26, %s377_s26 }
  0x6d   : > { %p19240_p9 = scmp.ne.s32.totalorder %s377_s26, %s19239_s4  ;;  %p19248_p3 = scmp.lt.s32.totalorder %s19239_s4, %s19239_s4 }
  0x6f   : > { %p19242_p10 = pnand %p19240_p9, %p19661_p13  ;;  %p19249_p2 = por %p19248_p3, %p19247_p1 }
  0x71   : > { %p19243_p0 = pneg %p19242_p10 }
  0x73   : > { %p19250_p4 = pnand %p19249_p2, %p19243_p0 }
  0x75   : > { %19253 = shalt.err (!%p19250_p4)
}
  0x76   : > { %16716 = dma.hbm_to_vmem [thread:$0]  (!%p19655_p12), %s21571_s1, 3328, %s377_s26, [#allocation3], %s21715_s18, %s21715_s18, %s21714_s20  }
  0x77   : > { %s19265_s27 = scalar_lea.vmem %s404_s2, 64  ;;  %p19273_p5 = scmp.lt.s32.totalorder %s404_s2, %s404_s2 }
  0x78   : > { %p19266_p7 = scmp.ne.s32.totalorder %s404_s2, %s19265_s27  ;;  %p19274_p6 = scmp.lt.s32.totalorder %s19265_s27, %s19265_s27 }
  0x7a   : > { %p19268_p8 = pnand %p19266_p7, %p19661_p13  ;;  %p19275_p9 = por %p19274_p6, %p19273_p5 }
  0x7c   : > { %p19269_p11 = pneg %p19268_p8 }
  0x7e   : > { %p19276_p10 = pnand %p19275_p9, %p19269_p11 }
  0x80   : > { %19279 = shalt.err (!%p19276_p10)
}
  0x81   : > { %16722 = dma.hbm_to_vmem [thread:$0]  (!%p19655_p12), %s21573_s3, 64, %s404_s2, [#allocation6]  }
  0x82   : > { %s19514_s19 = smov [#allocation10]   ;;  %s19515_s20 = smov [#allocation13]  }
  0x83   : > { %s427_s16 = sshll.u32 %s19514_s19, 4  ;;  %s451_s18 = sshll.u32 %s19515_s20, 4  ;;  %s428_s16 = int_to_ptr.vmem [resolvable:$true] %s427_s16  ;;  %s452_s18 = int_to_ptr.vmem [resolvable:$true] %s451_s18 }
  0x84   : > { %s19291_s22 = scalar_lea.vmem %s428_s16, 32  ;;  %p19299_p2 = scmp.lt.s32.totalorder %s428_s16, %s428_s16 }
  0x85   : > { %p19292_p0 = scmp.ne.s32.totalorder %s428_s16, %s19291_s22  ;;  %p19300_p4 = scmp.lt.s32.totalorder %s19291_s22, %s19291_s22 }
  0x87   : > { %p19294_p1 = pnand %p19292_p0, %p19661_p13  ;;  %p19301_p7 = por %p19300_p4, %p19299_p2 }
  0x89   : > { %p19295_p3 = pneg %p19294_p1 }
  0x8b   : > { %p19302_p8 = pnand %p19301_p7, %p19295_p3 }
  0x8d   : > { %19305 = shalt.err (!%p19302_p8)
}
  0x8e   : > { %16728 = dma.hbm_to_vmem [thread:$0]  (!%p19655_p12), %s21575_s5, 32, %s428_s16, [#allocation9]  }
  0x8f   : > { %s19317_s24 = scalar_lea.vmem %s452_s18, 32  ;;  %p19325_p9 = scmp.lt.s32.totalorder %s452_s18, %s452_s18 }
  0x90   : > { %p19318_p11 = scmp.ne.s32.totalorder %s452_s18, %s19317_s24  ;;  %p19326_p10 = scmp.lt.s32.totalorder %s19317_s24, %s19317_s24 }
  0x92   : > { %p19320_p5 = pnand %p19318_p11, %p19661_p13  ;;  %p19327_p0 = por %p19326_p10, %p19325_p9 }
  0x94   : > { %p19321_p6 = pneg %p19320_p5 }
  0x96   : > { %p19328_p1 = pnand %p19327_p0, %p19321_p6 }
  0x98   : > { %19331 = shalt.err (!%p19328_p1)
}
  0x99   : > { %16734 = dma.hbm_to_vmem [thread:$0]  (!%p19655_p12), %s21577_s7, 32, %s452_s18, [#allocation12]  }
  0x9a   : > { %s19516_s27 = smov [#allocation16]   ;;  %s19517_s29 = smov [#allocation19]  }
  0x9b   : > { %s475_s4 = sshll.u32 %s19516_s27, 4  ;;  %s499_s19 = sshll.u32 %s19517_s29, 4  ;;  %s476_s4 = int_to_ptr.vmem [resolvable:$true] %s475_s4  ;;  %s500_s19 = int_to_ptr.vmem [resolvable:$true] %s499_s19 }
  0x9c   : > { %s19343_s16 = scalar_lea.vmem %s476_s4, 64  ;;  %p19351_p7 = scmp.lt.s32.totalorder %s476_s4, %s476_s4 }
  0x9d   : > { %p19344_p3 = scmp.ne.s32.totalorder %s476_s4, %s19343_s16  ;;  %p19352_p8 = scmp.lt.s32.totalorder %s19343_s16, %s19343_s16 }
  0x9f   : > { %p19346_p2 = pnand %p19344_p3, %p19661_p13  ;;  %p19353_p11 = por %p19352_p8, %p19351_p7 }
  0xa1   : > { %p19347_p4 = pneg %p19346_p2 }
  0xa3   : > { %p19354_p5 = pnand %p19353_p11, %p19347_p4 }
  0xa5   : > { %19357 = shalt.err (!%p19354_p5)
}
  0xa6   : > { %16740 = dma.hbm_to_vmem [thread:$0]  (!%p19655_p12), %s21579_s9, 64, %s476_s4, [#allocation15]  }
  0xa7   : > { %s19369_s22 = scalar_lea.vmem %s500_s19, 64  ;;  %p19377_p0 = scmp.lt.s32.totalorder %s500_s19, %s500_s19 }
  0xa8   : > { %p19370_p6 = scmp.ne.s32.totalorder %s500_s19, %s19369_s22  ;;  %p19378_p1 = scmp.lt.s32.totalorder %s19369_s22, %s19369_s22 }
  0xaa   : > { %p19372_p9 = pnand %p19370_p6, %p19661_p13  ;;  %p19379_p3 = por %p19378_p1, %p19377_p0 }
  0xac   : > { %p19373_p10 = pneg %p19372_p9 }
  0xae   : > { %p19380_p2 = pnand %p19379_p3, %p19373_p10 }
  0xb0   : > { %19383 = shalt.err (!%p19380_p2)
}
  0xb1   : > { %16746 = dma.hbm_to_vmem [thread:$0]  (!%p19655_p12), %s21581_s11, 64, %s500_s19, [#allocation18]  }
  0xb2   : > { %s19518_s24 = smov [#allocation22]  }
  0xb3   : > { %s523_s14 = sshll.u32 %s19518_s24, 4  ;;  %s524_s14 = int_to_ptr.vmem [resolvable:$true] %s523_s14 }
  0xb4   : > { %s19395_s15 = scalar_lea.vmem %s524_s14, 16  ;;  %s19402_s27 = scalar_lea.vmem %s524_s14, 32 }
  0xb5   : > { %p19396_p4 = scmp.ne.s32.totalorder %s524_s14, %s19395_s15  ;;  %p19403_p11 = scmp.lt.s32.totalorder %s524_s14, %s524_s14 }
  0xb6   : > { %p19404_p5 = scmp.lt.s32.totalorder %s19402_s27, %s19395_s15 }
  0xb7   : > { %p19398_p7 = pnand %p19396_p4, %p19661_p13 }
  0xb8   : > { %p19405_p6 = por %p19404_p5, %p19403_p11 }
  0xb9   : > { %p19399_p8 = pneg %p19398_p7 }
  0xbb   : > { %p19406_p9 = pnand %p19405_p6, %p19399_p8 }
  0xbd   : > { %19409 = shalt.err (!%p19406_p9)
}
  0xbe   : > { %16752 = dma.hbm_to_vmem [thread:$0]  (!%p19655_p12), %s21583_s13, 16, %s524_s14, [#allocation21]  }
  0xbf   : > { %p21716_p10 = scmp.ne.s32.totalorder %s21709_s25, 0 }
  0xc1   : > { %544 = sbr.rel (%p21716_p10) target bundleno = 5139 (0x1413), region = 76 }
  0xc6   : > { %p21717_p0 = scmp.eq.s32.totalorder %s19619_s17, 0 }
  0xc8   : > { %19453 = dma.done.wait (%p21717_p0), [#allocation3], 3328   ;;  %p21718_p13 = pmov %p21717_p0 }
  0xc9   : > { %p21719_p1 = pmov %p21717_p0 }
  0xca   : > { %19455 = vsyncadd (%p21718_p13), [#allocation3], 4294963968 }
  0xcb   : > { %19457 = dma.done.wait (%p21719_p1), [#allocation6], 65600   ;;  %p21720_p3 = pmov %p21717_p0 }
  0xcc   : > { %p21721_p2 = pmov %p21717_p0 }
  0xcd   : > { %19459 = vsyncadd (%p21720_p3), [#allocation6], 4294901696 }
  0xce   : > { %19461 = dma.done.wait (%p21721_p2), [#allocation9], 24608   ;;  %p21722_p12 = pmov %p21717_p0 }
  0xcf   : > { %p21723_p4 = pmov %p21717_p0 }
  0xd0   : > { %19463 = vsyncadd (%p21722_p12), [#allocation9], 4294942688 }
  0xd1   : > { %19465 = dma.done.wait (%p21723_p4), [#allocation12], 12320   ;;  %p21724_p7 = pmov %p21717_p0 }
  0xd2   : > { %p21725_p8 = pmov %p21717_p0 }
  0xd3   : > { %19467 = vsyncadd (%p21724_p7), [#allocation12], 4294954976 }
  0xd4   : > { %19469 = dma.done.wait (%p21725_p8), [#allocation15], 16448   ;;  %p21726_p11 = pmov %p21717_p0 }
  0xd5   : > { %p21727_p5 = pmov %p21717_p0 }
  0xd6   : > { %19471 = vsyncadd (%p21726_p11), [#allocation15], 4294950848 }
  0xd7   : > { %19473 = dma.done.wait (%p21727_p5), [#allocation18], 65600   ;;  %p21728_p6 = pmov %p21717_p0 }
  0xd8   : > { %p21729_p9 = pmov %p21717_p0 }
  0xd9   : > { %19475 = vsyncadd (%p21728_p6), [#allocation18], 4294901696 }
  0xda   : > { %19477 = dma.done.wait (%p21729_p9), [#allocation21], 4112   ;;  %p21730_p10 = pmov %p21717_p0 }
  0xdb   : > { %p637_p0 = scmp.lt.s32.totalorder %s19619_s17, 1  ;;  %v21599_v0 = vmov 0   ;;  %v767_v6 = vld [vmem:[#allocation2 + $0xc0] sm:$0x33]  ;;  %vm924_vm0 = vcmask 1041408   ;;  %v21603_v48 = vlaneseq  ;;  %v21601_v53 = vmov 0.0  }
  0xdc   : > { %19479 = vsyncadd (%p21730_p10), [#allocation21], 4294963184  ;;  %16839 = vset.pattern.permute.xlu1 %v21599_v0  ;;  %16838 = vset.pattern.permute.xlu0 %v21599_v0  ;;  %v768_v7 = vld [vmem:[#allocation2 + $0xc8] sm:$0x33]  ;;  %v15051_v9 = vcombine.high %v767_v6, %v767_v6  ;;  %v15050_v11 = vcombine.low %v767_v6, %v767_v6  ;;  %v16844_v13 = vld [vmem:[#allocation2 + $0xa4] ss:$16 sps:$4 sm:$0xff]  }
  0xdd   : > { %s638_s25 = scalar_select %p637_p0, %s19619_s17, 1  ;;  %969 = vmatprep.mubr.bf16.mxu0 %v21599_v0  ;;  %1080 = vmatprep.mubr.bf16.mxu1 %v21599_v0  ;;  %v15053_v10 = vcombine.high %v768_v7, %v768_v7  ;;  %v15052_v12 = vcombine.low %v768_v7, %v768_v7  ;;  %v16846_v14 = vld [vmem:[#allocation2 + $0xac] ss:$16 sps:$4 sm:$0xff]   ;;  %v16848_v19 = vld [vmem:[#allocation2 + $0xa0] ss:$16 sps:$4 sm:$0xff]   ;;  %v19825_v49 = vand.u32 127, %v21603_v48 }
  0xde   : > { %15054 = vmatprep.subr.msk.bf16.mxu0 %vm924_vm0, %v15051_v9  ;;  %v926_v16 = vsel %vm924_vm0, %v15050_v11, 0  ;;  %v16849_v20 = vld [vmem:[#allocation2 + $0xa8] ss:$16 sps:$4 sm:$0xff]   ;;  %v16850_v21 = vld [vmem:[#allocation2 + $0x84] ss:$16 sps:$4 sm:$0xff]   ;;  %vm899_vm3 = vcmask 818176  }
  0xdf   : > { %s16658_s28 = smul.u32 120, %s638_s25  ;;  %15063 = vmatprep.subr.msk.bf16.mxu1 %vm924_vm0, %v15053_v10  ;;  %v932_v17 = vsel %vm924_vm0, %v15052_v12, 0  ;;  %940 = vmatpush1.bf16.msra.mxu0 %v926_v16  ;;  %v16852_v22 = vld [vmem:[#allocation2 + $0x8c] ss:$16 sps:$4 sm:$0xff]   ;;  %v16854_v25 = vld [vmem:[#allocation2 + $0x80] ss:$16 sps:$4 sm:$0xff]  }
  0xe0   : > { %1051 = vmatpush1.bf16.msra.mxu1 %v932_v17  ;;  %941 = vmatprep.subr.bf16.mxu0 %v16844_v13  ;;  %v16855_v26 = vld [vmem:[#allocation2 + $0x88] ss:$16 sps:$4 sm:$0xff]   ;;  %v16856_v27 = vld [vmem:[#allocation2 + $0x64] ss:$16 sps:$4 sm:$0xff]   ;;  %v16858_v28 = vld [vmem:[#allocation2 + $0x6c] ss:$16 sps:$4 sm:$0xff]  }
  0xe1   : > { %s19807_s16 = scalar_lea.vmem %s21570_s0, %s16658_s28  ;;  %1052 = vmatprep.subr.bf16.mxu1 %v16846_v14  ;;  %v16860_v31 = vld [vmem:[#allocation2 + $0x60] ss:$16 sps:$4 sm:$0xff]   ;;  %v16861_v32 = vld [vmem:[#allocation2 + $0x68] ss:$16 sps:$4 sm:$0xff]   ;;  %v16862_v33 = vld [vmem:[#allocation2 + $0x44] ss:$16 sps:$4 sm:$0xff]  }
  0xe2   : > { %v645_v1 = vld [vmem:[%s19807_s16 + $0x10] sm:$0xff]  ;;  %v643_v2 = vld [vmem:[%s19807_s16] sm:$0xff]  ;;  %v646_v3 = vld [vmem:[%s19807_s16 + $0x18] sm:$0xff]  ;;  %21731 = vst [vmem:[#allocation38_spill] sm:$0xff] %v19825_v49  ;;  %s635_s20 = sand.u32 1, %s19490_s30   ;;  %s16611_s18 = sshll.u32 %s19619_s17, 4 }
  0xe3   : > { %667 = vperm.xlu1 %16839, %v645_v1   ;;  %661 = vperm.xlu0 %16838, %v643_v2   ;;  %v644_v4 = vld [vmem:[%s19807_s16 + $0x8] sm:$0xff]  ;;  %v647_v8 = vld [vmem:[%s19807_s16 + $0x20] sm:$0xff]  ;;  %v650_v15 = vld [vmem:[%s19807_s16 + $0x38] sm:$0xff]  ;;  %s636_s22 = scalar_lea.vmem [#allocation23], %s635_s20  ;;  %s21967_s14 = sld [smem:[#allocation114_spill]] }
  0xe4   : > { %v648_v5 = vld [vmem:[%s19807_s16 + $0x28] sm:$0xff]  ;;  %v649_v18 = vld [vmem:[%s19807_s16 + $0x30] sm:$0xff]  ;;  %v651_v24 = vld [vmem:[%s19807_s16 + $0x40] sm:$0xff]  ;;  %942 = vmatpush1.bf16.msra.mxu0 %v16848_v19  ;;  %1053 = vmatpush1.bf16.msra.mxu1 %v16849_v20  ;;  %s14814_s26 = sshll.u32 %s636_s22, 4  ;;  %s14802_s27 = scalar_lea.sflag [#allocation4], %s635_s20  ;;  %s14815_s26 = int_to_ptr.vmem [resolvable:$true] %s14814_s26 }
  0xe5   : > { %v652_v23 = vld [vmem:[%s19807_s16 + $0x48] sm:$0xff]  ;;  %943 = vmatprep.subr.bf16.mxu0 %v16850_v21  ;;  %1054 = vmatprep.subr.bf16.mxu1 %v16852_v22  ;;  %v654_v29 = vld [vmem:[%s19807_s16 + $0x58] sm:$0xff]  ;;  %v653_v30 = vld [vmem:[%s19807_s16 + $0x50] sm:$0xff]  ;;  %s19410_s4 = scalar_lea.vmem %s14815_s26, 16  ;;  %p21968_p1 = scmp.ne.s32.totalorder %s21706_s23, 0 }
  0xe6   : > { %v16864_v34 = vld [vmem:[#allocation2 + $0x4c] ss:$16 sps:$4 sm:$0xff]   ;;  %v655_v36 = vld [vmem:[%s19807_s16 + $0x60] sm:$0xff]  ;;  %v16867_v38 = vld [vmem:[#allocation2 + $0x48] ss:$16 sps:$4 sm:$0xff]   ;;  %p19411_p13 = scmp.ne.s32.totalorder %s14815_s26, %s19410_s4  ;;  %s19522_s17 = smov [#allocation23]  }
  0xe7   : > { %670 = vperm.xlu1 %16839, %v646_v3   ;;  %664 = vperm.xlu0 %16838, %v644_v4   ;;  %v656_v35 = vld [vmem:[%s19807_s16 + $0x68] sm:$0xff]  ;;  %v16866_v37 = vld [vmem:[#allocation2 + $0x40] ss:$16 sps:$4 sm:$0xff]   ;;  %v16868_v39 = vld [vmem:[#allocation2 + $0x24] ss:$16 sps:$4 sm:$0xff]   ;;  %s19414_s29 = sshll.u32 %s19522_s17, 4  ;;  %s19415_s29 = int_to_ptr.vmem [resolvable:$false] %s19414_s29 }
  0xe8   : > { %944 = vmatpush1.bf16.msra.mxu0 %v16854_v25  ;;  %1055 = vmatpush1.bf16.msra.mxu1 %v16855_v26  ;;  %v16870_v40 = vld [vmem:[#allocation2 + $0x2c] ss:$16 sps:$4 sm:$0xff]   ;;  %v657_v41 = vld [vmem:[%s19807_s16 + $0x70] sm:$0xff]  ;;  %v16873_v43 = vld [vmem:[#allocation2 + $0x28] ss:$16 sps:$4 sm:$0xff]   ;;  %p19412_p3 = pnand %p19411_p13, %p21968_p1  ;;  %s19416_s25 = scalar_lea.vmem %s19415_s29, 32 }
  0xe9   : > { %945 = vmatprep.subr.bf16.mxu0 %v16856_v27  ;;  %1056 = vmatprep.subr.bf16.mxu1 %v16858_v28  ;;  %v16872_v42 = vld [vmem:[#allocation2 + $0x20] ss:$16 sps:$4 sm:$0xff]   ;;  %v16874_v44 = vld [vmem:[#allocation2 + $0x4] ss:$16 sps:$4 sm:$0xff]   ;;  %v16876_v45 = vld [vmem:[#allocation2 + $0xc] ss:$16 sps:$4 sm:$0xff]   ;;  %s21535_s15 = scalar_lea.hbm %s21967_s14, %s16611_s18  ;;  %p19417_p12 = scmp.lt.s32.totalorder %s14815_s26, %s19415_s29 }
  0xea   : > { %v16878_v46 = vld [vmem:[#allocation2] ss:$16 sps:$4 sm:$0xff]   ;;  %v16879_v47 = vld [vmem:[#allocation2 + $0x8] ss:$16 sps:$4 sm:$0xff]   ;;  %p19413_p2 = pneg %p19412_p3  ;;  %p19418_p4 = scmp.lt.s32.totalorder %s19416_s25, %s19410_s4 }
  0xeb   : > { %676 = vperm.xlu1 %16839, %v648_v5   ;;  %673 = vperm.xlu0 %16838, %v647_v8  }
  0xec   : > { %946 = vmatpush1.bf16.msra.mxu0 %v16860_v31  ;;  %1057 = vmatpush1.bf16.msra.mxu1 %v16861_v32  ;;  %p19419_p7 = por %p19418_p4, %p19417_p12 }
  0xed   : > { %947 = vmatprep.subr.bf16.mxu0 %v16862_v33  ;;  %1058 = vmatprep.subr.bf16.mxu1 %v16864_v34 }
  0xee   : > { %p19420_p8 = pnand %p19419_p7, %p19413_p2 }
  0xef   : > { %682 = vperm.xlu1 %16839, %v650_v15   ;;  %679 = vperm.xlu0 %16838, %v649_v18  }
  0xf0   : > { %948 = vmatpush1.bf16.msra.mxu0 %v16866_v37  ;;  %1059 = vmatpush1.bf16.msra.mxu1 %v16867_v38 }
  0xf1   : > { %949 = vmatprep.subr.bf16.mxu0 %v16868_v39  ;;  %1060 = vmatprep.subr.bf16.mxu1 %v16870_v40 }
  0xf3   : > { %688 = vperm.xlu1 %16839, %v652_v23   ;;  %685 = vperm.xlu0 %16838, %v651_v24  }
  0xf4   : > { %950 = vmatpush1.bf16.msra.mxu0 %v16872_v42  ;;  %1061 = vmatpush1.bf16.msra.mxu1 %v16873_v43 }
  0xf5   : > { %951 = vmatprep.subr.bf16.mxu0 %v16874_v44  ;;  %1062 = vmatprep.subr.bf16.mxu1 %v16876_v45 }
  0xf7   : > { %694 = vperm.xlu1 %16839, %v654_v29   ;;  %691 = vperm.xlu0 %16838, %v653_v30  }
  0xf8   : > { %952 = vmatpush1.bf16.msra.mxu0 %v16878_v46  ;;  %1063 = vmatpush1.bf16.msra.mxu1 %v16879_v47 }
  0xfb   : > { %700 = vperm.xlu1 %16839, %v656_v35   ;;  %697 = vperm.xlu0 %16838, %v655_v36  }
  0xff   : > { %703 = vperm.xlu0 %16838, %v657_v41  }
 0x15e   : > { %v662_v50 = vpop.permute.xlu0 %661  ;;  %v668_v51 = vpop.permute.xlu1 %667 }
 0x15f   : > { %vm705_vm1 = vcmp.eq.s32.totalorder %v19825_v49, %v662_v50  ;;  %vm707_vm4 = vcmp.eq.s32.totalorder %v19825_v49, %v668_v51 }
 0x160   : > { %v720_v54 = vsel %vm705_vm1, 1.0, %v21601_v53  ;;  %v722_v58 = vsel %vm707_vm4, 1.0, %v21601_v53  ;;  %vm1241_vm1 = vcmask 1043456   ;;  %vm1228_vm4 = vcmask 982016  }
 0x162   : > { %v665_v52 = vpop.permute.xlu0 %664  ;;  %v671_v57 = vpop.permute.xlu1 %670 }
 0x163   : > { %vm706_vm2 = vcmp.eq.s32.totalorder %v19825_v49, %v665_v52  ;;  %vm708_vm5 = vcmp.eq.s32.totalorder %v19825_v49, %v671_v57 }
 0x164   : > { %v721_v55 = vsel %vm706_vm2, 1.0, %v21601_v53  ;;  %v723_v59 = vsel %vm708_vm5, 1.0, %v21601_v53 }
 0x165   : > { %v735_v56 = vpack.c.bf16 %v721_v55, %v720_v54  ;;  %v736_v62 = vpack.c.bf16 %v723_v59, %v722_v58 }
 0x166   : > { %v677_v60 = vpop.permute.xlu1 %676  ;;  %v674_v61 = vpop.permute.xlu0 %673 }
 0x167   : > { %15055 = vmatmul.mubr.msk.bf16.vlgmr.msra.gmra.mxu0 %vm899_vm3, %v735_v56  ;;  %15064 = vmatmul.mubr.msk.bf16.vlgmr.msra.gmra.mxu1 %vm899_vm3, %v735_v56  ;;  %vm710_vm6 = vcmp.eq.s32.totalorder %v19825_v49, %v677_v60  ;;  %vm709_vm7 = vcmp.eq.s32.totalorder %v19825_v49, %v674_v61 }
 0x168   : > { %979 = vmatprep.mubr.bf16.mxu0 %v21599_v0  ;;  %1090 = vmatprep.mubr.bf16.mxu1 %v21599_v0  ;;  %v725_v63 = vsel %vm710_vm6, 1.0, %v21601_v53  ;;  %v724_v1 = vsel %vm709_vm7, 1.0, %v21601_v53 }
 0x169   : > { %v737_v4 = vpack.c.bf16 %v725_v63, %v724_v1 }
 0x16a   : > { %v683_v2 = vpop.permute.xlu1 %682  ;;  %v680_v3 = vpop.permute.xlu0 %679 }
 0x16b   : > { %vm712_vm8 = vcmp.eq.s32.totalorder %v19825_v49, %v683_v2  ;;  %vm711_vm9 = vcmp.eq.s32.totalorder %v19825_v49, %v680_v3 }
 0x16c   : > { %v727_v5 = vsel %vm712_vm8, 1.0, %v21601_v53  ;;  %v726_v6 = vsel %vm711_vm9, 1.0, %v21601_v53 }
 0x16d   : > { %v738_v9 = vpack.c.bf16 %v727_v5, %v726_v6 }
 0x16e   : > { %v689_v7 = vpop.permute.xlu1 %688  ;;  %v686_v8 = vpop.permute.xlu0 %685 }
 0x16f   : > { %15056 = vmatmul.mubr.msk.bf16.gmra.mxu0 %vm899_vm3, %v736_v62  ;;  %15065 = vmatmul.mubr.msk.bf16.gmra.mxu1 %vm899_vm3, %v736_v62  ;;  %vm714_vm10 = vcmp.eq.s32.totalorder %v19825_v49, %v689_v7  ;;  %vm713_vm11 = vcmp.eq.s32.totalorder %v19825_v49, %v686_v8 }
 0x170   : > { %989 = vmatprep.mubr.bf16.mxu0 %v21599_v0  ;;  %1100 = vmatprep.mubr.bf16.mxu1 %v21599_v0  ;;  %v729_v10 = vsel %vm714_vm10, 1.0, %v21601_v53  ;;  %v728_v11 = vsel %vm713_vm11, 1.0, %v21601_v53 }
 0x171   : > { %v739_v14 = vpack.c.bf16 %v729_v10, %v728_v11 }
 0x172   : > { %v695_v12 = vpop.permute.xlu1 %694  ;;  %v692_v13 = vpop.permute.xlu0 %691 }
 0x173   : > { %vm716_vm12 = vcmp.eq.s32.totalorder %v19825_v49, %v695_v12  ;;  %vm715_vm13 = vcmp.eq.s32.totalorder %v19825_v49, %v692_v13 }
 0x174   : > { %v731_v15 = vsel %vm716_vm12, 1.0, %v21601_v53  ;;  %v730_v16 = vsel %vm715_vm13, 1.0, %v21601_v53 }
 0x175   : > { %v740_v19 = vpack.c.bf16 %v731_v15, %v730_v16 }
 0x176   : > { %v701_v17 = vpop.permute.xlu1 %700  ;;  %v698_v18 = vpop.permute.xlu0 %697 }
 0x177   : > { %15057 = vmatmul.mubr.msk.bf16.gmra.mxu0 %vm899_vm3, %v737_v4  ;;  %15066 = vmatmul.mubr.msk.bf16.gmra.mxu1 %vm899_vm3, %v737_v4  ;;  %vm718_vm14 = vcmp.eq.s32.totalorder %v19825_v49, %v701_v17  ;;  %vm717_vm15 = vcmp.eq.s32.totalorder %v19825_v49, %v698_v18 }
 0x178   : > { %999 = vmatprep.mubr.bf16.mxu0 %v21599_v0  ;;  %1110 = vmatprep.mubr.bf16.mxu1 %v21599_v0  ;;  %v733_v20 = vsel %vm718_vm14, 1.0, %v21601_v53  ;;  %v732_v21 = vsel %vm717_vm15, 1.0, %v21601_v53 }
 0x179   : > { %v741_v23 = vpack.c.bf16 %v733_v20, %v732_v21 }
 0x17a   : > { %v704_v22 = vpop.permute.xlu0 %703 }
 0x17b   : > { %vm719_vm0 = vcmp.eq.s32.totalorder %v19825_v49, %v704_v22 }
 0x17c   : > { %v734_v24 = vsel %vm719_vm0, 1.0, %v21601_v53 }
 0x17d   : > { %v742_v25 = vpack.c.bf16 %v734_v24, %v734_v24 }
 0x17f   : > { %15058 = vmatmul.mubr.msk.bf16.gmra.mxu0 %vm899_vm3, %v738_v9  ;;  %15067 = vmatmul.mubr.msk.bf16.gmra.mxu1 %vm899_vm3, %v738_v9 }
 0x180   : > { %1009 = vmatprep.mubr.bf16.mxu0 %v21599_v0  ;;  %1120 = vmatprep.mubr.bf16.mxu1 %v21599_v0 }
 0x187   : > { %15059 = vmatmul.mubr.msk.bf16.gmra.mxu0 %vm899_vm3, %v739_v14  ;;  %15068 = vmatmul.mubr.msk.bf16.gmra.mxu1 %vm899_vm3, %v739_v14 }
 0x188   : > { %1019 = vmatprep.mubr.bf16.mxu0 %v21599_v0  ;;  %1130 = vmatprep.mubr.bf16.mxu1 %v21599_v0 }
 0x18f   : > { %15060 = vmatmul.mubr.msk.bf16.gmra.mxu0 %vm899_vm3, %v740_v19  ;;  %15069 = vmatmul.mubr.msk.bf16.gmra.mxu1 %vm899_vm3, %v740_v19 }
 0x190   : > { %1029 = vmatprep.mubr.bf16.mxu0 %v21599_v0  ;;  %1140 = vmatprep.mubr.bf16.mxu1 %v21599_v0 }
 0x197   : > { %15061 = vmatmul.mubr.msk.bf16.gmra.mxu0 %vm899_vm3, %v741_v23  ;;  %15070 = vmatmul.mubr.msk.bf16.gmra.mxu1 %vm899_vm3, %v741_v23 }
 0x198   : > { %1039 = vmatprep.mubr.bf16.mxu0 %v21599_v0  ;;  %1150 = vmatprep.mubr.bf16.mxu1 %v21599_v0 }
 0x19f   : > { %15062 = vmatmul.mubr.msk.bf16.gmra.mxu0 %vm899_vm3, %v742_v25  ;;  %15071 = vmatmul.mubr.msk.bf16.gmra.mxu1 %vm899_vm3, %v742_v25 }
 0x1a0   : > { %1286 = vmatprep.mubr.bf16.mxu0 %v21599_v0  ;;  %1359 = vmatprep.mubr.bf16.mxu1 %v21599_v0 }
 0x227   : > { %v971_v26 = vpop.f32.mrf.mxu0  ;;  %v1082_v27 = vpop.f32.mrf.mxu1 }
 0x229   : > { %v19889_v28 = vpop.f32.mrf.mxu0  ;;  %v19891_v29 = vpop.f32.mrf.mxu1 }
 0x22b   : > { %v975_v30 = vpop.f32.mrf.mxu0  ;;  %v1086_v31 = vpop.f32.mrf.mxu1 }
 0x22c   : > { %v19893_v32 = vpack.c.bf16 %v975_v30, %v971_v26  ;;  %v19895_v33 = vpack.c.bf16 %v1086_v31, %v1082_v27 }
 0x22d   : > { %v19897_v34 = vpop.f32.mrf.mxu0  ;;  %v19899_v35 = vpop.f32.mrf.mxu1 }
 0x22e   : > { %21732 = vst [vmem:[#allocation39_spill] sm:$0xff] %v19893_v32  ;;  %21733 = vst [vmem:[#allocation40_spill] sm:$0xff] %v19895_v33 }
 0x22f   : > { %v981_v36 = vpop.f32.mrf.mxu0  ;;  %v1092_v37 = vpop.f32.mrf.mxu1 }
 0x231   : > { %v19901_v38 = vpop.f32.mrf.mxu0  ;;  %v19903_v39 = vpop.f32.mrf.mxu1 }
 0x233   : > { %v985_v40 = vpop.f32.mrf.mxu0  ;;  %v1096_v41 = vpop.f32.mrf.mxu1 }
 0x234   : > { %v19905_v42 = vpack.c.bf16 %v985_v40, %v981_v36  ;;  %v19907_v43 = vpack.c.bf16 %v1096_v41, %v1092_v37 }
 0x235   : > { %v19909_v44 = vpop.f32.mrf.mxu0  ;;  %v19911_v45 = vpop.f32.mrf.mxu1 }
 0x236   : > { %21734 = vst [vmem:[#allocation41_spill] sm:$0xff] %v19905_v42  ;;  %21735 = vst [vmem:[#allocation42_spill] sm:$0xff] %v19907_v43 }
 0x237   : > { %v19913_v46 = vpop.f32.mrf.mxu0  ;;  %v19915_v47 = vpop.f32.mrf.mxu1 }
 0x239   : > { %v19917_v50 = vpop.f32.mrf.mxu0  ;;  %v19919_v51 = vpop.f32.mrf.mxu1 }
 0x23b   : > { %v19921_v52 = vpop.f32.mrf.mxu0  ;;  %v19923_v54 = vpop.f32.mrf.mxu1 }
 0x23d   : > { %v19925_v55 = vpop.f32.mrf.mxu0  ;;  %v19927_v56 = vpop.f32.mrf.mxu1 }
 0x23f   : > { %v19929_v57 = vpop.f32.mrf.mxu0  ;;  %v19931_v58 = vpop.f32.mrf.mxu1 }
 0x241   : > { %v19933_v59 = vpop.f32.mrf.mxu0  ;;  %v19935_v60 = vpop.f32.mrf.mxu1 }
 0x243   : > { %v19937_v61 = vpop.f32.mrf.mxu0  ;;  %v19939_v62 = vpop.f32.mrf.mxu1 }
 0x245   : > { %v19941_v63 = vpop.f32.mrf.mxu0  ;;  %v19943_v1 = vpop.f32.mrf.mxu1 }
 0x247   : > { %v19945_v2 = vpop.f32.mrf.mxu0  ;;  %v19947_v3 = vpop.f32.mrf.mxu1 }
 0x249   : > { %v1013_v4 = vpop.f32.mrf.mxu0  ;;  %v1124_v5 = vpop.f32.mrf.mxu1 }
 0x24b   : > { %v1015_v6 = vpop.f32.mrf.mxu0  ;;  %v1126_v7 = vpop.f32.mrf.mxu1 }
 0x24d   : > { %v1017_v8 = vpop.f32.mrf.mxu0  ;;  %v1128_v9 = vpop.f32.mrf.mxu1 }
 0x24f   : > { %v1021_v10 = vpop.f32.mrf.mxu0  ;;  %v1132_v11 = vpop.f32.mrf.mxu1 }
 0x251   : > { %v1023_v12 = vpop.f32.mrf.mxu0  ;;  %v1134_v13 = vpop.f32.mrf.mxu1 }
 0x253   : > { %v1025_v14 = vpop.f32.mrf.mxu0  ;;  %v1136_v15 = vpop.f32.mrf.mxu1 }
 0x255   : > { %v1027_v16 = vpop.f32.mrf.mxu0  ;;  %v1138_v17 = vpop.f32.mrf.mxu1 }
 0x257   : > { %v1031_v18 = vpop.f32.mrf.mxu0  ;;  %v1142_v19 = vpop.f32.mrf.mxu1 }
 0x259   : > { %v1033_v20 = vpop.f32.mrf.mxu0  ;;  %v1144_v21 = vpop.f32.mrf.mxu1 }
 0x25b   : > { %v1035_v22 = vpop.f32.mrf.mxu0  ;;  %v1146_v23 = vpop.f32.mrf.mxu1 }
 0x25d   : > { %v1037_v24 = vpop.f32.mrf.mxu0  ;;  %v1148_v25 = vpop.f32.mrf.mxu1 }
 0x25e   : > { %v19953_v48 = vpack.c.bf16 %v1037_v24, %v1033_v20  ;;  %v19955_v33 = vpack.c.bf16 %v1148_v25, %v1144_v21  ;;  %v19975_v20 = vpack.c.bf16 %v1027_v16, %v1023_v12  ;;  %v19977_v21 = vpack.c.bf16 %v1138_v17, %v1134_v13 }
 0x25f   : > { %v1041_v26 = vpop.f32.mrf.mxu0  ;;  %v1152_v27 = vpop.f32.mrf.mxu1  ;;  %v19983_v24 = vpack.c.bf16 %v1025_v14, %v1021_v10  ;;  %v19985_v25 = vpack.c.bf16 %v1136_v15, %v1132_v11  ;;  %v21742_v12 = vlaneseq  ;;  %v19999_v10 = vpack.c.bf16 %v1015_v6, %v19945_v2 }
 0x260   : > { %v1187_v30 = vpack.c.bf16 %v1041_v26, %v1041_v26  ;;  %v1189_v31 = vpack.c.bf16 %v1152_v27, %v1152_v27  ;;  %21736 = vst [vmem:[#allocation43_spill] sm:$0xff] %v19975_v20  ;;  %21737 = vst [vmem:[#allocation44_spill] sm:$0xff] %v19977_v21  ;;  %v20002_v11 = vpack.c.bf16 %v1126_v7, %v19947_v3  ;;  %v21770_v14 = vmov 0  }
 0x261   : > { %v1043_v36 = vpop.f32.mrf.mxu0  ;;  %v1154_v37 = vpop.f32.mrf.mxu1  ;;  %21738 = vst [vmem:[#allocation45_spill] sm:$0xff] %v19983_v24  ;;  %21739 = vst [vmem:[#allocation46_spill] sm:$0xff] %v19985_v25  ;;  %v19996_v13 = vshrl.u32 %v21742_v12, 7  ;;  %v20019_v3 = vpack.c.bf16 %v19937_v61, %v19929_v57 }
 0x262   : > { %v19949_v40 = vpack.c.bf16 %v1043_v36, %v1043_v36  ;;  %v19951_v41 = vpack.c.bf16 %v1154_v37, %v1154_v37  ;;  %v19958_v32 = vsel %vm1241_vm1, %v1187_v30, 0  ;;  %v19961_v43 = vsel %vm1241_vm1, %v1189_v31, 0  ;;  %21744 = vst [vmem:[#allocation50_spill] sm:$0xff] %v19999_v10  ;;  %21745 = vst [vmem:[#allocation51_spill] sm:$0xff] %v20002_v11 }
 0x263   : > { %v1045_v0 = vpop.f32.mrf.mxu0  ;;  %v1156_v53 = vpop.f32.mrf.mxu1  ;;  %21743 = vst [vmem:[#allocation49_spill] sm:$0xff] %v19996_v13  ;;  %v1193_v2 = vadd.s32 8, %v19996_v13  ;;  %21748 = vst [vmem:[#allocation54_spill] sm:$0xff] %v20019_v3  ;;  %v20038_v57 = vmul.u32 2, %v19996_v13  ;;  %v1198_v16 = vadd.s32 48, %v19996_v13  ;;  %v1199_v17 = vadd.s32 56, %v19996_v13 }
 0x264   : > { %15072 = vmatprep.subr.msk.bf16.mxu0 %vm1241_vm1, %v19949_v40  ;;  %15077 = vmatprep.subr.msk.bf16.mxu1 %vm1241_vm1, %v19951_v41  ;;  %v19971_v0 = vpack.c.bf16 %v1035_v22, %v1031_v18  ;;  %v19973_v53 = vpack.c.bf16 %v1146_v23, %v1142_v19  ;;  %v19987_v18 = vpack.c.bf16 %v1017_v8, %v1013_v4 }
 0x265   : > { %v1046_v26 = vpop.f32.mrf.mxu0  ;;  %v1157_v27 = vpop.f32.mrf.mxu1  ;;  %1255 = vmatpush1.bf16.msra.mxu0 %v19958_v32  ;;  %1328 = vmatpush1.bf16.msra.mxu1 %v19961_v43  ;;  %v19989_v19 = vpack.c.bf16 %v1128_v9, %v1124_v5  ;;  %v20006_v4 = vpack.c.bf16 %v19941_v63, %v19933_v59  ;;  %v20010_v5 = vpack.c.bf16 %v19943_v1, %v19935_v60  ;;  %v1197_v1 = vadd.s32 40, %v19996_v13 }
 0x266   : > { %1256 = vmatprep.subr.bf16.mxu0 %v19953_v48  ;;  %1329 = vmatprep.subr.bf16.mxu1 %v19955_v33  ;;  %21740 = vst [vmem:[#allocation47_spill] sm:$0xff] %v19987_v18  ;;  %v20023_v59 = vpack.c.bf16 %v19939_v62, %v19931_v58  ;;  %v20027_v60 = vpack.c.bf16 %v19925_v55, %v19917_v50  ;;  %21752 = vst [vmem:[#allocation58_spill] sm:$0xff] %v20038_v57  ;;  %v20040_v58 = vmul.u32 2, %v1193_v2 }
 0x267   : > { %21741 = vst [vmem:[#allocation48_spill] sm:$0xff] %v19989_v19  ;;  %21746 = vst [vmem:[#allocation52_spill] sm:$0xff] %v20006_v4  ;;  %v20031_v63 = vpack.c.bf16 %v19927_v56, %v19919_v51  ;;  %v20044_v50 = vpack.c.bf16 %v19921_v52, %v19913_v46  ;;  %v20048_v51 = vpack.c.bf16 %v19923_v54, %v19915_v47  ;;  %v21760_v46 = vld [vmem:[#allocation42_spill] sm:$0xff]  ;;  %v21761_v47 = vmov 0.0  }
 0x268   : > { %21747 = vst [vmem:[#allocation53_spill] sm:$0xff] %v20010_v5  ;;  %21749 = vst [vmem:[#allocation55_spill] sm:$0xff] %v20023_v59  ;;  %v20052_v55 = vpack.c.bf16 %v19909_v44, %v19901_v38  ;;  %v20056_v56 = vpack.c.bf16 %v19911_v45, %v19903_v39  ;;  %vm1208_vm2 = vcmp.eq.s32.totalorder %v19825_v49, %v20038_v57  ;;  %v1194_v38 = vadd.s32 16, %v19996_v13 }
 0x269   : > { %1257 = vmatpush1.bf16.msra.mxu0 %v19971_v0  ;;  %1330 = vmatpush1.bf16.msra.mxu1 %v19973_v53  ;;  %21750 = vst [vmem:[#allocation56_spill] sm:$0xff] %v20027_v60  ;;  %21751 = vst [vmem:[#allocation57_spill] sm:$0xff] %v20031_v63  ;;  %vm1209_vm3 = vcmp.eq.s32.totalorder %v19825_v49, %v20040_v58  ;;  %v1195_v44 = vadd.s32 24, %v19996_v13  ;;  %v20070_v39 = vpack.c.bf16 %v19897_v34, %v19889_v28  ;;  %v21766_v34 = vld [vmem:[#allocation39_spill] sm:$0xff] }
 0x26a   : > { %1258 = vmatprep.subr.bf16.mxu0 %v19975_v20  ;;  %1331 = vmatprep.subr.bf16.mxu1 %v19977_v21  ;;  %21753 = vst [vmem:[#allocation59_spill] sm:$0xff] %v20040_v58  ;;  %21754 = vst [vmem:[#allocation60_spill] sm:$0xff] %v20044_v50  ;;  %v20074_v45 = vpack.c.bf16 %v19899_v35, %v19891_v29  ;;  %v20079_v52 = vsel %vm1208_vm2, 1.0, %v21761_v47  ;;  %v1217_v54 = vsel %vm1209_vm3, 1.0, %v21761_v47  ;;  %v20084_v61 = vmul.u32 2, %v1194_v38  ;;  %v21767_v35 = vld [vmem:[#allocation40_spill] sm:$0xff] }
 0x26b   : > { %21755 = vst [vmem:[#allocation61_spill] sm:$0xff] %v20048_v51  ;;  %21756 = vst [vmem:[#allocation62_spill] sm:$0xff] %v20052_v55  ;;  %v20086_v28 = vmul.u32 2, %v1195_v44  ;;  %v20089_v29 = vpack.c.bf16 %v1217_v54, %v20079_v52  ;;  %v1196_v62 = vadd.s32 32, %v19996_v13  ;;  %v20115_v9 = vmul.u32 2, %v1197_v1 }
 0x26c   : > { %21757 = vst [vmem:[#allocation63_spill] sm:$0xff] %v20056_v56  ;;  %21758 = vst [vmem:[#allocation64_spill] sm:$0xff] %v20070_v39  ;;  %vm1210_vm5 = vcmp.eq.s32.totalorder %v19825_v49, %v20084_v61  ;;  %v20141_v30 = vmul.u32 2, %v1198_v16  ;;  %v20143_v31 = vmul.u32 2, %v1199_v17  ;;  %v1544_v27 = vadd.s32 1, %v20038_v57 }
 0x26d   : > { %1259 = vmatpush1.bf16.msra.mxu0 %v19983_v24  ;;  %1332 = vmatpush1.bf16.msra.mxu1 %v19985_v25  ;;  %21759 = vst [vmem:[#allocation65_spill] sm:$0xff] %v20074_v45  ;;  %21762 = vst [vmem:[#allocation66_spill] sm:$0xff] %v20079_v52  ;;  %vm1211_vm6 = vcmp.eq.s32.totalorder %v19825_v49, %v20086_v28  ;;  %v1218_v6 = vsel %vm1210_vm5, 1.0, %v21761_v47  ;;  %v20113_v8 = vmul.u32 2, %v1196_v62  ;;  %v1545_v12 = vadd.s32 1, %v20040_v58 }
 0x26e   : > { %1260 = vmatprep.subr.bf16.mxu0 %v19987_v18  ;;  %1333 = vmatprep.subr.bf16.mxu1 %v19989_v19  ;;  %21763 = vst [vmem:[#allocation67_spill] sm:$0xff] %v20084_v61  ;;  %21764 = vst [vmem:[#allocation68_spill] sm:$0xff] %v20086_v28  ;;  %v1219_v7 = vsel %vm1211_vm6, 1.0, %v21761_v47  ;;  %vm1213_vm8 = vcmp.eq.s32.totalorder %v19825_v49, %v20115_v9  ;;  %vm1214_vm9 = vcmp.eq.s32.totalorder %v19825_v49, %v20141_v30  ;;  %v16882_v38 = vld [vmem:[#allocation5 + $0x4e4] ss:$16 sps:$4 sm:$0xff]  }
 0x26f   : > { %21765 = vst [vmem:[#allocation69_spill] sm:$0xff] %v20089_v29  ;;  %21768 = vst [vmem:[#allocation70_spill] sm:$0xff] %v20113_v8  ;;  %v20119_v15 = vpack.c.bf16 %v1219_v7, %v1218_v6  ;;  %vm1212_vm7 = vcmp.eq.s32.totalorder %v19825_v49, %v20113_v8  ;;  %v1221_v23 = vsel %vm1213_vm8, 1.0, %v21761_v47  ;;  %vm1215_vm10 = vcmp.eq.s32.totalorder %v19825_v49, %v20143_v31  ;;  %v16885_v44 = vld [vmem:[#allocation5 + $0x6e4] ss:$16 sps:$4 sm:$0xff]  }
 0x270   : > { %21769 = vst [vmem:[#allocation71_spill] sm:$0xff] %v20115_v9  ;;  %v1220_v22 = vsel %vm1212_vm7, 1.0, %v21761_v47  ;;  %21772 = vst [vmem:[#allocation73_spill] sm:$0xff] %v20141_v30  ;;  %v1222_v37 = vsel %vm1214_vm9, 1.0, %v21761_v47  ;;  %v1223_v26 = vsel %vm1215_vm10, 1.0, %v21761_v47  ;;  %vm1552_vm11 = vcmp.eq.s32.totalorder %v19825_v49, %v1544_v27 }
 0x271   : > { %1261 = vmatpush1.bf16.msra.mxu0 %v19999_v10  ;;  %1334 = vmatpush1.bf16.msra.mxu1 %v20002_v11  ;;  %21771 = vst [vmem:[#allocation72_spill] sm:$0xff] %v20119_v15  ;;  %21773 = vst [vmem:[#allocation74_spill] sm:$0xff] %v20143_v31  ;;  %v1226_v36 = vpack.c.bf16 %v1221_v23, %v1220_v22  ;;  %v1227_v2 = vpack.c.bf16 %v1223_v26, %v1222_v37  ;;  %v20178_v54 = vsel %vm1552_vm11, 1.0, %v21761_v47  ;;  %v16880_v16 = vld [vmem:[#allocation5 + $0x4e0] ss:$16 sps:$4 sm:$0xff]  }
 0x272   : > { %1262 = vmatprep.subr.bf16.mxu0 %v20006_v4  ;;  %1335 = vmatprep.subr.bf16.mxu1 %v20010_v5  ;;  %vm1553_vm12 = vcmp.eq.s32.totalorder %v19825_v49, %v1545_v12  ;;  %21774 = vst [vmem:[#allocation75_spill] sm:$0xff] %v20178_v54  ;;  %v1546_v1 = vadd.s32 1, %v20084_v61  ;;  %v1547_v6 = vadd.s32 1, %v20086_v28  ;;  %v16883_v17 = vld [vmem:[#allocation5 + $0x6e0] ss:$16 sps:$4 sm:$0xff]  }
 0x273   : > { %v1561_v62 = vsel %vm1553_vm12, 1.0, %v21761_v47  ;;  %v16888_v22 = vld [vmem:[#allocation5 + $0x4c4] ss:$16 sps:$4 sm:$0xff]   ;;  %v16889_v37 = vld [vmem:[#allocation5 + $0x6c0] ss:$16 sps:$4 sm:$0xff]  }
 0x274   : > { %v20188_v7 = vpack.c.bf16 %v1561_v62, %v20178_v54  ;;  %v16891_v23 = vld [vmem:[#allocation5 + $0x6c4] ss:$16 sps:$4 sm:$0xff]   ;;  %vm1554_vm13 = vcmp.eq.s32.totalorder %v19825_v49, %v1546_v1  ;;  %vm1555_vm14 = vcmp.eq.s32.totalorder %v19825_v49, %v1547_v6  ;;  %v16892_v1 = vld [vmem:[#allocation5 + $0x4a0] ss:$16 sps:$4 sm:$0xff]   ;;  %v16984_v58 = vld [vmem:[#allocation5 + $0x4cc] ss:$16 sps:$4 sm:$0xff]  }
 0x275   : > { %1263 = vmatpush1.bf16.msra.mxu0 %v20019_v3  ;;  %1336 = vmatpush1.bf16.msra.mxu1 %v20023_v59  ;;  %v1562_v26 = vsel %vm1554_vm13, 1.0, %v21761_v47  ;;  %v1563_v27 = vsel %vm1555_vm14, 1.0, %v21761_v47  ;;  %v16894_v12 = vld [vmem:[#allocation5 + $0x4a4] ss:$16 sps:$4 sm:$0xff]   ;;  %v16895_v6 = vld [vmem:[#allocation5 + $0x6a0] ss:$16 sps:$4 sm:$0xff]  }
 0x276   : > { %1264 = vmatprep.subr.bf16.mxu0 %v20027_v60  ;;  %1337 = vmatprep.subr.bf16.mxu1 %v20031_v63  ;;  %21775 = vst [vmem:[#allocation76_spill] sm:$0xff] %v20188_v7  ;;  %v20204_v62 = vpack.c.bf16 %v1563_v27, %v1562_v26  ;;  %v16900_v54 = vld [vmem:[#allocation5 + $0x484] ss:$16 sps:$4 sm:$0xff]   ;;  %v1550_v26 = vadd.s32 1, %v20141_v30  ;;  %v1551_v27 = vadd.s32 1, %v20143_v31 }
 0x277   : > { %v16903_v52 = vld [vmem:[#allocation5 + $0x684] ss:$16 sps:$4 sm:$0xff]   ;;  %v16987_v57 = vld [vmem:[#allocation5 + $0x6cc] ss:$16 sps:$4 sm:$0xff]  }
 0x278   : > { %21776 = vst [vmem:[#allocation77_spill] sm:$0xff] %v20204_v62  ;;  %vm1558_vm2 = vcmp.eq.s32.totalorder %v19825_v49, %v1550_v26  ;;  %vm1559_vm3 = vcmp.eq.s32.totalorder %v19825_v49, %v1551_v27  ;;  %v16927_v26 = vld [vmem:[#allocation5 + $0x604] ss:$16 sps:$4 sm:$0xff]   ;;  %v16922_v27 = vld [vmem:[#allocation5 + $0x400] ss:$16 sps:$4 sm:$0xff]  }
 0x279   : > { %1265 = vmatpush1.bf16.msra.mxu0 %v20044_v50  ;;  %1338 = vmatpush1.bf16.msra.mxu1 %v20048_v51 }
 0x27a   : > { %1266 = vmatprep.subr.bf16.mxu0 %v20052_v55  ;;  %1339 = vmatprep.subr.bf16.mxu1 %v20056_v56 }
 0x27d   : > { %1267 = vmatpush1.bf16.msra.mxu0 %v19905_v42  ;;  %1340 = vmatpush1.bf16.msra.mxu1 %v21760_v46 }
 0x27e   : > { %1268 = vmatprep.subr.bf16.mxu0 %v20070_v39  ;;  %1341 = vmatprep.subr.bf16.mxu1 %v20074_v45 }
 0x281   : > { %1269 = vmatpush1.bf16.msra.mxu0 %v21766_v34  ;;  %1342 = vmatpush1.bf16.msra.mxu1 %v21767_v35 }
 0x282   : > { %15082 = vmatprep.subr.msk.bf16.mxu0 %vm1241_vm1, %v19949_v40  ;;  %15087 = vmatprep.subr.msk.bf16.mxu1 %vm1241_vm1, %v19951_v41 }
 0x284   : > { %15073 = vmatmul.mubr.msk.bf16.vlgmr.msra.gmra.mxu0 %vm1228_vm4, %v20089_v29  ;;  %15078 = vmatmul.mubr.msk.bf16.vlgmr.msra.gmra.mxu1 %vm1228_vm4, %v20089_v29 }
 0x285   : > { %1585 = vmatpush1.bf16.msra.mxu0 %v19958_v32  ;;  %1658 = vmatpush1.bf16.msra.mxu1 %v19961_v43 }
 0x286   : > { %1586 = vmatprep.subr.bf16.mxu0 %v19953_v48  ;;  %1659 = vmatprep.subr.bf16.mxu1 %v19955_v33 }
 0x287   : > { %1296 = vmatprep.mubr.bf16.mxu0 %v21770_v14  ;;  %1369 = vmatprep.mubr.bf16.mxu1 %v21770_v14 }
 0x289   : > { %1587 = vmatpush1.bf16.msra.mxu0 %v19971_v0  ;;  %1660 = vmatpush1.bf16.msra.mxu1 %v19973_v53 }
 0x28a   : > { %1588 = vmatprep.subr.bf16.mxu0 %v19975_v20  ;;  %1661 = vmatprep.subr.bf16.mxu1 %v19977_v21 }
 0x28c   : > { %15074 = vmatmul.mubr.msk.bf16.gmra.mxu0 %vm1228_vm4, %v20119_v15  ;;  %15079 = vmatmul.mubr.msk.bf16.gmra.mxu1 %vm1228_vm4, %v20119_v15 }
 0x28d   : > { %1589 = vmatpush1.bf16.msra.mxu0 %v19983_v24  ;;  %1662 = vmatpush1.bf16.msra.mxu1 %v19985_v25 }
 0x28e   : > { %1590 = vmatprep.subr.bf16.mxu0 %v19987_v18  ;;  %1663 = vmatprep.subr.bf16.mxu1 %v19989_v19 }
 0x28f   : > { %1306 = vmatprep.mubr.bf16.mxu0 %v21770_v14  ;;  %1379 = vmatprep.mubr.bf16.mxu1 %v21770_v14 }
 0x291   : > { %1591 = vmatpush1.bf16.msra.mxu0 %v19999_v10  ;;  %1664 = vmatpush1.bf16.msra.mxu1 %v20002_v11 }
 0x292   : > { %1592 = vmatprep.subr.bf16.mxu0 %v20006_v4  ;;  %1665 = vmatprep.subr.bf16.mxu1 %v20010_v5 }
 0x294   : > { %15075 = vmatmul.mubr.msk.bf16.gmra.mxu0 %vm1228_vm4, %v1226_v36  ;;  %15080 = vmatmul.mubr.msk.bf16.gmra.mxu1 %vm1228_vm4, %v1226_v36  ;;  %v16886_v36 = vld [vmem:[#allocation5 + $0x4c0] ss:$16 sps:$4 sm:$0xff]  }
 0x295   : > { %1593 = vmatpush1.bf16.msra.mxu0 %v20019_v3  ;;  %1666 = vmatpush1.bf16.msra.mxu1 %v20023_v59 }
 0x296   : > { %1594 = vmatprep.subr.bf16.mxu0 %v20027_v60  ;;  %1667 = vmatprep.subr.bf16.mxu1 %v20031_v63 }
 0x297   : > { %1316 = vmatprep.mubr.bf16.mxu0 %v21770_v14  ;;  %1389 = vmatprep.mubr.bf16.mxu1 %v21770_v14 }
 0x299   : > { %1595 = vmatpush1.bf16.msra.mxu0 %v20044_v50  ;;  %1668 = vmatpush1.bf16.msra.mxu1 %v20048_v51 }
 0x29a   : > { %1596 = vmatprep.subr.bf16.mxu0 %v20052_v55  ;;  %1669 = vmatprep.subr.bf16.mxu1 %v20056_v56 }
 0x29c   : > { %15076 = vmatmul.mubr.msk.bf16.gmra.mxu0 %vm1228_vm4, %v1227_v2  ;;  %15081 = vmatmul.mubr.msk.bf16.gmra.mxu1 %vm1228_vm4, %v1227_v2  ;;  %v16897_v2 = vld [vmem:[#allocation5 + $0x6a4] ss:$16 sps:$4 sm:$0xff]  }
 0x29d   : > { %1597 = vmatpush1.bf16.msra.mxu0 %v19905_v42  ;;  %1670 = vmatpush1.bf16.msra.mxu1 %v21760_v46 }
 0x29e   : > { %1598 = vmatprep.subr.bf16.mxu0 %v20070_v39  ;;  %1671 = vmatprep.subr.bf16.mxu1 %v20074_v45 }
 0x29f   : > { %1616 = vmatprep.mubr.bf16.mxu0 %v21770_v14  ;;  %1689 = vmatprep.mubr.bf16.mxu1 %v21770_v14 }
 0x2a1   : > { %1599 = vmatpush1.bf16.msra.mxu0 %v21766_v34  ;;  %1672 = vmatpush1.bf16.msra.mxu1 %v21767_v35 }
 0x2a2   : > { %2515 = vmatprep.subr.bf16.mxu0 %v16882_v38  ;;  %2588 = vmatprep.subr.bf16.mxu1 %v16885_v44  ;;  %v1548_v38 = vadd.s32 1, %v20113_v8  ;;  %v1549_v44 = vadd.s32 1, %v20115_v9 }
 0x2a4   : > { %15083 = vmatmul.mubr.msk.bf16.vlgmr.msra.gmra.mxu0 %vm1228_vm4, %v20188_v7  ;;  %15088 = vmatmul.mubr.msk.bf16.vlgmr.msra.gmra.mxu1 %vm1228_vm4, %v20188_v7  ;;  %vm1556_vm15 = vcmp.eq.s32.totalorder %v19825_v49, %v1548_v38  ;;  %vm1557_vm0 = vcmp.eq.s32.totalorder %v19825_v49, %v1549_v44  ;;  %v16907_v38 = vld [vmem:[#allocation5 + $0x660] ss:$16 sps:$4 sm:$0xff]   ;;  %v16912_v44 = vld [vmem:[#allocation5 + $0x444] ss:$16 sps:$4 sm:$0xff]  }
 0x2a5   : > { %1626 = vmatprep.mubr.bf16.mxu0 %v21770_v14  ;;  %1699 = vmatprep.mubr.bf16.mxu1 %v21770_v14 }
 0x2a6   : > { %2516 = vmatpush1.bf16.msra.mxu0 %v16880_v16  ;;  %2589 = vmatpush1.bf16.msra.mxu1 %v16883_v17  ;;  %v16898_v16 = vld [vmem:[#allocation5 + $0x480] ss:$16 sps:$4 sm:$0xff]  }
 0x2a7   : > { %2517 = vmatprep.subr.bf16.mxu0 %v16888_v22  ;;  %2590 = vmatprep.subr.bf16.mxu1 %v16891_v23  ;;  %v16901_v17 = vld [vmem:[#allocation5 + $0x680] ss:$16 sps:$4 sm:$0xff]   ;;  %v1564_v22 = vsel %vm1556_vm15, 1.0, %v21761_v47  ;;  %v1565_v23 = vsel %vm1557_vm0, 1.0, %v21761_v47 }
 0x2aa   : > { %2518 = vmatpush1.bf16.msra.mxu0 %v16886_v36  ;;  %2591 = vmatpush1.bf16.msra.mxu1 %v16889_v37  ;;  %v16906_v36 = vld [vmem:[#allocation5 + $0x464] ss:$16 sps:$4 sm:$0xff]  }
 0x2ab   : > { %2519 = vmatprep.subr.bf16.mxu0 %v16894_v12  ;;  %2592 = vmatprep.subr.bf16.mxu1 %v16897_v2  ;;  %v16909_v37 = vld [vmem:[#allocation5 + $0x664] ss:$16 sps:$4 sm:$0xff]   ;;  %v1570_v12 = vpack.c.bf16 %v1565_v23, %v1564_v22  ;;  %v16904_v2 = vld [vmem:[#allocation5 + $0x460] ss:$16 sps:$4 sm:$0xff]  }
 0x2ac   : > { %15084 = vmatmul.mubr.msk.bf16.gmra.mxu0 %vm1228_vm4, %v20204_v62  ;;  %15089 = vmatmul.mubr.msk.bf16.gmra.mxu1 %vm1228_vm4, %v20204_v62  ;;  %v16915_v62 = vld [vmem:[#allocation5 + $0x644] ss:$16 sps:$4 sm:$0xff]   ;;  %v16916_v23 = vld [vmem:[#allocation5 + $0x420] ss:$16 sps:$4 sm:$0xff]  }
 0x2ad   : > { %1636 = vmatprep.mubr.bf16.mxu0 %v21770_v14  ;;  %1709 = vmatprep.mubr.bf16.mxu1 %v21770_v14  ;;  %v16921_v22 = vld [vmem:[#allocation5 + $0x624] ss:$16 sps:$4 sm:$0xff]  }
 0x2ae   : > { %2520 = vmatpush1.bf16.msra.mxu0 %v16892_v1  ;;  %2593 = vmatpush1.bf16.msra.mxu1 %v16895_v6  ;;  %v16910_v1 = vld [vmem:[#allocation5 + $0x440] ss:$16 sps:$4 sm:$0xff]   ;;  %v1567_v6 = vsel %vm1559_vm3, 1.0, %v21761_v47 }
 0x2af   : > { %2521 = vmatprep.subr.bf16.mxu0 %v16900_v54  ;;  %2594 = vmatprep.subr.bf16.mxu1 %v16903_v52  ;;  %v16913_v54 = vld [vmem:[#allocation5 + $0x640] ss:$16 sps:$4 sm:$0xff]   ;;  %v1566_v52 = vsel %vm1558_vm2, 1.0, %v21761_v47 }
 0x2b2   : > { %2522 = vmatpush1.bf16.msra.mxu0 %v16898_v16  ;;  %2595 = vmatpush1.bf16.msra.mxu1 %v16901_v17  ;;  %v1571_v16 = vpack.c.bf16 %v1567_v6, %v1566_v52  ;;  %v16918_v17 = vld [vmem:[#allocation5 + $0x424] ss:$16 sps:$4 sm:$0xff]   ;;  %v16934_v52 = vld [vmem:[#allocation5 + $0x5c0] ss:$16 sps:$4 sm:$0xff]  }
 0x2b3   : > { %2523 = vmatprep.subr.bf16.mxu0 %v16906_v36  ;;  %2596 = vmatprep.subr.bf16.mxu1 %v16909_v37  ;;  %v16919_v36 = vld [vmem:[#allocation5 + $0x620] ss:$16 sps:$4 sm:$0xff]   ;;  %v16924_v37 = vld [vmem:[#allocation5 + $0x404] ss:$16 sps:$4 sm:$0xff]  }
 0x2b4   : > { %15085 = vmatmul.mubr.msk.bf16.gmra.mxu0 %vm1228_vm4, %v1570_v12  ;;  %15090 = vmatmul.mubr.msk.bf16.gmra.mxu1 %vm1228_vm4, %v1570_v12  ;;  %v16925_v12 = vld [vmem:[#allocation5 + $0x600] ss:$16 sps:$4 sm:$0xff]  }
 0x2b5   : > { %1646 = vmatprep.mubr.bf16.mxu0 %v21770_v14  ;;  %1719 = vmatprep.mubr.bf16.mxu1 %v21770_v14  ;;  %v16937_v6 = vld [vmem:[#allocation5 + $0x7c0] ss:$16 sps:$4 sm:$0xff]  }
 0x2b6   : > { %2524 = vmatpush1.bf16.msra.mxu0 %v16904_v2  ;;  %2597 = vmatpush1.bf16.msra.mxu1 %v16907_v38  ;;  %v16933_v2 = vld [vmem:[#allocation5 + $0x7e4] ss:$16 sps:$4 sm:$0xff]   ;;  %v16928_v38 = vld [vmem:[#allocation5 + $0x5e0] ss:$16 sps:$4 sm:$0xff]  }
 0x2b7   : > { %2525 = vmatprep.subr.bf16.mxu0 %v16912_v44  ;;  %2598 = vmatprep.subr.bf16.mxu1 %v16915_v62  ;;  %v16930_v62 = vld [vmem:[#allocation5 + $0x5e4] ss:$16 sps:$4 sm:$0xff]   ;;  %v16931_v44 = vld [vmem:[#allocation5 + $0x7e0] ss:$16 sps:$4 sm:$0xff]  }
 0x2ba   : > { %2526 = vmatpush1.bf16.msra.mxu0 %v16910_v1  ;;  %2599 = vmatpush1.bf16.msra.mxu1 %v16913_v54  ;;  %v16936_v1 = vld [vmem:[#allocation5 + $0x5c4] ss:$16 sps:$4 sm:$0xff]  }
 0x2bb   : > { %2527 = vmatprep.subr.bf16.mxu0 %v16918_v17  ;;  %2600 = vmatprep.subr.bf16.mxu1 %v16921_v22  ;;  %v16939_v54 = vld [vmem:[#allocation5 + $0x7c4] ss:$16 sps:$4 sm:$0xff]   ;;  %v16940_v22 = vld [vmem:[#allocation5 + $0x5a0] ss:$16 sps:$4 sm:$0xff]  }
 0x2bc   : > { %15086 = vmatmul.mubr.msk.bf16.gmra.mxu0 %vm1228_vm4, %v1571_v16  ;;  %15091 = vmatmul.mubr.msk.bf16.gmra.mxu1 %vm1228_vm4, %v1571_v16  ;;  %v16942_v16 = vld [vmem:[#allocation5 + $0x5a4] ss:$16 sps:$4 sm:$0xff]  }
 0x2bd   : > { %v16945_v17 = vld [vmem:[#allocation5 + $0x7a4] ss:$16 sps:$4 sm:$0xff]  }
 0x2be   : > { %2528 = vmatpush1.bf16.msra.mxu0 %v16916_v23  ;;  %2601 = vmatpush1.bf16.msra.mxu1 %v16919_v36  ;;  %v16943_v23 = vld [vmem:[#allocation5 + $0x7a0] ss:$16 sps:$4 sm:$0xff]   ;;  %v16948_v36 = vld [vmem:[#allocation5 + $0x584] ss:$16 sps:$4 sm:$0xff]  }
 0x2bf   : > { %2529 = vmatprep.subr.bf16.mxu0 %v16924_v37  ;;  %2602 = vmatprep.subr.bf16.mxu1 %v16927_v26  ;;  %v16951_v37 = vld [vmem:[#allocation5 + $0x784] ss:$16 sps:$4 sm:$0xff]   ;;  %v16946_v26 = vld [vmem:[#allocation5 + $0x580] ss:$16 sps:$4 sm:$0xff]  }
 0x2c2   : > { %2530 = vmatpush1.bf16.msra.mxu0 %v16922_v27  ;;  %2603 = vmatpush1.bf16.msra.mxu1 %v16925_v12  ;;  %v16949_v27 = vld [vmem:[#allocation5 + $0x780] ss:$16 sps:$4 sm:$0xff]   ;;  %v16954_v12 = vld [vmem:[#allocation5 + $0x564] ss:$16 sps:$4 sm:$0xff]  }
 0x2c3   : > { %2531 = vmatprep.subr.bf16.mxu0 %v16930_v62  ;;  %2604 = vmatprep.subr.bf16.mxu1 %v16933_v2  ;;  %v16957_v62 = vld [vmem:[#allocation5 + $0x764] ss:$16 sps:$4 sm:$0xff]   ;;  %v16952_v2 = vld [vmem:[#allocation5 + $0x560] ss:$16 sps:$4 sm:$0xff]  }
 0x2c6   : > { %2532 = vmatpush2.bf16.msra.mxu0 %v16928_v38  ;;  %2605 = vmatpush2.bf16.msra.mxu1 %v16931_v44  ;;  %v16955_v38 = vld [vmem:[#allocation5 + $0x760] ss:$16 sps:$4 sm:$0xff]   ;;  %v16960_v44 = vld [vmem:[#allocation5 + $0x544] ss:$16 sps:$4 sm:$0xff]  }
 0x2c7   : > { %2533 = vmatprep.subr.bf16.mxu0 %v16936_v1  ;;  %2606 = vmatprep.subr.bf16.mxu1 %v16939_v54  ;;  %v16963_v1 = vld [vmem:[#allocation5 + $0x744] ss:$16 sps:$4 sm:$0xff]   ;;  %v16958_v54 = vld [vmem:[#allocation5 + $0x540] ss:$16 sps:$4 sm:$0xff]  }
 0x2ca   : > { %2534 = vmatpush2.bf16.msra.mxu0 %v16934_v52  ;;  %2607 = vmatpush2.bf16.msra.mxu1 %v16937_v6  ;;  %v16961_v52 = vld [vmem:[#allocation5 + $0x740] ss:$16 sps:$4 sm:$0xff]   ;;  %v16966_v6 = vld [vmem:[#allocation5 + $0x524] ss:$16 sps:$4 sm:$0xff]  }
 0x2cb   : > { %2535 = vmatprep.subr.bf16.mxu0 %v16942_v16  ;;  %2608 = vmatprep.subr.bf16.mxu1 %v16945_v17  ;;  %v16969_v16 = vld [vmem:[#allocation5 + $0x724] ss:$16 sps:$4 sm:$0xff]   ;;  %v16964_v17 = vld [vmem:[#allocation5 + $0x520] ss:$16 sps:$4 sm:$0xff]  }
 0x2ce   : > { %2536 = vmatpush2.bf16.msra.mxu0 %v16940_v22  ;;  %2609 = vmatpush2.bf16.msra.mxu1 %v16943_v23  ;;  %v16967_v22 = vld [vmem:[#allocation5 + $0x720] ss:$16 sps:$4 sm:$0xff]   ;;  %v16972_v23 = vld [vmem:[#allocation5 + $0x504] ss:$16 sps:$4 sm:$0xff]  }
 0x2cf   : > { %2537 = vmatprep.subr.bf16.mxu0 %v16948_v36  ;;  %2610 = vmatprep.subr.bf16.mxu1 %v16951_v37  ;;  %v16975_v36 = vld [vmem:[#allocation5 + $0x704] ss:$16 sps:$4 sm:$0xff]   ;;  %v16970_v37 = vld [vmem:[#allocation5 + $0x500] ss:$16 sps:$4 sm:$0xff]  }
 0x2d2   : > { %2538 = vmatpush2.bf16.msra.mxu0 %v16946_v26  ;;  %2611 = vmatpush2.bf16.msra.mxu1 %v16949_v27  ;;  %v16973_v26 = vld [vmem:[#allocation5 + $0x700] ss:$16 sps:$4 sm:$0xff]   ;;  %v16978_v27 = vld [vmem:[#allocation5 + $0x4ec] ss:$16 sps:$4 sm:$0xff]  }
 0x2d3   : > { %2539 = vmatprep.subr.bf16.mxu0 %v16954_v12  ;;  %2612 = vmatprep.subr.bf16.mxu1 %v16957_v62  ;;  %v16981_v12 = vld [vmem:[#allocation5 + $0x6ec] ss:$16 sps:$4 sm:$0xff]  }
 0x2d6   : > { %2540 = vmatpush2.bf16.msra.mxu0 %v16952_v2  ;;  %2613 = vmatpush2.bf16.msra.mxu1 %v16955_v38 }
 0x2d7   : > { %2541 = vmatprep.subr.bf16.mxu0 %v16960_v44  ;;  %2614 = vmatprep.subr.bf16.mxu1 %v16963_v1 }
 0x2da   : > { %2542 = vmatpush2.bf16.msra.mxu0 %v16958_v54  ;;  %2615 = vmatpush2.bf16.msra.mxu1 %v16961_v52 }
 0x2db   : > { %2543 = vmatprep.subr.bf16.mxu0 %v16966_v6  ;;  %2616 = vmatprep.subr.bf16.mxu1 %v16969_v16 }
 0x2de   : > { %2544 = vmatpush2.bf16.msra.mxu0 %v16964_v17  ;;  %2617 = vmatpush2.bf16.msra.mxu1 %v16967_v22 }
 0x2df   : > { %2545 = vmatprep.subr.bf16.mxu0 %v16972_v23  ;;  %2618 = vmatprep.subr.bf16.mxu1 %v16975_v36 }
 0x2e2   : > { %2546 = vmatpush2.bf16.msra.mxu0 %v16970_v37  ;;  %2619 = vmatpush2.bf16.msra.mxu1 %v16973_v26 }
 0x2e3   : > { %2661 = vmatprep.subr.bf16.mxu0 %v16978_v27  ;;  %2734 = vmatprep.subr.bf16.mxu1 %v16981_v12 }
 0x344   : > { %v1288_v62 = vpop.f32.mrf.mxu0  ;;  %v1361_v2 = vpop.f32.mrf.mxu1 }
 0x346   : > { %v20228_v38 = vpop.f32.mrf.mxu0  ;;  %v20230_v44 = vpop.f32.mrf.mxu1 }
 0x348   : > { %v1292_v1 = vpop.f32.mrf.mxu0  ;;  %v1365_v54 = vpop.f32.mrf.mxu1 }
 0x349   : > { %v20232_v52 = vpack.c.bf16 %v1292_v1, %v1288_v62  ;;  %v20234_v6 = vpack.c.bf16 %v1365_v54, %v1361_v2 }
 0x34a   : > { %v20236_v16 = vpop.f32.mrf.mxu0  ;;  %v20238_v17 = vpop.f32.mrf.mxu1 }
 0x34c   : > { %v1298_v22 = vpop.f32.mrf.mxu0  ;;  %v1371_v23 = vpop.f32.mrf.mxu1 }
 0x34e   : > { %v20240_v36 = vpop.f32.mrf.mxu0  ;;  %v20242_v37 = vpop.f32.mrf.mxu1 }
 0x350   : > { %v1302_v26 = vpop.f32.mrf.mxu0  ;;  %v1375_v27 = vpop.f32.mrf.mxu1 }
 0x351   : > { %v20244_v12 = vpack.c.bf16 %v1302_v26, %v1298_v22  ;;  %v20246_v7 = vpack.c.bf16 %v1375_v27, %v1371_v23 }
 0x352   : > { %v20248_v62 = vpop.f32.mrf.mxu0  ;;  %v20250_v2 = vpop.f32.mrf.mxu1 }
 0x354   : > { %v1308_v1 = vpop.f32.mrf.mxu0  ;;  %v1381_v54 = vpop.f32.mrf.mxu1 }
 0x356   : > { %v20252_v15 = vpop.f32.mrf.mxu0  ;;  %v20254_v29 = vpop.f32.mrf.mxu1 }
 0x358   : > { %v1312_v13 = vpop.f32.mrf.mxu0  ;;  %v1385_v31 = vpop.f32.mrf.mxu1 }
 0x359   : > { %v20256_v30 = vpack.c.bf16 %v1312_v13, %v1308_v1  ;;  %v20258_v9 = vpack.c.bf16 %v1385_v31, %v1381_v54 }
 0x35a   : > { %v20260_v22 = vpop.f32.mrf.mxu0  ;;  %v20262_v23 = vpop.f32.mrf.mxu1 }
 0x35c   : > { %v1318_v26 = vpop.f32.mrf.mxu0  ;;  %v1391_v27 = vpop.f32.mrf.mxu1 }
 0x35e   : > { %v20264_v8 = vpop.f32.mrf.mxu0  ;;  %v20266_v35 = vpop.f32.mrf.mxu1 }
 0x360   : > { %v1322_v34 = vpop.f32.mrf.mxu0  ;;  %v1395_v28 = vpop.f32.mrf.mxu1 }
 0x361   : > { %v20268_v61 = vpack.c.bf16 %v1322_v34, %v1318_v26  ;;  %v20270_v45 = vpack.c.bf16 %v1395_v28, %v1391_v27  ;;  %v16976_v34 = vld [vmem:[#allocation5 + $0x4e8] ss:$16 sps:$4 sm:$0xff]  }
 0x362   : > { %v20272_v13 = vpop.f32.mrf.mxu0  ;;  %v20274_v31 = vpop.f32.mrf.mxu1  ;;  %v16979_v26 = vld [vmem:[#allocation5 + $0x6e8] ss:$16 sps:$4 sm:$0xff]  }
 0x364   : > { %v1618_v1 = vpop.f32.mrf.mxu0  ;;  %v1691_v54 = vpop.f32.mrf.mxu1 }
 0x366   : > { %v1620_v39 = vpop.f32.mrf.mxu0  ;;  %v1693_v47 = vpop.f32.mrf.mxu1 }
 0x368   : > { %v1622_v46 = vpop.f32.mrf.mxu0  ;;  %v1695_v42 = vpop.f32.mrf.mxu1 }
 0x369   : > { %v20280_v28 = vpack.c.bf16 %v1622_v46, %v1618_v1  ;;  %v20282_v27 = vpack.c.bf16 %v1695_v42, %v1691_v54 }
 0x36a   : > { %v1624_v14 = vpop.f32.mrf.mxu0  ;;  %v1697_v49 = vpop.f32.mrf.mxu1 }
 0x36b   : > { %v20276_v56 = vpack.c.bf16 %v1624_v14, %v1620_v39  ;;  %v20278_v55 = vpack.c.bf16 %v1697_v49, %v1693_v47  ;;  %v16982_v49 = vld [vmem:[#allocation5 + $0x4c8] ss:$16 sps:$4 sm:$0xff]   ;;  %v16990_v47 = vld [vmem:[#allocation5 + $0x4ac] ss:$16 sps:$4 sm:$0xff]  }
 0x36c   : > { %v1628_v51 = vpop.f32.mrf.mxu0  ;;  %v1701_v50 = vpop.f32.mrf.mxu1  ;;  %v16985_v39 = vld [vmem:[#allocation5 + $0x6c8] ss:$16 sps:$4 sm:$0xff]   ;;  %v16993_v14 = vld [vmem:[#allocation5 + $0x6ac] ss:$16 sps:$4 sm:$0xff]  }
 0x36d   : > { %2547 = vmatprep.mubr.bf16.mxu0 %v20276_v56  ;;  %2620 = vmatprep.mubr.bf16.mxu1 %v20278_v55 }
 0x36e   : > { %v1630_v63 = vpop.f32.mrf.mxu0  ;;  %v1703_v60 = vpop.f32.mrf.mxu1  ;;  %2548 = vmatmul.mubr.bf16.vlgmr.msra.gmra.mxu0 %v20280_v28  ;;  %2621 = vmatmul.mubr.bf16.vlgmr.msra.gmra.mxu1 %v20282_v27 }
 0x36f   : > { %2662 = vmatpush1.bf16.msra.mxu0 %v16976_v34  ;;  %2735 = vmatpush1.bf16.msra.mxu1 %v16979_v26  ;;  %v16988_v34 = vld [vmem:[#allocation5 + $0x4a8] ss:$16 sps:$4 sm:$0xff]  }
 0x370   : > { %v1632_v42 = vpop.f32.mrf.mxu0  ;;  %v1705_v46 = vpop.f32.mrf.mxu1  ;;  %2663 = vmatprep.subr.bf16.mxu0 %v16984_v58  ;;  %2736 = vmatprep.subr.bf16.mxu1 %v16987_v57  ;;  %v16991_v26 = vld [vmem:[#allocation5 + $0x6a8] ss:$16 sps:$4 sm:$0xff]   ;;  %v16996_v57 = vld [vmem:[#allocation5 + $0x48c] ss:$16 sps:$4 sm:$0xff]  }
 0x371   : > { %v20288_v1 = vpack.c.bf16 %v1632_v42, %v1628_v51  ;;  %v20290_v54 = vpack.c.bf16 %v1705_v46, %v1701_v50  ;;  %v16999_v58 = vld [vmem:[#allocation5 + $0x68c] ss:$16 sps:$4 sm:$0xff]  }
 0x372   : > { %v1634_v59 = vpop.f32.mrf.mxu0  ;;  %v1707_v3 = vpop.f32.mrf.mxu1 }
 0x373   : > { %v20292_v5 = vpack.c.bf16 %v1634_v59, %v1630_v63  ;;  %v20294_v4 = vpack.c.bf16 %v1707_v3, %v1703_v60  ;;  %2664 = vmatpush1.bf16.msra.mxu0 %v16982_v49  ;;  %2737 = vmatpush1.bf16.msra.mxu1 %v16985_v39  ;;  %v16994_v3 = vld [vmem:[#allocation5 + $0x488] ss:$16 sps:$4 sm:$0xff]   ;;  %v17002_v49 = vld [vmem:[#allocation5 + $0x46c] ss:$16 sps:$4 sm:$0xff]  }
 0x374   : > { %v1638_v11 = vpop.f32.mrf.mxu0  ;;  %v1711_v10 = vpop.f32.mrf.mxu1  ;;  %2665 = vmatprep.subr.bf16.mxu0 %v16990_v47  ;;  %2738 = vmatprep.subr.bf16.mxu1 %v16993_v14  ;;  %v16997_v59 = vld [vmem:[#allocation5 + $0x688] ss:$16 sps:$4 sm:$0xff]   ;;  %v17005_v39 = vld [vmem:[#allocation5 + $0x66c] ss:$16 sps:$4 sm:$0xff]  }
 0x375   : > { %2557 = vmatprep.mubr.bf16.mxu0 %v20292_v5  ;;  %2630 = vmatprep.mubr.bf16.mxu1 %v20294_v4 }
 0x376   : > { %v1640_v50 = vpop.f32.mrf.mxu0  ;;  %v1713_v51 = vpop.f32.mrf.mxu1  ;;  %2558 = vmatmul.mubr.bf16.gmra.mxu0 %v20288_v1  ;;  %2631 = vmatmul.mubr.bf16.gmra.mxu1 %v20290_v54 }
 0x377   : > { %2666 = vmatpush1.bf16.msra.mxu0 %v16988_v34  ;;  %2739 = vmatpush1.bf16.msra.mxu1 %v16991_v26  ;;  %v17000_v34 = vld [vmem:[#allocation5 + $0x468] ss:$16 sps:$4 sm:$0xff]  }
 0x378   : > { %v1642_v60 = vpop.f32.mrf.mxu0  ;;  %v1715_v63 = vpop.f32.mrf.mxu1  ;;  %2667 = vmatprep.subr.bf16.mxu0 %v16996_v57  ;;  %2740 = vmatprep.subr.bf16.mxu1 %v16999_v58  ;;  %v17003_v26 = vld [vmem:[#allocation5 + $0x668] ss:$16 sps:$4 sm:$0xff]   ;;  %v17008_v57 = vld [vmem:[#allocation5 + $0x44c] ss:$16 sps:$4 sm:$0xff]  }
 0x379   : > { %v20300_v42 = vpack.c.bf16 %v1642_v60, %v1638_v11  ;;  %v20302_v46 = vpack.c.bf16 %v1715_v63, %v1711_v10  ;;  %v17011_v58 = vld [vmem:[#allocation5 + $0x64c] ss:$16 sps:$4 sm:$0xff]  }
 0x37a   : > { %v1644_v47 = vpop.f32.mrf.mxu0  ;;  %v1717_v14 = vpop.f32.mrf.mxu1  ;;  %v17014_v60 = vld [vmem:[#allocation5 + $0x42c] ss:$16 sps:$4 sm:$0xff]  }
 0x37b   : > { %v20304_v19 = vpack.c.bf16 %v1644_v47, %v1640_v50  ;;  %v20306_v18 = vpack.c.bf16 %v1717_v14, %v1713_v51  ;;  %2668 = vmatpush1.bf16.msra.mxu0 %v16994_v3  ;;  %2741 = vmatpush1.bf16.msra.mxu1 %v16997_v59  ;;  %v17006_v50 = vld [vmem:[#allocation5 + $0x448] ss:$16 sps:$4 sm:$0xff]   ;;  %v17017_v63 = vld [vmem:[#allocation5 + $0x62c] ss:$16 sps:$4 sm:$0xff]  }
 0x37c   : > { %v1648_v25 = vpop.f32.mrf.mxu0  ;;  %v1721_v24 = vpop.f32.mrf.mxu1  ;;  %2669 = vmatprep.subr.bf16.mxu0 %v17002_v49  ;;  %2742 = vmatprep.subr.bf16.mxu1 %v17005_v39  ;;  %v17009_v51 = vld [vmem:[#allocation5 + $0x648] ss:$16 sps:$4 sm:$0xff]  }
 0x37d   : > { %2567 = vmatprep.mubr.bf16.mxu0 %v20304_v19  ;;  %2640 = vmatprep.mubr.bf16.mxu1 %v20306_v18 }
 0x37e   : > { %v1650_v10 = vpop.f32.mrf.mxu0  ;;  %v1723_v11 = vpop.f32.mrf.mxu1  ;;  %2568 = vmatmul.mubr.bf16.gmra.mxu0 %v20300_v42  ;;  %2641 = vmatmul.mubr.bf16.gmra.mxu1 %v20302_v46 }
 0x37f   : > { %2670 = vmatpush1.bf16.msra.mxu0 %v17000_v34  ;;  %2743 = vmatpush1.bf16.msra.mxu1 %v17003_v26  ;;  %v17012_v34 = vld [vmem:[#allocation5 + $0x428] ss:$16 sps:$4 sm:$0xff]  }
 0x380   : > { %v1652_v3 = vpop.f32.mrf.mxu0  ;;  %v1725_v59 = vpop.f32.mrf.mxu1  ;;  %2671 = vmatprep.subr.bf16.mxu0 %v17008_v57  ;;  %2744 = vmatprep.subr.bf16.mxu1 %v17011_v58  ;;  %v17015_v26 = vld [vmem:[#allocation5 + $0x628] ss:$16 sps:$4 sm:$0xff]   ;;  %v17023_v57 = vld [vmem:[#allocation5 + $0x60c] ss:$16 sps:$4 sm:$0xff]  }
 0x381   : > { %v20312_v49 = vpack.c.bf16 %v1652_v3, %v1648_v25  ;;  %v20314_v39 = vpack.c.bf16 %v1725_v59, %v1721_v24  ;;  %v17020_v25 = vld [vmem:[#allocation5 + $0x40c] ss:$16 sps:$4 sm:$0xff]   ;;  %v17018_v24 = vld [vmem:[#allocation5 + $0x408] ss:$16 sps:$4 sm:$0xff]  }
 0x382   : > { %v1654_v47 = vpop.f32.mrf.mxu0  ;;  %v1727_v14 = vpop.f32.mrf.mxu1  ;;  %v17021_v58 = vld [vmem:[#allocation5 + $0x608] ss:$16 sps:$4 sm:$0xff]   ;;  %v17032_v3 = vld [vmem:[#allocation5 + $0x5cc] ss:$16 sps:$4 sm:$0xff]  }
 0x383   : > { %v20316_v21 = vpack.c.bf16 %v1654_v47, %v1650_v10  ;;  %v20318_v20 = vpack.c.bf16 %v1727_v14, %v1723_v11  ;;  %2672 = vmatpush1.bf16.msra.mxu0 %v17006_v50  ;;  %2745 = vmatpush1.bf16.msra.mxu1 %v17009_v51  ;;  %v17026_v10 = vld [vmem:[#allocation5 + $0x5ec] ss:$16 sps:$4 sm:$0xff]   ;;  %v17024_v50 = vld [vmem:[#allocation5 + $0x5e8] ss:$16 sps:$4 sm:$0xff]  }
 0x384   : > { %2673 = vmatprep.subr.bf16.mxu0 %v17014_v60  ;;  %2746 = vmatprep.subr.bf16.mxu1 %v17017_v63  ;;  %v17029_v11 = vld [vmem:[#allocation5 + $0x7ec] ss:$16 sps:$4 sm:$0xff]   ;;  %v17027_v51 = vld [vmem:[#allocation5 + $0x7e8] ss:$16 sps:$4 sm:$0xff]  }
 0x385   : > { %2577 = vmatprep.mubr.bf16.mxu0 %v20316_v21  ;;  %2650 = vmatprep.mubr.bf16.mxu1 %v20318_v20  ;;  %v17035_v59 = vld [vmem:[#allocation5 + $0x7cc] ss:$16 sps:$4 sm:$0xff]   ;;  %v17030_v60 = vld [vmem:[#allocation5 + $0x5c8] ss:$16 sps:$4 sm:$0xff]  }
 0x386   : > { %2578 = vmatmul.mubr.bf16.gmra.mxu0 %v20312_v49  ;;  %2651 = vmatmul.mubr.bf16.gmra.mxu1 %v20314_v39  ;;  %v17033_v63 = vld [vmem:[#allocation5 + $0x7c8] ss:$16 sps:$4 sm:$0xff]  }
 0x387   : > { %2674 = vmatpush1.bf16.msra.mxu0 %v17012_v34  ;;  %2747 = vmatpush1.bf16.msra.mxu1 %v17015_v26  ;;  %v17036_v47 = vld [vmem:[#allocation5 + $0x5a8] ss:$16 sps:$4 sm:$0xff]   ;;  %v17044_v34 = vld [vmem:[#allocation5 + $0x58c] ss:$16 sps:$4 sm:$0xff]  }
 0x388   : > { %2693 = vmatprep.mubr.bf16.mxu0 %v20276_v56  ;;  %2766 = vmatprep.mubr.bf16.mxu1 %v20278_v55  ;;  %v17038_v56 = vld [vmem:[#allocation5 + $0x5ac] ss:$16 sps:$4 sm:$0xff]   ;;  %v17039_v14 = vld [vmem:[#allocation5 + $0x7a8] ss:$16 sps:$4 sm:$0xff]  }
 0x389   : > { %2675 = vmatprep.subr.bf16.mxu0 %v17020_v25  ;;  %2748 = vmatprep.subr.bf16.mxu1 %v17023_v57  ;;  %v17041_v55 = vld [vmem:[#allocation5 + $0x7ac] ss:$16 sps:$4 sm:$0xff]   ;;  %v17042_v25 = vld [vmem:[#allocation5 + $0x588] ss:$16 sps:$4 sm:$0xff]  }
 0x38a   : > { %v17047_v26 = vld [vmem:[#allocation5 + $0x78c] ss:$16 sps:$4 sm:$0xff]   ;;  %v17045_v57 = vld [vmem:[#allocation5 + $0x788] ss:$16 sps:$4 sm:$0xff]  }
 0x38b   : > { %2676 = vmatpush1.bf16.msra.mxu0 %v17018_v24  ;;  %2749 = vmatpush1.bf16.msra.mxu1 %v17021_v58  ;;  %v17050_v24 = vld [vmem:[#allocation5 + $0x56c] ss:$16 sps:$4 sm:$0xff]  }
 0x38c   : > { %2677 = vmatprep.subr.bf16.mxu0 %v17026_v10  ;;  %2750 = vmatprep.subr.bf16.mxu1 %v17029_v11  ;;  %v17053_v58 = vld [vmem:[#allocation5 + $0x76c] ss:$16 sps:$4 sm:$0xff]   ;;  %v17048_v10 = vld [vmem:[#allocation5 + $0x568] ss:$16 sps:$4 sm:$0xff]  }
 0x38d   : > { %v17051_v11 = vld [vmem:[#allocation5 + $0x768] ss:$16 sps:$4 sm:$0xff]  }
 0x38f   : > { %2678 = vmatpush2.bf16.msra.mxu0 %v17024_v50  ;;  %2751 = vmatpush2.bf16.msra.mxu1 %v17027_v51  ;;  %v17056_v50 = vld [vmem:[#allocation5 + $0x54c] ss:$16 sps:$4 sm:$0xff]  }
 0x390   : > { %2679 = vmatprep.subr.bf16.mxu0 %v17032_v3  ;;  %2752 = vmatprep.subr.bf16.mxu1 %v17035_v59  ;;  %v17059_v51 = vld [vmem:[#allocation5 + $0x74c] ss:$16 sps:$4 sm:$0xff]   ;;  %v17054_v3 = vld [vmem:[#allocation5 + $0x548] ss:$16 sps:$4 sm:$0xff]  }
 0x391   : > { %v17057_v59 = vld [vmem:[#allocation5 + $0x748] ss:$16 sps:$4 sm:$0xff]  }
 0x393   : > { %2680 = vmatpush2.bf16.msra.mxu0 %v17030_v60  ;;  %2753 = vmatpush2.bf16.msra.mxu1 %v17033_v63  ;;  %v17062_v60 = vld [vmem:[#allocation5 + $0x52c] ss:$16 sps:$4 sm:$0xff]  }
 0x394   : > { %2681 = vmatprep.subr.bf16.mxu0 %v17038_v56  ;;  %2754 = vmatprep.subr.bf16.mxu1 %v17041_v55  ;;  %v17065_v63 = vld [vmem:[#allocation5 + $0x72c] ss:$16 sps:$4 sm:$0xff]   ;;  %v17060_v56 = vld [vmem:[#allocation5 + $0x528] ss:$16 sps:$4 sm:$0xff]  }
 0x395   : > { %v17063_v55 = vld [vmem:[#allocation5 + $0x728] ss:$16 sps:$4 sm:$0xff]  }
 0x397   : > { %2682 = vmatpush2.bf16.msra.mxu0 %v17036_v47  ;;  %2755 = vmatpush2.bf16.msra.mxu1 %v17039_v14  ;;  %v17068_v47 = vld [vmem:[#allocation5 + $0x50c] ss:$16 sps:$4 sm:$0xff]  }
 0x398   : > { %2683 = vmatprep.subr.bf16.mxu0 %v17044_v34  ;;  %2756 = vmatprep.subr.bf16.mxu1 %v17047_v26  ;;  %v17071_v14 = vld [vmem:[#allocation5 + $0x70c] ss:$16 sps:$4 sm:$0xff]   ;;  %v17066_v34 = vld [vmem:[#allocation5 + $0x508] ss:$16 sps:$4 sm:$0xff]  }
 0x399   : > { %v17069_v26 = vld [vmem:[#allocation5 + $0x708] ss:$16 sps:$4 sm:$0xff]  }
 0x39b   : > { %2684 = vmatpush2.bf16.msra.mxu0 %v17042_v25  ;;  %2757 = vmatpush2.bf16.msra.mxu1 %v17045_v57  ;;  %v17074_v25 = vld [vmem:[#allocation5 + $0xe4] ss:$16 sps:$4 sm:$0xff]  }
 0x39c   : > { %2685 = vmatprep.subr.bf16.mxu0 %v17050_v24  ;;  %2758 = vmatprep.subr.bf16.mxu1 %v17053_v58  ;;  %v17077_v57 = vld [vmem:[#allocation5 + $0x2e4] ss:$16 sps:$4 sm:$0xff]   ;;  %v17072_v24 = vld [vmem:[#allocation5 + $0xe0] ss:$16 sps:$4 sm:$0xff]  }
 0x39d   : > { %v17075_v58 = vld [vmem:[#allocation5 + $0x2e0] ss:$16 sps:$4 sm:$0xff]  }
 0x39f   : > { %2686 = vmatpush2.bf16.msra.mxu0 %v17048_v10  ;;  %2759 = vmatpush2.bf16.msra.mxu1 %v17051_v11  ;;  %v17080_v10 = vld [vmem:[#allocation5 + $0xc4] ss:$16 sps:$4 sm:$0xff]  }
 0x3a0   : > { %2687 = vmatprep.subr.bf16.mxu0 %v17056_v50  ;;  %2760 = vmatprep.subr.bf16.mxu1 %v17059_v51  ;;  %v17083_v11 = vld [vmem:[#allocation5 + $0x2c4] ss:$16 sps:$4 sm:$0xff]   ;;  %v17078_v50 = vld [vmem:[#allocation5 + $0xc0] ss:$16 sps:$4 sm:$0xff]  }
 0x3a1   : > { %v17081_v51 = vld [vmem:[#allocation5 + $0x2c0] ss:$16 sps:$4 sm:$0xff]  }
 0x3a3   : > { %2688 = vmatpush2.bf16.msra.mxu0 %v17054_v3  ;;  %2761 = vmatpush2.bf16.msra.mxu1 %v17057_v59  ;;  %v17086_v3 = vld [vmem:[#allocation5 + $0xa4] ss:$16 sps:$4 sm:$0xff]  }
 0x3a4   : > { %2689 = vmatprep.subr.bf16.mxu0 %v17062_v60  ;;  %2762 = vmatprep.subr.bf16.mxu1 %v17065_v63  ;;  %v17089_v59 = vld [vmem:[#allocation5 + $0x2a4] ss:$16 sps:$4 sm:$0xff]   ;;  %v17084_v60 = vld [vmem:[#allocation5 + $0xa0] ss:$16 sps:$4 sm:$0xff]  }
 0x3a5   : > { %v17087_v63 = vld [vmem:[#allocation5 + $0x2a0] ss:$16 sps:$4 sm:$0xff]  }
 0x3a7   : > { %2690 = vmatpush2.bf16.msra.mxu0 %v17060_v56  ;;  %2763 = vmatpush2.bf16.msra.mxu1 %v17063_v55  ;;  %v17098_v56 = vld [vmem:[#allocation5 + $0x64] ss:$16 sps:$4 sm:$0xff]  }
 0x3a8   : > { %2691 = vmatprep.subr.bf16.mxu0 %v17068_v47  ;;  %2764 = vmatprep.subr.bf16.mxu1 %v17071_v14  ;;  %v17101_v55 = vld [vmem:[#allocation5 + $0x264] ss:$16 sps:$4 sm:$0xff]   ;;  %v17096_v47 = vld [vmem:[#allocation5 + $0x60] ss:$16 sps:$4 sm:$0xff]  }
 0x3a9   : > { %v17099_v14 = vld [vmem:[#allocation5 + $0x260] ss:$16 sps:$4 sm:$0xff]  }
 0x3ab   : > { %2692 = vmatpush2.bf16.msra.mxu0 %v17066_v34  ;;  %2765 = vmatpush2.bf16.msra.mxu1 %v17069_v26  ;;  %v17110_v34 = vld [vmem:[#allocation5 + $0x24] ss:$16 sps:$4 sm:$0xff]  }
 0x3ac   : > { %3447 = vmatprep.subr.bf16.mxu0 %v17074_v25  ;;  %3520 = vmatprep.subr.bf16.mxu1 %v17077_v57  ;;  %v17113_v26 = vld [vmem:[#allocation5 + $0x224] ss:$16 sps:$4 sm:$0xff]   ;;  %v17108_v25 = vld [vmem:[#allocation5 + $0x20] ss:$16 sps:$4 sm:$0xff]  }
 0x3ad   : > { %v17111_v57 = vld [vmem:[#allocation5 + $0x220] ss:$16 sps:$4 sm:$0xff]  }
 0x3ae   : > { %2694 = vmatmul.mubr.bf16.vlgmr.msra.gmra.mxu0 %v20280_v28  ;;  %2767 = vmatmul.mubr.bf16.vlgmr.msra.gmra.mxu1 %v20282_v27  ;;  %v17092_v28 = vld [vmem:[#allocation5 + $0x84] ss:$16 sps:$4 sm:$0xff]  }
 0x3af   : > { %2703 = vmatprep.mubr.bf16.mxu0 %v20292_v5  ;;  %2776 = vmatprep.mubr.bf16.mxu1 %v20294_v4  ;;  %v17095_v27 = vld [vmem:[#allocation5 + $0x284] ss:$16 sps:$4 sm:$0xff]   ;;  %v17090_v4 = vld [vmem:[#allocation5 + $0x80] ss:$16 sps:$4 sm:$0xff]  }
 0x3b0   : > { %3448 = vmatpush1.bf16.msra.mxu0 %v17072_v24  ;;  %3521 = vmatpush1.bf16.msra.mxu1 %v17075_v58  ;;  %v17093_v5 = vld [vmem:[#allocation5 + $0x280] ss:$16 sps:$4 sm:$0xff]  }
 0x3b1   : > { %3449 = vmatprep.subr.bf16.mxu0 %v17080_v10  ;;  %3522 = vmatprep.subr.bf16.mxu1 %v17083_v11  ;;  %v17120_v24 = vld [vmem:[#allocation5 + $0x1e0] ss:$16 sps:$4 sm:$0xff]  }
 0x3b2   : > { %v17123_v58 = vld [vmem:[#allocation5 + $0x3e0] ss:$16 sps:$4 sm:$0xff]  }
 0x3b3   : > { %v17126_v10 = vld [vmem:[#allocation5 + $0x1c0] ss:$16 sps:$4 sm:$0xff]  }
 0x3b4   : > { %3450 = vmatpush1.bf16.msra.mxu0 %v17078_v50  ;;  %3523 = vmatpush1.bf16.msra.mxu1 %v17081_v51  ;;  %v17129_v11 = vld [vmem:[#allocation5 + $0x3c0] ss:$16 sps:$4 sm:$0xff]   ;;  %v17134_v50 = vld [vmem:[#allocation5 + $0x1a4] ss:$16 sps:$4 sm:$0xff]  }
 0x3b5   : > { %3451 = vmatprep.subr.bf16.mxu0 %v17086_v3  ;;  %3524 = vmatprep.subr.bf16.mxu1 %v17089_v59  ;;  %v17137_v51 = vld [vmem:[#allocation5 + $0x3a4] ss:$16 sps:$4 sm:$0xff]   ;;  %v17132_v3 = vld [vmem:[#allocation5 + $0x1a0] ss:$16 sps:$4 sm:$0xff]  }
 0x3b6   : > { %2704 = vmatmul.mubr.bf16.gmra.mxu0 %v20288_v1  ;;  %2777 = vmatmul.mubr.bf16.gmra.mxu1 %v20290_v54  ;;  %v17104_v1 = vld [vmem:[#allocation5 + $0x44] ss:$16 sps:$4 sm:$0xff]   ;;  %v17135_v59 = vld [vmem:[#allocation5 + $0x3a0] ss:$16 sps:$4 sm:$0xff]  }
 0x3b7   : > { %2713 = vmatprep.mubr.bf16.mxu0 %v20304_v19  ;;  %2786 = vmatprep.mubr.bf16.mxu1 %v20306_v18  ;;  %v17107_v54 = vld [vmem:[#allocation5 + $0x244] ss:$16 sps:$4 sm:$0xff]   ;;  %v17102_v18 = vld [vmem:[#allocation5 + $0x40] ss:$16 sps:$4 sm:$0xff]  }
 0x3b8   : > { %3452 = vmatpush1.bf16.msra.mxu0 %v17084_v60  ;;  %3525 = vmatpush1.bf16.msra.mxu1 %v17087_v63  ;;  %v17105_v19 = vld [vmem:[#allocation5 + $0x240] ss:$16 sps:$4 sm:$0xff]   ;;  %v17140_v60 = vld [vmem:[#allocation5 + $0x184] ss:$16 sps:$4 sm:$0xff]  }
 0x3b9   : > { %3453 = vmatprep.subr.bf16.mxu0 %v17092_v28  ;;  %3526 = vmatprep.subr.bf16.mxu1 %v17095_v27  ;;  %v17143_v63 = vld [vmem:[#allocation5 + $0x384] ss:$16 sps:$4 sm:$0xff]   ;;  %v17138_v28 = vld [vmem:[#allocation5 + $0x180] ss:$16 sps:$4 sm:$0xff]  }
 0x3ba   : > { %v17141_v27 = vld [vmem:[#allocation5 + $0x380] ss:$16 sps:$4 sm:$0xff]  }
 0x3bc   : > { %3454 = vmatpush1.bf16.msra.mxu0 %v17090_v4  ;;  %3527 = vmatpush1.bf16.msra.mxu1 %v17093_v5  ;;  %v17146_v4 = vld [vmem:[#allocation5 + $0x164] ss:$16 sps:$4 sm:$0xff]  }
 0x3bd   : > { %3455 = vmatprep.subr.bf16.mxu0 %v17098_v56  ;;  %3528 = vmatprep.subr.bf16.mxu1 %v17101_v55  ;;  %v17149_v5 = vld [vmem:[#allocation5 + $0x364] ss:$16 sps:$4 sm:$0xff]   ;;  %v17144_v56 = vld [vmem:[#allocation5 + $0x160] ss:$16 sps:$4 sm:$0xff]  }
 0x3be   : > { %2714 = vmatmul.mubr.bf16.gmra.mxu0 %v20300_v42  ;;  %2787 = vmatmul.mubr.bf16.gmra.mxu1 %v20302_v46  ;;  %v20340_v42 = vpack.c.bf16 %v20236_v16, %v20228_v38  ;;  %v17119_v46 = vld [vmem:[#allocation5 + $0x204] ss:$16 sps:$4 sm:$0xff]   ;;  %v17114_v38 = vld [vmem:[#allocation5] ss:$16 sps:$4 sm:$0xff]  }
 0x3bf   : > { %2723 = vmatprep.mubr.bf16.mxu0 %v20316_v21  ;;  %2796 = vmatprep.mubr.bf16.mxu1 %v20318_v20  ;;  %v20344_v21 = vpack.c.bf16 %v20238_v17, %v20230_v44  ;;  %v17116_v20 = vld [vmem:[#allocation5 + $0x4] ss:$16 sps:$4 sm:$0xff]   ;;  %v17117_v16 = vld [vmem:[#allocation5 + $0x200] ss:$16 sps:$4 sm:$0xff]  }
 0x3c0   : > { %3456 = vmatpush1.bf16.msra.mxu0 %v17096_v47  ;;  %3529 = vmatpush1.bf16.msra.mxu1 %v17099_v14  ;;  %v17122_v44 = vld [vmem:[#allocation5 + $0x1e4] ss:$16 sps:$4 sm:$0xff]   ;;  %v17147_v55 = vld [vmem:[#allocation5 + $0x360] ss:$16 sps:$4 sm:$0xff]  }
 0x3c1   : > { %3457 = vmatprep.subr.bf16.mxu0 %v17104_v1  ;;  %3530 = vmatprep.subr.bf16.mxu1 %v17107_v54  ;;  %v17125_v17 = vld [vmem:[#allocation5 + $0x3e4] ss:$16 sps:$4 sm:$0xff]   ;;  %v17150_v1 = vld [vmem:[#allocation5 + $0x140] ss:$16 sps:$4 sm:$0xff]  }
 0x3c2   : > { %v17152_v47 = vld [vmem:[#allocation5 + $0x144] ss:$16 sps:$4 sm:$0xff]   ;;  %v17153_v54 = vld [vmem:[#allocation5 + $0x340] ss:$16 sps:$4 sm:$0xff]  }
 0x3c3   : > { %v17155_v14 = vld [vmem:[#allocation5 + $0x344] ss:$16 sps:$4 sm:$0xff]  }
 0x3c4   : > { %3458 = vmatpush1.bf16.msra.mxu0 %v17102_v18  ;;  %3531 = vmatpush1.bf16.msra.mxu1 %v17105_v19  ;;  %v17158_v18 = vld [vmem:[#allocation5 + $0x124] ss:$16 sps:$4 sm:$0xff]  }
 0x3c5   : > { %3459 = vmatprep.subr.bf16.mxu0 %v17110_v34  ;;  %3532 = vmatprep.subr.bf16.mxu1 %v17113_v26  ;;  %v17161_v19 = vld [vmem:[#allocation5 + $0x324] ss:$16 sps:$4 sm:$0xff]   ;;  %v17156_v34 = vld [vmem:[#allocation5 + $0x120] ss:$16 sps:$4 sm:$0xff]  }
 0x3c6   : > { %2724 = vmatmul.mubr.bf16.gmra.mxu0 %v20312_v49  ;;  %2797 = vmatmul.mubr.bf16.gmra.mxu1 %v20314_v39  ;;  %v17128_v49 = vld [vmem:[#allocation5 + $0x1c4] ss:$16 sps:$4 sm:$0xff]   ;;  %v17159_v26 = vld [vmem:[#allocation5 + $0x320] ss:$16 sps:$4 sm:$0xff]  }
 0x3c7   : > { %3479 = vmatprep.mubr.bf16.mxu0 %v20340_v42  ;;  %3552 = vmatprep.mubr.bf16.mxu1 %v20344_v21  ;;  %v17131_v39 = vld [vmem:[#allocation5 + $0x3c4] ss:$16 sps:$4 sm:$0xff]  }
 0x3c8   : > { %3460 = vmatpush1.bf16.msra.mxu0 %v17108_v25  ;;  %3533 = vmatpush1.bf16.msra.mxu1 %v17111_v57  ;;  %v17164_v25 = vld [vmem:[#allocation5 + $0x104] ss:$16 sps:$4 sm:$0xff]  }
 0x3c9   : > { %3461 = vmatprep.subr.bf16.mxu0 %v17116_v20  ;;  %3534 = vmatprep.subr.bf16.mxu1 %v17119_v46  ;;  %v17167_v57 = vld [vmem:[#allocation5 + $0x304] ss:$16 sps:$4 sm:$0xff]   ;;  %v17162_v20 = vld [vmem:[#allocation5 + $0x100] ss:$16 sps:$4 sm:$0xff]  }
 0x3ca   : > { %v17165_v46 = vld [vmem:[#allocation5 + $0x300] ss:$16 sps:$4 sm:$0xff]  }
 0x3cc   : > { %3462 = vmatpush1.bf16.msra.mxu0 %v17114_v38  ;;  %3535 = vmatpush1.bf16.msra.mxu1 %v17117_v16  ;;  %v17170_v38 = vld [vmem:[#allocation5 + $0xec] ss:$16 sps:$4 sm:$0xff]  }
 0x3cd   : > { %3463 = vmatprep.subr.bf16.mxu0 %v17122_v44  ;;  %3536 = vmatprep.subr.bf16.mxu1 %v17125_v17  ;;  %v17173_v16 = vld [vmem:[#allocation5 + $0x2ec] ss:$16 sps:$4 sm:$0xff]   ;;  %v17168_v44 = vld [vmem:[#allocation5 + $0xe8] ss:$16 sps:$4 sm:$0xff]  }
 0x3ce   : > { %v17171_v17 = vld [vmem:[#allocation5 + $0x2e8] ss:$16 sps:$4 sm:$0xff]  }
 0x3d0   : > { %3464 = vmatpush2.bf16.msra.mxu0 %v17120_v24  ;;  %3537 = vmatpush2.bf16.msra.mxu1 %v17123_v58  ;;  %v20352_v24 = vpack.c.bf16 %v20248_v62, %v20240_v36  ;;  %v20356_v58 = vpack.c.bf16 %v20250_v2, %v20242_v37  ;;  %v17182_v36 = vld [vmem:[#allocation5 + $0xac] ss:$16 sps:$4 sm:$0xff]   ;;  %v17180_v37 = vld [vmem:[#allocation5 + $0xa8] ss:$16 sps:$4 sm:$0xff]  }
 0x3d1   : > { %3465 = vmatprep.subr.bf16.mxu0 %v17128_v49  ;;  %3538 = vmatprep.subr.bf16.mxu1 %v17131_v39  ;;  %v17176_v49 = vld [vmem:[#allocation5 + $0xcc] ss:$16 sps:$4 sm:$0xff]   ;;  %v17183_v2 = vld [vmem:[#allocation5 + $0x2a8] ss:$16 sps:$4 sm:$0xff]  }
 0x3d2   : > { %v17179_v39 = vld [vmem:[#allocation5 + $0x2cc] ss:$16 sps:$4 sm:$0xff]  }
 0x3d3   : > { %v17185_v62 = vld [vmem:[#allocation5 + $0x2ac] ss:$16 sps:$4 sm:$0xff]  }
 0x3d4   : > { %3466 = vmatpush2.bf16.msra.mxu0 %v17126_v10  ;;  %3539 = vmatpush2.bf16.msra.mxu1 %v17129_v11  ;;  %v17174_v10 = vld [vmem:[#allocation5 + $0xc8] ss:$16 sps:$4 sm:$0xff]  }
 0x3d5   : > { %3467 = vmatprep.subr.bf16.mxu0 %v17134_v50  ;;  %3540 = vmatprep.subr.bf16.mxu1 %v17137_v51  ;;  %v17177_v11 = vld [vmem:[#allocation5 + $0x2c8] ss:$16 sps:$4 sm:$0xff]   ;;  %v20364_v50 = vpack.c.bf16 %v20260_v22, %v20252_v15  ;;  %v20368_v51 = vpack.c.bf16 %v20262_v23, %v20254_v29  ;;  %v17194_v29 = vld [vmem:[#allocation5 + $0x6c] ss:$16 sps:$4 sm:$0xff]  }
 0x3d6   : > { %v17186_v15 = vld [vmem:[#allocation5 + $0x88] ss:$16 sps:$4 sm:$0xff]   ;;  %v17197_v23 = vld [vmem:[#allocation5 + $0x26c] ss:$16 sps:$4 sm:$0xff]  }
 0x3d7   : > { %v17189_v22 = vld [vmem:[#allocation5 + $0x288] ss:$16 sps:$4 sm:$0xff]  }
 0x3d8   : > { %3468 = vmatpush2.bf16.msra.mxu0 %v17132_v3  ;;  %3541 = vmatpush2.bf16.msra.mxu1 %v17135_v59  ;;  %v17188_v3 = vld [vmem:[#allocation5 + $0x8c] ss:$16 sps:$4 sm:$0xff]  }
 0x3d9   : > { %3469 = vmatprep.subr.bf16.mxu0 %v17140_v60  ;;  %3542 = vmatprep.subr.bf16.mxu1 %v17143_v63  ;;  %v17191_v59 = vld [vmem:[#allocation5 + $0x28c] ss:$16 sps:$4 sm:$0xff]   ;;  %v17192_v60 = vld [vmem:[#allocation5 + $0x68] ss:$16 sps:$4 sm:$0xff]  }
 0x3da   : > { %v17195_v63 = vld [vmem:[#allocation5 + $0x268] ss:$16 sps:$4 sm:$0xff]  }
 0x3dc   : > { %3470 = vmatpush2.bf16.msra.mxu0 %v17138_v28  ;;  %3543 = vmatpush2.bf16.msra.mxu1 %v17141_v27  ;;  %v20376_v28 = vpack.c.bf16 %v20272_v13, %v20264_v8  ;;  %v20380_v27 = vpack.c.bf16 %v20274_v31, %v20266_v35  ;;  %v17198_v8 = vld [vmem:[#allocation5 + $0x48] ss:$16 sps:$4 sm:$0xff]   ;;  %v17206_v35 = vld [vmem:[#allocation5 + $0x2c] ss:$16 sps:$4 sm:$0xff]  }
 0x3dd   : > { %3471 = vmatprep.subr.bf16.mxu0 %v17146_v4  ;;  %3544 = vmatprep.subr.bf16.mxu1 %v17149_v5  ;;  %v17200_v4 = vld [vmem:[#allocation5 + $0x4c] ss:$16 sps:$4 sm:$0xff]   ;;  %v17201_v13 = vld [vmem:[#allocation5 + $0x248] ss:$16 sps:$4 sm:$0xff]  }
 0x3de   : > { %v17203_v5 = vld [vmem:[#allocation5 + $0x24c] ss:$16 sps:$4 sm:$0xff]  }
 0x3df   : > { %v17209_v31 = vld [vmem:[#allocation5 + $0x22c] ss:$16 sps:$4 sm:$0xff]  }
 0x3e0   : > { %3472 = vmatpush2.bf16.msra.mxu0 %v17144_v56  ;;  %3545 = vmatpush2.bf16.msra.mxu1 %v17147_v55  ;;  %v17204_v56 = vld [vmem:[#allocation5 + $0x28] ss:$16 sps:$4 sm:$0xff]  }
 0x3e1   : > { %3473 = vmatprep.subr.bf16.mxu0 %v17152_v47  ;;  %3546 = vmatprep.subr.bf16.mxu1 %v17155_v14  ;;  %v17207_v55 = vld [vmem:[#allocation5 + $0x228] ss:$16 sps:$4 sm:$0xff]   ;;  %v17212_v47 = vld [vmem:[#allocation5 + $0xc] ss:$16 sps:$4 sm:$0xff]  }
 0x3e2   : > { %v17215_v14 = vld [vmem:[#allocation5 + $0x20c] ss:$16 sps:$4 sm:$0xff]  }
 0x3e4   : > { %3474 = vmatpush2.bf16.msra.mxu0 %v17150_v1  ;;  %3547 = vmatpush2.bf16.msra.mxu1 %v17153_v54  ;;  %v17210_v1 = vld [vmem:[#allocation5 + $0x8] ss:$16 sps:$4 sm:$0xff]  }
 0x3e5   : > { %3475 = vmatprep.subr.bf16.mxu0 %v17158_v18  ;;  %3548 = vmatprep.subr.bf16.mxu1 %v17161_v19  ;;  %v17213_v54 = vld [vmem:[#allocation5 + $0x208] ss:$16 sps:$4 sm:$0xff]   ;;  %v17218_v18 = vld [vmem:[#allocation5 + $0x1ec] ss:$16 sps:$4 sm:$0xff]  }
 0x3e6   : > { %v17221_v19 = vld [vmem:[#allocation5 + $0x3ec] ss:$16 sps:$4 sm:$0xff]  }
 0x3e8   : > { %3476 = vmatpush2.bf16.msra.mxu0 %v17156_v34  ;;  %3549 = vmatpush2.bf16.msra.mxu1 %v17159_v26  ;;  %v17216_v34 = vld [vmem:[#allocation5 + $0x1e8] ss:$16 sps:$4 sm:$0xff]  }
 0x3e9   : > { %3477 = vmatprep.subr.bf16.mxu0 %v17164_v25  ;;  %3550 = vmatprep.subr.bf16.mxu1 %v17167_v57  ;;  %v17219_v26 = vld [vmem:[#allocation5 + $0x3e8] ss:$16 sps:$4 sm:$0xff]   ;;  %v17224_v25 = vld [vmem:[#allocation5 + $0x1cc] ss:$16 sps:$4 sm:$0xff]  }
 0x3ea   : > { %v17227_v57 = vld [vmem:[#allocation5 + $0x3cc] ss:$16 sps:$4 sm:$0xff]  }
 0x3ec   : > { %3478 = vmatpush2.bf16.msra.mxu0 %v17162_v20  ;;  %3551 = vmatpush2.bf16.msra.mxu1 %v17165_v46  ;;  %v17230_v20 = vld [vmem:[#allocation5 + $0x1ac] ss:$16 sps:$4 sm:$0xff]  }
 0x3ed   : > { %3593 = vmatprep.subr.bf16.mxu0 %v17170_v38  ;;  %3666 = vmatprep.subr.bf16.mxu1 %v17173_v16  ;;  %v17233_v46 = vld [vmem:[#allocation5 + $0x3ac] ss:$16 sps:$4 sm:$0xff]   ;;  %v17228_v38 = vld [vmem:[#allocation5 + $0x1a8] ss:$16 sps:$4 sm:$0xff]  }
 0x3ee   : > { %v17231_v16 = vld [vmem:[#allocation5 + $0x3a8] ss:$16 sps:$4 sm:$0xff]  }
 0x3ef   : > { %3480 = vmatmul.mubr.bf16.vlgmr.msra.gmra.mxu0 %v20232_v52  ;;  %3553 = vmatmul.mubr.bf16.vlgmr.msra.gmra.mxu1 %v20234_v6 }
 0x3f0   : > { %3489 = vmatprep.mubr.bf16.mxu0 %v20352_v24  ;;  %3562 = vmatprep.mubr.bf16.mxu1 %v20356_v58 }
 0x3f1   : > { %3594 = vmatpush1.bf16.msra.mxu0 %v17168_v44  ;;  %3667 = vmatpush1.bf16.msra.mxu1 %v17171_v17  ;;  %v17236_v44 = vld [vmem:[#allocation5 + $0x18c] ss:$16 sps:$4 sm:$0xff]  }
 0x3f2   : > { %3595 = vmatprep.subr.bf16.mxu0 %v17176_v49  ;;  %3668 = vmatprep.subr.bf16.mxu1 %v17179_v39  ;;  %v17239_v17 = vld [vmem:[#allocation5 + $0x38c] ss:$16 sps:$4 sm:$0xff]   ;;  %v17234_v49 = vld [vmem:[#allocation5 + $0x188] ss:$16 sps:$4 sm:$0xff]  }
 0x3f3   : > { %v17237_v39 = vld [vmem:[#allocation5 + $0x388] ss:$16 sps:$4 sm:$0xff]  }
 0x3f5   : > { %3596 = vmatpush1.bf16.msra.mxu0 %v17174_v10  ;;  %3669 = vmatpush1.bf16.msra.mxu1 %v17177_v11  ;;  %v17242_v10 = vld [vmem:[#allocation5 + $0x16c] ss:$16 sps:$4 sm:$0xff]  }
 0x3f6   : > { %3597 = vmatprep.subr.bf16.mxu0 %v17182_v36  ;;  %3670 = vmatprep.subr.bf16.mxu1 %v17185_v62  ;;  %v17245_v11 = vld [vmem:[#allocation5 + $0x36c] ss:$16 sps:$4 sm:$0xff]   ;;  %v17240_v36 = vld [vmem:[#allocation5 + $0x168] ss:$16 sps:$4 sm:$0xff]  }
 0x3f7   : > { %3490 = vmatmul.mubr.bf16.gmra.mxu0 %v20244_v12  ;;  %3563 = vmatmul.mubr.bf16.gmra.mxu1 %v20246_v7  ;;  %v17243_v62 = vld [vmem:[#allocation5 + $0x368] ss:$16 sps:$4 sm:$0xff]  }
 0x3f8   : > { %3499 = vmatprep.mubr.bf16.mxu0 %v20364_v50  ;;  %3572 = vmatprep.mubr.bf16.mxu1 %v20368_v51 }
 0x3f9   : > { %3598 = vmatpush1.bf16.msra.mxu0 %v17180_v37  ;;  %3671 = vmatpush1.bf16.msra.mxu1 %v17183_v2  ;;  %v17248_v37 = vld [vmem:[#allocation5 + $0x14c] ss:$16 sps:$4 sm:$0xff]  }
 0x3fa   : > { %3599 = vmatprep.subr.bf16.mxu0 %v17188_v3  ;;  %3672 = vmatprep.subr.bf16.mxu1 %v17191_v59  ;;  %v17251_v2 = vld [vmem:[#allocation5 + $0x34c] ss:$16 sps:$4 sm:$0xff]   ;;  %v17246_v3 = vld [vmem:[#allocation5 + $0x148] ss:$16 sps:$4 sm:$0xff]  }
 0x3fb   : > { %v17249_v59 = vld [vmem:[#allocation5 + $0x348] ss:$16 sps:$4 sm:$0xff]  }
 0x3fd   : > { %3600 = vmatpush1.bf16.msra.mxu0 %v17186_v15  ;;  %3673 = vmatpush1.bf16.msra.mxu1 %v17189_v22  ;;  %v17254_v15 = vld [vmem:[#allocation5 + $0x12c] ss:$16 sps:$4 sm:$0xff]  }
 0x3fe   : > { %3601 = vmatprep.subr.bf16.mxu0 %v17194_v29  ;;  %3674 = vmatprep.subr.bf16.mxu1 %v17197_v23  ;;  %v17257_v22 = vld [vmem:[#allocation5 + $0x32c] ss:$16 sps:$4 sm:$0xff]   ;;  %v17252_v29 = vld [vmem:[#allocation5 + $0x128] ss:$16 sps:$4 sm:$0xff]  }
 0x3ff   : > { %3500 = vmatmul.mubr.bf16.gmra.mxu0 %v20256_v30  ;;  %3573 = vmatmul.mubr.bf16.gmra.mxu1 %v20258_v9  ;;  %v17255_v23 = vld [vmem:[#allocation5 + $0x328] ss:$16 sps:$4 sm:$0xff]  }
 0x400   : > { %3509 = vmatprep.mubr.bf16.mxu0 %v20376_v28  ;;  %3582 = vmatprep.mubr.bf16.mxu1 %v20380_v27 }
 0x401   : > { %3602 = vmatpush1.bf16.msra.mxu0 %v17192_v60  ;;  %3675 = vmatpush1.bf16.msra.mxu1 %v17195_v63  ;;  %v17260_v60 = vld [vmem:[#allocation5 + $0x10c] ss:$16 sps:$4 sm:$0xff]  }
 0x402   : > { %3603 = vmatprep.subr.bf16.mxu0 %v17200_v4  ;;  %3676 = vmatprep.subr.bf16.mxu1 %v17203_v5  ;;  %v17263_v63 = vld [vmem:[#allocation5 + $0x30c] ss:$16 sps:$4 sm:$0xff]   ;;  %v17258_v4 = vld [vmem:[#allocation5 + $0x108] ss:$16 sps:$4 sm:$0xff]  }
 0x403   : > { %v17261_v5 = vld [vmem:[#allocation5 + $0x308] ss:$16 sps:$4 sm:$0xff]  }
 0x405   : > { %3604 = vmatpush1.bf16.msra.mxu0 %v17198_v8  ;;  %3677 = vmatpush1.bf16.msra.mxu1 %v17201_v13 }
 0x406   : > { %3605 = vmatprep.subr.bf16.mxu0 %v17206_v35  ;;  %3678 = vmatprep.subr.bf16.mxu1 %v17209_v31 }
 0x407   : > { %3510 = vmatmul.mubr.bf16.gmra.mxu0 %v20268_v61  ;;  %3583 = vmatmul.mubr.bf16.gmra.mxu1 %v20270_v45 }
 0x408   : > { %3625 = vmatprep.mubr.bf16.mxu0 %v20340_v42  ;;  %3698 = vmatprep.mubr.bf16.mxu1 %v20344_v21  ;;  %v17222_v42 = vld [vmem:[#allocation5 + $0x1c8] ss:$16 sps:$4 sm:$0xff]  }
 0x409   : > { %3606 = vmatpush1.bf16.msra.mxu0 %v17204_v56  ;;  %3679 = vmatpush1.bf16.msra.mxu1 %v17207_v55  ;;  %v17225_v21 = vld [vmem:[#allocation5 + $0x3c8] ss:$16 sps:$4 sm:$0xff]  }
 0x40a   : > { %3607 = vmatprep.subr.bf16.mxu0 %v17212_v47  ;;  %3680 = vmatprep.subr.bf16.mxu1 %v17215_v14 }
 0x40d   : > { %3608 = vmatpush1.bf16.msra.mxu0 %v17210_v1  ;;  %3681 = vmatpush1.bf16.msra.mxu1 %v17213_v54  ;;  %v21779_v54 = vld [vmem:[#allocation43_spill] sm:$0xff] }
 0x40e   : > { %3609 = vmatprep.subr.bf16.mxu0 %v17218_v18  ;;  %3682 = vmatprep.subr.bf16.mxu1 %v17221_v19  ;;  %v21780_v18 = vld [vmem:[#allocation44_spill] sm:$0xff] }
 0x411   : > { %3610 = vmatpush2.bf16.msra.mxu0 %v17216_v34  ;;  %3683 = vmatpush2.bf16.msra.mxu1 %v17219_v26 }
 0x412   : > { %3611 = vmatprep.subr.bf16.mxu0 %v17224_v25  ;;  %3684 = vmatprep.subr.bf16.mxu1 %v17227_v57  ;;  %v21781_v57 = vld [vmem:[#allocation45_spill] sm:$0xff] }
 0x415   : > { %3612 = vmatpush2.bf16.msra.mxu0 %v17222_v42  ;;  %3685 = vmatpush2.bf16.msra.mxu1 %v17225_v21  ;;  %v21782_v42 = vld [vmem:[#allocation46_spill] sm:$0xff] }
 0x416   : > { %3613 = vmatprep.subr.bf16.mxu0 %v17230_v20  ;;  %3686 = vmatprep.subr.bf16.mxu1 %v17233_v46  ;;  %v21783_v46 = vld [vmem:[#allocation47_spill] sm:$0xff] }
 0x419   : > { %3614 = vmatpush2.bf16.msra.mxu0 %v17228_v38  ;;  %3687 = vmatpush2.bf16.msra.mxu1 %v17231_v16  ;;  %v21784_v38 = vld [vmem:[#allocation48_spill] sm:$0xff] }
 0x41a   : > { %3615 = vmatprep.subr.bf16.mxu0 %v17236_v44  ;;  %3688 = vmatprep.subr.bf16.mxu1 %v17239_v17 }
 0x41d   : > { %3616 = vmatpush2.bf16.msra.mxu0 %v17234_v49  ;;  %3689 = vmatpush2.bf16.msra.mxu1 %v17237_v39  ;;  %v21789_v49 = vld [vmem:[#allocation52_spill] sm:$0xff]  ;;  %v21790_v39 = vld [vmem:[#allocation53_spill] sm:$0xff] }
 0x41e   : > { %3617 = vmatprep.subr.bf16.mxu0 %v17242_v10  ;;  %3690 = vmatprep.subr.bf16.mxu1 %v17245_v11 }
 0x421   : > { %3618 = vmatpush2.bf16.msra.mxu0 %v17240_v36  ;;  %3691 = vmatpush2.bf16.msra.mxu1 %v17243_v62 }
 0x422   : > { %3619 = vmatprep.subr.bf16.mxu0 %v17248_v37  ;;  %3692 = vmatprep.subr.bf16.mxu1 %v17251_v2  ;;  %v21791_v37 = vld [vmem:[#allocation54_spill] sm:$0xff]  ;;  %v21792_v2 = vld [vmem:[#allocation55_spill] sm:$0xff] }
 0x425   : > { %3620 = vmatpush2.bf16.msra.mxu0 %v17246_v3  ;;  %3693 = vmatpush2.bf16.msra.mxu1 %v17249_v59 }
 0x426   : > { %3621 = vmatprep.subr.bf16.mxu0 %v17254_v15  ;;  %3694 = vmatprep.subr.bf16.mxu1 %v17257_v22  ;;  %v21793_v15 = vld [vmem:[#allocation56_spill] sm:$0xff]  ;;  %v21794_v22 = vld [vmem:[#allocation57_spill] sm:$0xff] }
 0x429   : > { %3622 = vmatpush2.bf16.msra.mxu0 %v17252_v29  ;;  %3695 = vmatpush2.bf16.msra.mxu1 %v17255_v23  ;;  %v21796_v29 = vld [vmem:[#allocation59_spill] sm:$0xff] }
 0x42a   : > { %3623 = vmatprep.subr.bf16.mxu0 %v17260_v60  ;;  %3696 = vmatprep.subr.bf16.mxu1 %v17263_v63  ;;  %v3740_v23 = vadd.s32 2, %v21796_v29  ;;  %v21799_v63 = vld [vmem:[#allocation60_spill] sm:$0xff] }
 0x42d   : > { %3624 = vmatpush2.bf16.msra.mxu0 %v17258_v4  ;;  %3697 = vmatpush2.bf16.msra.mxu1 %v17261_v5  ;;  %v21800_v4 = vld [vmem:[#allocation61_spill] sm:$0xff] }
 0x42e   : > { %15348 = vmatprep.subr.msk.bf16.mxu0 %vm1241_vm1, %v19949_v40  ;;  %15353 = vmatprep.subr.msk.bf16.mxu1 %vm1241_vm1, %v19951_v41  ;;  %v2549_v8 = vpop.f32.mrf.mxu0  ;;  %v2622_v13 = vpop.f32.mrf.mxu1 }
 0x42f   : > { %v20394_v35 = vadd.f32 %v2622_v13, %v2549_v8  ;;  %v21801_v13 = vld [vmem:[#allocation62_spill] sm:$0xff] }
 0x430   : > { %3626 = vmatmul.mubr.bf16.vlgmr.msra.gmra.mxu0 %v20232_v52  ;;  %3699 = vmatmul.mubr.bf16.vlgmr.msra.gmra.mxu1 %v20234_v6  ;;  %v2551_v31 = vpop.f32.mrf.mxu0  ;;  %v2624_v56 = vpop.f32.mrf.mxu1 }
 0x431   : > { %3635 = vmatprep.mubr.bf16.mxu0 %v20352_v24  ;;  %3708 = vmatprep.mubr.bf16.mxu1 %v20356_v58  ;;  %v20400_v55 = vadd.f32 %v2624_v56, %v2551_v31  ;;  %v21802_v31 = vld [vmem:[#allocation63_spill] sm:$0xff]  ;;  %v21803_v56 = vld [vmem:[#allocation38_spill] sm:$0xff] }
 0x432   : > { %3780 = vmatpush1.bf16.msra.mxu0 %v19958_v32  ;;  %3853 = vmatpush1.bf16.msra.mxu1 %v19961_v43  ;;  %v2553_v47 = vpop.f32.mrf.mxu0  ;;  %v2626_v14 = vpop.f32.mrf.mxu1  ;;  %vm3748_vm6 = vcmp.eq.s32.totalorder %v21803_v56, %v3740_v23 }
 0x433   : > { %3781 = vmatprep.subr.bf16.mxu0 %v19953_v48  ;;  %3854 = vmatprep.subr.bf16.mxu1 %v19955_v33  ;;  %v20406_v52 = vadd.f32 %v2626_v14, %v2553_v47 }
 0x434   : > { %v20408_v6 = vpop.f32.mrf.mxu0  ;;  %v20410_v1 = vpop.f32.mrf.mxu1 }
 0x435   : > { %21777 = vst [vmem:[#allocation78_spill] sm:$0xff] %v20408_v6  ;;  %21778 = vst [vmem:[#allocation79_spill] sm:$0xff] %v20410_v1  ;;  %v17264_v1 = vld [vmem:[#allocation5 + $0x8e0] ss:$16 sps:$4 sm:$0xff]   ;;  %v17266_v6 = vld [vmem:[#allocation5 + $0x8e4] ss:$16 sps:$4 sm:$0xff]  }
 0x436   : > { %3782 = vmatpush1.bf16.msra.mxu0 %v19971_v0  ;;  %3855 = vmatpush1.bf16.msra.mxu1 %v19973_v53  ;;  %v2559_v24 = vpop.f32.mrf.mxu0  ;;  %v2632_v58 = vpop.f32.mrf.mxu1 }
 0x437   : > { %3783 = vmatprep.subr.bf16.mxu0 %v21779_v54  ;;  %3856 = vmatprep.subr.bf16.mxu1 %v21780_v18  ;;  %v20416_v19 = vadd.f32 %v2632_v58, %v2559_v24  ;;  %v21804_v58 = vmov 0  }
 0x438   : > { %3636 = vmatmul.mubr.bf16.gmra.mxu0 %v20244_v12  ;;  %3709 = vmatmul.mubr.bf16.gmra.mxu1 %v20246_v7  ;;  %v2561_v34 = vpop.f32.mrf.mxu0  ;;  %v2634_v26 = vpop.f32.mrf.mxu1 }
 0x439   : > { %3645 = vmatprep.mubr.bf16.mxu0 %v20364_v50  ;;  %3718 = vmatprep.mubr.bf16.mxu1 %v20368_v51  ;;  %v20422_v25 = vadd.f32 %v2634_v26, %v2561_v34  ;;  %v21787_v50 = vld [vmem:[#allocation50_spill] sm:$0xff]  ;;  %v21788_v51 = vld [vmem:[#allocation51_spill] sm:$0xff]  ;;  %v21805_v26 = vld [vmem:[#allocation41_spill] sm:$0xff] }
 0x43a   : > { %3784 = vmatpush1.bf16.msra.mxu0 %v21781_v57  ;;  %3857 = vmatpush1.bf16.msra.mxu1 %v21782_v42  ;;  %v2563_v21 = vpop.f32.mrf.mxu0  ;;  %v2636_v20 = vpop.f32.mrf.mxu1 }
 0x43b   : > { %3785 = vmatprep.subr.bf16.mxu0 %v21783_v46  ;;  %3858 = vmatprep.subr.bf16.mxu1 %v21784_v38  ;;  %v20428_v12 = vadd.f32 %v2636_v20, %v2563_v21  ;;  %v21806_v21 = vld [vmem:[#allocation42_spill] sm:$0xff]  ;;  %v21807_v20 = vmov 0.0  }
 0x43c   : > { %v20430_v7 = vpop.f32.mrf.mxu0  ;;  %v20432_v16 = vpop.f32.mrf.mxu1 }
 0x43d   : > { %21785 = vst [vmem:[#allocation43_spill] sm:$0xff] %v20430_v7  ;;  %21786 = vst [vmem:[#allocation44_spill] sm:$0xff] %v20432_v16  ;;  %v17267_v16 = vld [vmem:[#allocation5 + $0xae0] ss:$16 sps:$4 sm:$0xff]  }
 0x43e   : > { %3786 = vmatpush1.bf16.msra.mxu0 %v21787_v50  ;;  %3859 = vmatpush1.bf16.msra.mxu1 %v21788_v51  ;;  %v2569_v44 = vpop.f32.mrf.mxu0  ;;  %v2642_v17 = vpop.f32.mrf.mxu1 }
 0x43f   : > { %3787 = vmatprep.subr.bf16.mxu0 %v21789_v49  ;;  %3860 = vmatprep.subr.bf16.mxu1 %v21790_v39  ;;  %v20438_v10 = vadd.f32 %v2642_v17, %v2569_v44  ;;  %v3756_v17 = vsel %vm3748_vm6, 1.0, %v21807_v20 }
 0x440   : > { %3646 = vmatmul.mubr.bf16.gmra.mxu0 %v20256_v30  ;;  %3719 = vmatmul.mubr.bf16.gmra.mxu1 %v20258_v9  ;;  %v2571_v11 = vpop.f32.mrf.mxu0  ;;  %v2644_v36 = vpop.f32.mrf.mxu1  ;;  %v21795_v30 = vld [vmem:[#allocation58_spill] sm:$0xff] }
 0x441   : > { %3655 = vmatprep.mubr.bf16.mxu0 %v20376_v28  ;;  %3728 = vmatprep.mubr.bf16.mxu1 %v20380_v27  ;;  %v20444_v62 = vadd.f32 %v2644_v36, %v2571_v11  ;;  %v3739_v9 = vadd.s32 2, %v21795_v30  ;;  %v21808_v36 = vld [vmem:[#allocation64_spill] sm:$0xff] }
 0x442   : > { %3788 = vmatpush1.bf16.msra.mxu0 %v21791_v37  ;;  %3861 = vmatpush1.bf16.msra.mxu1 %v21792_v2  ;;  %v2573_v3 = vpop.f32.mrf.mxu0  ;;  %v2646_v59 = vpop.f32.mrf.mxu1 }
 0x443   : > { %3789 = vmatprep.subr.bf16.mxu0 %v21793_v15  ;;  %3862 = vmatprep.subr.bf16.mxu1 %v21794_v22  ;;  %v20452_v60 = vadd.f32 %v2646_v59, %v2573_v3  ;;  %vm3747_vm5 = vcmp.eq.s32.totalorder %v21803_v56, %v3739_v9  ;;  %v21810_v3 = vld [vmem:[#allocation67_spill] sm:$0xff]  ;;  %v21811_v9 = vld [vmem:[#allocation68_spill] sm:$0xff] }
 0x444   : > { %v20454_v28 = vpop.f32.mrf.mxu0  ;;  %v20456_v27 = vpop.f32.mrf.mxu1  ;;  %v3755_v44 = vsel %vm3747_vm5, 1.0, %v21807_v20  ;;  %v3741_v59 = vadd.s32 2, %v21810_v3  ;;  %v3742_v23 = vadd.s32 2, %v21811_v9  ;;  %v17278_v9 = vld [vmem:[#allocation5 + $0x8a4] ss:$16 sps:$4 sm:$0xff]  }
 0x445   : > { %21797 = vst [vmem:[#allocation45_spill] sm:$0xff] %v20454_v28  ;;  %21798 = vst [vmem:[#allocation46_spill] sm:$0xff] %v20456_v27  ;;  %v21816_v27 = vld [vmem:[#allocation71_spill] sm:$0xff]  ;;  %v17281_v3 = vld [vmem:[#allocation5 + $0xaa4] ss:$16 sps:$4 sm:$0xff]  }
 0x446   : > { %3790 = vmatpush1.bf16.msra.mxu0 %v21799_v63  ;;  %3863 = vmatpush1.bf16.msra.mxu1 %v21800_v4  ;;  %v2579_v5 = vpop.f32.mrf.mxu0  ;;  %v2652_v8 = vpop.f32.mrf.mxu1  ;;  %vm3749_vm7 = vcmp.eq.s32.totalorder %v21803_v56, %v3741_v59  ;;  %vm3750_vm8 = vcmp.eq.s32.totalorder %v21803_v56, %v3742_v23  ;;  %v17275_v59 = vld [vmem:[#allocation5 + $0xac4] ss:$16 sps:$4 sm:$0xff]   ;;  %v3744_v28 = vadd.s32 2, %v21816_v27  ;;  %v17279_v27 = vld [vmem:[#allocation5 + $0xaa0] ss:$16 sps:$4 sm:$0xff]  }
 0x447   : > { %3791 = vmatprep.subr.bf16.mxu0 %v21801_v13  ;;  %3864 = vmatprep.subr.bf16.mxu1 %v21802_v31  ;;  %v20464_v47 = vadd.f32 %v2652_v8, %v2579_v5  ;;  %v20482_v8 = vpack.c.bf16 %v3756_v17, %v3755_v44  ;;  %v17272_v44 = vld [vmem:[#allocation5 + $0x8c4] ss:$16 sps:$4 sm:$0xff]   ;;  %v3757_v17 = vsel %vm3749_vm7, 1.0, %v21807_v20  ;;  %vm6437_vm7 = vcmask 1045504  }
 0x448   : > { %3656 = vmatmul.mubr.bf16.gmra.mxu0 %v20268_v61  ;;  %3729 = vmatmul.mubr.bf16.gmra.mxu1 %v20270_v45  ;;  %v2581_v14 = vpop.f32.mrf.mxu0  ;;  %v2654_v24 = vpop.f32.mrf.mxu1  ;;  %v21809_v45 = vld [vmem:[#allocation65_spill] sm:$0xff]  ;;  %v21815_v23 = vld [vmem:[#allocation70_spill] sm:$0xff]  ;;  %vm3752_vm10 = vcmp.eq.s32.totalorder %v21803_v56, %v3744_v28 }
 0x449   : > { %3811 = vmatprep.mubr.bf16.mxu0 %v21804_v58  ;;  %3884 = vmatprep.mubr.bf16.mxu1 %v21804_v58  ;;  %v20470_v34 = vadd.f32 %v2654_v24, %v2581_v14  ;;  %21812 = vst [vmem:[#allocation47_spill] sm:$0xff] %v20482_v8  ;;  %v21813_v14 = vld [vmem:[#allocation39_spill] sm:$0xff]  ;;  %v21814_v24 = vld [vmem:[#allocation40_spill] sm:$0xff]  ;;  %v3743_v7 = vadd.s32 2, %v21815_v23  ;;  %v21818_v28 = vld [vmem:[#allocation73_spill] sm:$0xff] }
 0x44a   : > { %3792 = vmatpush1.bf16.msra.mxu0 %v21805_v26  ;;  %3865 = vmatpush1.bf16.msra.mxu1 %v21806_v21  ;;  %v2583_v11 = vpop.f32.mrf.mxu0  ;;  %v2656_v61 = vpop.f32.mrf.mxu1  ;;  %v17276_v23 = vld [vmem:[#allocation5 + $0x8a0] ss:$16 sps:$4 sm:$0xff]  }
 0x44b   : > { %3793 = vmatprep.subr.bf16.mxu0 %v21808_v36  ;;  %3866 = vmatprep.subr.bf16.mxu1 %v21809_v45  ;;  %v20480_v5 = vadd.f32 %v2656_v61, %v2583_v11  ;;  %v17269_v11 = vld [vmem:[#allocation5 + $0xae4] ss:$16 sps:$4 sm:$0xff]   ;;  %v3758_v61 = vsel %vm3750_vm8, 1.0, %v21807_v20  ;;  %vm3751_vm9 = vcmp.eq.s32.totalorder %v21803_v56, %v3743_v7  ;;  %v17291_v45 = vld [vmem:[#allocation5 + $0xa60] ss:$16 sps:$4 sm:$0xff]   ;;  %vm6431_vm8 = vcmask 482304  }
 0x44c   : > { %v3759_v7 = vsel %vm3751_vm9, 1.0, %v21807_v20  ;;  %vm8317_vm9 = vcmask 1046528  }
 0x44e   : > { %3794 = vmatpush1.bf16.msra.mxu0 %v21813_v14  ;;  %3867 = vmatpush1.bf16.msra.mxu1 %v21814_v24  ;;  %v17273_v24 = vld [vmem:[#allocation5 + $0xac0] ss:$16 sps:$4 sm:$0xff]   ;;  %v20498_v14 = vpack.c.bf16 %v3758_v61, %v3757_v17 }
 0x44f   : > { %4710 = vmatprep.subr.bf16.mxu0 %v17266_v6  ;;  %4783 = vmatprep.subr.bf16.mxu1 %v17269_v11  ;;  %v17284_v6 = vld [vmem:[#allocation5 + $0x884] ss:$16 sps:$4 sm:$0xff]   ;;  %v17285_v17 = vld [vmem:[#allocation5 + $0xa80] ss:$16 sps:$4 sm:$0xff]  }
 0x450   : > { %21817 = vst [vmem:[#allocation48_spill] sm:$0xff] %v20498_v14 }
 0x451   : > { %15349 = vmatmul.mubr.msk.bf16.vlgmr.msra.gmra.mxu0 %vm1228_vm4, %v20482_v8  ;;  %15354 = vmatmul.mubr.msk.bf16.vlgmr.msra.gmra.mxu1 %vm1228_vm4, %v20482_v8  ;;  %v17270_v8 = vld [vmem:[#allocation5 + $0x8c0] ss:$16 sps:$4 sm:$0xff]  }
 0x452   : > { %3821 = vmatprep.mubr.bf16.mxu0 %v21804_v58  ;;  %3894 = vmatprep.mubr.bf16.mxu1 %v21804_v58 }
 0x453   : > { %4711 = vmatpush1.bf16.msra.mxu0 %v17264_v1  ;;  %4784 = vmatpush1.bf16.msra.mxu1 %v17267_v16  ;;  %v17287_v1 = vld [vmem:[#allocation5 + $0xa84] ss:$16 sps:$4 sm:$0xff]   ;;  %v3760_v16 = vsel %vm3752_vm10, 1.0, %v21807_v20  ;;  %vm8314_vm10 = vcmask 236544  }
 0x454   : > { %4712 = vmatprep.subr.bf16.mxu0 %v17272_v44  ;;  %4785 = vmatprep.subr.bf16.mxu1 %v17275_v59  ;;  %v17282_v44 = vld [vmem:[#allocation5 + $0x880] ss:$16 sps:$4 sm:$0xff]   ;;  %v3765_v61 = vpack.c.bf16 %v3760_v16, %v3759_v7  ;;  %v17290_v59 = vld [vmem:[#allocation5 + $0x864] ss:$16 sps:$4 sm:$0xff]   ;;  %v20522_v16 = vpop.f32.mrf.mxu0 }
 0x455   : > { %21820 = vst [vmem:[#allocation50_spill] sm:$0xff] %v20522_v16  ;;  %v17309_v16 = vld [vmem:[#allocation5 + $0xa00] ss:$16 sps:$4 sm:$0xff]  }
 0x457   : > { %4713 = vmatpush1.bf16.msra.mxu0 %v17270_v8  ;;  %4786 = vmatpush1.bf16.msra.mxu1 %v17273_v24  ;;  %v3745_v8 = vadd.s32 2, %v21818_v28  ;;  %v21819_v24 = vld [vmem:[#allocation74_spill] sm:$0xff]  ;;  %v17288_v28 = vld [vmem:[#allocation5 + $0x860] ss:$16 sps:$4 sm:$0xff]  }
 0x458   : > { %v3746_v11 = vadd.s32 2, %v21819_v24  ;;  %4714 = vmatprep.subr.bf16.mxu0 %v17278_v9  ;;  %4787 = vmatprep.subr.bf16.mxu1 %v17281_v3  ;;  %v17299_v3 = vld [vmem:[#allocation5 + $0xa44] ss:$16 sps:$4 sm:$0xff]  }
 0x459   : > { %15350 = vmatmul.mubr.msk.bf16.gmra.mxu0 %vm1228_vm4, %v20498_v14  ;;  %15355 = vmatmul.mubr.msk.bf16.gmra.mxu1 %vm1228_vm4, %v20498_v14  ;;  %vm3753_vm11 = vcmp.eq.s32.totalorder %v21803_v56, %v3745_v8  ;;  %v17293_v14 = vld [vmem:[#allocation5 + $0xa64] ss:$16 sps:$4 sm:$0xff]   ;;  %v20524_v8 = vpop.f32.mrf.mxu1 }
 0x45a   : > { %3831 = vmatprep.mubr.bf16.mxu0 %v21804_v58  ;;  %3904 = vmatprep.mubr.bf16.mxu1 %v21804_v58  ;;  %vm3754_vm12 = vcmp.eq.s32.totalorder %v21803_v56, %v3746_v11  ;;  %v3761_v9 = vsel %vm3753_vm11, 1.0, %v21807_v20  ;;  %21821 = vst [vmem:[#allocation51_spill] sm:$0xff] %v20524_v8  ;;  %v17306_v8 = vld [vmem:[#allocation5 + $0x800] ss:$16 sps:$4 sm:$0xff]   ;;  %vm9199_vm11 = vcmask 113664  }
 0x45b   : > { %4715 = vmatpush1.bf16.msra.mxu0 %v17276_v23  ;;  %4788 = vmatpush1.bf16.msra.mxu1 %v17279_v27  ;;  %v17296_v27 = vld [vmem:[#allocation5 + $0x844] ss:$16 sps:$4 sm:$0xff]   ;;  %v3762_v23 = vsel %vm3754_vm12, 1.0, %v21807_v20  ;;  %vm10273_vm12 = vcmask 1042432  }
 0x45c   : > { %4716 = vmatprep.subr.bf16.mxu0 %v17284_v6  ;;  %4789 = vmatprep.subr.bf16.mxu1 %v17287_v1  ;;  %v17294_v6 = vld [vmem:[#allocation5 + $0x840] ss:$16 sps:$4 sm:$0xff]   ;;  %v3766_v7 = vpack.c.bf16 %v3762_v23, %v3761_v9 }
 0x45d   : > { %v17297_v1 = vld [vmem:[#allocation5 + $0xa40] ss:$16 sps:$4 sm:$0xff]  }
 0x45f   : > { %4717 = vmatpush1.bf16.msra.mxu0 %v17282_v44  ;;  %4790 = vmatpush1.bf16.msra.mxu1 %v17285_v17  ;;  %v17302_v17 = vld [vmem:[#allocation5 + $0x824] ss:$16 sps:$4 sm:$0xff]  }
 0x460   : > { %4718 = vmatprep.subr.bf16.mxu0 %v17290_v59  ;;  %4791 = vmatprep.subr.bf16.mxu1 %v17293_v14 }
 0x461   : > { %15351 = vmatmul.mubr.msk.bf16.gmra.mxu0 %vm1228_vm4, %v3765_v61  ;;  %15356 = vmatmul.mubr.msk.bf16.gmra.mxu1 %vm1228_vm4, %v3765_v61  ;;  %v17305_v61 = vld [vmem:[#allocation5 + $0xa24] ss:$16 sps:$4 sm:$0xff]  }
 0x462   : > { %3841 = vmatprep.mubr.bf16.mxu0 %v21804_v58  ;;  %3914 = vmatprep.mubr.bf16.mxu1 %v21804_v58 }
 0x463   : > { %4719 = vmatpush1.bf16.msra.mxu0 %v17288_v28  ;;  %4792 = vmatpush1.bf16.msra.mxu1 %v17291_v45 }
 0x464   : > { %4720 = vmatprep.subr.bf16.mxu0 %v17296_v27  ;;  %4793 = vmatprep.subr.bf16.mxu1 %v17299_v3  ;;  %v17300_v27 = vld [vmem:[#allocation5 + $0x820] ss:$16 sps:$4 sm:$0xff]  }
 0x465   : > { %v17303_v3 = vld [vmem:[#allocation5 + $0xa20] ss:$16 sps:$4 sm:$0xff]  }
 0x467   : > { %4721 = vmatpush1.bf16.msra.mxu0 %v17294_v6  ;;  %4794 = vmatpush1.bf16.msra.mxu1 %v17297_v1 }
 0x468   : > { %4722 = vmatprep.subr.bf16.mxu0 %v17302_v17  ;;  %4795 = vmatprep.subr.bf16.mxu1 %v17305_v61 }
 0x469   : > { %15352 = vmatmul.mubr.msk.bf16.gmra.mxu0 %vm1228_vm4, %v3766_v7  ;;  %15357 = vmatmul.mubr.msk.bf16.gmra.mxu1 %vm1228_vm4, %v3766_v7 }
 0x46b   : > { %4723 = vmatpush1.bf16.msra.mxu0 %v17300_v27  ;;  %4796 = vmatpush1.bf16.msra.mxu1 %v17303_v3  ;;  %v17314_v27 = vld [vmem:[#allocation5 + $0x9e4] ss:$16 sps:$4 sm:$0xff]  }
 0x46c   : > { %v17317_v3 = vld [vmem:[#allocation5 + $0xbe4] ss:$16 sps:$4 sm:$0xff]  }
 0x46e   : > { %v2695_v11 = vpop.f32.mrf.mxu0  ;;  %v2768_v44 = vpop.f32.mrf.mxu1 }
 0x46f   : > { %v20526_v14 = vadd.f32 %v2768_v44, %v2695_v11  ;;  %v17308_v11 = vld [vmem:[#allocation5 + $0x804] ss:$16 sps:$4 sm:$0xff]  }
 0x470   : > { %v2697_v45 = vpop.f32.mrf.mxu0  ;;  %v2770_v28 = vpop.f32.mrf.mxu1  ;;  %v17311_v44 = vld [vmem:[#allocation5 + $0xa04] ss:$16 sps:$4 sm:$0xff]   ;;  %4724 = vmatprep.subr.bf16.mxu0 %v17308_v11 }
 0x471   : > { %v20528_v59 = vadd.f32 %v2770_v28, %v2697_v45  ;;  %4797 = vmatprep.subr.bf16.mxu1 %v17311_v44  ;;  %4725 = vmatpush1.bf16.msra.mxu0 %v17306_v8  ;;  %v17323_v44 = vld [vmem:[#allocation5 + $0xbc4] ss:$16 sps:$4 sm:$0xff]  }
 0x472   : > { %v2699_v9 = vpop.f32.mrf.mxu0  ;;  %v2772_v23 = vpop.f32.mrf.mxu1  ;;  %4798 = vmatpush1.bf16.msra.mxu1 %v17309_v16  ;;  %4726 = vmatprep.subr.bf16.mxu0 %v17314_v27  ;;  %v17320_v16 = vld [vmem:[#allocation5 + $0x9c4] ss:$16 sps:$4 sm:$0xff]  }
 0x473   : > { %v20530_v6 = vadd.f32 %v2772_v23, %v2699_v9  ;;  %v17312_v23 = vld [vmem:[#allocation5 + $0x9e0] ss:$16 sps:$4 sm:$0xff]   ;;  %4799 = vmatprep.subr.bf16.mxu1 %v17317_v3  ;;  %v17326_v27 = vld [vmem:[#allocation5 + $0x9a4] ss:$16 sps:$4 sm:$0xff]  }
 0x474   : > { %v20532_v1 = vpop.f32.mrf.mxu0  ;;  %v20534_v7 = vpop.f32.mrf.mxu1 }
 0x475   : > { %21822 = vst [vmem:[#allocation52_spill] sm:$0xff] %v20532_v1  ;;  %21823 = vst [vmem:[#allocation53_spill] sm:$0xff] %v20534_v7  ;;  %v17315_v7 = vld [vmem:[#allocation5 + $0xbe0] ss:$16 sps:$4 sm:$0xff]   ;;  %4727 = vmatpush2.bf16.msra.mxu0 %v17312_v23 }
 0x476   : > { %v2705_v45 = vpop.f32.mrf.mxu0  ;;  %v2778_v28 = vpop.f32.mrf.mxu1  ;;  %4800 = vmatpush2.bf16.msra.mxu1 %v17315_v7  ;;  %4728 = vmatprep.subr.bf16.mxu0 %v17320_v16  ;;  %v17329_v7 = vld [vmem:[#allocation5 + $0xba4] ss:$16 sps:$4 sm:$0xff]   ;;  %v17324_v23 = vld [vmem:[#allocation5 + $0x9a0] ss:$16 sps:$4 sm:$0xff]  }
 0x477   : > { %v20536_v24 = vadd.f32 %v2778_v28, %v2705_v45  ;;  %v17318_v45 = vld [vmem:[#allocation5 + $0x9c0] ss:$16 sps:$4 sm:$0xff]   ;;  %4801 = vmatprep.subr.bf16.mxu1 %v17323_v44 }
 0x478   : > { %v2707_v17 = vpop.f32.mrf.mxu0  ;;  %v2780_v61 = vpop.f32.mrf.mxu1  ;;  %v17321_v28 = vld [vmem:[#allocation5 + $0xbc0] ss:$16 sps:$4 sm:$0xff]  }
 0x479   : > { %v20538_v9 = vadd.f32 %v2780_v61, %v2707_v17  ;;  %4729 = vmatpush2.bf16.msra.mxu0 %v17318_v45  ;;  %v17332_v45 = vld [vmem:[#allocation5 + $0x984] ss:$16 sps:$4 sm:$0xff]  }
 0x47a   : > { %v2709_v1 = vpop.f32.mrf.mxu0  ;;  %v2782_v36 = vpop.f32.mrf.mxu1  ;;  %4802 = vmatpush2.bf16.msra.mxu1 %v17321_v28  ;;  %4730 = vmatprep.subr.bf16.mxu0 %v17326_v27  ;;  %v17335_v28 = vld [vmem:[#allocation5 + $0xb84] ss:$16 sps:$4 sm:$0xff]  }
 0x47b   : > { %v20540_v20 = vadd.f32 %v2782_v36, %v2709_v1  ;;  %4803 = vmatprep.subr.bf16.mxu1 %v17329_v7  ;;  %v17338_v27 = vld [vmem:[#allocation5 + $0x964] ss:$16 sps:$4 sm:$0xff]  }
 0x47c   : > { %v20542_v11 = vpop.f32.mrf.mxu0  ;;  %v20544_v8 = vpop.f32.mrf.mxu1 }
 0x47d   : > { %21824 = vst [vmem:[#allocation54_spill] sm:$0xff] %v20542_v11  ;;  %21825 = vst [vmem:[#allocation55_spill] sm:$0xff] %v20544_v8  ;;  %v17327_v8 = vld [vmem:[#allocation5 + $0xba0] ss:$16 sps:$4 sm:$0xff]   ;;  %4731 = vmatpush2.bf16.msra.mxu0 %v17324_v23 }
 0x47e   : > { %v2715_v17 = vpop.f32.mrf.mxu0  ;;  %v2788_v61 = vpop.f32.mrf.mxu1  ;;  %4804 = vmatpush2.bf16.msra.mxu1 %v17327_v8  ;;  %4732 = vmatprep.subr.bf16.mxu0 %v17332_v45  ;;  %v17341_v8 = vld [vmem:[#allocation5 + $0xb64] ss:$16 sps:$4 sm:$0xff]   ;;  %v17336_v23 = vld [vmem:[#allocation5 + $0x960] ss:$16 sps:$4 sm:$0xff]  }
 0x47f   : > { %v20546_v21 = vadd.f32 %v2788_v61, %v2715_v17  ;;  %v17330_v17 = vld [vmem:[#allocation5 + $0x980] ss:$16 sps:$4 sm:$0xff]   ;;  %4805 = vmatprep.subr.bf16.mxu1 %v17335_v28  ;;  %v17344_v45 = vld [vmem:[#allocation5 + $0x944] ss:$16 sps:$4 sm:$0xff]  }
 0x480   : > { %v2717_v36 = vpop.f32.mrf.mxu0  ;;  %v2790_v1 = vpop.f32.mrf.mxu1  ;;  %v17333_v61 = vld [vmem:[#allocation5 + $0xb80] ss:$16 sps:$4 sm:$0xff]   ;;  %v17347_v28 = vld [vmem:[#allocation5 + $0xb44] ss:$16 sps:$4 sm:$0xff]  }
 0x481   : > { %v20548_v3 = vadd.f32 %v2790_v1, %v2717_v36  ;;  %4733 = vmatpush2.bf16.msra.mxu0 %v17330_v17  ;;  %v17342_v17 = vld [vmem:[#allocation5 + $0x940] ss:$16 sps:$4 sm:$0xff]  }
 0x482   : > { %v2719_v11 = vpop.f32.mrf.mxu0  ;;  %v2792_v26 = vpop.f32.mrf.mxu1  ;;  %4806 = vmatpush2.bf16.msra.mxu1 %v17333_v61  ;;  %4734 = vmatprep.subr.bf16.mxu0 %v17338_v27  ;;  %v17345_v61 = vld [vmem:[#allocation5 + $0xb40] ss:$16 sps:$4 sm:$0xff]  }
 0x483   : > { %v20550_v58 = vadd.f32 %v2792_v26, %v2719_v11  ;;  %4807 = vmatprep.subr.bf16.mxu1 %v17341_v8  ;;  %v17354_v27 = vld [vmem:[#allocation5 + $0x900] ss:$16 sps:$4 sm:$0xff]   ;;  %v17362_v8 = vld [vmem:[#allocation5 + $0x8ec] ss:$16 sps:$4 sm:$0xff]  }
 0x484   : > { %v20552_v16 = vpop.f32.mrf.mxu0  ;;  %v20554_v44 = vpop.f32.mrf.mxu1 }
 0x485   : > { %21826 = vst [vmem:[#allocation56_spill] sm:$0xff] %v20552_v16  ;;  %21827 = vst [vmem:[#allocation57_spill] sm:$0xff] %v20554_v44  ;;  %v17339_v44 = vld [vmem:[#allocation5 + $0xb60] ss:$16 sps:$4 sm:$0xff]   ;;  %4735 = vmatpush2.bf16.msra.mxu0 %v17336_v23  ;;  %v17365_v23 = vld [vmem:[#allocation5 + $0xaec] ss:$16 sps:$4 sm:$0xff]  }
 0x486   : > { %v2725_v36 = vpop.f32.mrf.mxu0  ;;  %v2798_v1 = vpop.f32.mrf.mxu1  ;;  %4808 = vmatpush2.bf16.msra.mxu1 %v17339_v44  ;;  %4736 = vmatprep.subr.bf16.mxu0 %v17344_v45  ;;  %v17357_v44 = vld [vmem:[#allocation5 + $0xb00] ss:$16 sps:$4 sm:$0xff]  }
 0x487   : > { %v20556_v56 = vadd.f32 %v2798_v1, %v2725_v36  ;;  %4809 = vmatprep.subr.bf16.mxu1 %v17347_v28  ;;  %v17350_v36 = vld [vmem:[#allocation5 + $0x924] ss:$16 sps:$4 sm:$0xff]  }
 0x488   : > { %v2727_v26 = vpop.f32.mrf.mxu0  ;;  %v2800_v11 = vpop.f32.mrf.mxu1  ;;  %v17353_v1 = vld [vmem:[#allocation5 + $0xb24] ss:$16 sps:$4 sm:$0xff]  }
 0x489   : > { %v20558_v7 = vadd.f32 %v2800_v11, %v2727_v26  ;;  %4737 = vmatpush2.bf16.msra.mxu0 %v17342_v17  ;;  %v17348_v26 = vld [vmem:[#allocation5 + $0x920] ss:$16 sps:$4 sm:$0xff]  }
 0x48a   : > { %v2729_v16 = vpop.f32.mrf.mxu0  ;;  %v2802_v31 = vpop.f32.mrf.mxu1  ;;  %4810 = vmatpush2.bf16.msra.mxu1 %v17345_v61  ;;  %v17351_v11 = vld [vmem:[#allocation5 + $0xb20] ss:$16 sps:$4 sm:$0xff]   ;;  %4738 = vmatprep.subr.bf16.mxu0 %v17350_v36 }
 0x48b   : > { %v20560_v13 = vadd.f32 %v2802_v31, %v2729_v16  ;;  %4811 = vmatprep.subr.bf16.mxu1 %v17353_v1  ;;  %v17356_v31 = vld [vmem:[#allocation5 + $0x904] ss:$16 sps:$4 sm:$0xff]  }
 0x48c   : > { %v17359_v16 = vld [vmem:[#allocation5 + $0xb04] ss:$16 sps:$4 sm:$0xff]   ;;  %v20562_v45 = vpop.f32.mrf.mxu0  ;;  %v20564_v28 = vpop.f32.mrf.mxu1 }
 0x48d   : > { %4739 = vmatpush2.bf16.msra.mxu0 %v17348_v26  ;;  %21828 = vst [vmem:[#allocation58_spill] sm:$0xff] %v20562_v45  ;;  %21829 = vst [vmem:[#allocation59_spill] sm:$0xff] %v20564_v28 }
 0x48e   : > { %4812 = vmatpush2.bf16.msra.mxu1 %v17351_v11  ;;  %4740 = vmatprep.subr.bf16.mxu0 %v17356_v31 }
 0x48f   : > { %4813 = vmatprep.subr.bf16.mxu1 %v17359_v16 }
 0x491   : > { %4741 = vmatpush2.bf16.msra.mxu0 %v17354_v27 }
 0x492   : > { %4814 = vmatpush2.bf16.msra.mxu1 %v17357_v44  ;;  %4856 = vmatprep.subr.bf16.mxu0 %v17362_v8 }
 0x493   : > { %4929 = vmatprep.subr.bf16.mxu1 %v17365_v23 }
 0x4af   : > { %v3481_v17 = vpop.f32.mrf.mxu0  ;;  %v3554_v61 = vpop.f32.mrf.mxu1 }
 0x4b0   : > { %v3482_v36 = vadd.f32 %v3481_v17, %v20394_v35 }
 0x4b1   : > { %v3483_v1 = vpop.f32.mrf.mxu0  ;;  %v3556_v26 = vpop.f32.mrf.mxu1 }
 0x4b2   : > { %v20567_v11 = vadd.f32 %v3554_v61, %v3482_v36  ;;  %v3484_v31 = vadd.f32 %v3483_v1, %v20400_v55 }
 0x4b3   : > { %v3485_v16 = vpop.f32.mrf.mxu0  ;;  %v3558_v27 = vpop.f32.mrf.mxu1 }
 0x4b4   : > { %21830 = vst [vmem:[#allocation60_spill] sm:$0xff] %v20567_v11  ;;  %v20570_v44 = vadd.f32 %v3556_v26, %v3484_v31  ;;  %v3486_v8 = vadd.f32 %v3485_v16, %v20406_v52 }
 0x4b5   : > { %v20573_v23 = vpop.f32.mrf.mxu0  ;;  %v20575_v45 = vpop.f32.mrf.mxu1 }
 0x4b6   : > { %21831 = vst [vmem:[#allocation80_spill] sm:$0xff] %v20573_v23  ;;  %21832 = vst [vmem:[#allocation81_spill] sm:$0xff] %v20575_v45  ;;  %v20577_v28 = vadd.f32 %v3558_v27, %v3486_v8 }
 0x4b7   : > { %v3491_v4 = vpop.f32.mrf.mxu0  ;;  %v3564_v35 = vpop.f32.mrf.mxu1 }
 0x4b8   : > { %v3492_v17 = vadd.f32 %v3491_v4, %v20416_v19 }
 0x4b9   : > { %v3493_v61 = vpop.f32.mrf.mxu0  ;;  %v3566_v36 = vpop.f32.mrf.mxu1 }
 0x4ba   : > { %v20580_v11 = vadd.f32 %v3564_v35, %v3492_v17  ;;  %v3494_v55 = vadd.f32 %v3493_v61, %v20422_v25 }
 0x4bb   : > { %v3495_v1 = vpop.f32.mrf.mxu0  ;;  %v3568_v26 = vpop.f32.mrf.mxu1 }
 0x4bc   : > { %v20583_v31 = vadd.f32 %v3566_v36, %v3494_v55  ;;  %v3496_v52 = vadd.f32 %v3495_v1, %v20428_v12 }
 0x4bd   : > { %v20586_v16 = vpop.f32.mrf.mxu0  ;;  %v20588_v27 = vpop.f32.mrf.mxu1 }
 0x4be   : > { %21833 = vst [vmem:[#allocation82_spill] sm:$0xff] %v20586_v16  ;;  %21834 = vst [vmem:[#allocation83_spill] sm:$0xff] %v20588_v27  ;;  %v20590_v8 = vadd.f32 %v3568_v26, %v3496_v52 }
 0x4bf   : > { %v3501_v45 = vpop.f32.mrf.mxu0  ;;  %v3574_v19 = vpop.f32.mrf.mxu1 }
 0x4c0   : > { %v3502_v4 = vadd.f32 %v3501_v45, %v20438_v10 }
 0x4c1   : > { %v3503_v35 = vpop.f32.mrf.mxu0  ;;  %v3576_v17 = vpop.f32.mrf.mxu1 }
 0x4c2   : > { %v20593_v23 = vadd.f32 %v3574_v19, %v3502_v4  ;;  %v3504_v25 = vadd.f32 %v3503_v35, %v20444_v62 }
 0x4c3   : > { %v3505_v61 = vpop.f32.mrf.mxu0  ;;  %v3578_v36 = vpop.f32.mrf.mxu1 }
 0x4c4   : > { %v20596_v55 = vadd.f32 %v3576_v17, %v3504_v25  ;;  %v3506_v12 = vadd.f32 %v3505_v61, %v20452_v60 }
 0x4c5   : > { %v20599_v1 = vpop.f32.mrf.mxu0  ;;  %v20601_v26 = vpop.f32.mrf.mxu1 }
 0x4c6   : > { %21835 = vst [vmem:[#allocation84_spill] sm:$0xff] %v20599_v1  ;;  %21836 = vst [vmem:[#allocation85_spill] sm:$0xff] %v20601_v26  ;;  %v20603_v52 = vadd.f32 %v3578_v36, %v3506_v12 }
 0x4c7   : > { %v3511_v27 = vpop.f32.mrf.mxu0  ;;  %v3584_v10 = vpop.f32.mrf.mxu1 }
 0x4c8   : > { %21837 = vst [vmem:[#allocation86_spill] sm:$0xff] %v20603_v52  ;;  %v3512_v45 = vadd.f32 %v3511_v27, %v20464_v47 }
 0x4c9   : > { %v3513_v19 = vpop.f32.mrf.mxu0  ;;  %v3586_v4 = vpop.f32.mrf.mxu1 }
 0x4ca   : > { %v20606_v16 = vadd.f32 %v3584_v10, %v3512_v45  ;;  %v3514_v62 = vadd.f32 %v3513_v19, %v20470_v34 }
 0x4cb   : > { %v3515_v35 = vpop.f32.mrf.mxu0  ;;  %v3588_v25 = vpop.f32.mrf.mxu1 }
 0x4cc   : > { %21838 = vst [vmem:[#allocation87_spill] sm:$0xff] %v20606_v16  ;;  %v20609_v17 = vadd.f32 %v3586_v4, %v3514_v62  ;;  %v3516_v60 = vadd.f32 %v3515_v35, %v20480_v5 }
 0x4cd   : > { %v20614_v36 = vpop.f32.mrf.mxu0  ;;  %v20616_v12 = vpop.f32.mrf.mxu1 }
 0x4ce   : > { %21839 = vst [vmem:[#allocation88_spill] sm:$0xff] %v20609_v17  ;;  %v20612_v61 = vadd.f32 %v3588_v25, %v3516_v60  ;;  %21841 = vst [vmem:[#allocation90_spill] sm:$0xff] %v20614_v36 }
 0x4cf   : > { %21842 = vst [vmem:[#allocation91_spill] sm:$0xff] %v20616_v12 }
 0x4d0   : > { %21840 = vst [vmem:[#allocation89_spill] sm:$0xff] %v20612_v61 }
 0x4f0   : > { %v3627_v26 = vpop.f32.mrf.mxu0  ;;  %v3700_v47 = vpop.f32.mrf.mxu1 }
 0x4f1   : > { %v3628_v27 = vadd.f32 %v3627_v26, %v20526_v14 }
 0x4f2   : > { %v3629_v10 = vpop.f32.mrf.mxu0  ;;  %v3702_v45 = vpop.f32.mrf.mxu1 }
 0x4f3   : > { %v20619_v1 = vadd.f32 %v3700_v47, %v3628_v27  ;;  %v3630_v34 = vadd.f32 %v3629_v10, %v20528_v59 }
 0x4f4   : > { %v3631_v19 = vpop.f32.mrf.mxu0  ;;  %v3704_v4 = vpop.f32.mrf.mxu1 }
 0x4f5   : > { %21843 = vst [vmem:[#allocation92_spill] sm:$0xff] %v20619_v1  ;;  %v20622_v5 = vadd.f32 %v3702_v45, %v3630_v34  ;;  %v3632_v62 = vadd.f32 %v3631_v19, %v20530_v6 }
 0x4f6   : > { %v20625_v35 = vpop.f32.mrf.mxu0  ;;  %v20627_v60 = vpop.f32.mrf.mxu1 }
 0x4f7   : > { %21844 = vst [vmem:[#allocation93_spill] sm:$0xff] %v20622_v5  ;;  %21845 = vst [vmem:[#allocation94_spill] sm:$0xff] %v20625_v35  ;;  %v20629_v25 = vadd.f32 %v3704_v4, %v3632_v62 }
 0x4f8   : > { %21846 = vst [vmem:[#allocation95_spill] sm:$0xff] %v20627_v60  ;;  %v3637_v12 = vpop.f32.mrf.mxu0  ;;  %v3710_v14 = vpop.f32.mrf.mxu1 }
 0x4f9   : > { %21847 = vst [vmem:[#allocation96_spill] sm:$0xff] %v20629_v25  ;;  %v3638_v26 = vadd.f32 %v3637_v12, %v20536_v24 }
 0x4fa   : > { %v3639_v47 = vpop.f32.mrf.mxu0  ;;  %v3712_v27 = vpop.f32.mrf.mxu1 }
 0x4fb   : > { %v20632_v36 = vadd.f32 %v3710_v14, %v3638_v26  ;;  %v3640_v59 = vadd.f32 %v3639_v47, %v20538_v9 }
 0x4fc   : > { %v3641_v10 = vpop.f32.mrf.mxu0  ;;  %v3714_v45 = vpop.f32.mrf.mxu1 }
 0x4fd   : > { %21848 = vst [vmem:[#allocation97_spill] sm:$0xff] %v20632_v36  ;;  %v20635_v34 = vadd.f32 %v3712_v27, %v3640_v59  ;;  %v3642_v6 = vadd.f32 %v3641_v10, %v20540_v20 }
 0x4fe   : > { %v20638_v19 = vpop.f32.mrf.mxu0  ;;  %v20640_v4 = vpop.f32.mrf.mxu1 }
 0x4ff   : > { %21849 = vst [vmem:[#allocation98_spill] sm:$0xff] %v20635_v34  ;;  %21850 = vst [vmem:[#allocation99_spill] sm:$0xff] %v20638_v19  ;;  %v20642_v62 = vadd.f32 %v3714_v45, %v3642_v6 }
 0x500   : > { %21851 = vst [vmem:[#allocation100_spill] sm:$0xff] %v20640_v4  ;;  %v3647_v60 = vpop.f32.mrf.mxu0  ;;  %v3720_v24 = vpop.f32.mrf.mxu1 }
 0x501   : > { %21852 = vst [vmem:[#allocation101_spill] sm:$0xff] %v20642_v62  ;;  %v3648_v12 = vadd.f32 %v3647_v60, %v20546_v21 }
 0x502   : > { %v3649_v14 = vpop.f32.mrf.mxu0  ;;  %v3722_v26 = vpop.f32.mrf.mxu1 }
 0x503   : > { %v20645_v35 = vadd.f32 %v3720_v24, %v3648_v12  ;;  %v3650_v9 = vadd.f32 %v3649_v14, %v20548_v3 }
 0x504   : > { %v3651_v47 = vpop.f32.mrf.mxu0  ;;  %v3724_v27 = vpop.f32.mrf.mxu1 }
 0x505   : > { %21853 = vst [vmem:[#allocation102_spill] sm:$0xff] %v20645_v35  ;;  %v20648_v59 = vadd.f32 %v3722_v26, %v3650_v9  ;;  %v3652_v20 = vadd.f32 %v3651_v47, %v20550_v58 }
 0x506   : > { %v20651_v10 = vpop.f32.mrf.mxu0  ;;  %v20653_v45 = vpop.f32.mrf.mxu1 }
 0x507   : > { %21854 = vst [vmem:[#allocation103_spill] sm:$0xff] %v20648_v59  ;;  %21855 = vst [vmem:[#allocation104_spill] sm:$0xff] %v20651_v10  ;;  %v20655_v6 = vadd.f32 %v3724_v27, %v3652_v20 }
 0x508   : > { %21856 = vst [vmem:[#allocation105_spill] sm:$0xff] %v20653_v45  ;;  %v3657_v4 = vpop.f32.mrf.mxu0  ;;  %v3730_v21 = vpop.f32.mrf.mxu1 }
 0x509   : > { %21857 = vst [vmem:[#allocation106_spill] sm:$0xff] %v20655_v6  ;;  %v3658_v60 = vadd.f32 %v3657_v4, %v20556_v56 }
 0x50a   : > { %v3659_v24 = vpop.f32.mrf.mxu0  ;;  %v3732_v12 = vpop.f32.mrf.mxu1 }
 0x50b   : > { %v20658_v19 = vadd.f32 %v3730_v21, %v3658_v60  ;;  %v3660_v3 = vadd.f32 %v3659_v24, %v20558_v7 }
 0x50c   : > { %v3661_v14 = vpop.f32.mrf.mxu0  ;;  %v3734_v26 = vpop.f32.mrf.mxu1 }
 0x50d   : > { %21858 = vst [vmem:[#allocation107_spill] sm:$0xff] %v20658_v19  ;;  %v20661_v9 = vadd.f32 %v3732_v12, %v3660_v3  ;;  %v3662_v58 = vadd.f32 %v3661_v14, %v20560_v13  ;;  %v17360_v3 = vld [vmem:[#allocation5 + $0x8e8] ss:$16 sps:$4 sm:$0xff]  }
 0x50e   : > { %v20664_v47 = vpop.f32.mrf.mxu0  ;;  %v20666_v27 = vpop.f32.mrf.mxu1  ;;  %v17363_v13 = vld [vmem:[#allocation5 + $0xae8] ss:$16 sps:$4 sm:$0xff]  }
 0x50f   : > { %21859 = vst [vmem:[#allocation108_spill] sm:$0xff] %v20661_v9  ;;  %21860 = vst [vmem:[#allocation109_spill] sm:$0xff] %v20664_v47  ;;  %v20668_v20 = vadd.f32 %v3734_v26, %v3662_v58 }
 0x510   : > { %21861 = vst [vmem:[#allocation110_spill] sm:$0xff] %v20666_v27  ;;  %v17368_v27 = vld [vmem:[#allocation5 + $0x8cc] ss:$16 sps:$4 sm:$0xff]  }
 0x511   : > { %21862 = vst [vmem:[#allocation111_spill] sm:$0xff] %v20668_v20  ;;  %v3813_v45 = vpop.f32.mrf.mxu0  ;;  %v3886_v56 = vpop.f32.mrf.mxu1  ;;  %v17371_v20 = vld [vmem:[#allocation5 + $0xacc] ss:$16 sps:$4 sm:$0xff]  }
 0x513   : > { %v3815_v4 = vpop.f32.mrf.mxu0  ;;  %v3888_v10 = vpop.f32.mrf.mxu1 }
 0x515   : > { %v3817_v21 = vpop.f32.mrf.mxu0  ;;  %v3890_v60 = vpop.f32.mrf.mxu1 }
 0x516   : > { %v20674_v14 = vpack.c.bf16 %v3817_v21, %v3813_v45  ;;  %v20676_v47 = vpack.c.bf16 %v3890_v60, %v3886_v56  ;;  %v17377_v21 = vld [vmem:[#allocation5 + $0xaac] ss:$16 sps:$4 sm:$0xff]  }
 0x517   : > { %v3819_v19 = vpop.f32.mrf.mxu0  ;;  %v3892_v7 = vpop.f32.mrf.mxu1 }
 0x518   : > { %v20670_v24 = vpack.c.bf16 %v3819_v19, %v3815_v4  ;;  %v20672_v12 = vpack.c.bf16 %v3892_v7, %v3888_v10  ;;  %v17366_v19 = vld [vmem:[#allocation5 + $0x8c8] ss:$16 sps:$4 sm:$0xff]   ;;  %v17374_v4 = vld [vmem:[#allocation5 + $0x8ac] ss:$16 sps:$4 sm:$0xff]  }
 0x519   : > { %v3823_v26 = vpop.f32.mrf.mxu0  ;;  %v3896_v58 = vpop.f32.mrf.mxu1  ;;  %v17369_v10 = vld [vmem:[#allocation5 + $0xac8] ss:$16 sps:$4 sm:$0xff]  }
 0x51a   : > { %4742 = vmatprep.mubr.bf16.mxu0 %v20670_v24  ;;  %4815 = vmatprep.mubr.bf16.mxu1 %v20672_v12 }
 0x51b   : > { %v3825_v9 = vpop.f32.mrf.mxu0  ;;  %v3898_v6 = vpop.f32.mrf.mxu1  ;;  %4743 = vmatmul.mubr.bf16.vlgmr.msra.gmra.mxu0 %v20674_v14  ;;  %4816 = vmatmul.mubr.bf16.vlgmr.msra.gmra.mxu1 %v20676_v47 }
 0x51c   : > { %4857 = vmatpush1.bf16.msra.mxu0 %v17360_v3  ;;  %4930 = vmatpush1.bf16.msra.mxu1 %v17363_v13  ;;  %v17372_v3 = vld [vmem:[#allocation5 + $0x8a8] ss:$16 sps:$4 sm:$0xff]  }
 0x51d   : > { %v3827_v45 = vpop.f32.mrf.mxu0  ;;  %v3900_v56 = vpop.f32.mrf.mxu1  ;;  %4858 = vmatprep.subr.bf16.mxu0 %v17368_v27  ;;  %4931 = vmatprep.subr.bf16.mxu1 %v17371_v20  ;;  %v17375_v13 = vld [vmem:[#allocation5 + $0xaa8] ss:$16 sps:$4 sm:$0xff]   ;;  %v17380_v27 = vld [vmem:[#allocation5 + $0x88c] ss:$16 sps:$4 sm:$0xff]  }
 0x51e   : > { %v20682_v60 = vpack.c.bf16 %v3827_v45, %v3823_v26  ;;  %v20684_v7 = vpack.c.bf16 %v3900_v56, %v3896_v58  ;;  %v17383_v20 = vld [vmem:[#allocation5 + $0xa8c] ss:$16 sps:$4 sm:$0xff]  }
 0x51f   : > { %v3829_v59 = vpop.f32.mrf.mxu0  ;;  %v3902_v35 = vpop.f32.mrf.mxu1 }
 0x520   : > { %v20686_v62 = vpack.c.bf16 %v3829_v59, %v3825_v9  ;;  %v20688_v34 = vpack.c.bf16 %v3902_v35, %v3898_v6  ;;  %4859 = vmatpush1.bf16.msra.mxu0 %v17366_v19  ;;  %4932 = vmatpush1.bf16.msra.mxu1 %v17369_v10  ;;  %v17378_v35 = vld [vmem:[#allocation5 + $0x888] ss:$16 sps:$4 sm:$0xff]   ;;  %v17386_v19 = vld [vmem:[#allocation5 + $0x86c] ss:$16 sps:$4 sm:$0xff]  }
 0x521   : > { %v3833_v36 = vpop.f32.mrf.mxu0  ;;  %v3906_v25 = vpop.f32.mrf.mxu1  ;;  %4860 = vmatprep.subr.bf16.mxu0 %v17374_v4  ;;  %4933 = vmatprep.subr.bf16.mxu1 %v17377_v21  ;;  %v17381_v59 = vld [vmem:[#allocation5 + $0xa88] ss:$16 sps:$4 sm:$0xff]   ;;  %v17389_v10 = vld [vmem:[#allocation5 + $0xa6c] ss:$16 sps:$4 sm:$0xff]  }
 0x522   : > { %4752 = vmatprep.mubr.bf16.mxu0 %v20686_v62  ;;  %4825 = vmatprep.mubr.bf16.mxu1 %v20688_v34 }
 0x523   : > { %v3835_v26 = vpop.f32.mrf.mxu0  ;;  %v3908_v58 = vpop.f32.mrf.mxu1  ;;  %4753 = vmatmul.mubr.bf16.gmra.mxu0 %v20682_v60  ;;  %4826 = vmatmul.mubr.bf16.gmra.mxu1 %v20684_v7 }
 0x524   : > { %4861 = vmatpush1.bf16.msra.mxu0 %v17372_v3  ;;  %4934 = vmatpush1.bf16.msra.mxu1 %v17375_v13  ;;  %v17384_v3 = vld [vmem:[#allocation5 + $0x868] ss:$16 sps:$4 sm:$0xff]  }
 0x525   : > { %v3837_v6 = vpop.f32.mrf.mxu0  ;;  %v3910_v9 = vpop.f32.mrf.mxu1  ;;  %4862 = vmatprep.subr.bf16.mxu0 %v17380_v27  ;;  %4935 = vmatprep.subr.bf16.mxu1 %v17383_v20  ;;  %v17387_v13 = vld [vmem:[#allocation5 + $0xa68] ss:$16 sps:$4 sm:$0xff]   ;;  %v17392_v27 = vld [vmem:[#allocation5 + $0x84c] ss:$16 sps:$4 sm:$0xff]  }
 0x526   : > { %v20694_v45 = vpack.c.bf16 %v3837_v6, %v3833_v36  ;;  %v20696_v56 = vpack.c.bf16 %v3910_v9, %v3906_v25  ;;  %v17395_v20 = vld [vmem:[#allocation5 + $0xa4c] ss:$16 sps:$4 sm:$0xff]  }
 0x527   : > { %v3839_v4 = vpop.f32.mrf.mxu0  ;;  %v3912_v21 = vpop.f32.mrf.mxu1  ;;  %v17398_v6 = vld [vmem:[#allocation5 + $0x82c] ss:$16 sps:$4 sm:$0xff]  }
 0x528   : > { %v20698_v5 = vpack.c.bf16 %v3839_v4, %v3835_v26  ;;  %v20700_v1 = vpack.c.bf16 %v3912_v21, %v3908_v58  ;;  %4863 = vmatpush1.bf16.msra.mxu0 %v17378_v35  ;;  %4936 = vmatpush1.bf16.msra.mxu1 %v17381_v59  ;;  %v17390_v26 = vld [vmem:[#allocation5 + $0x848] ss:$16 sps:$4 sm:$0xff]   ;;  %v17401_v9 = vld [vmem:[#allocation5 + $0xa2c] ss:$16 sps:$4 sm:$0xff]  }
 0x529   : > { %v3843_v61 = vpop.f32.mrf.mxu0  ;;  %v3916_v17 = vpop.f32.mrf.mxu1  ;;  %4864 = vmatprep.subr.bf16.mxu0 %v17386_v19  ;;  %4937 = vmatprep.subr.bf16.mxu1 %v17389_v10  ;;  %v17393_v58 = vld [vmem:[#allocation5 + $0xa48] ss:$16 sps:$4 sm:$0xff]  }
 0x52a   : > { %4762 = vmatprep.mubr.bf16.mxu0 %v20698_v5  ;;  %4835 = vmatprep.mubr.bf16.mxu1 %v20700_v1 }
 0x52b   : > { %v3845_v36 = vpop.f32.mrf.mxu0  ;;  %v3918_v25 = vpop.f32.mrf.mxu1  ;;  %4763 = vmatmul.mubr.bf16.gmra.mxu0 %v20694_v45  ;;  %4836 = vmatmul.mubr.bf16.gmra.mxu1 %v20696_v56 }
 0x52c   : > { %4865 = vmatpush1.bf16.msra.mxu0 %v17384_v3  ;;  %4938 = vmatpush1.bf16.msra.mxu1 %v17387_v13  ;;  %v17396_v3 = vld [vmem:[#allocation5 + $0x828] ss:$16 sps:$4 sm:$0xff]  }
 0x52d   : > { %v3847_v35 = vpop.f32.mrf.mxu0  ;;  %v3920_v59 = vpop.f32.mrf.mxu1  ;;  %4866 = vmatprep.subr.bf16.mxu0 %v17392_v27  ;;  %4939 = vmatprep.subr.bf16.mxu1 %v17395_v20  ;;  %v17399_v13 = vld [vmem:[#allocation5 + $0xa28] ss:$16 sps:$4 sm:$0xff]   ;;  %v17407_v27 = vld [vmem:[#allocation5 + $0xa0c] ss:$16 sps:$4 sm:$0xff]  }
 0x52e   : > { %v20706_v19 = vpack.c.bf16 %v3847_v35, %v3843_v61  ;;  %v20708_v10 = vpack.c.bf16 %v3920_v59, %v3916_v17  ;;  %v17404_v61 = vld [vmem:[#allocation5 + $0x80c] ss:$16 sps:$4 sm:$0xff]   ;;  %v17402_v17 = vld [vmem:[#allocation5 + $0x808] ss:$16 sps:$4 sm:$0xff]  }
 0x52f   : > { %v3849_v4 = vpop.f32.mrf.mxu0  ;;  %v3922_v21 = vpop.f32.mrf.mxu1  ;;  %v17405_v20 = vld [vmem:[#allocation5 + $0xa08] ss:$16 sps:$4 sm:$0xff]   ;;  %v17416_v35 = vld [vmem:[#allocation5 + $0x9cc] ss:$16 sps:$4 sm:$0xff]  }
 0x530   : > { %v20710_v16 = vpack.c.bf16 %v3849_v4, %v3845_v36  ;;  %v20712_v52 = vpack.c.bf16 %v3922_v21, %v3918_v25  ;;  %4867 = vmatpush1.bf16.msra.mxu0 %v17390_v26  ;;  %4940 = vmatpush1.bf16.msra.mxu1 %v17393_v58  ;;  %v17410_v36 = vld [vmem:[#allocation5 + $0x9ec] ss:$16 sps:$4 sm:$0xff]   ;;  %v17408_v26 = vld [vmem:[#allocation5 + $0x9e8] ss:$16 sps:$4 sm:$0xff]  }
 0x531   : > { %4868 = vmatprep.subr.bf16.mxu0 %v17398_v6  ;;  %4941 = vmatprep.subr.bf16.mxu1 %v17401_v9  ;;  %v17413_v25 = vld [vmem:[#allocation5 + $0xbec] ss:$16 sps:$4 sm:$0xff]   ;;  %v17411_v58 = vld [vmem:[#allocation5 + $0xbe8] ss:$16 sps:$4 sm:$0xff]  }
 0x532   : > { %4772 = vmatprep.mubr.bf16.mxu0 %v20710_v16  ;;  %4845 = vmatprep.mubr.bf16.mxu1 %v20712_v52  ;;  %v17419_v59 = vld [vmem:[#allocation5 + $0xbcc] ss:$16 sps:$4 sm:$0xff]   ;;  %v17414_v6 = vld [vmem:[#allocation5 + $0x9c8] ss:$16 sps:$4 sm:$0xff]  }
 0x533   : > { %4773 = vmatmul.mubr.bf16.gmra.mxu0 %v20706_v19  ;;  %4846 = vmatmul.mubr.bf16.gmra.mxu1 %v20708_v10  ;;  %v17417_v9 = vld [vmem:[#allocation5 + $0xbc8] ss:$16 sps:$4 sm:$0xff]  }
 0x534   : > { %4869 = vmatpush1.bf16.msra.mxu0 %v17396_v3  ;;  %4942 = vmatpush1.bf16.msra.mxu1 %v17399_v13  ;;  %v17420_v4 = vld [vmem:[#allocation5 + $0x9a8] ss:$16 sps:$4 sm:$0xff]   ;;  %v17428_v3 = vld [vmem:[#allocation5 + $0x98c] ss:$16 sps:$4 sm:$0xff]  }
 0x535   : > { %4888 = vmatprep.mubr.bf16.mxu0 %v20670_v24  ;;  %4961 = vmatprep.mubr.bf16.mxu1 %v20672_v12  ;;  %v17422_v24 = vld [vmem:[#allocation5 + $0x9ac] ss:$16 sps:$4 sm:$0xff]   ;;  %v17423_v21 = vld [vmem:[#allocation5 + $0xba8] ss:$16 sps:$4 sm:$0xff]  }
 0x536   : > { %4870 = vmatprep.subr.bf16.mxu0 %v17404_v61  ;;  %4943 = vmatprep.subr.bf16.mxu1 %v17407_v27  ;;  %v17425_v12 = vld [vmem:[#allocation5 + $0xbac] ss:$16 sps:$4 sm:$0xff]   ;;  %v17426_v61 = vld [vmem:[#allocation5 + $0x988] ss:$16 sps:$4 sm:$0xff]  }
 0x537   : > { %v17431_v13 = vld [vmem:[#allocation5 + $0xb8c] ss:$16 sps:$4 sm:$0xff]   ;;  %v17429_v27 = vld [vmem:[#allocation5 + $0xb88] ss:$16 sps:$4 sm:$0xff]  }
 0x538   : > { %4871 = vmatpush1.bf16.msra.mxu0 %v17402_v17  ;;  %4944 = vmatpush1.bf16.msra.mxu1 %v17405_v20  ;;  %v17434_v17 = vld [vmem:[#allocation5 + $0x96c] ss:$16 sps:$4 sm:$0xff]  }
 0x539   : > { %4872 = vmatprep.subr.bf16.mxu0 %v17410_v36  ;;  %4945 = vmatprep.subr.bf16.mxu1 %v17413_v25  ;;  %v17437_v20 = vld [vmem:[#allocation5 + $0xb6c] ss:$16 sps:$4 sm:$0xff]   ;;  %v17432_v36 = vld [vmem:[#allocation5 + $0x968] ss:$16 sps:$4 sm:$0xff]  }
 0x53a   : > { %v17435_v25 = vld [vmem:[#allocation5 + $0xb68] ss:$16 sps:$4 sm:$0xff]  }
 0x53c   : > { %4873 = vmatpush2.bf16.msra.mxu0 %v17408_v26  ;;  %4946 = vmatpush2.bf16.msra.mxu1 %v17411_v58  ;;  %v17440_v26 = vld [vmem:[#allocation5 + $0x94c] ss:$16 sps:$4 sm:$0xff]  }
 0x53d   : > { %4874 = vmatprep.subr.bf16.mxu0 %v17416_v35  ;;  %4947 = vmatprep.subr.bf16.mxu1 %v17419_v59  ;;  %v17443_v58 = vld [vmem:[#allocation5 + $0xb4c] ss:$16 sps:$4 sm:$0xff]   ;;  %v17438_v35 = vld [vmem:[#allocation5 + $0x948] ss:$16 sps:$4 sm:$0xff]  }
 0x53e   : > { %v17441_v59 = vld [vmem:[#allocation5 + $0xb48] ss:$16 sps:$4 sm:$0xff]  }
 0x540   : > { %4875 = vmatpush2.bf16.msra.mxu0 %v17414_v6  ;;  %4948 = vmatpush2.bf16.msra.mxu1 %v17417_v9  ;;  %v17446_v6 = vld [vmem:[#allocation5 + $0x92c] ss:$16 sps:$4 sm:$0xff]  }
 0x541   : > { %4876 = vmatprep.subr.bf16.mxu0 %v17422_v24  ;;  %4949 = vmatprep.subr.bf16.mxu1 %v17425_v12  ;;  %v17449_v9 = vld [vmem:[#allocation5 + $0xb2c] ss:$16 sps:$4 sm:$0xff]   ;;  %v17444_v24 = vld [vmem:[#allocation5 + $0x928] ss:$16 sps:$4 sm:$0xff]  }
 0x542   : > { %v17447_v12 = vld [vmem:[#allocation5 + $0xb28] ss:$16 sps:$4 sm:$0xff]  }
 0x544   : > { %4877 = vmatpush2.bf16.msra.mxu0 %v17420_v4  ;;  %4950 = vmatpush2.bf16.msra.mxu1 %v17423_v21  ;;  %v17452_v4 = vld [vmem:[#allocation5 + $0x90c] ss:$16 sps:$4 sm:$0xff]  }
 0x545   : > { %4878 = vmatprep.subr.bf16.mxu0 %v17428_v3  ;;  %4951 = vmatprep.subr.bf16.mxu1 %v17431_v13  ;;  %v17455_v21 = vld [vmem:[#allocation5 + $0xb0c] ss:$16 sps:$4 sm:$0xff]   ;;  %v17450_v3 = vld [vmem:[#allocation5 + $0x908] ss:$16 sps:$4 sm:$0xff]  }
 0x546   : > { %v17453_v13 = vld [vmem:[#allocation5 + $0xb08] ss:$16 sps:$4 sm:$0xff]  }
 0x548   : > { %4879 = vmatpush2.bf16.msra.mxu0 %v17426_v61  ;;  %4952 = vmatpush2.bf16.msra.mxu1 %v17429_v27  ;;  %v17476_v61 = vld [vmem:[#allocation5 + $0xc84] ss:$16 sps:$4 sm:$0xff]  }
 0x549   : > { %4880 = vmatprep.subr.bf16.mxu0 %v17434_v17  ;;  %4953 = vmatprep.subr.bf16.mxu1 %v17437_v20  ;;  %v21879_v20 = vld [vmem:[#allocation73_spill] sm:$0xff] }
 0x54c   : > { %4881 = vmatpush2.bf16.msra.mxu0 %v17432_v36  ;;  %4954 = vmatpush2.bf16.msra.mxu1 %v17435_v25  ;;  %v5040_v36 = vadd.s32 3, %v21879_v20  ;;  %v21880_v25 = vld [vmem:[#allocation74_spill] sm:$0xff]  ;;  %v17540_v20 = vld [vmem:[#allocation5 + $0xd20] ss:$16 sps:$4 sm:$0xff]  }
 0x54d   : > { %4882 = vmatprep.subr.bf16.mxu0 %v17440_v26  ;;  %4955 = vmatprep.subr.bf16.mxu1 %v17443_v58  ;;  %v5041_v26 = vadd.s32 3, %v21880_v25  ;;  %v17471_v58 = vld [vmem:[#allocation5 + $0xea0] ss:$16 sps:$4 sm:$0xff]   ;;  %v17548_v25 = vld [vmem:[#allocation5 + $0xd04] ss:$16 sps:$4 sm:$0xff]  }
 0x550   : > { %4883 = vmatpush2.bf16.msra.mxu0 %v17438_v35  ;;  %4956 = vmatpush2.bf16.msra.mxu1 %v17441_v59  ;;  %v17474_v35 = vld [vmem:[#allocation5 + $0xc80] ss:$16 sps:$4 sm:$0xff]   ;;  %v17479_v59 = vld [vmem:[#allocation5 + $0xe84] ss:$16 sps:$4 sm:$0xff]  }
 0x551   : > { %4884 = vmatprep.subr.bf16.mxu0 %v17446_v6  ;;  %4957 = vmatprep.subr.bf16.mxu1 %v17449_v9  ;;  %v17477_v9 = vld [vmem:[#allocation5 + $0xe80] ss:$16 sps:$4 sm:$0xff]  }
 0x554   : > { %4885 = vmatpush2.bf16.msra.mxu0 %v17444_v24  ;;  %4958 = vmatpush2.bf16.msra.mxu1 %v17447_v12  ;;  %v17482_v24 = vld [vmem:[#allocation5 + $0xc64] ss:$16 sps:$4 sm:$0xff]   ;;  %v17480_v12 = vld [vmem:[#allocation5 + $0xc60] ss:$16 sps:$4 sm:$0xff]  }
 0x555   : > { %4886 = vmatprep.subr.bf16.mxu0 %v17452_v4  ;;  %4959 = vmatprep.subr.bf16.mxu1 %v17455_v21  ;;  %v17485_v4 = vld [vmem:[#allocation5 + $0xe64] ss:$16 sps:$4 sm:$0xff]  }
 0x556   : > { %v17488_v21 = vld [vmem:[#allocation5 + $0xc44] ss:$16 sps:$4 sm:$0xff]  }
 0x558   : > { %4887 = vmatpush2.bf16.msra.mxu0 %v17450_v3  ;;  %4960 = vmatpush2.bf16.msra.mxu1 %v17453_v13 }
 0x559   : > { %15486 = vmatprep.subr.msk.bf16.mxu0 %vm1241_vm1, %v19949_v40  ;;  %15491 = vmatprep.subr.msk.bf16.mxu1 %vm1241_vm1, %v19951_v41  ;;  %v21865_v40 = vld [vmem:[#allocation63_spill] sm:$0xff]  ;;  %v21866_v41 = vld [vmem:[#allocation38_spill] sm:$0xff] }
 0x55a   : > { %vm5048_vm5 = vcmp.eq.s32.totalorder %v21866_v41, %v5040_v36  ;;  %vm5049_vm6 = vcmp.eq.s32.totalorder %v21866_v41, %v5041_v26  ;;  %v17543_v36 = vld [vmem:[#allocation5 + $0xf20] ss:$16 sps:$4 sm:$0xff]   ;;  %v17551_v26 = vld [vmem:[#allocation5 + $0xf04] ss:$16 sps:$4 sm:$0xff]  }
 0x55b   : > { %4889 = vmatmul.mubr.bf16.vlgmr.msra.gmra.mxu0 %v20674_v14  ;;  %4962 = vmatmul.mubr.bf16.vlgmr.msra.gmra.mxu1 %v20676_v47  ;;  %v17467_v14 = vld [vmem:[#allocation5 + $0xec4] ss:$16 sps:$4 sm:$0xff]  }
 0x55c   : > { %4898 = vmatprep.mubr.bf16.mxu0 %v20686_v62  ;;  %4971 = vmatprep.mubr.bf16.mxu1 %v20688_v34  ;;  %v21878_v62 = vld [vmem:[#allocation71_spill] sm:$0xff] }
 0x55d   : > { %5075 = vmatpush1.bf16.msra.mxu0 %v19958_v32  ;;  %5148 = vmatpush1.bf16.msra.mxu1 %v19961_v43  ;;  %v5035_v32 = vadd.s32 3, %v21796_v29  ;;  %v21864_v43 = vld [vmem:[#allocation62_spill] sm:$0xff]  ;;  %v17459_v29 = vld [vmem:[#allocation5 + $0xee0] ss:$16 sps:$4 sm:$0xff]   ;;  %v5039_v47 = vadd.s32 3, %v21878_v62 }
 0x55e   : > { %5076 = vmatprep.subr.bf16.mxu0 %v19953_v48  ;;  %5149 = vmatprep.subr.bf16.mxu1 %v19955_v33  ;;  %v5034_v48 = vadd.s32 3, %v21795_v30  ;;  %v21863_v33 = vld [vmem:[#allocation61_spill] sm:$0xff]  ;;  %v17458_v30 = vld [vmem:[#allocation5 + $0xce4] ss:$16 sps:$4 sm:$0xff]  }
 0x55f   : > { %vm5043_vm14 = vcmp.eq.s32.totalorder %v21866_v41, %v5035_v32  ;;  %vm5047_vm3 = vcmp.eq.s32.totalorder %v21866_v41, %v5039_v47  ;;  %v17486_v32 = vld [vmem:[#allocation5 + $0xc40] ss:$16 sps:$4 sm:$0xff]  }
 0x560   : > { %vm5042_vm13 = vcmp.eq.s32.totalorder %v21866_v41, %v5034_v48  ;;  %v17483_v48 = vld [vmem:[#allocation5 + $0xe60] ss:$16 sps:$4 sm:$0xff]  }
 0x561   : > { %5077 = vmatpush1.bf16.msra.mxu0 %v19971_v0  ;;  %5150 = vmatpush1.bf16.msra.mxu1 %v19973_v53  ;;  %v21867_v0 = vmov 0   ;;  %v21868_v53 = vld [vmem:[#allocation41_spill] sm:$0xff] }
 0x562   : > { %5078 = vmatprep.subr.bf16.mxu0 %v21779_v54  ;;  %5151 = vmatprep.subr.bf16.mxu1 %v21780_v18  ;;  %v21869_v54 = vld [vmem:[#allocation42_spill] sm:$0xff]  ;;  %v21870_v18 = vmov 0.0   ;;  %v17522_v62 = vld [vmem:[#allocation5 + $0xd80] ss:$16 sps:$4 sm:$0xff]  }
 0x563   : > { %4899 = vmatmul.mubr.bf16.gmra.mxu0 %v20682_v60  ;;  %4972 = vmatmul.mubr.bf16.gmra.mxu1 %v20684_v7  ;;  %v17462_v60 = vld [vmem:[#allocation5 + $0xcc0] ss:$16 sps:$4 sm:$0xff]   ;;  %v5055_v17 = vsel %vm5047_vm3, 1.0, %v21870_v18  ;;  %v5056_v3 = vsel %vm5048_vm5, 1.0, %v21870_v18  ;;  %v5057_v13 = vsel %vm5049_vm6, 1.0, %v21870_v18 }
 0x564   : > { %4908 = vmatprep.mubr.bf16.mxu0 %v20698_v5  ;;  %4981 = vmatprep.mubr.bf16.mxu1 %v20700_v1  ;;  %v17461_v1 = vld [vmem:[#allocation5 + $0xee4] ss:$16 sps:$4 sm:$0xff]   ;;  %v17525_v47 = vld [vmem:[#allocation5 + $0xf80] ss:$16 sps:$4 sm:$0xff]  }
 0x565   : > { %5079 = vmatpush1.bf16.msra.mxu0 %v21781_v57  ;;  %5152 = vmatpush1.bf16.msra.mxu1 %v21782_v42  ;;  %v5050_v57 = vsel %vm5042_vm13, 1.0, %v21870_v18  ;;  %v5051_v42 = vsel %vm5043_vm14, 1.0, %v21870_v18  ;;  %v21877_v5 = vld [vmem:[#allocation70_spill] sm:$0xff]  ;;  %vm10269_vm14 = vcmask 56320  }
 0x566   : > { %5080 = vmatprep.subr.bf16.mxu0 %v21783_v46  ;;  %5153 = vmatprep.subr.bf16.mxu1 %v21784_v38  ;;  %v21871_v46 = vld [vmem:[#allocation64_spill] sm:$0xff]  ;;  %v21872_v38 = vld [vmem:[#allocation65_spill] sm:$0xff]  ;;  %v5038_v34 = vadd.s32 3, %v21877_v5 }
 0x567   : > { %v17524_v5 = vld [vmem:[#allocation5 + $0xd84] ss:$16 sps:$4 sm:$0xff]  }
 0x568   : > { %vm5046_vm2 = vcmp.eq.s32.totalorder %v21866_v41, %v5038_v34  ;;  %v17527_v34 = vld [vmem:[#allocation5 + $0xf84] ss:$16 sps:$4 sm:$0xff]  }
 0x569   : > { %5081 = vmatpush1.bf16.msra.mxu0 %v21787_v50  ;;  %5154 = vmatpush1.bf16.msra.mxu1 %v21788_v51  ;;  %v21873_v50 = vld [vmem:[#allocation67_spill] sm:$0xff]  ;;  %v5054_v27 = vsel %vm5046_vm2, 1.0, %v21870_v18 }
 0x56a   : > { %5082 = vmatprep.subr.bf16.mxu0 %v21789_v49  ;;  %5155 = vmatprep.subr.bf16.mxu1 %v21790_v39  ;;  %v5036_v51 = vadd.s32 3, %v21873_v50  ;;  %v21874_v49 = vld [vmem:[#allocation68_spill] sm:$0xff]  ;;  %v5060_v6 = vpack.c.bf16 %v5055_v17, %v5054_v27  ;;  %v17498_v50 = vld [vmem:[#allocation5 + $0xc00] ss:$16 sps:$4 sm:$0xff]  }
 0x56b   : > { %4909 = vmatmul.mubr.bf16.gmra.mxu0 %v20694_v45  ;;  %4982 = vmatmul.mubr.bf16.gmra.mxu1 %v20696_v56  ;;  %v5037_v39 = vadd.s32 3, %v21874_v49  ;;  %v17465_v45 = vld [vmem:[#allocation5 + $0xec0] ss:$16 sps:$4 sm:$0xff]   ;;  %v17470_v56 = vld [vmem:[#allocation5 + $0xca4] ss:$16 sps:$4 sm:$0xff]  }
 0x56c   : > { %4918 = vmatprep.mubr.bf16.mxu0 %v20710_v16  ;;  %4991 = vmatprep.mubr.bf16.mxu1 %v20712_v52  ;;  %vm5044_vm15 = vcmp.eq.s32.totalorder %v21866_v41, %v5036_v51  ;;  %v17464_v52 = vld [vmem:[#allocation5 + $0xcc4] ss:$16 sps:$4 sm:$0xff]   ;;  %v17501_v51 = vld [vmem:[#allocation5 + $0xe00] ss:$16 sps:$4 sm:$0xff]  }
 0x56d   : > { %5083 = vmatpush1.bf16.msra.mxu0 %v21791_v37  ;;  %5156 = vmatpush1.bf16.msra.mxu1 %v21792_v2  ;;  %v5058_v37 = vpack.c.bf16 %v5051_v42, %v5050_v57  ;;  %v21875_v2 = vld [vmem:[#allocation39_spill] sm:$0xff]  ;;  %vm5045_vm0 = vcmp.eq.s32.totalorder %v21866_v41, %v5037_v39  ;;  %v17506_v49 = vld [vmem:[#allocation5 + $0xde4] ss:$16 sps:$4 sm:$0xff]  }
 0x56e   : > { %5084 = vmatprep.subr.bf16.mxu0 %v21793_v15  ;;  %5157 = vmatprep.subr.bf16.mxu1 %v21794_v22  ;;  %v21876_v15 = vld [vmem:[#allocation40_spill] sm:$0xff]  ;;  %v17456_v22 = vld [vmem:[#allocation5 + $0xce0] ss:$16 sps:$4 sm:$0xff]   ;;  %v5053_v16 = vsel %vm5045_vm0, 1.0, %v21870_v18 }
 0x56f   : > { %v17492_v57 = vld [vmem:[#allocation5 + $0xc20] ss:$16 sps:$4 sm:$0xff]   ;;  %v17509_v39 = vld [vmem:[#allocation5 + $0xfe4] ss:$16 sps:$4 sm:$0xff]  }
 0x570   : > { %v17495_v42 = vld [vmem:[#allocation5 + $0xe20] ss:$16 sps:$4 sm:$0xff]   ;;  %v17542_v27 = vld [vmem:[#allocation5 + $0xd24] ss:$16 sps:$4 sm:$0xff]  }
 0x571   : > { %5085 = vmatpush1.bf16.msra.mxu0 %v21799_v63  ;;  %5158 = vmatpush1.bf16.msra.mxu1 %v21863_v33  ;;  %v5052_v63 = vsel %vm5044_vm15, 1.0, %v21870_v18  ;;  %v17491_v33 = vld [vmem:[#allocation5 + $0xe44] ss:$16 sps:$4 sm:$0xff]  }
 0x572   : > { %5086 = vmatprep.subr.bf16.mxu0 %v21864_v43  ;;  %5159 = vmatprep.subr.bf16.mxu1 %v21865_v40  ;;  %v5059_v7 = vpack.c.bf16 %v5053_v16, %v5052_v63  ;;  %v5061_v43 = vpack.c.bf16 %v5057_v13, %v5056_v3  ;;  %v17489_v40 = vld [vmem:[#allocation5 + $0xe40] ss:$16 sps:$4 sm:$0xff]   ;;  %v17518_v63 = vld [vmem:[#allocation5 + $0xda4] ss:$16 sps:$4 sm:$0xff]  }
 0x573   : > { %4919 = vmatmul.mubr.bf16.gmra.mxu0 %v20706_v19  ;;  %4992 = vmatmul.mubr.bf16.gmra.mxu1 %v20708_v10  ;;  %v17468_v19 = vld [vmem:[#allocation5 + $0xca0] ss:$16 sps:$4 sm:$0xff]   ;;  %v17473_v10 = vld [vmem:[#allocation5 + $0xea4] ss:$16 sps:$4 sm:$0xff]  }
 0x574   : > { %5106 = vmatprep.mubr.bf16.mxu0 %v21867_v0  ;;  %5179 = vmatprep.mubr.bf16.mxu1 %v21867_v0  ;;  %v17521_v16 = vld [vmem:[#allocation5 + $0xfa4] ss:$16 sps:$4 sm:$0xff]  }
 0x575   : > { %5087 = vmatpush1.bf16.msra.mxu0 %v21868_v53  ;;  %5160 = vmatpush1.bf16.msra.mxu1 %v21869_v54  ;;  %v17494_v53 = vld [vmem:[#allocation5 + $0xc24] ss:$16 sps:$4 sm:$0xff]  }
 0x576   : > { %5088 = vmatprep.subr.bf16.mxu0 %v21871_v46  ;;  %5161 = vmatprep.subr.bf16.mxu1 %v21872_v38  ;;  %v17497_v54 = vld [vmem:[#allocation5 + $0xe24] ss:$16 sps:$4 sm:$0xff]  }
 0x577   : > { %v17500_v46 = vld [vmem:[#allocation5 + $0xc04] ss:$16 sps:$4 sm:$0xff]  }
 0x578   : > { %v17503_v38 = vld [vmem:[#allocation5 + $0xe04] ss:$16 sps:$4 sm:$0xff]  }
 0x579   : > { %5089 = vmatpush1.bf16.msra.mxu0 %v21875_v2  ;;  %5162 = vmatpush1.bf16.msra.mxu1 %v21876_v15  ;;  %v17507_v2 = vld [vmem:[#allocation5 + $0xfe0] ss:$16 sps:$4 sm:$0xff]   ;;  %v17512_v15 = vld [vmem:[#allocation5 + $0xdc4] ss:$16 sps:$4 sm:$0xff]  }
 0x57a   : > { %6005 = vmatprep.subr.bf16.mxu0 %v17458_v30  ;;  %6078 = vmatprep.subr.bf16.mxu1 %v17461_v1  ;;  %v17510_v30 = vld [vmem:[#allocation5 + $0xdc0] ss:$16 sps:$4 sm:$0xff]   ;;  %v17545_v17 = vld [vmem:[#allocation5 + $0xf24] ss:$16 sps:$4 sm:$0xff]  }
 0x57b   : > { %v17516_v1 = vld [vmem:[#allocation5 + $0xda0] ss:$16 sps:$4 sm:$0xff]   ;;  %v21881_v3 = vld [vmem:[#allocation60_spill] sm:$0xff] }
 0x57c   : > { %15487 = vmatmul.mubr.msk.bf16.vlgmr.msra.gmra.mxu0 %vm1228_vm4, %v5058_v37  ;;  %15492 = vmatmul.mubr.msk.bf16.vlgmr.msra.gmra.mxu1 %vm1228_vm4, %v5058_v37  ;;  %v17504_v37 = vld [vmem:[#allocation5 + $0xde0] ss:$16 sps:$4 sm:$0xff]  }
 0x57d   : > { %5116 = vmatprep.mubr.bf16.mxu0 %v21867_v0  ;;  %5189 = vmatprep.mubr.bf16.mxu1 %v21867_v0 }
 0x57e   : > { %6006 = vmatpush1.bf16.msra.mxu0 %v17456_v22  ;;  %6079 = vmatpush1.bf16.msra.mxu1 %v17459_v29  ;;  %v17515_v22 = vld [vmem:[#allocation5 + $0xfc4] ss:$16 sps:$4 sm:$0xff]   ;;  %v17513_v29 = vld [vmem:[#allocation5 + $0xfc0] ss:$16 sps:$4 sm:$0xff]  }
 0x57f   : > { %6007 = vmatprep.subr.bf16.mxu0 %v17464_v52  ;;  %6080 = vmatprep.subr.bf16.mxu1 %v17467_v14  ;;  %v17519_v52 = vld [vmem:[#allocation5 + $0xfa0] ss:$16 sps:$4 sm:$0xff]   ;;  %v17530_v14 = vld [vmem:[#allocation5 + $0xd64] ss:$16 sps:$4 sm:$0xff]  }
 0x582   : > { %6008 = vmatpush1.bf16.msra.mxu0 %v17462_v60  ;;  %6081 = vmatpush1.bf16.msra.mxu1 %v17465_v45  ;;  %v17533_v60 = vld [vmem:[#allocation5 + $0xf64] ss:$16 sps:$4 sm:$0xff]   ;;  %v17531_v45 = vld [vmem:[#allocation5 + $0xf60] ss:$16 sps:$4 sm:$0xff]  }
 0x583   : > { %6009 = vmatprep.subr.bf16.mxu0 %v17470_v56  ;;  %6082 = vmatprep.subr.bf16.mxu1 %v17473_v10  ;;  %v17536_v56 = vld [vmem:[#allocation5 + $0xd44] ss:$16 sps:$4 sm:$0xff]   ;;  %v17534_v10 = vld [vmem:[#allocation5 + $0xd40] ss:$16 sps:$4 sm:$0xff]  }
 0x584   : > { %15488 = vmatmul.mubr.msk.bf16.gmra.mxu0 %vm1228_vm4, %v5059_v7  ;;  %15493 = vmatmul.mubr.msk.bf16.gmra.mxu1 %vm1228_vm4, %v5059_v7  ;;  %v17528_v7 = vld [vmem:[#allocation5 + $0xd60] ss:$16 sps:$4 sm:$0xff]  }
 0x585   : > { %5126 = vmatprep.mubr.bf16.mxu0 %v21867_v0  ;;  %5199 = vmatprep.mubr.bf16.mxu1 %v21867_v0 }
 0x586   : > { %6010 = vmatpush1.bf16.msra.mxu0 %v17468_v19  ;;  %6083 = vmatpush1.bf16.msra.mxu1 %v17471_v58  ;;  %v17539_v19 = vld [vmem:[#allocation5 + $0xf44] ss:$16 sps:$4 sm:$0xff]   ;;  %v17546_v58 = vld [vmem:[#allocation5 + $0xd00] ss:$16 sps:$4 sm:$0xff]  }
 0x587   : > { %6011 = vmatprep.subr.bf16.mxu0 %v17476_v61  ;;  %6084 = vmatprep.subr.bf16.mxu1 %v17479_v59  ;;  %v17537_v61 = vld [vmem:[#allocation5 + $0xf40] ss:$16 sps:$4 sm:$0xff]   ;;  %v17554_v59 = vld [vmem:[#allocation5 + $0xcec] ss:$16 sps:$4 sm:$0xff]  }
 0x58a   : > { %6012 = vmatpush1.bf16.msra.mxu0 %v17474_v35  ;;  %6085 = vmatpush1.bf16.msra.mxu1 %v17477_v9  ;;  %v17549_v35 = vld [vmem:[#allocation5 + $0xf00] ss:$16 sps:$4 sm:$0xff]  }
 0x58b   : > { %6013 = vmatprep.subr.bf16.mxu0 %v17482_v24  ;;  %6086 = vmatprep.subr.bf16.mxu1 %v17485_v4 }
 0x58c   : > { %15489 = vmatmul.mubr.msk.bf16.gmra.mxu0 %vm1228_vm4, %v5060_v6  ;;  %15494 = vmatmul.mubr.msk.bf16.gmra.mxu1 %vm1228_vm4, %v5060_v6  ;;  %v17557_v6 = vld [vmem:[#allocation5 + $0xeec] ss:$16 sps:$4 sm:$0xff]  }
 0x58d   : > { %5136 = vmatprep.mubr.bf16.mxu0 %v21867_v0  ;;  %5209 = vmatprep.mubr.bf16.mxu1 %v21867_v0 }
 0x58e   : > { %6014 = vmatpush1.bf16.msra.mxu0 %v17480_v12  ;;  %6087 = vmatpush1.bf16.msra.mxu1 %v17483_v48 }
 0x58f   : > { %6015 = vmatprep.subr.bf16.mxu0 %v17488_v21  ;;  %6088 = vmatprep.subr.bf16.mxu1 %v17491_v33 }
 0x592   : > { %6016 = vmatpush1.bf16.msra.mxu0 %v17486_v32  ;;  %6089 = vmatpush1.bf16.msra.mxu1 %v17489_v40 }
 0x593   : > { %6017 = vmatprep.subr.bf16.mxu0 %v17494_v53  ;;  %6090 = vmatprep.subr.bf16.mxu1 %v17497_v54 }
 0x594   : > { %15490 = vmatmul.mubr.msk.bf16.gmra.mxu0 %vm1228_vm4, %v5061_v43  ;;  %15495 = vmatmul.mubr.msk.bf16.gmra.mxu1 %vm1228_vm4, %v5061_v43  ;;  %vm6436_vm4 = vcmask 1044480  }
 0x596   : > { %6018 = vmatpush1.bf16.msra.mxu0 %v17492_v57  ;;  %6091 = vmatpush1.bf16.msra.mxu1 %v17495_v42 }
 0x597   : > { %6019 = vmatprep.subr.bf16.mxu0 %v17500_v46  ;;  %6092 = vmatprep.subr.bf16.mxu1 %v17503_v38 }
 0x59a   : > { %6020 = vmatpush1.bf16.msra.mxu0 %v17498_v50  ;;  %6093 = vmatpush1.bf16.msra.mxu1 %v17501_v51 }
 0x59b   : > { %6021 = vmatprep.subr.bf16.mxu0 %v17506_v49  ;;  %6094 = vmatprep.subr.bf16.mxu1 %v17509_v39 }
 0x59e   : > { %6022 = vmatpush2.bf16.msra.mxu0 %v17504_v37  ;;  %6095 = vmatpush2.bf16.msra.mxu1 %v17507_v2 }
 0x59f   : > { %6023 = vmatprep.subr.bf16.mxu0 %v17512_v15  ;;  %6096 = vmatprep.subr.bf16.mxu1 %v17515_v22 }
 0x5a2   : > { %6024 = vmatpush2.bf16.msra.mxu0 %v17510_v30  ;;  %6097 = vmatpush2.bf16.msra.mxu1 %v17513_v29 }
 0x5a3   : > { %6025 = vmatprep.subr.bf16.mxu0 %v17518_v63  ;;  %6098 = vmatprep.subr.bf16.mxu1 %v17521_v16 }
 0x5a6   : > { %6026 = vmatpush2.bf16.msra.mxu0 %v17516_v1  ;;  %6099 = vmatpush2.bf16.msra.mxu1 %v17519_v52 }
 0x5a7   : > { %6027 = vmatprep.subr.bf16.mxu0 %v17524_v5  ;;  %6100 = vmatprep.subr.bf16.mxu1 %v17527_v34 }
 0x5aa   : > { %6028 = vmatpush2.bf16.msra.mxu0 %v17522_v62  ;;  %6101 = vmatpush2.bf16.msra.mxu1 %v17525_v47 }
 0x5ab   : > { %6029 = vmatprep.subr.bf16.mxu0 %v17530_v14  ;;  %6102 = vmatprep.subr.bf16.mxu1 %v17533_v60 }
 0x5ae   : > { %6030 = vmatpush2.bf16.msra.mxu0 %v17528_v7  ;;  %6103 = vmatpush2.bf16.msra.mxu1 %v17531_v45 }
 0x5af   : > { %6031 = vmatprep.subr.bf16.mxu0 %v17536_v56  ;;  %6104 = vmatprep.subr.bf16.mxu1 %v17539_v19 }
 0x5b2   : > { %6032 = vmatpush2.bf16.msra.mxu0 %v17534_v10  ;;  %6105 = vmatpush2.bf16.msra.mxu1 %v17537_v61  ;;  %v21883_v61 = vld [vmem:[#allocation87_spill] sm:$0xff] }
 0x5b3   : > { %6033 = vmatprep.subr.bf16.mxu0 %v17542_v27  ;;  %6106 = vmatprep.subr.bf16.mxu1 %v17545_v17 }
 0x5b6   : > { %6034 = vmatpush2.bf16.msra.mxu0 %v17540_v20  ;;  %6107 = vmatpush2.bf16.msra.mxu1 %v17543_v36  ;;  %v21884_v36 = vld [vmem:[#allocation88_spill] sm:$0xff] }
 0x5b7   : > { %6035 = vmatprep.subr.bf16.mxu0 %v17548_v25  ;;  %6108 = vmatprep.subr.bf16.mxu1 %v17551_v26 }
 0x5ba   : > { %6036 = vmatpush2.bf16.msra.mxu0 %v17546_v58  ;;  %6109 = vmatpush2.bf16.msra.mxu1 %v17549_v35  ;;  %v21885_v58 = vld [vmem:[#allocation89_spill] sm:$0xff] }
 0x5bb   : > { %6151 = vmatprep.subr.bf16.mxu0 %v17554_v59  ;;  %6224 = vmatprep.subr.bf16.mxu1 %v17557_v6 }
 0x5db   : > { %v4744_v9 = vpop.f32.mrf.mxu0  ;;  %v4817_v24 = vpop.f32.mrf.mxu1 }
 0x5dc   : > { %v4818_v12 = vadd.f32 %v4817_v24, %v4744_v9 }
 0x5dd   : > { %v4746_v4 = vpop.f32.mrf.mxu0  ;;  %v4819_v21 = vpop.f32.mrf.mxu1 }
 0x5de   : > { %v20809_v13 = vadd.f32 %v4818_v12, %v21881_v3  ;;  %v4820_v48 = vadd.f32 %v4819_v21, %v4746_v4  ;;  %v21886_v3 = vld [vmem:[#allocation92_spill] sm:$0xff] }
 0x5df   : > { %v4748_v32 = vpop.f32.mrf.mxu0  ;;  %v4821_v33 = vpop.f32.mrf.mxu1 }
 0x5e0   : > { %v20812_v43 = vadd.f32 %v4820_v48, %v20570_v44  ;;  %v4822_v40 = vadd.f32 %v4821_v33, %v4748_v32 }
 0x5e1   : > { %v20814_v53 = vpop.f32.mrf.mxu0  ;;  %v20816_v54 = vpop.f32.mrf.mxu1 }
 0x5e2   : > { %v20819_v57 = vadd.f32 %v4822_v40, %v20577_v28 }
 0x5e3   : > { %v4754_v42 = vpop.f32.mrf.mxu0  ;;  %v4827_v46 = vpop.f32.mrf.mxu1 }
 0x5e4   : > { %v4828_v38 = vadd.f32 %v4827_v46, %v4754_v42  ;;  %v21887_v42 = vld [vmem:[#allocation93_spill] sm:$0xff] }
 0x5e5   : > { %v4756_v50 = vpop.f32.mrf.mxu0  ;;  %v4829_v51 = vpop.f32.mrf.mxu1 }
 0x5e6   : > { %v20822_v49 = vadd.f32 %v4828_v38, %v20580_v11  ;;  %v4830_v39 = vadd.f32 %v4829_v51, %v4756_v50 }
 0x5e7   : > { %v4758_v37 = vpop.f32.mrf.mxu0  ;;  %v4831_v44 = vpop.f32.mrf.mxu1 }
 0x5e8   : > { %v20825_v2 = vadd.f32 %v4830_v39, %v20583_v31  ;;  %v4832_v15 = vadd.f32 %v4831_v44, %v4758_v37  ;;  %v21891_v39 = vld [vmem:[#allocation96_spill] sm:$0xff] }
 0x5e9   : > { %v20827_v22 = vpop.f32.mrf.mxu0  ;;  %v20829_v30 = vpop.f32.mrf.mxu1 }
 0x5ea   : > { %v20832_v28 = vadd.f32 %v4832_v15, %v20590_v8  ;;  %v21882_v8 = vld [vmem:[#allocation86_spill] sm:$0xff] }
 0x5eb   : > { %v4764_v29 = vpop.f32.mrf.mxu0  ;;  %v4837_v63 = vpop.f32.mrf.mxu1 }
 0x5ec   : > { %v4838_v16 = vadd.f32 %v4837_v63, %v4764_v29 }
 0x5ed   : > { %v4766_v1 = vpop.f32.mrf.mxu0  ;;  %v4839_v11 = vpop.f32.mrf.mxu1 }
 0x5ee   : > { %v20835_v52 = vadd.f32 %v4838_v16, %v20593_v23  ;;  %v4840_v5 = vadd.f32 %v4839_v11, %v4766_v1  ;;  %v21892_v1 = vld [vmem:[#allocation97_spill] sm:$0xff] }
 0x5ef   : > { %v4768_v34 = vpop.f32.mrf.mxu0  ;;  %v4841_v31 = vpop.f32.mrf.mxu1 }
 0x5f0   : > { %v20838_v62 = vadd.f32 %v4840_v5, %v20596_v55  ;;  %v4842_v47 = vadd.f32 %v4841_v31, %v4768_v34 }
 0x5f1   : > { %v20840_v14 = vpop.f32.mrf.mxu0  ;;  %v20842_v60 = vpop.f32.mrf.mxu1 }
 0x5f2   : > { %v20845_v7 = vadd.f32 %v4842_v47, %v21882_v8  ;;  %v21893_v47 = vld [vmem:[#allocation98_spill] sm:$0xff] }
 0x5f3   : > { %v4774_v45 = vpop.f32.mrf.mxu0  ;;  %v4847_v56 = vpop.f32.mrf.mxu1 }
 0x5f4   : > { %v4848_v19 = vadd.f32 %v4847_v56, %v4774_v45 }
 0x5f5   : > { %v4776_v10 = vpop.f32.mrf.mxu0  ;;  %v4849_v23 = vpop.f32.mrf.mxu1 }
 0x5f6   : > { %v20848_v27 = vadd.f32 %v4848_v19, %v21883_v61  ;;  %v4850_v17 = vadd.f32 %v4849_v23, %v4776_v10  ;;  %v21897_v10 = vld [vmem:[#allocation101_spill] sm:$0xff] }
 0x5f7   : > { %v4778_v20 = vpop.f32.mrf.mxu0  ;;  %v4851_v55 = vpop.f32.mrf.mxu1 }
 0x5f8   : > { %v20851_v25 = vadd.f32 %v4850_v17, %v21884_v36  ;;  %v4852_v26 = vadd.f32 %v4851_v55, %v4778_v20 }
 0x5f9   : > { %v20856_v59 = vpop.f32.mrf.mxu0  ;;  %v20858_v6 = vpop.f32.mrf.mxu1 }
 0x5fa   : > { %v20854_v35 = vadd.f32 %v4852_v26, %v21885_v58  ;;  %v21898_v26 = vld [vmem:[#allocation102_spill] sm:$0xff] }
 0x61b   : > { %v4890_v9 = vpop.f32.mrf.mxu0  ;;  %v4963_v24 = vpop.f32.mrf.mxu1 }
 0x61c   : > { %v4964_v12 = vadd.f32 %v4963_v24, %v4890_v9 }
 0x61d   : > { %v4892_v4 = vpop.f32.mrf.mxu0  ;;  %v4965_v21 = vpop.f32.mrf.mxu1 }
 0x61e   : > { %v20861_v48 = vadd.f32 %v4964_v12, %v21886_v3  ;;  %v4966_v32 = vadd.f32 %v4965_v21, %v4892_v4  ;;  %v21899_v4 = vld [vmem:[#allocation103_spill] sm:$0xff] }
 0x61f   : > { %v4894_v33 = vpop.f32.mrf.mxu0  ;;  %v4967_v40 = vpop.f32.mrf.mxu1 }
 0x620   : > { %v20864_v46 = vadd.f32 %v4966_v32, %v21887_v42  ;;  %v4968_v38 = vadd.f32 %v4967_v40, %v4894_v33  ;;  %v21901_v40 = vld [vmem:[#allocation106_spill] sm:$0xff] }
 0x621   : > { %v20866_v50 = vpop.f32.mrf.mxu0  ;;  %v20868_v51 = vpop.f32.mrf.mxu1 }
 0x622   : > { %21888 = vst [vmem:[#allocation61_spill] sm:$0xff] %v20864_v46  ;;  %21889 = vst [vmem:[#allocation62_spill] sm:$0xff] %v20866_v50  ;;  %v20871_v37 = vadd.f32 %v4968_v38, %v21891_v39 }
 0x623   : > { %21890 = vst [vmem:[#allocation63_spill] sm:$0xff] %v20868_v51  ;;  %v4900_v44 = vpop.f32.mrf.mxu0  ;;  %v4973_v15 = vpop.f32.mrf.mxu1 }
 0x624   : > { %v4974_v29 = vadd.f32 %v4973_v15, %v4900_v44 }
 0x625   : > { %v4902_v63 = vpop.f32.mrf.mxu0  ;;  %v4975_v16 = vpop.f32.mrf.mxu1 }
 0x626   : > { %v20874_v11 = vadd.f32 %v4974_v29, %v21892_v1  ;;  %v4976_v5 = vadd.f32 %v4975_v16, %v4902_v63  ;;  %v21902_v63 = vld [vmem:[#allocation107_spill] sm:$0xff] }
 0x627   : > { %v4904_v34 = vpop.f32.mrf.mxu0  ;;  %v4977_v31 = vpop.f32.mrf.mxu1 }
 0x628   : > { %v20877_v8 = vadd.f32 %v4976_v5, %v21893_v47  ;;  %v4978_v45 = vadd.f32 %v4977_v31, %v4904_v34  ;;  %v21904_v31 = vld [vmem:[#allocation108_spill] sm:$0xff] }
 0x629   : > { %v20879_v56 = vpop.f32.mrf.mxu0  ;;  %v20881_v19 = vpop.f32.mrf.mxu1 }
 0x62a   : > { %21894 = vst [vmem:[#allocation41_spill] sm:$0xff] %v20877_v8  ;;  %21895 = vst [vmem:[#allocation42_spill] sm:$0xff] %v20879_v56  ;;  %v20884_v23 = vadd.f32 %v4978_v45, %v21897_v10 }
 0x62b   : > { %21896 = vst [vmem:[#allocation64_spill] sm:$0xff] %v20881_v19  ;;  %v4910_v61 = vpop.f32.mrf.mxu0  ;;  %v4983_v17 = vpop.f32.mrf.mxu1 }
 0x62c   : > { %v4984_v20 = vadd.f32 %v4983_v17, %v4910_v61  ;;  %v21907_v17 = vld [vmem:[#allocation111_spill] sm:$0xff] }
 0x62d   : > { %v4912_v55 = vpop.f32.mrf.mxu0  ;;  %v4985_v36 = vpop.f32.mrf.mxu1 }
 0x62e   : > { %v20887_v58 = vadd.f32 %v4984_v20, %v21898_v26  ;;  %v4986_v9 = vadd.f32 %v4985_v36, %v4912_v55 }
 0x62f   : > { %v4914_v24 = vpop.f32.mrf.mxu0  ;;  %v4987_v12 = vpop.f32.mrf.mxu1 }
 0x630   : > { %v20890_v21 = vadd.f32 %v4986_v9, %v21899_v4  ;;  %v4988_v3 = vadd.f32 %v4987_v12, %v4914_v24 }
 0x631   : > { %v20892_v32 = vpop.f32.mrf.mxu0  ;;  %v20894_v33 = vpop.f32.mrf.mxu1 }
 0x632   : > { %21900 = vst [vmem:[#allocation65_spill] sm:$0xff] %v20890_v21  ;;  %v20897_v42 = vadd.f32 %v4988_v3, %v21901_v40 }
 0x633   : > { %v4920_v38 = vpop.f32.mrf.mxu0  ;;  %v4993_v39 = vpop.f32.mrf.mxu1 }
 0x634   : > { %v4994_v44 = vadd.f32 %v4993_v39, %v4920_v38  ;;  %v17552_v39 = vld [vmem:[#allocation5 + $0xce8] ss:$16 sps:$4 sm:$0xff]  }
 0x635   : > { %v4922_v15 = vpop.f32.mrf.mxu0  ;;  %v4995_v29 = vpop.f32.mrf.mxu1 }
 0x636   : > { %v20900_v16 = vadd.f32 %v4994_v44, %v21902_v63  ;;  %v4996_v1 = vadd.f32 %v4995_v29, %v4922_v15  ;;  %v17555_v44 = vld [vmem:[#allocation5 + $0xee8] ss:$16 sps:$4 sm:$0xff]  }
 0x637   : > { %v4924_v5 = vpop.f32.mrf.mxu0  ;;  %v4997_v34 = vpop.f32.mrf.mxu1 }
 0x638   : > { %21903 = vst [vmem:[#allocation67_spill] sm:$0xff] %v20900_v16  ;;  %v20903_v47 = vadd.f32 %v4996_v1, %v21904_v31  ;;  %v4998_v45 = vadd.f32 %v4997_v34, %v4924_v5  ;;  %v17560_v5 = vld [vmem:[#allocation5 + $0xccc] ss:$16 sps:$4 sm:$0xff]  }
 0x639   : > { %v20905_v10 = vpop.f32.mrf.mxu0  ;;  %v20907_v61 = vpop.f32.mrf.mxu1  ;;  %v17563_v34 = vld [vmem:[#allocation5 + $0xecc] ss:$16 sps:$4 sm:$0xff]  }
 0x63a   : > { %21905 = vst [vmem:[#allocation68_spill] sm:$0xff] %v20903_v47  ;;  %21906 = vst [vmem:[#allocation39_spill] sm:$0xff] %v20907_v61  ;;  %v20910_v20 = vadd.f32 %v4998_v45, %v21907_v17  ;;  %v17558_v17 = vld [vmem:[#allocation5 + $0xcc8] ss:$16 sps:$4 sm:$0xff]   ;;  %v21925_v61 = vld [vmem:[#allocation83_spill] sm:$0xff] }
 0x63c   : > { %21908 = vst [vmem:[#allocation40_spill] sm:$0xff] %v20910_v20  ;;  %v5108_v55 = vpop.f32.mrf.mxu0  ;;  %v5181_v36 = vpop.f32.mrf.mxu1 }
 0x63e   : > { %v5110_v26 = vpop.f32.mrf.mxu0  ;;  %v5183_v9 = vpop.f32.mrf.mxu1 }
 0x640   : > { %v5112_v24 = vpop.f32.mrf.mxu0  ;;  %v5185_v12 = vpop.f32.mrf.mxu1 }
 0x641   : > { %v20916_v15 = vpack.c.bf16 %v5112_v24, %v5108_v55  ;;  %v20918_v29 = vpack.c.bf16 %v5185_v12, %v5181_v36  ;;  %v17561_v55 = vld [vmem:[#allocation5 + $0xec8] ss:$16 sps:$4 sm:$0xff]   ;;  %v17569_v24 = vld [vmem:[#allocation5 + $0xeac] ss:$16 sps:$4 sm:$0xff]  }
 0x642   : > { %v5114_v4 = vpop.f32.mrf.mxu0  ;;  %v5187_v3 = vpop.f32.mrf.mxu1 }
 0x643   : > { %v20912_v40 = vpack.c.bf16 %v5114_v4, %v5110_v26  ;;  %v20914_v38 = vpack.c.bf16 %v5187_v3, %v5183_v9  ;;  %v17566_v9 = vld [vmem:[#allocation5 + $0xcac] ss:$16 sps:$4 sm:$0xff]  }
 0x644   : > { %v5118_v63 = vpop.f32.mrf.mxu0  ;;  %v5191_v1 = vpop.f32.mrf.mxu1 }
 0x645   : > { %6037 = vmatprep.mubr.bf16.mxu0 %v20912_v40  ;;  %6110 = vmatprep.mubr.bf16.mxu1 %v20914_v38 }
 0x646   : > { %v5120_v31 = vpop.f32.mrf.mxu0  ;;  %v5193_v45 = vpop.f32.mrf.mxu1  ;;  %6038 = vmatmul.mubr.bf16.vlgmr.msra.gmra.mxu0 %v20916_v15  ;;  %6111 = vmatmul.mubr.bf16.vlgmr.msra.gmra.mxu1 %v20918_v29 }
 0x647   : > { %6152 = vmatpush1.bf16.msra.mxu0 %v17552_v39  ;;  %6225 = vmatpush1.bf16.msra.mxu1 %v17555_v44  ;;  %v17564_v39 = vld [vmem:[#allocation5 + $0xca8] ss:$16 sps:$4 sm:$0xff]  }
 0x648   : > { %v5122_v36 = vpop.f32.mrf.mxu0  ;;  %v5195_v26 = vpop.f32.mrf.mxu1  ;;  %6153 = vmatprep.subr.bf16.mxu0 %v17560_v5  ;;  %6226 = vmatprep.subr.bf16.mxu1 %v17563_v34  ;;  %v17567_v44 = vld [vmem:[#allocation5 + $0xea8] ss:$16 sps:$4 sm:$0xff]   ;;  %v17572_v5 = vld [vmem:[#allocation5 + $0xc8c] ss:$16 sps:$4 sm:$0xff]  }
 0x649   : > { %v20924_v12 = vpack.c.bf16 %v5122_v36, %v5118_v63  ;;  %v20926_v4 = vpack.c.bf16 %v5195_v26, %v5191_v1  ;;  %v17575_v34 = vld [vmem:[#allocation5 + $0xe8c] ss:$16 sps:$4 sm:$0xff]  }
 0x64a   : > { %v5124_v3 = vpop.f32.mrf.mxu0  ;;  %v5197_v18 = vpop.f32.mrf.mxu1  ;;  %v17581_v36 = vld [vmem:[#allocation5 + $0xe6c] ss:$16 sps:$4 sm:$0xff]  }
 0x64b   : > { %v20928_v41 = vpack.c.bf16 %v5124_v3, %v5120_v31  ;;  %v20930_v46 = vpack.c.bf16 %v5197_v18, %v5193_v45  ;;  %6154 = vmatpush1.bf16.msra.mxu0 %v17558_v17  ;;  %6227 = vmatpush1.bf16.msra.mxu1 %v17561_v55  ;;  %v17570_v18 = vld [vmem:[#allocation5 + $0xc88] ss:$16 sps:$4 sm:$0xff]   ;;  %v17578_v55 = vld [vmem:[#allocation5 + $0xc6c] ss:$16 sps:$4 sm:$0xff]  }
 0x64c   : > { %v5128_v8 = vpop.f32.mrf.mxu0  ;;  %v5201_v21 = vpop.f32.mrf.mxu1  ;;  %6155 = vmatprep.subr.bf16.mxu0 %v17566_v9  ;;  %6228 = vmatprep.subr.bf16.mxu1 %v17569_v24  ;;  %v17573_v31 = vld [vmem:[#allocation5 + $0xe88] ss:$16 sps:$4 sm:$0xff]  }
 0x64d   : > { %6047 = vmatprep.mubr.bf16.mxu0 %v20928_v41  ;;  %6120 = vmatprep.mubr.bf16.mxu1 %v20930_v46 }
 0x64e   : > { %v5130_v63 = vpop.f32.mrf.mxu0  ;;  %v5203_v1 = vpop.f32.mrf.mxu1  ;;  %6048 = vmatmul.mubr.bf16.gmra.mxu0 %v20924_v12  ;;  %6121 = vmatmul.mubr.bf16.gmra.mxu1 %v20926_v4 }
 0x64f   : > { %6156 = vmatpush1.bf16.msra.mxu0 %v17564_v39  ;;  %6229 = vmatpush1.bf16.msra.mxu1 %v17567_v44  ;;  %v17576_v39 = vld [vmem:[#allocation5 + $0xc68] ss:$16 sps:$4 sm:$0xff]  }
 0x650   : > { %v5132_v45 = vpop.f32.mrf.mxu0  ;;  %v5205_v17 = vpop.f32.mrf.mxu1  ;;  %6157 = vmatprep.subr.bf16.mxu0 %v17572_v5  ;;  %6230 = vmatprep.subr.bf16.mxu1 %v17575_v34  ;;  %v17579_v44 = vld [vmem:[#allocation5 + $0xe68] ss:$16 sps:$4 sm:$0xff]   ;;  %v17584_v5 = vld [vmem:[#allocation5 + $0xc4c] ss:$16 sps:$4 sm:$0xff]  }
 0x651   : > { %v20936_v26 = vpack.c.bf16 %v5132_v45, %v5128_v8  ;;  %v20938_v9 = vpack.c.bf16 %v5205_v17, %v5201_v21  ;;  %v17587_v34 = vld [vmem:[#allocation5 + $0xe4c] ss:$16 sps:$4 sm:$0xff]  }
 0x652   : > { %v5134_v24 = vpop.f32.mrf.mxu0  ;;  %v5207_v3 = vpop.f32.mrf.mxu1  ;;  %v17590_v45 = vld [vmem:[#allocation5 + $0xc2c] ss:$16 sps:$4 sm:$0xff]  }
 0x653   : > { %v20940_v51 = vpack.c.bf16 %v5134_v24, %v5130_v63  ;;  %v20942_v50 = vpack.c.bf16 %v5207_v3, %v5203_v1  ;;  %6158 = vmatpush1.bf16.msra.mxu0 %v17570_v18  ;;  %6231 = vmatpush1.bf16.msra.mxu1 %v17573_v31  ;;  %v17582_v63 = vld [vmem:[#allocation5 + $0xc48] ss:$16 sps:$4 sm:$0xff]   ;;  %v17593_v17 = vld [vmem:[#allocation5 + $0xe2c] ss:$16 sps:$4 sm:$0xff]  }
 0x654   : > { %v5138_v20 = vpop.f32.mrf.mxu0  ;;  %v5211_v47 = vpop.f32.mrf.mxu1  ;;  %6159 = vmatprep.subr.bf16.mxu0 %v17578_v55  ;;  %6232 = vmatprep.subr.bf16.mxu1 %v17581_v36  ;;  %v17585_v1 = vld [vmem:[#allocation5 + $0xe48] ss:$16 sps:$4 sm:$0xff]  }
 0x655   : > { %6057 = vmatprep.mubr.bf16.mxu0 %v20940_v51  ;;  %6130 = vmatprep.mubr.bf16.mxu1 %v20942_v50 }
 0x656   : > { %v5140_v8 = vpop.f32.mrf.mxu0  ;;  %v5213_v21 = vpop.f32.mrf.mxu1  ;;  %6058 = vmatmul.mubr.bf16.gmra.mxu0 %v20936_v26  ;;  %6131 = vmatmul.mubr.bf16.gmra.mxu1 %v20938_v9 }
 0x657   : > { %6160 = vmatpush1.bf16.msra.mxu0 %v17576_v39  ;;  %6233 = vmatpush1.bf16.msra.mxu1 %v17579_v44  ;;  %v17588_v39 = vld [vmem:[#allocation5 + $0xc28] ss:$16 sps:$4 sm:$0xff]  }
 0x658   : > { %v5142_v18 = vpop.f32.mrf.mxu0  ;;  %v5215_v31 = vpop.f32.mrf.mxu1  ;;  %6161 = vmatprep.subr.bf16.mxu0 %v17584_v5  ;;  %6234 = vmatprep.subr.bf16.mxu1 %v17587_v34  ;;  %v17591_v44 = vld [vmem:[#allocation5 + $0xe28] ss:$16 sps:$4 sm:$0xff]   ;;  %v17599_v5 = vld [vmem:[#allocation5 + $0xe0c] ss:$16 sps:$4 sm:$0xff]  }
 0x659   : > { %v20948_v55 = vpack.c.bf16 %v5142_v18, %v5138_v20  ;;  %v20950_v36 = vpack.c.bf16 %v5215_v31, %v5211_v47  ;;  %v17596_v20 = vld [vmem:[#allocation5 + $0xc0c] ss:$16 sps:$4 sm:$0xff]   ;;  %v17594_v47 = vld [vmem:[#allocation5 + $0xc08] ss:$16 sps:$4 sm:$0xff]  }
 0x65a   : > { %v5144_v24 = vpop.f32.mrf.mxu0  ;;  %v5217_v3 = vpop.f32.mrf.mxu1  ;;  %v17597_v34 = vld [vmem:[#allocation5 + $0xe08] ss:$16 sps:$4 sm:$0xff]   ;;  %v17608_v18 = vld [vmem:[#allocation5 + $0xdcc] ss:$16 sps:$4 sm:$0xff]  }
 0x65b   : > { %v20952_v19 = vpack.c.bf16 %v5144_v24, %v5140_v8  ;;  %v20954_v56 = vpack.c.bf16 %v5217_v3, %v5213_v21  ;;  %6162 = vmatpush1.bf16.msra.mxu0 %v17582_v63  ;;  %6235 = vmatpush1.bf16.msra.mxu1 %v17585_v1  ;;  %v17602_v8 = vld [vmem:[#allocation5 + $0xdec] ss:$16 sps:$4 sm:$0xff]   ;;  %v17600_v63 = vld [vmem:[#allocation5 + $0xde8] ss:$16 sps:$4 sm:$0xff]  }
 0x65c   : > { %6163 = vmatprep.subr.bf16.mxu0 %v17590_v45  ;;  %6236 = vmatprep.subr.bf16.mxu1 %v17593_v17  ;;  %v17605_v21 = vld [vmem:[#allocation5 + $0xfec] ss:$16 sps:$4 sm:$0xff]   ;;  %v17603_v1 = vld [vmem:[#allocation5 + $0xfe8] ss:$16 sps:$4 sm:$0xff]  }
 0x65d   : > { %6067 = vmatprep.mubr.bf16.mxu0 %v20952_v19  ;;  %6140 = vmatprep.mubr.bf16.mxu1 %v20954_v56  ;;  %v17611_v31 = vld [vmem:[#allocation5 + $0xfcc] ss:$16 sps:$4 sm:$0xff]   ;;  %v17606_v45 = vld [vmem:[#allocation5 + $0xdc8] ss:$16 sps:$4 sm:$0xff]  }
 0x65e   : > { %6068 = vmatmul.mubr.bf16.gmra.mxu0 %v20948_v55  ;;  %6141 = vmatmul.mubr.bf16.gmra.mxu1 %v20950_v36  ;;  %v17609_v17 = vld [vmem:[#allocation5 + $0xfc8] ss:$16 sps:$4 sm:$0xff]  }
 0x65f   : > { %6164 = vmatpush1.bf16.msra.mxu0 %v17588_v39  ;;  %6237 = vmatpush1.bf16.msra.mxu1 %v17591_v44  ;;  %v17612_v24 = vld [vmem:[#allocation5 + $0xda8] ss:$16 sps:$4 sm:$0xff]   ;;  %v17620_v39 = vld [vmem:[#allocation5 + $0xd8c] ss:$16 sps:$4 sm:$0xff]  }
 0x660   : > { %6183 = vmatprep.mubr.bf16.mxu0 %v20912_v40  ;;  %6256 = vmatprep.mubr.bf16.mxu1 %v20914_v38  ;;  %v17614_v40 = vld [vmem:[#allocation5 + $0xdac] ss:$16 sps:$4 sm:$0xff]   ;;  %v17615_v3 = vld [vmem:[#allocation5 + $0xfa8] ss:$16 sps:$4 sm:$0xff]  }
 0x661   : > { %6165 = vmatprep.subr.bf16.mxu0 %v17596_v20  ;;  %6238 = vmatprep.subr.bf16.mxu1 %v17599_v5  ;;  %v17617_v38 = vld [vmem:[#allocation5 + $0xfac] ss:$16 sps:$4 sm:$0xff]   ;;  %v17618_v20 = vld [vmem:[#allocation5 + $0xd88] ss:$16 sps:$4 sm:$0xff]  }
 0x662   : > { %v17623_v44 = vld [vmem:[#allocation5 + $0xf8c] ss:$16 sps:$4 sm:$0xff]   ;;  %v17621_v5 = vld [vmem:[#allocation5 + $0xf88] ss:$16 sps:$4 sm:$0xff]  }
 0x663   : > { %6166 = vmatpush1.bf16.msra.mxu0 %v17594_v47  ;;  %6239 = vmatpush1.bf16.msra.mxu1 %v17597_v34  ;;  %v17626_v47 = vld [vmem:[#allocation5 + $0xd6c] ss:$16 sps:$4 sm:$0xff]  }
 0x664   : > { %6167 = vmatprep.subr.bf16.mxu0 %v17602_v8  ;;  %6240 = vmatprep.subr.bf16.mxu1 %v17605_v21  ;;  %v17629_v34 = vld [vmem:[#allocation5 + $0xf6c] ss:$16 sps:$4 sm:$0xff]   ;;  %v17624_v8 = vld [vmem:[#allocation5 + $0xd68] ss:$16 sps:$4 sm:$0xff]  }
 0x665   : > { %v17627_v21 = vld [vmem:[#allocation5 + $0xf68] ss:$16 sps:$4 sm:$0xff]  }
 0x667   : > { %6168 = vmatpush2.bf16.msra.mxu0 %v17600_v63  ;;  %6241 = vmatpush2.bf16.msra.mxu1 %v17603_v1  ;;  %v17632_v63 = vld [vmem:[#allocation5 + $0xd4c] ss:$16 sps:$4 sm:$0xff]  }
 0x668   : > { %6169 = vmatprep.subr.bf16.mxu0 %v17608_v18  ;;  %6242 = vmatprep.subr.bf16.mxu1 %v17611_v31  ;;  %v17635_v1 = vld [vmem:[#allocation5 + $0xf4c] ss:$16 sps:$4 sm:$0xff]   ;;  %v17630_v18 = vld [vmem:[#allocation5 + $0xd48] ss:$16 sps:$4 sm:$0xff]  }
 0x669   : > { %v17633_v31 = vld [vmem:[#allocation5 + $0xf48] ss:$16 sps:$4 sm:$0xff]  }
 0x66b   : > { %6170 = vmatpush2.bf16.msra.mxu0 %v17606_v45  ;;  %6243 = vmatpush2.bf16.msra.mxu1 %v17609_v17  ;;  %v17638_v45 = vld [vmem:[#allocation5 + $0xd2c] ss:$16 sps:$4 sm:$0xff]  }
 0x66c   : > { %6171 = vmatprep.subr.bf16.mxu0 %v17614_v40  ;;  %6244 = vmatprep.subr.bf16.mxu1 %v17617_v38  ;;  %v17641_v17 = vld [vmem:[#allocation5 + $0xf2c] ss:$16 sps:$4 sm:$0xff]   ;;  %v17636_v40 = vld [vmem:[#allocation5 + $0xd28] ss:$16 sps:$4 sm:$0xff]  }
 0x66d   : > { %v17639_v38 = vld [vmem:[#allocation5 + $0xf28] ss:$16 sps:$4 sm:$0xff]  }
 0x66f   : > { %6172 = vmatpush2.bf16.msra.mxu0 %v17612_v24  ;;  %6245 = vmatpush2.bf16.msra.mxu1 %v17615_v3  ;;  %v17644_v24 = vld [vmem:[#allocation5 + $0xd0c] ss:$16 sps:$4 sm:$0xff]  }
 0x670   : > { %6173 = vmatprep.subr.bf16.mxu0 %v17620_v39  ;;  %6246 = vmatprep.subr.bf16.mxu1 %v17623_v44  ;;  %v17647_v3 = vld [vmem:[#allocation5 + $0xf0c] ss:$16 sps:$4 sm:$0xff]   ;;  %v17642_v39 = vld [vmem:[#allocation5 + $0xd08] ss:$16 sps:$4 sm:$0xff]  }
 0x671   : > { %v17645_v44 = vld [vmem:[#allocation5 + $0xf08] ss:$16 sps:$4 sm:$0xff]  }
 0x673   : > { %6174 = vmatpush2.bf16.msra.mxu0 %v17618_v20  ;;  %6247 = vmatpush2.bf16.msra.mxu1 %v17621_v5 }
 0x674   : > { %6175 = vmatprep.subr.bf16.mxu0 %v17626_v47  ;;  %6248 = vmatprep.subr.bf16.mxu1 %v17629_v34 }
 0x677   : > { %6176 = vmatpush2.bf16.msra.mxu0 %v17624_v8  ;;  %6249 = vmatpush2.bf16.msra.mxu1 %v17627_v21 }
 0x678   : > { %6177 = vmatprep.subr.bf16.mxu0 %v17632_v63  ;;  %6250 = vmatprep.subr.bf16.mxu1 %v17635_v1 }
 0x67b   : > { %6178 = vmatpush2.bf16.msra.mxu0 %v17630_v18  ;;  %6251 = vmatpush2.bf16.msra.mxu1 %v17633_v31 }
 0x67c   : > { %6179 = vmatprep.subr.bf16.mxu0 %v17638_v45  ;;  %6252 = vmatprep.subr.bf16.mxu1 %v17641_v17 }
 0x67f   : > { %6180 = vmatpush2.bf16.msra.mxu0 %v17636_v40  ;;  %6253 = vmatpush2.bf16.msra.mxu1 %v17639_v38 }
 0x680   : > { %6181 = vmatprep.subr.bf16.mxu0 %v17644_v24  ;;  %6254 = vmatprep.subr.bf16.mxu1 %v17647_v3 }
 0x683   : > { %6182 = vmatpush2.bf16.msra.mxu0 %v17642_v39  ;;  %6255 = vmatpush2.bf16.msra.mxu1 %v17645_v44 }
 0x686   : > { %6184 = vmatmul.mubr.bf16.vlgmr.msra.gmra.mxu0 %v20916_v15  ;;  %6257 = vmatmul.mubr.bf16.vlgmr.msra.gmra.mxu1 %v20918_v29  ;;  %v20981_v15 = vld [vmem:[#allocation7] sm:$0xf] }
 0x687   : > { %6193 = vmatprep.mubr.bf16.mxu0 %v20928_v41  ;;  %6266 = vmatprep.mubr.bf16.mxu1 %v20930_v46  ;;  %v21909_v41 = vld [vmem:[#allocation49_spill] sm:$0xff] }
 0x688   : > { %v20979_v46 = vsub.s32 0, %v21909_v41 }
 0x68a   : > { %21910 = vst [vmem:[#allocation70_spill] sm:$0xff] %v20979_v46 }
 0x68e   : > { %6194 = vmatmul.mubr.bf16.gmra.mxu0 %v20924_v12  ;;  %6267 = vmatmul.mubr.bf16.gmra.mxu1 %v20926_v4  ;;  %v20990_v4 = vrot.slane %v20981_v15, %v20979_v46 }
 0x68f   : > { %6203 = vmatprep.mubr.bf16.mxu0 %v20940_v51  ;;  %6276 = vmatprep.mubr.bf16.mxu1 %v20942_v50 }
 0x696   : > { %6204 = vmatmul.mubr.bf16.gmra.mxu0 %v20936_v26  ;;  %6277 = vmatmul.mubr.bf16.gmra.mxu1 %v20938_v9 }
 0x697   : > { %6213 = vmatprep.mubr.bf16.mxu0 %v20952_v19  ;;  %6286 = vmatprep.mubr.bf16.mxu1 %v20954_v56 }
 0x69e   : > { %6214 = vmatmul.mubr.bf16.gmra.mxu0 %v20948_v55  ;;  %6287 = vmatmul.mubr.bf16.gmra.mxu1 %v20950_v36 }
 0x69f   : > { %6484 = vmatprep.mubr.bf16.mxu0 %v21867_v0  ;;  %6537 = vmatprep.mubr.bf16.mxu1 %v21867_v0 }
 0x706   : > { %v6039_v50 = vpop.f32.mrf.mxu0  ;;  %v6112_v51 = vpop.f32.mrf.mxu1 }
 0x707   : > { %v6113_v29 = vadd.f32 %v6112_v51, %v6039_v50 }
 0x708   : > { %v20983_v12 = vpop.f32.mrf.mxu0  ;;  %v20985_v19 = vpop.f32.mrf.mxu1 }
 0x709   : > { %v6297_v56 = vadd.f32 %v6113_v29, %v20809_v13 }
 0x70a   : > { %v6043_v26 = vpop.f32.mrf.mxu0  ;;  %v6116_v9 = vpop.f32.mrf.mxu1 }
 0x70b   : > { %v6117_v55 = vadd.f32 %v6116_v9, %v6043_v26  ;;  %v6351_v5 = vadd.f32 %v20990_v4, %v6297_v56 }
 0x70c   : > { %v20992_v36 = vpop.f32.mrf.mxu0  ;;  %v20994_v20 = vpop.f32.mrf.mxu1 }
 0x70d   : > { %v6301_v47 = vadd.f32 %v6117_v55, %v20819_v57  ;;  %v6383_v18 = vmax.f32 %v6351_v5, 0.0 }
 0x70e   : > { %v6049_v34 = vpop.f32.mrf.mxu0  ;;  %v6122_v8 = vpop.f32.mrf.mxu1 }
 0x70f   : > { %v6355_v21 = vadd.f32 %v20990_v4, %v6301_v47  ;;  %v6123_v13 = vadd.f32 %v6122_v8, %v6049_v34  ;;  %v21911_v47 = vld [vmem:[#allocation45_spill] sm:$0xff]  ;;  %v21912_v34 = vld [vmem:[#allocation46_spill] sm:$0xff] }
 0x710   : > { %v20999_v63 = vpop.f32.mrf.mxu0  ;;  %v21001_v1 = vpop.f32.mrf.mxu1  ;;  %v2649_v8 = vadd.f32 %v21912_v34, %v21911_v47  ;;  %v21919_v47 = vld [vmem:[#allocation78_spill] sm:$0xff]  ;;  %v21920_v34 = vld [vmem:[#allocation79_spill] sm:$0xff] }
 0x711   : > { %v6387_v31 = vmax.f32 %v6355_v21, 0.0  ;;  %v6305_v45 = vadd.f32 %v6123_v13, %v20822_v49  ;;  %v21913_v21 = vld [vmem:[#allocation50_spill] sm:$0xff]  ;;  %v21914_v13 = vld [vmem:[#allocation51_spill] sm:$0xff]  ;;  %v2629_v16 = vadd.f32 %v21920_v34, %v21919_v47 }
 0x712   : > { %v6053_v17 = vpop.f32.mrf.mxu0  ;;  %v6126_v40 = vpop.f32.mrf.mxu1  ;;  %v21924_v47 = vld [vmem:[#allocation91_spill] sm:$0xff] }
 0x713   : > { %v21004_v38 = vpack.c.bf16 %v6387_v31, %v6383_v18  ;;  %v6127_v24 = vadd.f32 %v6126_v40, %v6053_v17  ;;  %v6359_v39 = vadd.f32 %v20990_v4, %v6305_v45  ;;  %v2659_v18 = vadd.f32 %v21914_v13, %v21913_v21  ;;  %v21915_v40 = vld [vmem:[#allocation43_spill] sm:$0xff]  ;;  %v21921_v13 = vld [vmem:[#allocation82_spill] sm:$0xff] }
 0x714   : > { %v6055_v3 = vpop.f32.mrf.mxu0  ;;  %v6128_v57 = vpop.f32.mrf.mxu1 }
 0x715   : > { %v6309_v44 = vadd.f32 %v6127_v24, %v20832_v28  ;;  %v6391_v55 = vmax.f32 %v6359_v39, 0.0  ;;  %v21916_v24 = vld [vmem:[#allocation44_spill] sm:$0xff]  ;;  %v21918_v39 = vld [vmem:[#allocation90_spill] sm:$0xff] }
 0x716   : > { %v6059_v50 = vpop.f32.mrf.mxu0  ;;  %v6132_v51 = vpop.f32.mrf.mxu1 }
 0x717   : > { %v6363_v29 = vadd.f32 %v20990_v4, %v6309_v44  ;;  %v6133_v56 = vadd.f32 %v6132_v51, %v6059_v50  ;;  %v2639_v44 = vadd.f32 %v21916_v24, %v21915_v40  ;;  %v21917_v50 = vld [vmem:[#allocation84_spill] sm:$0xff] }
 0x718   : > { %v6061_v26 = vpop.f32.mrf.mxu0  ;;  %v6134_v9 = vpop.f32.mrf.mxu1  ;;  %v3508_v51 = vadd.f32 %v21917_v50, %v2649_v8  ;;  %v21923_v50 = vld [vmem:[#allocation85_spill] sm:$0xff] }
 0x719   : > { %v6395_v49 = vmax.f32 %v6363_v29, 0.0  ;;  %v6313_v5 = vadd.f32 %v6133_v56, %v20835_v52  ;;  %v3518_v29 = vadd.f32 %v21918_v39, %v2659_v18  ;;  %v21922_v18 = vld [vmem:[#allocation80_spill] sm:$0xff] }
 0x71a   : > { %v6063_v31 = vpop.f32.mrf.mxu0  ;;  %v6136_v45 = vpop.f32.mrf.mxu1  ;;  %v3488_v40 = vadd.f32 %v21922_v18, %v2629_v16  ;;  %v3581_v39 = vadd.f32 %v21923_v50, %v3508_v51  ;;  %v6135_v18 = vadd.f32 %v6134_v9, %v6061_v26  ;;  %v4824_v9 = vadd.f32 %v20816_v54, %v20814_v53 }
 0x71b   : > { %v21014_v28 = vpack.c.bf16 %v6395_v49, %v6391_v55  ;;  %v6137_v17 = vadd.f32 %v6136_v45, %v6063_v31  ;;  %v6367_v52 = vadd.f32 %v20990_v4, %v6313_v5  ;;  %v3498_v55 = vadd.f32 %v21921_v13, %v2639_v44 }
 0x71c   : > { %v6065_v56 = vpop.f32.mrf.mxu0  ;;  %v6138_v46 = vpop.f32.mrf.mxu1  ;;  %v4844_v49 = vadd.f32 %v20842_v60, %v20840_v14  ;;  %v4854_v31 = vadd.f32 %v20858_v6, %v20856_v59  ;;  %v3591_v34 = vadd.f32 %v21924_v47, %v3518_v29 }
 0x71d   : > { %v6317_v21 = vadd.f32 %v6137_v17, %v20845_v7  ;;  %v21034_v7 = vsub.s32 1, %v21909_v41  ;;  %v6399_v17 = vmax.f32 %v6367_v52, 0.0  ;;  %v6139_v13 = vadd.f32 %v6138_v46, %v6065_v56 }
 0x71e   : > { %v6069_v8 = vpop.f32.mrf.mxu0  ;;  %v6142_v45 = vpop.f32.mrf.mxu1  ;;  %v3571_v16 = vadd.f32 %v21925_v61, %v3498_v55  ;;  %v5031_v51 = vadd.f32 %v4854_v31, %v3591_v34  ;;  %v6125_v31 = vadd.f32 %v21001_v1, %v20999_v63  ;;  %v6119_v34 = vadd.f32 %v20994_v20, %v20992_v36 }
 0x71f   : > { %v6371_v5 = vadd.f32 %v20990_v4, %v6317_v21  ;;  %v6143_v24 = vadd.f32 %v6142_v45, %v6069_v8  ;;  %v4834_v21 = vadd.f32 %v20829_v30, %v20827_v22  ;;  %v5023_v8 = vadd.f32 %v4844_v49, %v3581_v39  ;;  %v21926_v49 = vld [vmem:[#allocation81_spill] sm:$0xff] }
 0x720   : > { %v6071_v44 = vpop.f32.mrf.mxu0  ;;  %v6144_v14 = vpop.f32.mrf.mxu1  ;;  %v6338_v46 = vrot.slane %v20981_v15, %v21034_v7  ;;  %v3561_v26 = vadd.f32 %v21926_v49, %v3488_v40 }
 0x721   : > { %v6403_v60 = vmax.f32 %v6371_v5, 0.0  ;;  %v6321_v59 = vadd.f32 %v6143_v24, %v20848_v27  ;;  %v6145_v6 = vadd.f32 %v6144_v14, %v6071_v44  ;;  %v6129_v27 = vadd.f32 %v6128_v57, %v6055_v3 }
 0x722   : > { %v6073_v45 = vpop.f32.mrf.mxu0  ;;  %v6146_v29 = vpop.f32.mrf.mxu1  ;;  %v6318_v61 = vadd.f32 %v6139_v13, %v5023_v8  ;;  %v6314_v3 = vadd.f32 %v6135_v18, %v20838_v62  ;;  %v5007_v63 = vadd.f32 %v4824_v9, %v3561_v26  ;;  %v6115_v62 = vadd.f32 %v20985_v19, %v20983_v12 }
 0x723   : > { %v21040_v50 = vpack.c.bf16 %v6403_v60, %v6399_v17  ;;  %v6322_v52 = vadd.f32 %v6145_v6, %v20851_v25  ;;  %v6147_v47 = vadd.f32 %v6146_v29, %v6073_v45  ;;  %v6375_v22 = vadd.f32 %v20990_v4, %v6321_v59 }
 0x724   : > { %v6075_v56 = vpop.f32.mrf.mxu0  ;;  %v6148_v5 = vpop.f32.mrf.mxu1  ;;  %v5015_v25 = vadd.f32 %v4834_v21, %v3571_v16  ;;  %v21695_v17 = vmov 65535   ;;  %v6372_v53 = vadd.f32 %v6338_v46, %v6318_v61  ;;  %v6368_v1 = vadd.f32 %v6338_v46, %v6314_v3 }
 0x725   : > { %v6325_v30 = vadd.f32 %v6147_v47, %v20854_v35  ;;  %v6149_v55 = vadd.f32 %v6148_v5, %v6075_v56  ;;  %v6376_v57 = vadd.f32 %v6338_v46, %v6322_v52  ;;  %v6438_v40 = vsel %vm6436_vm4, 4294967295, %v21695_v17  ;;  %v17663_v17 = vld [vmem:[#allocation8 + $0x220] ss:$8 sps:$4 sm:$0xff]  }
 0x726   : > { %v6310_v35 = vadd.f32 %v6129_v27, %v5015_v25  ;;  %v6407_v54 = vmax.f32 %v6375_v22, 0.0  ;;  %v21062_v20 = vsel %vm6437_vm7, %v6438_v40, 0  ;;  %v6302_v59 = vadd.f32 %v6119_v34, %v5007_v63 }
 0x727   : > { %v6379_v24 = vadd.f32 %v20990_v4, %v6325_v30  ;;  %v6326_v39 = vadd.f32 %v6149_v55, %v5031_v51  ;;  %v6306_v4 = vadd.f32 %v6125_v31, %v20825_v2  ;;  %v6408_v60 = vmax.f32 %v6376_v57, 0.0  ;;  %v21928_v31 = vld [vmem:[#allocation72_spill] sm:$0xff] }
 0x728   : > { %v6364_v6 = vadd.f32 %v6338_v46, %v6310_v35  ;;  %v6404_v21 = vmax.f32 %v6372_v53, 0.0  ;;  %v6298_v8 = vadd.f32 %v6115_v62, %v20812_v43  ;;  %v6400_v45 = vmax.f32 %v6368_v1, 0.0  ;;  %v17653_v62 = vld [vmem:[#allocation8 + $0x264] ss:$8 sps:$4 sm:$0xff]  }
 0x729   : > { %v6411_v44 = vmax.f32 %v6379_v24, 0.0  ;;  %v6380_v14 = vadd.f32 %v6338_v46, %v6326_v39  ;;  %v6360_v51 = vadd.f32 %v6338_v46, %v6306_v4  ;;  %v6356_v12 = vadd.f32 %v6338_v46, %v6302_v59  ;;  %v17650_v39 = vld [vmem:[#allocation8 + $0x274] ss:$8 sps:$4 sm:$0xff]   ;;  %v21929_v59 = vld [vmem:[#allocation76_spill] sm:$0xff] }
 0x72a   : > { %v21072_v19 = vpack.c.bf16 %v6404_v21, %v6400_v45  ;;  %v6396_v18 = vmax.f32 %v6364_v6, 0.0  ;;  %v6352_v52 = vadd.f32 %v6338_v46, %v6298_v8  ;;  %v21927_v46 = vld [vmem:[#allocation69_spill] sm:$0xff]  ;;  %v21092_v61 = vsub.s32 2, %v21909_v41 }
 0x72b   : > { %v6427_v13 = vpack.c.bf16 %v6411_v44, %v6407_v54  ;;  %v6412_v36 = vmax.f32 %v6380_v14, 0.0  ;;  %v6392_v47 = vmax.f32 %v6360_v51, 0.0  ;;  %v6388_v27 = vmax.f32 %v6356_v12, 0.0  ;;  %v17648_v44 = vld [vmem:[#allocation8 + $0x270] ss:$8 sps:$4 sm:$0xff]  }
 0x72c   : > { %v6384_v56 = vmax.f32 %v6352_v52, 0.0  ;;  %v21103_v25 = vrot.slane %v20981_v15, %v21092_v61  ;;  %v17656_v51 = vld [vmem:[#allocation8 + $0x254] ss:$8 sps:$4 sm:$0xff]  }
 0x72d   : > { %v6428_v16 = vpack.c.bf16 %v6412_v36, %v6408_v60  ;;  %v21069_v2 = vand.u32 %v21062_v20, %v6427_v13  ;;  %v21076_v43 = vpack.c.bf16 %v6396_v18, %v6392_v47 }
 0x72e   : > { %v21080_v5 = vpack.c.bf16 %v6388_v27, %v6384_v56  ;;  %v17654_v27 = vld [vmem:[#allocation8 + $0x250] ss:$8 sps:$4 sm:$0xff]  }
 0x72f   : > { %v21066_v29 = vand.u32 %v21062_v20, %v6428_v16  ;;  %v17651_v16 = vld [vmem:[#allocation8 + $0x260] ss:$8 sps:$4 sm:$0xff]  }
 0x731   : > { %6460 = vmatprep.subr.bf16.mxu0 %v21066_v29 }
 0x732   : > { %6461 = vmatpush1.bf16.msra.mxu0 %v21069_v2 }
 0x733   : > { %6462 = vmatprep.subr.bf16.mxu0 %v21072_v19 }
 0x736   : > { %6463 = vmatpush1.bf16.msra.mxu0 %v21040_v50 }
 0x737   : > { %6464 = vmatprep.subr.bf16.mxu0 %v21076_v43 }
 0x73a   : > { %6465 = vmatpush1.bf16.msra.mxu0 %v21014_v28 }
 0x73b   : > { %6466 = vmatprep.subr.bf16.mxu0 %v21080_v5 }
 0x73e   : > { %6467 = vmatpush1.bf16.msra.mxu0 %v21004_v38 }
 0x73f   : > { %6642 = vmatprep.subr.bf16.mxu0 %v21066_v29 }
 0x741   : > { %15624 = vmatmul.mubr.msk.bf16.vlgmr.msra.gmra.mxu0 %vm6431_vm8, %v21927_v46 }
 0x742   : > { %6643 = vmatpush1.bf16.msra.mxu0 %v21069_v2  ;;  %6494 = vmatprep.mubr.bf16.mxu0 %v21867_v0 }
 0x743   : > { %6644 = vmatprep.subr.bf16.mxu0 %v21072_v19 }
 0x746   : > { %v6185_v22 = vpop.f32.mrf.mxu0  ;;  %v6258_v30 = vpop.f32.mrf.mxu1  ;;  %6645 = vmatpush1.bf16.msra.mxu0 %v21040_v50 }
 0x747   : > { %v6259_v55 = vadd.f32 %v6258_v30, %v6185_v22  ;;  %6646 = vmatprep.subr.bf16.mxu0 %v21076_v43  ;;  %v17659_v30 = vld [vmem:[#allocation8 + $0x244] ss:$8 sps:$4 sm:$0xff]  }
 0x748   : > { %v21096_v49 = vpop.f32.mrf.mxu0  ;;  %v21098_v26 = vpop.f32.mrf.mxu1 }
 0x749   : > { %v6299_v9 = vadd.f32 %v6259_v55, %v20861_v48  ;;  %15625 = vmatmul.mubr.msk.bf16.gmra.mxu0 %vm6431_vm8, %v21928_v31 }
 0x74a   : > { %v6189_v3 = vpop.f32.mrf.mxu0  ;;  %v6262_v57 = vpop.f32.mrf.mxu1  ;;  %6647 = vmatpush1.bf16.msra.mxu0 %v21014_v28  ;;  %6666 = vmatprep.mubr.bf16.mxu0 %v21867_v0 }
 0x74b   : > { %v6263_v24 = vadd.f32 %v6262_v57, %v6189_v3  ;;  %6648 = vmatprep.subr.bf16.mxu0 %v21080_v5  ;;  %v6353_v35 = vadd.f32 %v21103_v25, %v6299_v9 }
 0x74c   : > { %v21110_v34 = vpop.f32.mrf.mxu0  ;;  %v21112_v48 = vpop.f32.mrf.mxu1 }
 0x74d   : > { %v6303_v40 = vadd.f32 %v6263_v24, %v20871_v37  ;;  %v6385_v60 = vmax.f32 %v6353_v35, 0.0  ;;  %v21931_v35 = vld [vmem:[#allocation56_spill] sm:$0xff] }
 0x74e   : > { %v6195_v53 = vpop.f32.mrf.mxu0  ;;  %v6268_v54 = vpop.f32.mrf.mxu1  ;;  %6649 = vmatpush1.bf16.msra.mxu0 %v21004_v38 }
 0x74f   : > { %v6357_v14 = vadd.f32 %v21103_v25, %v6303_v40  ;;  %v6269_v63 = vadd.f32 %v6268_v54, %v6195_v53  ;;  %7133 = vmatprep.subr.bf16.mxu0 %v17650_v39  ;;  %v21930_v39 = vld [vmem:[#allocation77_spill] sm:$0xff] }
 0x750   : > { %v21118_v4 = vpop.f32.mrf.mxu0  ;;  %v21120_v1 = vpop.f32.mrf.mxu1 }
 0x751   : > { %v6389_v13 = vmax.f32 %v6357_v14, 0.0  ;;  %v6307_v36 = vadd.f32 %v6269_v63, %v20874_v11  ;;  %15628 = vmatmul.mubr.msk.bf16.vlgmr.msra.gmra.mxu0 %vm6431_vm8, %v21929_v59 }
 0x752   : > { %v6199_v37 = vpop.f32.mrf.mxu0  ;;  %v6272_v6 = vpop.f32.mrf.mxu1  ;;  %6676 = vmatprep.mubr.bf16.mxu0 %v21867_v0  ;;  %7134 = vmatpush1.bf16.msra.mxu0 %v17648_v44  ;;  %v17657_v44 = vld [vmem:[#allocation8 + $0x240] ss:$8 sps:$4 sm:$0xff]  }
 0x753   : > { %v21126_v21 = vpack.c.bf16 %v6389_v13, %v6385_v60  ;;  %v6273_v8 = vadd.f32 %v6272_v6, %v6199_v37  ;;  %7135 = vmatprep.subr.bf16.mxu0 %v17653_v62  ;;  %v6361_v11 = vadd.f32 %v21103_v25, %v6307_v36  ;;  %v17662_v62 = vld [vmem:[#allocation8 + $0x234] ss:$8 sps:$4 sm:$0xff]   ;;  %v21935_v37 = vld [vmem:[#allocation104_spill] sm:$0xff] }
 0x754   : > { %v21128_v45 = vpop.f32.mrf.mxu0  ;;  %v21130_v12 = vpop.f32.mrf.mxu1  ;;  %v21933_v60 = vld [vmem:[#allocation58_spill] sm:$0xff]  ;;  %v21934_v13 = vld [vmem:[#allocation59_spill] sm:$0xff] }
 0x755   : > { %v6311_v18 = vadd.f32 %v6273_v8, %v20884_v23  ;;  %v6393_v3 = vmax.f32 %v6361_v11, 0.0  ;;  %v21932_v23 = vld [vmem:[#allocation57_spill] sm:$0xff]  ;;  %v2805_v36 = vadd.f32 %v21934_v13, %v21933_v60  ;;  %v21937_v11 = vld [vmem:[#allocation55_spill] sm:$0xff] }
 0x756   : > { %v6205_v52 = vpop.f32.mrf.mxu0  ;;  %v6278_v47 = vpop.f32.mrf.mxu1  ;;  %7136 = vmatpush1.bf16.msra.mxu0 %v17651_v16  ;;  %v2795_v40 = vadd.f32 %v21932_v23, %v21931_v35  ;;  %v21940_v35 = vld [vmem:[#allocation53_spill] sm:$0xff]  ;;  %v21943_v13 = vld [vmem:[#allocation39_spill] sm:$0xff] }
 0x757   : > { %v6365_v56 = vadd.f32 %v21103_v25, %v6311_v18  ;;  %v6279_v22 = vadd.f32 %v6278_v47, %v6205_v52  ;;  %7137 = vmatprep.subr.bf16.mxu0 %v17656_v51  ;;  %v21936_v51 = vld [vmem:[#allocation54_spill] sm:$0xff]  ;;  %v21938_v47 = vld [vmem:[#allocation109_spill] sm:$0xff] }
 0x758   : > { %v6207_v55 = vpop.f32.mrf.mxu0  ;;  %v6280_v9 = vpop.f32.mrf.mxu1  ;;  %v2785_v18 = vadd.f32 %v21937_v11, %v21936_v51  ;;  %v17665_v60 = vld [vmem:[#allocation8 + $0x224] ss:$8 sps:$4 sm:$0xff]  }
 0x759   : > { %v6397_v57 = vmax.f32 %v6365_v56, 0.0  ;;  %v6315_v24 = vadd.f32 %v6279_v22, %v20887_v58  ;;  %15629 = vmatmul.mubr.msk.bf16.gmra.mxu0 %vm6431_vm8, %v21930_v39  ;;  %v3654_v58 = vadd.f32 %v21935_v37, %v2795_v40  ;;  %v4990_v56 = vadd.f32 %v20894_v33, %v20892_v32 }
 0x75a   : > { %v6209_v53 = vpop.f32.mrf.mxu0  ;;  %v6282_v54 = vpop.f32.mrf.mxu1  ;;  %7138 = vmatpush1.bf16.msra.mxu0 %v17654_v27  ;;  %v3664_v27 = vadd.f32 %v21938_v47, %v2805_v36  ;;  %v5000_v36 = vadd.f32 %v21943_v13, %v20905_v10  ;;  %v21160_v32 = vsub.s32 3, %v21909_v41  ;;  %v21944_v47 = vld [vmem:[#allocation67_spill] sm:$0xff] }
 0x75b   : > { %v21140_v14 = vpack.c.bf16 %v6397_v57, %v6393_v3  ;;  %v6283_v63 = vadd.f32 %v6282_v54, %v6209_v53  ;;  %7139 = vmatprep.subr.bf16.mxu0 %v17659_v30  ;;  %v6369_v6 = vadd.f32 %v21103_v25, %v6315_v24  ;;  %v17660_v3 = vld [vmem:[#allocation8 + $0x230] ss:$8 sps:$4 sm:$0xff]   ;;  %v21939_v57 = vld [vmem:[#allocation52_spill] sm:$0xff] }
 0x75c   : > { %v6211_v16 = vpop.f32.mrf.mxu0  ;;  %v6284_v8 = vpop.f32.mrf.mxu1  ;;  %v2775_v23 = vadd.f32 %v21940_v35, %v21939_v57  ;;  %v21941_v24 = vld [vmem:[#allocation99_spill] sm:$0xff]  ;;  %v21947_v35 = vld [vmem:[#allocation42_spill] sm:$0xff] }
 0x75d   : > { %v6319_v52 = vadd.f32 %v6283_v63, %v20897_v42  ;;  %v3644_v40 = vadd.f32 %v21941_v24, %v2785_v18  ;;  %v21942_v42 = vld [vmem:[#allocation105_spill] sm:$0xff]  ;;  %v6401_v33 = vmax.f32 %v6369_v6, 0.0  ;;  %v6285_v11 = vadd.f32 %v6284_v8, %v6211_v16 }
 0x75e   : > { %v6215_v22 = vpop.f32.mrf.mxu0  ;;  %v6288_v30 = vpop.f32.mrf.mxu1  ;;  %7140 = vmatpush1.bf16.msra.mxu0 %v17657_v44  ;;  %v3727_v63 = vadd.f32 %v21942_v42, %v3654_v58  ;;  %v21948_v58 = vld [vmem:[#allocation64_spill] sm:$0xff]  ;;  %v6281_v6 = vadd.f32 %v6280_v9, %v6207_v55 }
 0x75f   : > { %v6373_v53 = vadd.f32 %v21103_v25, %v6319_v52  ;;  %v6289_v54 = vadd.f32 %v6288_v30, %v6215_v22  ;;  %7141 = vmatprep.subr.bf16.mxu0 %v17662_v62  ;;  %v21945_v52 = vld [vmem:[#allocation94_spill] sm:$0xff]  ;;  %v4980_v24 = vadd.f32 %v21948_v58, %v21947_v35  ;;  %v21951_v9 = vld [vmem:[#allocation40_spill] sm:$0xff]  ;;  %v21955_v35 = vld [vmem:[#allocation95_spill] sm:$0xff] }
 0x760   : > { %v6217_v44 = vpop.f32.mrf.mxu0  ;;  %v6290_v37 = vpop.f32.mrf.mxu1  ;;  %v3634_v22 = vadd.f32 %v21945_v52, %v2775_v23  ;;  %v21946_v62 = vld [vmem:[#allocation110_spill] sm:$0xff]  ;;  %v5025_v42 = vadd.f32 %v4990_v56, %v3727_v63  ;;  %v6275_v56 = vadd.f32 %v21130_v12, %v21128_v45 }
 0x761   : > { %v6405_v51 = vmax.f32 %v6373_v53, 0.0  ;;  %v6323_v18 = vadd.f32 %v6289_v54, %v21944_v47  ;;  %v6291_v57 = vadd.f32 %v6290_v37, %v6217_v44  ;;  %v3737_v30 = vadd.f32 %v21946_v62, %v3664_v27  ;;  %v21949_v53 = vld [vmem:[#allocation68_spill] sm:$0xff]  ;;  %v17668_v54 = vld [vmem:[#allocation8 + $0x214] ss:$8 sps:$4 sm:$0xff]  }
 0x762   : > { %v6219_v10 = vpop.f32.mrf.mxu0  ;;  %v6292_v13 = vpop.f32.mrf.mxu1  ;;  %7142 = vmatpush1.bf16.msra.mxu0 %v17660_v3  ;;  %v21950_v44 = vld [vmem:[#allocation100_spill] sm:$0xff]  ;;  %v6346_v27 = vrot.slane %v20981_v15, %v21160_v32  ;;  %v6320_v47 = vadd.f32 %v6285_v11, %v5025_v42  ;;  %v17666_v15 = vld [vmem:[#allocation8 + $0x210] ss:$8 sps:$4 sm:$0xff]   ;;  %v3707_v58 = vadd.f32 %v21955_v35, %v3634_v22  ;;  %v6265_v42 = vadd.f32 %v21112_v48, %v21110_v34  ;;  %v17686_v35 = vld [vmem:[#allocation8 + $0x2b4] ss:$8 sps:$4 sm:$0xff]  }
 0x763   : > { %v21167_v41 = vpack.c.bf16 %v6405_v51, %v6401_v33  ;;  %v6324_v16 = vadd.f32 %v6291_v57, %v21949_v53  ;;  %v6293_v8 = vadd.f32 %v6292_v13, %v6219_v10  ;;  %7143 = vmatprep.subr.bf16.mxu0 %v17665_v60  ;;  %v3717_v23 = vadd.f32 %v21950_v44, %v3644_v40  ;;  %v21952_v57 = vld [vmem:[#allocation62_spill] sm:$0xff]  ;;  %v21953_v60 = vld [vmem:[#allocation63_spill] sm:$0xff] }
 0x764   : > { %v5033_v37 = vadd.f32 %v5000_v36, %v3737_v30  ;;  %v6221_v63 = vpop.f32.mrf.mxu0  ;;  %v6294_v3 = vpop.f32.mrf.mxu1  ;;  %v6377_v55 = vadd.f32 %v21103_v25, %v6323_v18  ;;  %v4970_v52 = vadd.f32 %v21953_v60, %v21952_v57  ;;  %v6271_v40 = vadd.f32 %v21120_v1, %v21118_v4  ;;  %v21954_v36 = vld [vmem:[#allocation65_spill] sm:$0xff] }
 0x765   : > { %v6327_v33 = vadd.f32 %v6293_v8, %v21951_v9  ;;  %v6295_v51 = vadd.f32 %v6294_v3, %v6221_v63  ;;  %v5017_v62 = vadd.f32 %v4980_v24, %v3717_v23  ;;  %v6316_v30 = vadd.f32 %v6281_v6, %v21954_v36  ;;  %v17671_v18 = vld [vmem:[#allocation8 + $0x204] ss:$8 sps:$4 sm:$0xff]   ;;  %v17674_v23 = vld [vmem:[#allocation8 + $0x2f4] ss:$8 sps:$4 sm:$0xff]   ;;  %v17672_v63 = vld [vmem:[#allocation8 + $0x2f0] ss:$8 sps:$4 sm:$0xff]  }
 0x766   : > { %7144 = vmatpush1.bf16.msra.mxu0 %v17663_v17  ;;  %v6378_v45 = vadd.f32 %v6346_v27, %v6324_v16  ;;  %v6374_v24 = vadd.f32 %v6346_v27, %v6320_v47  ;;  %v6409_v13 = vmax.f32 %v6377_v55, 0.0  ;;  %v5009_v17 = vadd.f32 %v4970_v52, %v3707_v58  ;;  %v21956_v6 = vld [vmem:[#allocation41_spill] sm:$0xff] }
 0x767   : > { %v6381_v12 = vadd.f32 %v21103_v25, %v6327_v33  ;;  %v6328_v11 = vadd.f32 %v6295_v51, %v5033_v37  ;;  %7145 = vmatprep.subr.bf16.mxu0 %v17668_v54  ;;  %v6312_v10 = vadd.f32 %v6275_v56, %v5017_v62  ;;  %v6261_v1 = vadd.f32 %v21098_v26, %v21096_v49  ;;  %v17669_v25 = vld [vmem:[#allocation8 + $0x200] ss:$8 sps:$4 sm:$0xff]   ;;  %v17677_v9 = vld [vmem:[#allocation8 + $0x2e4] ss:$8 sps:$4 sm:$0xff]  }
 0x768   : > { %v6308_v16 = vadd.f32 %v6271_v40, %v21956_v6  ;;  %v6370_v8 = vadd.f32 %v6346_v27, %v6316_v30  ;;  %v6410_v54 = vmax.f32 %v6378_v45, 0.0  ;;  %v6304_v34 = vadd.f32 %v6265_v42, %v5009_v17  ;;  %v21957_v3 = vld [vmem:[#allocation61_spill] sm:$0xff]  ;;  %v17680_v45 = vld [vmem:[#allocation8 + $0x2d4] ss:$8 sps:$4 sm:$0xff]  }
 0x769   : > { %v6413_v53 = vmax.f32 %v6381_v12, 0.0  ;;  %v6382_v4 = vadd.f32 %v6346_v27, %v6328_v11  ;;  %v6366_v48 = vadd.f32 %v6346_v27, %v6312_v10  ;;  %v6406_v56 = vmax.f32 %v6374_v24, 0.0  ;;  %v17675_v52 = vld [vmem:[#allocation8 + $0x2e0] ss:$8 sps:$4 sm:$0xff]   ;;  %v17683_v11 = vld [vmem:[#allocation8 + $0x2c4] ss:$8 sps:$4 sm:$0xff]  }
 0x76a   : > { %7146 = vmatpush1.bf16.msra.mxu0 %v17666_v15  ;;  %v6300_v47 = vadd.f32 %v6261_v1, %v21957_v3  ;;  %v6362_v55 = vadd.f32 %v6346_v27, %v6308_v16  ;;  %v6402_v49 = vmax.f32 %v6370_v8, 0.0  ;;  %v6358_v51 = vadd.f32 %v6346_v27, %v6304_v34  ;;  %v17681_v12 = vld [vmem:[#allocation8 + $0x2c0] ss:$8 sps:$4 sm:$0xff]   ;;  %v17689_v42 = vld [vmem:[#allocation8 + $0x2a4] ss:$8 sps:$4 sm:$0xff]  }
 0x76b   : > { %v6429_v44 = vpack.c.bf16 %v6413_v53, %v6409_v13  ;;  %v6414_v22 = vmax.f32 %v6382_v4, 0.0  ;;  %7147 = vmatprep.subr.bf16.mxu0 %v17671_v18  ;;  %v6398_v60 = vmax.f32 %v6366_v48, 0.0  ;;  %v17684_v18 = vld [vmem:[#allocation8 + $0x2b0] ss:$8 sps:$4 sm:$0xff]   ;;  %v17687_v58 = vld [vmem:[#allocation8 + $0x2a0] ss:$8 sps:$4 sm:$0xff]  }
 0x76c   : > { %v21197_v57 = vpack.c.bf16 %v6406_v56, %v6402_v49  ;;  %v6354_v62 = vadd.f32 %v6346_v27, %v6300_v47  ;;  %v6394_v40 = vmax.f32 %v6362_v55, 0.0  ;;  %v6390_v36 = vmax.f32 %v6358_v51, 0.0  ;;  %v17678_v27 = vld [vmem:[#allocation8 + $0x2d0] ss:$8 sps:$4 sm:$0xff]   ;;  %v17692_v10 = vld [vmem:[#allocation8 + $0x294] ss:$8 sps:$4 sm:$0xff]  }
 0x76d   : > { %v6430_v37 = vpack.c.bf16 %v6414_v22, %v6410_v54  ;;  %v21194_v33 = vand.u32 %v21062_v20, %v6429_v44  ;;  %v17693_v24 = vld [vmem:[#allocation8 + $0x280] ss:$8 sps:$4 sm:$0xff]   ;;  %v17695_v13 = vld [vmem:[#allocation8 + $0x284] ss:$8 sps:$4 sm:$0xff]   ;;  %v17696_v53 = vld [vmem:[#allocation8 + $0x370] ss:$8 sps:$4 sm:$0xff]  }
 0x76e   : > { %7148 = vmatpush1.bf16.msra.mxu0 %v17669_v25  ;;  %v21201_v15 = vpack.c.bf16 %v6398_v60, %v6394_v40  ;;  %v17698_v4 = vld [vmem:[#allocation8 + $0x374] ss:$8 sps:$4 sm:$0xff]   ;;  %v17702_v1 = vld [vmem:[#allocation8 + $0x360] ss:$8 sps:$4 sm:$0xff]   ;;  %v17704_v6 = vld [vmem:[#allocation8 + $0x364] ss:$8 sps:$4 sm:$0xff]  }
 0x76f   : > { %v21191_v26 = vand.u32 %v21062_v20, %v6430_v37  ;;  %7149 = vmatprep.subr.bf16.mxu0 %v17674_v23  ;;  %v6386_v20 = vmax.f32 %v6354_v62, 0.0  ;;  %v17701_v17 = vld [vmem:[#allocation8 + $0x74] ss:$8 sps:$4 sm:$0xff]   ;;  %v17708_v16 = vld [vmem:[#allocation8 + $0x350] ss:$8 sps:$4 sm:$0xff]  }
 0x770   : > { %v17710_v25 = vld [vmem:[#allocation8 + $0x354] ss:$8 sps:$4 sm:$0xff]   ;;  %v17714_v8 = vld [vmem:[#allocation8 + $0x340] ss:$8 sps:$4 sm:$0xff]   ;;  %v17716_v54 = vld [vmem:[#allocation8 + $0x344] ss:$8 sps:$4 sm:$0xff]  }
 0x771   : > { %6513 = vmatprep.subr.bf16.mxu1 %v21191_v26  ;;  %v21205_v30 = vpack.c.bf16 %v6390_v36, %v6386_v20  ;;  %v17720_v44 = vld [vmem:[#allocation8 + $0x330] ss:$8 sps:$4 sm:$0xff]   ;;  %v17722_v22 = vld [vmem:[#allocation8 + $0x334] ss:$8 sps:$4 sm:$0xff]   ;;  %v17728_v23 = vld [vmem:[#allocation8 + $0x324] ss:$8 sps:$4 sm:$0xff]  }
 0x772   : > { %6514 = vmatpush1.bf16.msra.mxu1 %v21194_v33  ;;  %7150 = vmatpush2.bf16.msra.mxu0 %v17672_v63  ;;  %v17732_v34 = vld [vmem:[#allocation8 + $0x310] ss:$8 sps:$4 sm:$0xff]   ;;  %v17734_v48 = vld [vmem:[#allocation8 + $0x314] ss:$8 sps:$4 sm:$0xff]   ;;  %v17738_v37 = vld [vmem:[#allocation8 + $0x300] ss:$8 sps:$4 sm:$0xff]  }
 0x773   : > { %6515 = vmatprep.subr.bf16.mxu1 %v21197_v57  ;;  %7151 = vmatprep.subr.bf16.mxu0 %v17677_v9  ;;  %v17740_v56 = vld [vmem:[#allocation8 + $0x304] ss:$8 sps:$4 sm:$0xff]   ;;  %v17744_v63 = vld [vmem:[#allocation8 + $0x3f0] ss:$8 sps:$4 sm:$0xff]   ;;  %v17746_v3 = vld [vmem:[#allocation8 + $0x3f4] ss:$8 sps:$4 sm:$0xff]  }
 0x774   : > { %v17750_v47 = vld [vmem:[#allocation8 + $0x3e0] ss:$8 sps:$4 sm:$0xff]   ;;  %v17752_v55 = vld [vmem:[#allocation8 + $0x3e4] ss:$8 sps:$4 sm:$0xff]   ;;  %v17756_v49 = vld [vmem:[#allocation8 + $0x3d0] ss:$8 sps:$4 sm:$0xff]  }
 0x775   : > { %v17758_v9 = vld [vmem:[#allocation8 + $0x3d4] ss:$8 sps:$4 sm:$0xff]   ;;  %v17764_v51 = vld [vmem:[#allocation8 + $0x3c4] ss:$8 sps:$4 sm:$0xff]   ;;  %v17762_v60 = vld [vmem:[#allocation8 + $0x3c0] ss:$8 sps:$4 sm:$0xff]  }
 0x776   : > { %6516 = vmatpush1.bf16.msra.mxu1 %v21167_v41  ;;  %7152 = vmatpush2.bf16.msra.mxu0 %v17675_v52  ;;  %v17768_v52 = vld [vmem:[#allocation8 + $0x3b0] ss:$8 sps:$4 sm:$0xff]   ;;  %v17770_v62 = vld [vmem:[#allocation8 + $0x3b4] ss:$8 sps:$4 sm:$0xff]   ;;  %v17776_v40 = vld [vmem:[#allocation8 + $0x3a4] ss:$8 sps:$4 sm:$0xff]  }
 0x777   : > { %6517 = vmatprep.subr.bf16.mxu1 %v21201_v15  ;;  %7153 = vmatprep.subr.bf16.mxu0 %v17680_v45  ;;  %v17774_v36 = vld [vmem:[#allocation8 + $0x3a0] ss:$8 sps:$4 sm:$0xff]   ;;  %v17780_v20 = vld [vmem:[#allocation8 + $0x390] ss:$8 sps:$4 sm:$0xff]   ;;  %v17788_v45 = vld [vmem:[#allocation8 + $0x384] ss:$8 sps:$4 sm:$0xff]  }
 0x77a   : > { %6518 = vmatpush1.bf16.msra.mxu1 %v21140_v14  ;;  %7154 = vmatpush2.bf16.msra.mxu0 %v17678_v27  ;;  %v17782_v27 = vld [vmem:[#allocation8 + $0x394] ss:$8 sps:$4 sm:$0xff]  }
 0x77b   : > { %6519 = vmatprep.subr.bf16.mxu1 %v21205_v30  ;;  %7155 = vmatprep.subr.bf16.mxu0 %v17683_v11  ;;  %v17794_v11 = vld [vmem:[#allocation8 + $0x174] ss:$8 sps:$4 sm:$0xff]  }
 0x77e   : > { %6520 = vmatpush1.bf16.msra.mxu1 %v21126_v21  ;;  %7156 = vmatpush2.bf16.msra.mxu0 %v17681_v12  ;;  %v17786_v12 = vld [vmem:[#allocation8 + $0x380] ss:$8 sps:$4 sm:$0xff]  }
 0x77f   : > { %6695 = vmatprep.subr.bf16.mxu1 %v21191_v26  ;;  %7157 = vmatprep.subr.bf16.mxu0 %v17686_v35 }
 0x781   : > { %15626 = vmatmul.mubr.msk.bf16.vlgmr.msra.gmra.mxu1 %vm6431_vm8, %v21927_v46 }
 0x782   : > { %6696 = vmatpush1.bf16.msra.mxu1 %v21194_v33  ;;  %6547 = vmatprep.mubr.bf16.mxu1 %v21867_v0 }
 0x783   : > { %6697 = vmatprep.subr.bf16.mxu1 %v21197_v57  ;;  %7158 = vmatpush2.bf16.msra.mxu0 %v17684_v18 }
 0x784   : > { %7159 = vmatprep.subr.bf16.mxu0 %v17689_v42 }
 0x786   : > { %6698 = vmatpush1.bf16.msra.mxu1 %v21167_v41 }
 0x787   : > { %6699 = vmatprep.subr.bf16.mxu1 %v21201_v15  ;;  %7160 = vmatpush2.bf16.msra.mxu0 %v17687_v58 }
 0x788   : > { %7161 = vmatprep.subr.bf16.mxu0 %v17692_v10 }
 0x789   : > { %15627 = vmatmul.mubr.msk.bf16.gmra.mxu1 %vm6431_vm8, %v21928_v31  ;;  %v17690_v31 = vld [vmem:[#allocation8 + $0x290] ss:$8 sps:$4 sm:$0xff]  }
 0x78a   : > { %6700 = vmatpush1.bf16.msra.mxu1 %v21140_v14  ;;  %6719 = vmatprep.mubr.bf16.mxu1 %v21867_v0 }
 0x78b   : > { %6701 = vmatprep.subr.bf16.mxu1 %v21205_v30  ;;  %7162 = vmatpush2.bf16.msra.mxu0 %v17690_v31 }
 0x78c   : > { %7163 = vmatprep.subr.bf16.mxu0 %v17695_v13 }
 0x78e   : > { %6702 = vmatpush1.bf16.msra.mxu1 %v21126_v21 }
 0x78f   : > { %7164 = vmatpush2.bf16.msra.mxu0 %v17693_v24  ;;  %7186 = vmatprep.subr.bf16.mxu1 %v17698_v4 }
 0x790   : > { %7559 = vmatprep.subr.bf16.mxu0 %v17701_v17 }
 0x791   : > { %15630 = vmatmul.mubr.msk.bf16.vlgmr.msra.gmra.mxu1 %vm6431_vm8, %v21929_v59 }
 0x792   : > { %6729 = vmatprep.mubr.bf16.mxu1 %v21867_v0  ;;  %7187 = vmatpush1.bf16.msra.mxu1 %v17696_v53 }
 0x793   : > { %7188 = vmatprep.subr.bf16.mxu1 %v17704_v6 }
 0x796   : > { %7189 = vmatpush1.bf16.msra.mxu1 %v17702_v1 }
 0x797   : > { %7190 = vmatprep.subr.bf16.mxu1 %v17710_v25 }
 0x799   : > { %15631 = vmatmul.mubr.msk.bf16.gmra.mxu1 %vm6431_vm8, %v21930_v39  ;;  %v17726_v39 = vld [vmem:[#allocation8 + $0x320] ss:$8 sps:$4 sm:$0xff]  }
 0x79a   : > { %7191 = vmatpush1.bf16.msra.mxu1 %v17708_v16 }
 0x79b   : > { %7192 = vmatprep.subr.bf16.mxu1 %v17716_v54  ;;  %v17699_v54 = vld [vmem:[#allocation8 + $0x70] ss:$8 sps:$4 sm:$0xff]  }
 0x79e   : > { %7193 = vmatpush1.bf16.msra.mxu1 %v17714_v8 }
 0x79f   : > { %7194 = vmatprep.subr.bf16.mxu1 %v17722_v22 }
 0x7a2   : > { %7195 = vmatpush1.bf16.msra.mxu1 %v17720_v44  ;;  %v17707_v44 = vld [vmem:[#allocation8 + $0x64] ss:$8 sps:$4 sm:$0xff]  }
 0x7a3   : > { %7196 = vmatprep.subr.bf16.mxu1 %v17728_v23  ;;  %v17705_v23 = vld [vmem:[#allocation8 + $0x60] ss:$8 sps:$4 sm:$0xff]  }
 0x7a6   : > { %7197 = vmatpush1.bf16.msra.mxu1 %v17726_v39 }
 0x7a7   : > { %7198 = vmatprep.subr.bf16.mxu1 %v17734_v48 }
 0x7aa   : > { %7199 = vmatpush1.bf16.msra.mxu1 %v17732_v34  ;;  %v17713_v34 = vld [vmem:[#allocation8 + $0x54] ss:$8 sps:$4 sm:$0xff]  }
 0x7ab   : > { %7200 = vmatprep.subr.bf16.mxu1 %v17740_v56 }
 0x7ae   : > { %7201 = vmatpush1.bf16.msra.mxu1 %v17738_v37 }
 0x7af   : > { %7202 = vmatprep.subr.bf16.mxu1 %v17746_v3  ;;  %v17711_v3 = vld [vmem:[#allocation8 + $0x50] ss:$8 sps:$4 sm:$0xff]  }
 0x7b2   : > { %7203 = vmatpush2.bf16.msra.mxu1 %v17744_v63 }
 0x7b3   : > { %7204 = vmatprep.subr.bf16.mxu1 %v17752_v55  ;;  %v17719_v55 = vld [vmem:[#allocation8 + $0x44] ss:$8 sps:$4 sm:$0xff]  }
 0x7b6   : > { %7205 = vmatpush2.bf16.msra.mxu1 %v17750_v47 }
 0x7b7   : > { %7206 = vmatprep.subr.bf16.mxu1 %v17758_v9  ;;  %v17725_v9 = vld [vmem:[#allocation8 + $0x34] ss:$8 sps:$4 sm:$0xff]  }
 0x7ba   : > { %7207 = vmatpush2.bf16.msra.mxu1 %v17756_v49  ;;  %v17717_v49 = vld [vmem:[#allocation8 + $0x40] ss:$8 sps:$4 sm:$0xff]  }
 0x7bb   : > { %7208 = vmatprep.subr.bf16.mxu1 %v17764_v51  ;;  %v17723_v51 = vld [vmem:[#allocation8 + $0x30] ss:$8 sps:$4 sm:$0xff]  }
 0x7be   : > { %7209 = vmatpush2.bf16.msra.mxu1 %v17762_v60  ;;  %v17731_v60 = vld [vmem:[#allocation8 + $0x24] ss:$8 sps:$4 sm:$0xff]  }
 0x7bf   : > { %7210 = vmatprep.subr.bf16.mxu1 %v17770_v62  ;;  %v17737_v62 = vld [vmem:[#allocation8 + $0x14] ss:$8 sps:$4 sm:$0xff]  }
 0x7c2   : > { %7211 = vmatpush2.bf16.msra.mxu1 %v17768_v52  ;;  %v17729_v52 = vld [vmem:[#allocation8 + $0x20] ss:$8 sps:$4 sm:$0xff]  }
 0x7c3   : > { %7212 = vmatprep.subr.bf16.mxu1 %v17776_v40  ;;  %v17735_v40 = vld [vmem:[#allocation8 + $0x10] ss:$8 sps:$4 sm:$0xff]  }
 0x7c6   : > { %7213 = vmatpush2.bf16.msra.mxu1 %v17774_v36  ;;  %v17743_v36 = vld [vmem:[#allocation8 + $0x4] ss:$8 sps:$4 sm:$0xff]  }
 0x7c7   : > { %7214 = vmatprep.subr.bf16.mxu1 %v17782_v27  ;;  %v17749_v27 = vld [vmem:[#allocation8 + $0xf4] ss:$8 sps:$4 sm:$0xff]  }
 0x7ca   : > { %7215 = vmatpush2.bf16.msra.mxu1 %v17780_v20  ;;  %v17741_v20 = vld [vmem:[#allocation8] ss:$8 sps:$4 sm:$0xff]  }
 0x7cb   : > { %7216 = vmatprep.subr.bf16.mxu1 %v17788_v45  ;;  %v17747_v45 = vld [vmem:[#allocation8 + $0xf0] ss:$8 sps:$4 sm:$0xff]  }
 0x7ce   : > { %7217 = vmatpush2.bf16.msra.mxu1 %v17786_v12  ;;  %v17755_v12 = vld [vmem:[#allocation8 + $0xe4] ss:$8 sps:$4 sm:$0xff]  }
 0x7cf   : > { %7612 = vmatprep.subr.bf16.mxu1 %v17794_v11  ;;  %v17753_v11 = vld [vmem:[#allocation8 + $0xe0] ss:$8 sps:$4 sm:$0xff]  }
 0x801   : > { %v21229_v18 = vpop.f32.mrf.mxu0 }
 0x803   : > { %v6488_v35 = vpop.f32.mrf.mxu0 }
 0x805   : > { %v21231_v58 = vpop.f32.mrf.mxu0 }
 0x806   : > { %v6558_v42 = vpack.c.bf16 %v21231_v58, %v21229_v18  ;;  %v17798_v18 = vld [vmem:[#allocation8 + $0x150] ss:$8 sps:$4 sm:$0xff]   ;;  %v17803_v58 = vld [vmem:[#allocation8 + $0x144] ss:$8 sps:$4 sm:$0xff]  }
 0x807   : > { %v6492_v31 = vpop.f32.mrf.mxu0 }
 0x808   : > { %v6559_v63 = vpack.c.bf16 %v6492_v31, %v6488_v35  ;;  %v17761_v35 = vld [vmem:[#allocation8 + $0xd4] ss:$8 sps:$4 sm:$0xff]   ;;  %v17759_v31 = vld [vmem:[#allocation8 + $0xd0] ss:$8 sps:$4 sm:$0xff]  }
 0x809   : > { %v21235_v10 = vpop.f32.mrf.mxu0 }
 0x80b   : > { %v21237_v24 = vpop.f32.mrf.mxu0 }
 0x80d   : > { %v21239_v13 = vpop.f32.mrf.mxu0 }
 0x80e   : > { %v6562_v53 = vpack.c.bf16 %v21239_v13, %v21235_v10  ;;  %v17807_v10 = vld [vmem:[#allocation8 + $0x120] ss:$8 sps:$4 sm:$0xff]   ;;  %v17812_v13 = vld [vmem:[#allocation8 + $0x114] ss:$8 sps:$4 sm:$0xff]  }
 0x80f   : > { %v21243_v4 = vpop.f32.mrf.mxu0 }
 0x811   : > { %v6668_v17 = vpop.f32.mrf.mxu0 }
 0x813   : > { %v6670_v1 = vpop.f32.mrf.mxu0 }
 0x815   : > { %v6672_v6 = vpop.f32.mrf.mxu0 }
 0x816   : > { %v6740_v16 = vpack.c.bf16 %v6672_v6, %v6668_v17 }
 0x817   : > { %v6674_v25 = vpop.f32.mrf.mxu0 }
 0x818   : > { %v6741_v8 = vpack.c.bf16 %v6674_v25, %v6670_v1  ;;  %v17767_v1 = vld [vmem:[#allocation8 + $0xc4] ss:$8 sps:$4 sm:$0xff]  }
 0x819   : > { %v6678_v22 = vpop.f32.mrf.mxu0 }
 0x81a   : > { %7165 = vmatprep.mubr.bf16.mxu0 %v6741_v8  ;;  %v17773_v8 = vld [vmem:[#allocation8 + $0xb4] ss:$8 sps:$4 sm:$0xff]  }
 0x81b   : > { %7166 = vmatmul.mubr.bf16.vlgmr.msra.gmra.mxu0 %v6740_v16  ;;  %v6680_v39 = vpop.f32.mrf.mxu0  ;;  %v17765_v16 = vld [vmem:[#allocation8 + $0xc0] ss:$8 sps:$4 sm:$0xff]  }
 0x81c   : > { %7560 = vmatpush1.bf16.msra.mxu0 %v17699_v54 }
 0x81d   : > { %7561 = vmatprep.subr.bf16.mxu0 %v17707_v44  ;;  %v6682_v48 = vpop.f32.mrf.mxu0 }
 0x81e   : > { %v6744_v37 = vpack.c.bf16 %v6682_v48, %v6678_v22  ;;  %v17771_v22 = vld [vmem:[#allocation8 + $0xb0] ss:$8 sps:$4 sm:$0xff]   ;;  %v17777_v48 = vld [vmem:[#allocation8 + $0xa0] ss:$8 sps:$4 sm:$0xff]  }
 0x81f   : > { %v6684_v56 = vpop.f32.mrf.mxu0 }
 0x820   : > { %7562 = vmatpush1.bf16.msra.mxu0 %v17705_v23  ;;  %v6745_v47 = vpack.c.bf16 %v6684_v56, %v6680_v39  ;;  %v17779_v23 = vld [vmem:[#allocation8 + $0xa4] ss:$8 sps:$4 sm:$0xff]   ;;  %v17785_v56 = vld [vmem:[#allocation8 + $0x94] ss:$8 sps:$4 sm:$0xff]  }
 0x821   : > { %7563 = vmatprep.subr.bf16.mxu0 %v17713_v34 }
 0x822   : > { %7175 = vmatprep.mubr.bf16.mxu0 %v6745_v47 }
 0x823   : > { %7176 = vmatmul.mubr.bf16.gmra.mxu0 %v6744_v37 }
 0x824   : > { %7564 = vmatpush1.bf16.msra.mxu0 %v17711_v3  ;;  %7591 = vmatprep.mubr.bf16.mxu0 %v6559_v63 }
 0x825   : > { %7565 = vmatprep.subr.bf16.mxu0 %v17719_v55  ;;  %v17783_v55 = vld [vmem:[#allocation8 + $0x90] ss:$8 sps:$4 sm:$0xff]  }
 0x828   : > { %7566 = vmatpush1.bf16.msra.mxu0 %v17717_v49 }
 0x829   : > { %7567 = vmatprep.subr.bf16.mxu0 %v17725_v9  ;;  %v17791_v9 = vld [vmem:[#allocation8 + $0x84] ss:$8 sps:$4 sm:$0xff]  }
 0x82c   : > { %7568 = vmatpush1.bf16.msra.mxu0 %v17723_v51 }
 0x82d   : > { %7569 = vmatprep.subr.bf16.mxu0 %v17731_v60  ;;  %v17789_v60 = vld [vmem:[#allocation8 + $0x80] ss:$8 sps:$4 sm:$0xff]  }
 0x830   : > { %7570 = vmatpush1.bf16.msra.mxu0 %v17729_v52 }
 0x831   : > { %7571 = vmatprep.subr.bf16.mxu0 %v17737_v62 }
 0x834   : > { %7572 = vmatpush1.bf16.msra.mxu0 %v17735_v40 }
 0x835   : > { %7573 = vmatprep.subr.bf16.mxu0 %v17743_v36  ;;  %v17792_v36 = vld [vmem:[#allocation8 + $0x170] ss:$8 sps:$4 sm:$0xff]  }
 0x838   : > { %7574 = vmatpush1.bf16.msra.mxu0 %v17741_v20 }
 0x839   : > { %7575 = vmatprep.subr.bf16.mxu0 %v17749_v27 }
 0x83c   : > { %7576 = vmatpush2.bf16.msra.mxu0 %v17747_v45  ;;  %v17797_v45 = vld [vmem:[#allocation8 + $0x164] ss:$8 sps:$4 sm:$0xff]  }
 0x83d   : > { %7577 = vmatprep.subr.bf16.mxu0 %v17755_v12 }
 0x840   : > { %7578 = vmatpush2.bf16.msra.mxu0 %v17753_v11  ;;  %v6563_v11 = vpack.c.bf16 %v21243_v4, %v21237_v24  ;;  %v21958_v24 = vld [vmem:[#allocation47_spill] sm:$0xff]  ;;  %v21959_v4 = vld [vmem:[#allocation48_spill] sm:$0xff] }
 0x841   : > { %v21245_v17 = vpop.f32.mrf.mxu1  ;;  %7579 = vmatprep.subr.bf16.mxu0 %v17761_v35  ;;  %v17795_v35 = vld [vmem:[#allocation8 + $0x160] ss:$8 sps:$4 sm:$0xff]  }
 0x843   : > { %v21247_v6 = vpop.f32.mrf.mxu1 }
 0x844   : > { %7580 = vmatpush2.bf16.msra.mxu0 %v17759_v31 }
 0x845   : > { %v21249_v25 = vpop.f32.mrf.mxu1  ;;  %7581 = vmatprep.subr.bf16.mxu0 %v17767_v1 }
 0x846   : > { %v6560_v54 = vpack.c.bf16 %v21249_v25, %v21245_v17  ;;  %v17846_v17 = vld [vmem:[#allocation8 + $0x460] ss:$8 sps:$4 sm:$0xff]   ;;  %v17854_v25 = vld [vmem:[#allocation8 + $0x454] ss:$8 sps:$4 sm:$0xff]  }
 0x847   : > { %v6545_v44 = vpop.f32.mrf.mxu1 }
 0x848   : > { %7582 = vmatpush2.bf16.msra.mxu0 %v17765_v16 }
 0x849   : > { %v21253_v39 = vpop.f32.mrf.mxu1  ;;  %7583 = vmatprep.subr.bf16.mxu0 %v17773_v8 }
 0x84b   : > { %v21255_v34 = vpop.f32.mrf.mxu1 }
 0x84c   : > { %7584 = vmatpush2.bf16.msra.mxu0 %v17771_v22  ;;  %v17819_v22 = vld [vmem:[#allocation8 + $0x1e0] ss:$8 sps:$4 sm:$0xff]  }
 0x84d   : > { %v21257_v37 = vpop.f32.mrf.mxu1  ;;  %7585 = vmatprep.subr.bf16.mxu0 %v17779_v23  ;;  %v17824_v23 = vld [vmem:[#allocation8 + $0x1d4] ss:$8 sps:$4 sm:$0xff]  }
 0x84e   : > { %v6564_v63 = vpack.c.bf16 %v21257_v37, %v21253_v39  ;;  %v17857_v39 = vld [vmem:[#allocation8 + $0x554] ss:$8 sps:$4 sm:$0xff]  }
 0x84f   : > { %v21261_v3 = vpop.f32.mrf.mxu1  ;;  %v17866_v37 = vld [vmem:[#allocation8 + $0x434] ss:$8 sps:$4 sm:$0xff]  }
 0x850   : > { %v6565_v47 = vpack.c.bf16 %v21261_v3, %v21255_v34  ;;  %7586 = vmatpush2.bf16.msra.mxu0 %v17777_v48  ;;  %v17822_v48 = vld [vmem:[#allocation8 + $0x1d0] ss:$8 sps:$4 sm:$0xff]   ;;  %v17858_v34 = vld [vmem:[#allocation8 + $0x440] ss:$8 sps:$4 sm:$0xff]   ;;  %v17863_v3 = vld [vmem:[#allocation8 + $0x544] ss:$8 sps:$4 sm:$0xff]  }
 0x851   : > { %v6721_v49 = vpop.f32.mrf.mxu1  ;;  %7587 = vmatprep.subr.bf16.mxu0 %v17785_v56  ;;  %v17827_v56 = vld [vmem:[#allocation8 + $0x1c4] ss:$8 sps:$4 sm:$0xff]  }
 0x853   : > { %v6723_v51 = vpop.f32.mrf.mxu1 }
 0x854   : > { %7588 = vmatpush2.bf16.msra.mxu0 %v17783_v55  ;;  %v17825_v55 = vld [vmem:[#allocation8 + $0x1c0] ss:$8 sps:$4 sm:$0xff]  }
 0x855   : > { %v6725_v52 = vpop.f32.mrf.mxu1  ;;  %7589 = vmatprep.subr.bf16.mxu0 %v17791_v9  ;;  %v17828_v9 = vld [vmem:[#allocation8 + $0x1b0] ss:$8 sps:$4 sm:$0xff]  }
 0x856   : > { %v6742_v20 = vpack.c.bf16 %v6725_v52, %v6721_v49  ;;  %v17830_v49 = vld [vmem:[#allocation8 + $0x1b4] ss:$8 sps:$4 sm:$0xff]  }
 0x857   : > { %v6727_v62 = vpop.f32.mrf.mxu1  ;;  %v17836_v52 = vld [vmem:[#allocation8 + $0x194] ss:$8 sps:$4 sm:$0xff]  }
 0x858   : > { %v6743_v40 = vpack.c.bf16 %v6727_v62, %v6723_v51  ;;  %7590 = vmatpush2.bf16.msra.mxu0 %v17789_v60  ;;  %v17833_v51 = vld [vmem:[#allocation8 + $0x1a4] ss:$8 sps:$4 sm:$0xff]   ;;  %v17831_v60 = vld [vmem:[#allocation8 + $0x1a0] ss:$8 sps:$4 sm:$0xff]   ;;  %v17834_v62 = vld [vmem:[#allocation8 + $0x190] ss:$8 sps:$4 sm:$0xff]  }
 0x859   : > { %v6731_v27 = vpop.f32.mrf.mxu1  ;;  %7677 = vmatprep.subr.bf16.mxu0 %v21066_v29  ;;  %v17800_v29 = vld [vmem:[#allocation8 + $0x154] ss:$8 sps:$4 sm:$0xff]  }
 0x85a   : > { %7218 = vmatprep.mubr.bf16.mxu1 %v6743_v40  ;;  %v17839_v40 = vld [vmem:[#allocation8 + $0x184] ss:$8 sps:$4 sm:$0xff]  }
 0x85b   : > { %v6733_v12 = vpop.f32.mrf.mxu1  ;;  %7219 = vmatmul.mubr.bf16.vlgmr.msra.gmra.mxu1 %v6742_v20  ;;  %7592 = vmatmul.mubr.bf16.vlgmr.msra.gmra.mxu0 %v6558_v42  ;;  %v17809_v42 = vld [vmem:[#allocation8 + $0x124] ss:$8 sps:$4 sm:$0xff]  }
 0x85c   : > { %7613 = vmatpush1.bf16.msra.mxu1 %v17792_v36  ;;  %7678 = vmatpush1.bf16.msra.mxu0 %v21069_v2  ;;  %v6561_v2 = vpack.c.bf16 %v6545_v44, %v21247_v6  ;;  %v17816_v6 = vld [vmem:[#allocation8 + $0x1f0] ss:$8 sps:$4 sm:$0xff]   ;;  %v17821_v44 = vld [vmem:[#allocation8 + $0x1e4] ss:$8 sps:$4 sm:$0xff]   ;;  %v17837_v36 = vld [vmem:[#allocation8 + $0x180] ss:$8 sps:$4 sm:$0xff]  }
 0x85d   : > { %v6735_v31 = vpop.f32.mrf.mxu1  ;;  %7679 = vmatprep.subr.bf16.mxu0 %v21072_v19  ;;  %7614 = vmatprep.subr.bf16.mxu1 %v17797_v45  ;;  %v17801_v19 = vld [vmem:[#allocation8 + $0x140] ss:$8 sps:$4 sm:$0xff]   ;;  %v17872_v20 = vld [vmem:[#allocation8 + $0x424] ss:$8 sps:$4 sm:$0xff]   ;;  %v17869_v45 = vld [vmem:[#allocation8 + $0x534] ss:$8 sps:$4 sm:$0xff]  }
 0x85e   : > { %7601 = vmatprep.mubr.bf16.mxu0 %v6563_v11  ;;  %v6746_v1 = vpack.c.bf16 %v6735_v31, %v6731_v27  ;;  %v17861_v27 = vld [vmem:[#allocation8 + $0x540] ss:$8 sps:$4 sm:$0xff]   ;;  %v17878_v11 = vld [vmem:[#allocation8 + $0x414] ss:$8 sps:$4 sm:$0xff]   ;;  %v17875_v31 = vld [vmem:[#allocation8 + $0x524] ss:$8 sps:$4 sm:$0xff]  }
 0x85f   : > { %v6737_v16 = vpop.f32.mrf.mxu1 }
 0x860   : > { %v6747_v8 = vpack.c.bf16 %v6737_v16, %v6733_v12  ;;  %7615 = vmatpush1.bf16.msra.mxu1 %v17795_v35  ;;  %7680 = vmatpush1.bf16.msra.mxu0 %v21040_v50  ;;  %v17806_v50 = vld [vmem:[#allocation8 + $0x134] ss:$8 sps:$4 sm:$0xff]   ;;  %v17870_v12 = vld [vmem:[#allocation8 + $0x420] ss:$8 sps:$4 sm:$0xff]   ;;  %v17867_v35 = vld [vmem:[#allocation8 + $0x530] ss:$8 sps:$4 sm:$0xff]  }
 0x861   : > { %7681 = vmatprep.subr.bf16.mxu0 %v21076_v43  ;;  %7616 = vmatprep.subr.bf16.mxu1 %v17800_v29  ;;  %v17804_v43 = vld [vmem:[#allocation8 + $0x130] ss:$8 sps:$4 sm:$0xff]   ;;  %v17873_v16 = vld [vmem:[#allocation8 + $0x520] ss:$8 sps:$4 sm:$0xff]  }
 0x862   : > { %7228 = vmatprep.mubr.bf16.mxu1 %v6747_v8  ;;  %v17876_v29 = vld [vmem:[#allocation8 + $0x410] ss:$8 sps:$4 sm:$0xff]   ;;  %v17881_v8 = vld [vmem:[#allocation8 + $0x514] ss:$8 sps:$4 sm:$0xff]  }
 0x863   : > { %7229 = vmatmul.mubr.bf16.gmra.mxu1 %v6746_v1  ;;  %7602 = vmatmul.mubr.bf16.gmra.mxu0 %v6562_v53  ;;  %v17813_v53 = vld [vmem:[#allocation8 + $0x100] ss:$8 sps:$4 sm:$0xff]   ;;  %v17884_v1 = vld [vmem:[#allocation8 + $0x404] ss:$8 sps:$4 sm:$0xff]  }
 0x864   : > { %7617 = vmatpush1.bf16.msra.mxu1 %v17798_v18  ;;  %7644 = vmatprep.mubr.bf16.mxu1 %v6561_v2  ;;  %v17882_v18 = vld [vmem:[#allocation8 + $0x400] ss:$8 sps:$4 sm:$0xff]   ;;  %v17879_v2 = vld [vmem:[#allocation8 + $0x510] ss:$8 sps:$4 sm:$0xff]  }
 0x865   : > { %7682 = vmatpush1.bf16.msra.mxu0 %v21014_v28  ;;  %7618 = vmatprep.subr.bf16.mxu1 %v17803_v58  ;;  %v17810_v28 = vld [vmem:[#allocation8 + $0x110] ss:$8 sps:$4 sm:$0xff]   ;;  %v17890_v58 = vld [vmem:[#allocation8 + $0x4f4] ss:$8 sps:$4 sm:$0xff]  }
 0x866   : > { %7683 = vmatprep.subr.bf16.mxu0 %v21080_v5  ;;  %7701 = vmatprep.mubr.bf16.mxu0 %v21867_v0  ;;  %v17815_v5 = vld [vmem:[#allocation8 + $0x104] ss:$8 sps:$4 sm:$0xff]  }
 0x868   : > { %7619 = vmatpush1.bf16.msra.mxu1 %v17801_v19  ;;  %v17887_v19 = vld [vmem:[#allocation8 + $0x504] ss:$8 sps:$4 sm:$0xff]  }
 0x869   : > { %7684 = vmatpush1.bf16.msra.mxu0 %v21004_v38  ;;  %7620 = vmatprep.subr.bf16.mxu1 %v17806_v50  ;;  %v17818_v38 = vld [vmem:[#allocation8 + $0x1f4] ss:$8 sps:$4 sm:$0xff]   ;;  %v17888_v50 = vld [vmem:[#allocation8 + $0x4f0] ss:$8 sps:$4 sm:$0xff]  }
 0x86c   : > { %7621 = vmatpush1.bf16.msra.mxu1 %v17804_v43  ;;  %15760 = vmatmul.mubr.msk.bf16.vlgmr.msra.gmra.mxu0 %vm6431_vm8, %v21958_v24  ;;  %v17896_v43 = vld [vmem:[#allocation8 + $0x4e4] ss:$8 sps:$4 sm:$0xff]  }
 0x86d   : > { %7622 = vmatprep.subr.bf16.mxu1 %v17809_v42  ;;  %7711 = vmatprep.mubr.bf16.mxu0 %v21867_v0  ;;  %v17885_v42 = vld [vmem:[#allocation8 + $0x500] ss:$8 sps:$4 sm:$0xff]  }
 0x870   : > { %7623 = vmatpush1.bf16.msra.mxu1 %v17807_v10  ;;  %v17893_v10 = vld [vmem:[#allocation8 + $0x5f4] ss:$8 sps:$4 sm:$0xff]  }
 0x871   : > { %7624 = vmatprep.subr.bf16.mxu1 %v17812_v13  ;;  %v17894_v13 = vld [vmem:[#allocation8 + $0x4e0] ss:$8 sps:$4 sm:$0xff]  }
 0x874   : > { %7625 = vmatpush1.bf16.msra.mxu1 %v17810_v28  ;;  %15761 = vmatmul.mubr.msk.bf16.gmra.mxu0 %vm6431_vm8, %v21959_v4  ;;  %v17891_v28 = vld [vmem:[#allocation8 + $0x5f0] ss:$8 sps:$4 sm:$0xff]  }
 0x875   : > { %7626 = vmatprep.subr.bf16.mxu1 %v17815_v5  ;;  %v17899_v5 = vld [vmem:[#allocation8 + $0x5e4] ss:$8 sps:$4 sm:$0xff]  }
 0x878   : > { %7627 = vmatpush1.bf16.msra.mxu1 %v17813_v53  ;;  %v17902_v53 = vld [vmem:[#allocation8 + $0x4d4] ss:$8 sps:$4 sm:$0xff]  }
 0x879   : > { %7628 = vmatprep.subr.bf16.mxu1 %v17818_v38  ;;  %v17900_v38 = vld [vmem:[#allocation8 + $0x4d0] ss:$8 sps:$4 sm:$0xff]  }
 0x87c   : > { %7629 = vmatpush2.bf16.msra.mxu1 %v17816_v6  ;;  %v17908_v6 = vld [vmem:[#allocation8 + $0x4c4] ss:$8 sps:$4 sm:$0xff]  }
 0x87d   : > { %7630 = vmatprep.subr.bf16.mxu1 %v17821_v44  ;;  %v17906_v44 = vld [vmem:[#allocation8 + $0x4c0] ss:$8 sps:$4 sm:$0xff]  }
 0x880   : > { %7631 = vmatpush2.bf16.msra.mxu1 %v17819_v22  ;;  %v17914_v22 = vld [vmem:[#allocation8 + $0x4b4] ss:$8 sps:$4 sm:$0xff]  }
 0x881   : > { %7632 = vmatprep.subr.bf16.mxu1 %v17824_v23  ;;  %v17912_v23 = vld [vmem:[#allocation8 + $0x4b0] ss:$8 sps:$4 sm:$0xff]  }
 0x884   : > { %7633 = vmatpush2.bf16.msra.mxu1 %v17822_v48  ;;  %v17920_v48 = vld [vmem:[#allocation8 + $0x4a4] ss:$8 sps:$4 sm:$0xff]  }
 0x885   : > { %7634 = vmatprep.subr.bf16.mxu1 %v17827_v56  ;;  %v17905_v56 = vld [vmem:[#allocation8 + $0x5d4] ss:$8 sps:$4 sm:$0xff]  }
 0x888   : > { %7635 = vmatpush2.bf16.msra.mxu1 %v17825_v55  ;;  %v17918_v55 = vld [vmem:[#allocation8 + $0x4a0] ss:$8 sps:$4 sm:$0xff]  }
 0x889   : > { %7636 = vmatprep.subr.bf16.mxu1 %v17830_v49  ;;  %v17903_v49 = vld [vmem:[#allocation8 + $0x5d0] ss:$8 sps:$4 sm:$0xff]  }
 0x88c   : > { %7637 = vmatpush2.bf16.msra.mxu1 %v17828_v9  ;;  %v17926_v9 = vld [vmem:[#allocation8 + $0x494] ss:$8 sps:$4 sm:$0xff]  }
 0x88d   : > { %7638 = vmatprep.subr.bf16.mxu1 %v17833_v51  ;;  %v17911_v51 = vld [vmem:[#allocation8 + $0x5c4] ss:$8 sps:$4 sm:$0xff]  }
 0x890   : > { %7639 = vmatpush2.bf16.msra.mxu1 %v17831_v60  ;;  %v17924_v60 = vld [vmem:[#allocation8 + $0x490] ss:$8 sps:$4 sm:$0xff]  }
 0x891   : > { %7640 = vmatprep.subr.bf16.mxu1 %v17836_v52  ;;  %v17909_v52 = vld [vmem:[#allocation8 + $0x5c0] ss:$8 sps:$4 sm:$0xff]  }
 0x894   : > { %7641 = vmatpush2.bf16.msra.mxu1 %v17834_v62  ;;  %v17932_v62 = vld [vmem:[#allocation8 + $0x484] ss:$8 sps:$4 sm:$0xff]  }
 0x895   : > { %7642 = vmatprep.subr.bf16.mxu1 %v17839_v40  ;;  %v17917_v40 = vld [vmem:[#allocation8 + $0x5b4] ss:$8 sps:$4 sm:$0xff]  }
 0x898   : > { %7643 = vmatpush2.bf16.msra.mxu1 %v17837_v36  ;;  %v17930_v36 = vld [vmem:[#allocation8 + $0x480] ss:$8 sps:$4 sm:$0xff]  }
 0x899   : > { %7730 = vmatprep.subr.bf16.mxu1 %v21191_v26  ;;  %v17842_v26 = vld [vmem:[#allocation8 + $0x474] ss:$8 sps:$4 sm:$0xff]  }
 0x89a   : > { %8168 = vmatprep.subr.bf16.mxu0 %v17842_v26  ;;  %v17915_v26 = vld [vmem:[#allocation8 + $0x5b0] ss:$8 sps:$4 sm:$0xff]  }
 0x89b   : > { %7645 = vmatmul.mubr.bf16.vlgmr.msra.gmra.mxu1 %v6560_v54  ;;  %v17849_v54 = vld [vmem:[#allocation8 + $0x560] ss:$8 sps:$4 sm:$0xff]  }
 0x89c   : > { %7654 = vmatprep.mubr.bf16.mxu1 %v6565_v47  ;;  %7731 = vmatpush1.bf16.msra.mxu1 %v21194_v33  ;;  %v17840_v33 = vld [vmem:[#allocation8 + $0x470] ss:$8 sps:$4 sm:$0xff]  }
 0x89d   : > { %7732 = vmatprep.subr.bf16.mxu1 %v21197_v57  ;;  %8169 = vmatpush1.bf16.msra.mxu0 %v17840_v33  ;;  %v17843_v57 = vld [vmem:[#allocation8 + $0x570] ss:$8 sps:$4 sm:$0xff]   ;;  %v17923_v33 = vld [vmem:[#allocation8 + $0x5a4] ss:$8 sps:$4 sm:$0xff]  }
 0x89e   : > { %v17864_v47 = vld [vmem:[#allocation8 + $0x430] ss:$8 sps:$4 sm:$0xff]  }
 0x8a0   : > { %7733 = vmatpush1.bf16.msra.mxu1 %v21167_v41  ;;  %v17848_v41 = vld [vmem:[#allocation8 + $0x464] ss:$8 sps:$4 sm:$0xff]  }
 0x8a1   : > { %7734 = vmatprep.subr.bf16.mxu1 %v21201_v15  ;;  %v17845_v15 = vld [vmem:[#allocation8 + $0x574] ss:$8 sps:$4 sm:$0xff]   ;;  %8170 = vmatprep.subr.bf16.mxu0 %v17848_v41  ;;  %v17921_v41 = vld [vmem:[#allocation8 + $0x5a0] ss:$8 sps:$4 sm:$0xff]  }
 0x8a2   : > { %8171 = vmatpush1.bf16.msra.mxu0 %v17846_v17  ;;  %v17935_v17 = vld [vmem:[#allocation8 + $0x584] ss:$8 sps:$4 sm:$0xff]  }
 0x8a3   : > { %7655 = vmatmul.mubr.bf16.gmra.mxu1 %v6564_v63  ;;  %8172 = vmatprep.subr.bf16.mxu0 %v17854_v25  ;;  %v17855_v63 = vld [vmem:[#allocation8 + $0x550] ss:$8 sps:$4 sm:$0xff]  }
 0x8a4   : > { %7735 = vmatpush1.bf16.msra.mxu1 %v21140_v14  ;;  %7754 = vmatprep.mubr.bf16.mxu1 %v21867_v0  ;;  %v17851_v14 = vld [vmem:[#allocation8 + $0x564] ss:$8 sps:$4 sm:$0xff]  }
 0x8a5   : > { %7736 = vmatprep.subr.bf16.mxu1 %v21205_v30  ;;  %v17852_v30 = vld [vmem:[#allocation8 + $0x450] ss:$8 sps:$4 sm:$0xff]  }
 0x8a6   : > { %8173 = vmatpush1.bf16.msra.mxu0 %v17852_v30 }
 0x8a8   : > { %7737 = vmatpush1.bf16.msra.mxu1 %v21126_v21  ;;  %v17860_v21 = vld [vmem:[#allocation8 + $0x444] ss:$8 sps:$4 sm:$0xff]  }
 0x8a9   : > { %8221 = vmatprep.subr.bf16.mxu1 %v17845_v15  ;;  %8174 = vmatprep.subr.bf16.mxu0 %v17860_v21  ;;  %v17927_v15 = vld [vmem:[#allocation8 + $0x590] ss:$8 sps:$4 sm:$0xff]  }
 0x8aa   : > { %8175 = vmatpush1.bf16.msra.mxu0 %v17858_v34 }
 0x8ab   : > { %15762 = vmatmul.mubr.msk.bf16.vlgmr.msra.gmra.mxu1 %vm6431_vm8, %v21958_v24  ;;  %8176 = vmatprep.subr.bf16.mxu0 %v17866_v37 }
 0x8ac   : > { %7764 = vmatprep.mubr.bf16.mxu1 %v21867_v0  ;;  %8222 = vmatpush1.bf16.msra.mxu1 %v17843_v57  ;;  %v17929_v57 = vld [vmem:[#allocation8 + $0x594] ss:$8 sps:$4 sm:$0xff]  }
 0x8ad   : > { %8223 = vmatprep.subr.bf16.mxu1 %v17851_v14  ;;  %v17933_v14 = vld [vmem:[#allocation8 + $0x580] ss:$8 sps:$4 sm:$0xff]  }
 0x8ae   : > { %8177 = vmatpush1.bf16.msra.mxu0 %v17864_v47 }
 0x8af   : > { %8178 = vmatprep.subr.bf16.mxu0 %v17872_v20 }
 0x8b0   : > { %8224 = vmatpush1.bf16.msra.mxu1 %v17849_v54 }
 0x8b1   : > { %8225 = vmatprep.subr.bf16.mxu1 %v17857_v39 }
 0x8b2   : > { %8179 = vmatpush1.bf16.msra.mxu0 %v17870_v12 }
 0x8b3   : > { %15763 = vmatmul.mubr.msk.bf16.gmra.mxu1 %vm6431_vm8, %v21959_v4  ;;  %8180 = vmatprep.subr.bf16.mxu0 %v17878_v11  ;;  %v17897_v4 = vld [vmem:[#allocation8 + $0x5e0] ss:$8 sps:$4 sm:$0xff]  }
 0x8b4   : > { %8226 = vmatpush1.bf16.msra.mxu1 %v17855_v63 }
 0x8b5   : > { %8227 = vmatprep.subr.bf16.mxu1 %v17863_v3 }
 0x8b6   : > { %8181 = vmatpush1.bf16.msra.mxu0 %v17876_v29 }
 0x8b7   : > { %8182 = vmatprep.subr.bf16.mxu0 %v17884_v1 }
 0x8b8   : > { %8228 = vmatpush1.bf16.msra.mxu1 %v17861_v27 }
 0x8b9   : > { %8229 = vmatprep.subr.bf16.mxu1 %v17869_v45 }
 0x8ba   : > { %8183 = vmatpush1.bf16.msra.mxu0 %v17882_v18 }
 0x8bb   : > { %8184 = vmatprep.subr.bf16.mxu0 %v17890_v58 }
 0x8bc   : > { %8230 = vmatpush1.bf16.msra.mxu1 %v17867_v35 }
 0x8bd   : > { %8231 = vmatprep.subr.bf16.mxu1 %v17875_v31 }
 0x8be   : > { %8185 = vmatpush2.bf16.msra.mxu0 %v17888_v50 }
 0x8bf   : > { %8186 = vmatprep.subr.bf16.mxu0 %v17896_v43 }
 0x8c0   : > { %8232 = vmatpush1.bf16.msra.mxu1 %v17873_v16 }
 0x8c1   : > { %8233 = vmatprep.subr.bf16.mxu1 %v17881_v8 }
 0x8c2   : > { %8187 = vmatpush2.bf16.msra.mxu0 %v17894_v13 }
 0x8c3   : > { %8188 = vmatprep.subr.bf16.mxu0 %v17902_v53 }
 0x8c4   : > { %8234 = vmatpush1.bf16.msra.mxu1 %v17879_v2 }
 0x8c5   : > { %8235 = vmatprep.subr.bf16.mxu1 %v17887_v19 }
 0x8c6   : > { %8189 = vmatpush2.bf16.msra.mxu0 %v17900_v38 }
 0x8c7   : > { %8190 = vmatprep.subr.bf16.mxu0 %v17908_v6 }
 0x8c8   : > { %8236 = vmatpush1.bf16.msra.mxu1 %v17885_v42 }
 0x8c9   : > { %8237 = vmatprep.subr.bf16.mxu1 %v17893_v10 }
 0x8ca   : > { %8191 = vmatpush2.bf16.msra.mxu0 %v17906_v44 }
 0x8cb   : > { %8192 = vmatprep.subr.bf16.mxu0 %v17914_v22 }
 0x8cc   : > { %8238 = vmatpush2.bf16.msra.mxu1 %v17891_v28 }
 0x8cd   : > { %8239 = vmatprep.subr.bf16.mxu1 %v17899_v5 }
 0x8ce   : > { %8193 = vmatpush2.bf16.msra.mxu0 %v17912_v23 }
 0x8cf   : > { %8194 = vmatprep.subr.bf16.mxu0 %v17920_v48 }
 0x8d0   : > { %8240 = vmatpush2.bf16.msra.mxu1 %v17897_v4 }
 0x8d1   : > { %8241 = vmatprep.subr.bf16.mxu1 %v17905_v56 }
 0x8d2   : > { %8195 = vmatpush2.bf16.msra.mxu0 %v17918_v55 }
 0x8d3   : > { %8196 = vmatprep.subr.bf16.mxu0 %v17926_v9 }
 0x8d4   : > { %8242 = vmatpush2.bf16.msra.mxu1 %v17903_v49 }
 0x8d5   : > { %8243 = vmatprep.subr.bf16.mxu1 %v17911_v51 }
 0x8d6   : > { %8197 = vmatpush2.bf16.msra.mxu0 %v17924_v60 }
 0x8d7   : > { %8198 = vmatprep.subr.bf16.mxu0 %v17932_v62 }
 0x8d8   : > { %8244 = vmatpush2.bf16.msra.mxu1 %v17909_v52 }
 0x8d9   : > { %8245 = vmatprep.subr.bf16.mxu1 %v17917_v40 }
 0x8da   : > { %8199 = vmatpush2.bf16.msra.mxu0 %v17930_v36 }
 0x8db   : > { %v7167_v30 = vpop.f32.mrf.mxu0 }
 0x8dc   : > { %8246 = vmatpush2.bf16.msra.mxu1 %v17915_v26 }
 0x8dd   : > { %8247 = vmatprep.subr.bf16.mxu1 %v17923_v33  ;;  %v7169_v25 = vpop.f32.mrf.mxu0 }
 0x8df   : > { %v7171_v21 = vpop.f32.mrf.mxu0 }
 0x8e0   : > { %8248 = vmatpush2.bf16.msra.mxu1 %v17921_v41 }
 0x8e1   : > { %8249 = vmatprep.subr.bf16.mxu1 %v17929_v57  ;;  %v7173_v54 = vpop.f32.mrf.mxu0 }
 0x8e3   : > { %v7177_v39 = vpop.f32.mrf.mxu0 }
 0x8e4   : > { %8250 = vmatpush2.bf16.msra.mxu1 %v17927_v15 }
 0x8e5   : > { %8251 = vmatprep.subr.bf16.mxu1 %v17935_v17  ;;  %v7179_v34 = vpop.f32.mrf.mxu0 }
 0x8e7   : > { %v7181_v37 = vpop.f32.mrf.mxu0 }
 0x8e8   : > { %8252 = vmatpush2.bf16.msra.mxu1 %v17933_v14 }
 0x8e9   : > { %v7183_v63 = vpop.f32.mrf.mxu0 }
 0x91b   : > { %v7220_v3 = vpop.f32.mrf.mxu1  ;;  %v7593_v47 = vpop.f32.mrf.mxu0 }
 0x91c   : > { %v7221_v20 = vadd.f32 %v7220_v3, %v7167_v30 }
 0x91d   : > { %v7222_v27 = vpop.f32.mrf.mxu1  ;;  %v7595_v45 = vpop.f32.mrf.mxu0 }
 0x91e   : > { %v7594_v12 = vadd.f32 %v7593_v47, %v7221_v20  ;;  %v7223_v11 = vadd.f32 %v7222_v27, %v7169_v25 }
 0x91f   : > { %v7224_v35 = vpop.f32.mrf.mxu1  ;;  %v7597_v31 = vpop.f32.mrf.mxu0 }
 0x920   : > { %v7596_v29 = vadd.f32 %v7595_v45, %v7223_v11  ;;  %v7225_v1 = vadd.f32 %v7224_v35, %v7171_v21 }
 0x921   : > { %v7226_v16 = vpop.f32.mrf.mxu1  ;;  %v7599_v8 = vpop.f32.mrf.mxu0 }
 0x922   : > { %v7598_v18 = vadd.f32 %v7597_v31, %v7225_v1  ;;  %v7227_v33 = vadd.f32 %v7226_v16, %v7173_v54 }
 0x923   : > { %v7230_v58 = vpop.f32.mrf.mxu1  ;;  %v7603_v2 = vpop.f32.mrf.mxu0 }
 0x924   : > { %v7231_v19 = vadd.f32 %v7230_v58, %v7177_v39  ;;  %v7600_v14 = vadd.f32 %v7599_v8, %v7227_v33 }
 0x925   : > { %v7232_v50 = vpop.f32.mrf.mxu1  ;;  %v7605_v43 = vpop.f32.mrf.mxu0 }
 0x926   : > { %v7604_v42 = vadd.f32 %v7603_v2, %v7231_v19  ;;  %v7233_v10 = vadd.f32 %v7232_v50, %v7179_v34 }
 0x927   : > { %v7234_v13 = vpop.f32.mrf.mxu1  ;;  %v7607_v28 = vpop.f32.mrf.mxu0 }
 0x928   : > { %v7606_v5 = vadd.f32 %v7605_v43, %v7233_v10  ;;  %v7235_v53 = vadd.f32 %v7234_v13, %v7181_v37  ;;  %v8282_v10 = vld [vmem:[#allocation10] sm:$0x3] }
 0x929   : > { %v7236_v4 = vpop.f32.mrf.mxu1  ;;  %v7609_v44 = vpop.f32.mrf.mxu0 }
 0x92a   : > { %v7608_v38 = vadd.f32 %v7607_v28, %v7235_v53  ;;  %v7237_v6 = vadd.f32 %v7236_v4, %v7183_v63  ;;  %v21960_v4 = vld [vmem:[#allocation70_spill] sm:$0xff] }
 0x92c   : > { %v7610_v22 = vadd.f32 %v7609_v44, %v7237_v6  ;;  %v7703_v23 = vpop.f32.mrf.mxu0 }
 0x92e   : > { %v7705_v48 = vpop.f32.mrf.mxu0 }
 0x930   : > { %v7707_v56 = vpop.f32.mrf.mxu0 }
 0x931   : > { %v7775_v55 = vpack.c.bf16 %v7707_v56, %v7703_v23  ;;  %v8291_v23 = vrot.slane %v8282_v10, %v21034_v7 }
 0x932   : > { %v7709_v49 = vpop.f32.mrf.mxu0 }
 0x933   : > { %v7776_v9 = vpack.c.bf16 %v7709_v49, %v7705_v48 }
 0x934   : > { %v7713_v51 = vpop.f32.mrf.mxu0 }
 0x935   : > { %8200 = vmatprep.mubr.bf16.mxu0 %v7776_v9 }
 0x936   : > { %v7715_v60 = vpop.f32.mrf.mxu0  ;;  %8201 = vmatmul.mubr.bf16.vlgmr.msra.gmra.mxu0 %v7775_v55 }
 0x938   : > { %v7717_v52 = vpop.f32.mrf.mxu0 }
 0x939   : > { %v7779_v62 = vpack.c.bf16 %v7717_v52, %v7713_v51 }
 0x93a   : > { %v7719_v40 = vpop.f32.mrf.mxu0 }
 0x93b   : > { %v7780_v36 = vpack.c.bf16 %v7719_v40, %v7715_v60 }
 0x93d   : > { %8210 = vmatprep.mubr.bf16.mxu0 %v7780_v36 }
 0x93e   : > { %8211 = vmatmul.mubr.bf16.gmra.mxu0 %v7779_v62 }
 0x93f   : > { %8358 = vmatprep.mubr.bf16.mxu0 %v21867_v0 }
 0x95b   : > { %v7646_v26 = vpop.f32.mrf.mxu1 }
 0x95c   : > { %v7647_v41 = vadd.f32 %v7646_v26, %v7594_v12 }
 0x95d   : > { %v7648_v57 = vpop.f32.mrf.mxu1 }
 0x95e   : > { %v7649_v15 = vadd.f32 %v7648_v57, %v7596_v29 }
 0x95f   : > { %v7650_v17 = vpop.f32.mrf.mxu1 }
 0x960   : > { %v7651_v30 = vadd.f32 %v7650_v17, %v7598_v18 }
 0x961   : > { %v7652_v25 = vpop.f32.mrf.mxu1 }
 0x962   : > { %v7653_v21 = vadd.f32 %v7652_v25, %v7600_v14 }
 0x963   : > { %v7656_v39 = vpop.f32.mrf.mxu1 }
 0x964   : > { %v7657_v34 = vadd.f32 %v7656_v39, %v7604_v42 }
 0x965   : > { %v7658_v37 = vpop.f32.mrf.mxu1 }
 0x966   : > { %v7659_v63 = vadd.f32 %v7658_v37, %v7606_v5 }
 0x967   : > { %v7660_v3 = vpop.f32.mrf.mxu1 }
 0x968   : > { %v21312_v47 = vadd.f32 %v7660_v3, %v7608_v38  ;;  %v8287_v38 = vrot.slane %v8282_v10, %v21960_v4  ;;  %v17986_v10 = vld [vmem:[#allocation11 + $0x74] ss:$8 sps:$4 sm:$0xff]  }
 0x969   : > { %v7662_v20 = vpop.f32.mrf.mxu1 }
 0x96a   : > { %v21314_v27 = vadd.f32 %v7662_v20, %v7610_v22 }
 0x96b   : > { %v7756_v45 = vpop.f32.mrf.mxu1 }
 0x96d   : > { %v7758_v54 = vpop.f32.mrf.mxu1 }
 0x96f   : > { %v7760_v12 = vpop.f32.mrf.mxu1 }
 0x970   : > { %v7777_v31 = vpack.c.bf16 %v7760_v12, %v7756_v45 }
 0x971   : > { %v7762_v11 = vpop.f32.mrf.mxu1 }
 0x972   : > { %v7778_v35 = vpack.c.bf16 %v7762_v11, %v7758_v54 }
 0x973   : > { %v7766_v29 = vpop.f32.mrf.mxu1 }
 0x974   : > { %8253 = vmatprep.mubr.bf16.mxu1 %v7778_v35 }
 0x975   : > { %v7768_v1 = vpop.f32.mrf.mxu1  ;;  %8254 = vmatmul.mubr.bf16.vlgmr.msra.gmra.mxu1 %v7777_v31 }
 0x977   : > { %v7770_v16 = vpop.f32.mrf.mxu1 }
 0x978   : > { %v7781_v58 = vpack.c.bf16 %v7770_v16, %v7766_v29 }
 0x979   : > { %v7772_v8 = vpop.f32.mrf.mxu1 }
 0x97a   : > { %v7782_v18 = vpack.c.bf16 %v7772_v8, %v7768_v1 }
 0x97c   : > { %8263 = vmatprep.mubr.bf16.mxu1 %v7782_v18  ;;  %v21961_v18 = vmov 65535  }
 0x97d   : > { %8264 = vmatmul.mubr.bf16.gmra.mxu1 %v7781_v58 }
 0x97e   : > { %8437 = vmatprep.mubr.bf16.mxu1 %v21867_v0 }
 0x9f6   : > { %v8202_v2 = vpop.f32.mrf.mxu0 }
 0x9f8   : > { %v8204_v19 = vpop.f32.mrf.mxu0 }
 0x9fa   : > { %v8206_v50 = vpop.f32.mrf.mxu0 }
 0x9fc   : > { %v8208_v43 = vpop.f32.mrf.mxu0 }
 0x9fe   : > { %v8212_v5 = vpop.f32.mrf.mxu0 }
 0xa00   : > { %v8214_v55 = vpop.f32.mrf.mxu0 }
 0xa02   : > { %v8216_v33 = vpop.f32.mrf.mxu0 }
 0xa04   : > { %v8218_v45 = vpop.f32.mrf.mxu0 }
 0xa35   : > { %v8255_v42 = vpop.f32.mrf.mxu1 }
 0xa36   : > { %v8256_v13 = vadd.f32 %v8255_v42, %v8202_v2 }
 0xa37   : > { %v8257_v28 = vpop.f32.mrf.mxu1 }
 0xa38   : > { %v8274_v53 = vadd.f32 %v8256_v13, %v7647_v41  ;;  %v8258_v6 = vadd.f32 %v8257_v28, %v8204_v19  ;;  %v17936_v13 = vld [vmem:[#allocation11 + $0x170] ss:$8 sps:$4 sm:$0xff]  }
 0xa39   : > { %v8259_v44 = vpop.f32.mrf.mxu1  ;;  %v17984_v28 = vld [vmem:[#allocation11 + $0x70] ss:$8 sps:$4 sm:$0xff]  }
 0xa3a   : > { %v8275_v22 = vadd.f32 %v8258_v6, %v7649_v15  ;;  %v8260_v48 = vadd.f32 %v8259_v44, %v8206_v50  ;;  %v8294_v49 = vadd.f32 %v8287_v38, %v8274_v53  ;;  %v17989_v53 = vld [vmem:[#allocation11 + $0x64] ss:$8 sps:$4 sm:$0xff]   ;;  %v17987_v6 = vld [vmem:[#allocation11 + $0x60] ss:$8 sps:$4 sm:$0xff]   ;;  %v17944_v44 = vld [vmem:[#allocation11 + $0x154] ss:$8 sps:$4 sm:$0xff]  }
 0xa3b   : > { %v8261_v56 = vpop.f32.mrf.mxu1 }
 0xa3c   : > { %v8276_v9 = vadd.f32 %v8260_v48, %v7651_v30  ;;  %v8262_v51 = vadd.f32 %v8261_v56, %v8208_v43  ;;  %v8295_v52 = vadd.f32 %v8291_v23, %v8275_v22  ;;  %v8302_v41 = vmax.f32 %v8294_v49, 0.0  ;;  %v17992_v22 = vld [vmem:[#allocation11 + $0x54] ss:$8 sps:$4 sm:$0xff]   ;;  %v17990_v48 = vld [vmem:[#allocation11 + $0x50] ss:$8 sps:$4 sm:$0xff]  }
 0xa3d   : > { %v8265_v60 = vpop.f32.mrf.mxu1  ;;  %v17947_v56 = vld [vmem:[#allocation11 + $0x144] ss:$8 sps:$4 sm:$0xff]   ;;  %v17950_v49 = vld [vmem:[#allocation11 + $0x134] ss:$8 sps:$4 sm:$0xff]  }
 0xa3e   : > { %v8296_v62 = vadd.f32 %v8287_v38, %v8276_v9  ;;  %v8277_v40 = vadd.f32 %v8262_v51, %v7653_v21  ;;  %v8266_v36 = vadd.f32 %v8265_v60, %v8212_v5  ;;  %v8303_v39 = vmax.f32 %v8295_v52, 0.0  ;;  %v17941_v5 = vld [vmem:[#allocation11 + $0x164] ss:$8 sps:$4 sm:$0xff]   ;;  %v17998_v9 = vld [vmem:[#allocation11 + $0x34] ss:$8 sps:$4 sm:$0xff]  }
 0xa3f   : > { %v8267_v26 = vpop.f32.mrf.mxu1  ;;  %v17948_v51 = vld [vmem:[#allocation11 + $0x130] ss:$8 sps:$4 sm:$0xff]   ;;  %v17953_v52 = vld [vmem:[#allocation11 + $0x124] ss:$8 sps:$4 sm:$0xff]  }
 0xa40   : > { %v8304_v57 = vmax.f32 %v8296_v62, 0.0  ;;  %v8297_v17 = vadd.f32 %v8291_v23, %v8277_v40  ;;  %v8268_v14 = vadd.f32 %v8267_v26, %v8214_v55  ;;  %v8278_v15 = vadd.f32 %v8266_v36, %v7657_v34  ;;  %v17995_v55 = vld [vmem:[#allocation11 + $0x44] ss:$8 sps:$4 sm:$0xff]   ;;  %v17996_v60 = vld [vmem:[#allocation11 + $0x30] ss:$8 sps:$4 sm:$0xff]  }
 0xa41   : > { %v8269_v25 = vpop.f32.mrf.mxu1  ;;  %v18001_v62 = vld [vmem:[#allocation11 + $0x24] ss:$8 sps:$4 sm:$0xff]   ;;  %v17951_v40 = vld [vmem:[#allocation11 + $0x120] ss:$8 sps:$4 sm:$0xff]   ;;  %v17956_v26 = vld [vmem:[#allocation11 + $0x114] ss:$8 sps:$4 sm:$0xff]  }
 0xa42   : > { %v21319_v37 = vpack.c.bf16 %v8304_v57, %v8302_v41  ;;  %v8305_v3 = vmax.f32 %v8297_v17, 0.0  ;;  %v8279_v20 = vadd.f32 %v8268_v14, %v7659_v63  ;;  %v8270_v30 = vadd.f32 %v8269_v25, %v8216_v33  ;;  %v17999_v36 = vld [vmem:[#allocation11 + $0x20] ss:$8 sps:$4 sm:$0xff]   ;;  %v18004_v33 = vld [vmem:[#allocation11 + $0x14] ss:$8 sps:$4 sm:$0xff]  }
 0xa43   : > { %v8271_v54 = vpop.f32.mrf.mxu1  ;;  %v8298_v21 = vadd.f32 %v8287_v38, %v8278_v15  ;;  %v8318_v63 = vsel %vm6437_vm7, 4294967295, %v21961_v18  ;;  %v17954_v41 = vld [vmem:[#allocation11 + $0x110] ss:$8 sps:$4 sm:$0xff]   ;;  %v17959_v17 = vld [vmem:[#allocation11 + $0x104] ss:$8 sps:$4 sm:$0xff]  }
 0xa44   : > { %v8272_v12 = vadd.f32 %v8271_v54, %v8218_v45  ;;  %v21321_v11 = vpack.c.bf16 %v8305_v3, %v8303_v39  ;;  %v8280_v35 = vadd.f32 %v8270_v30, %v21312_v47  ;;  %v8299_v31 = vadd.f32 %v8291_v23, %v8279_v20  ;;  %v18002_v57 = vld [vmem:[#allocation11 + $0x10] ss:$8 sps:$4 sm:$0xff]   ;;  %v18007_v14 = vld [vmem:[#allocation11 + $0x4] ss:$8 sps:$4 sm:$0xff]   ;;  %v17957_v15 = vld [vmem:[#allocation11 + $0x100] ss:$8 sps:$4 sm:$0xff]  }
 0xa45   : > { %v8306_v16 = vmax.f32 %v8298_v21, 0.0  ;;  %v8319_v43 = vsel %vm8317_vm9, %v8318_v63, 0  ;;  %v18005_v25 = vld [vmem:[#allocation11] ss:$8 sps:$4 sm:$0xff]   ;;  %v17962_v39 = vld [vmem:[#allocation11 + $0x1f4] ss:$8 sps:$4 sm:$0xff]  }
 0xa46   : > { %v8281_v29 = vadd.f32 %v8272_v12, %v21314_v27  ;;  %v8300_v1 = vadd.f32 %v8287_v38, %v8280_v35  ;;  %v8307_v58 = vmax.f32 %v8299_v31, 0.0  ;;  %v17938_v27 = vld [vmem:[#allocation11 + $0x174] ss:$8 sps:$4 sm:$0xff]   ;;  %v17939_v38 = vld [vmem:[#allocation11 + $0x160] ss:$8 sps:$4 sm:$0xff]  }
 0xa47   : > { %v18010_v3 = vld [vmem:[#allocation11 + $0xf4] ss:$8 sps:$4 sm:$0xff]   ;;  %v17960_v20 = vld [vmem:[#allocation11 + $0x1f0] ss:$8 sps:$4 sm:$0xff]   ;;  %v17965_v45 = vld [vmem:[#allocation11 + $0x1e4] ss:$8 sps:$4 sm:$0xff]  }
 0xa48   : > { %v8301_v34 = vadd.f32 %v8291_v23, %v8281_v29  ;;  %v8308_v8 = vmax.f32 %v8300_v1, 0.0  ;;  %v17942_v23 = vld [vmem:[#allocation11 + $0x150] ss:$8 sps:$4 sm:$0xff]   ;;  %v18013_v54 = vld [vmem:[#allocation11 + $0xe4] ss:$8 sps:$4 sm:$0xff]  }
 0xa49   : > { %v18008_v30 = vld [vmem:[#allocation11 + $0xf0] ss:$8 sps:$4 sm:$0xff]   ;;  %v17963_v12 = vld [vmem:[#allocation11 + $0x1e0] ss:$8 sps:$4 sm:$0xff]   ;;  %v17968_v35 = vld [vmem:[#allocation11 + $0x1d4] ss:$8 sps:$4 sm:$0xff]  }
 0xa4a   : > { %v8309_v2 = vmax.f32 %v8301_v34, 0.0  ;;  %v8312_v19 = vpack.c.bf16 %v8308_v8, %v8306_v16  ;;  %v18011_v21 = vld [vmem:[#allocation11 + $0xe0] ss:$8 sps:$4 sm:$0xff]   ;;  %v17966_v31 = vld [vmem:[#allocation11 + $0x1d0] ss:$8 sps:$4 sm:$0xff]  }
 0xa4b   : > { %v17971_v29 = vld [vmem:[#allocation11 + $0x1c4] ss:$8 sps:$4 sm:$0xff]   ;;  %v17969_v1 = vld [vmem:[#allocation11 + $0x1c0] ss:$8 sps:$4 sm:$0xff]   ;;  %v17974_v34 = vld [vmem:[#allocation11 + $0x1b4] ss:$8 sps:$4 sm:$0xff]  }
 0xa4c   : > { %v8313_v50 = vpack.c.bf16 %v8309_v2, %v8307_v58  ;;  %v21330_v47 = vand.u32 %v8319_v43, %v8312_v19  ;;  %v17972_v16 = vld [vmem:[#allocation11 + $0x1b0] ss:$8 sps:$4 sm:$0xff]   ;;  %v17977_v8 = vld [vmem:[#allocation11 + $0x1a4] ss:$8 sps:$4 sm:$0xff]   ;;  %v17975_v63 = vld [vmem:[#allocation11 + $0x1a0] ss:$8 sps:$4 sm:$0xff]  }
 0xa4d   : > { %v18016_v58 = vld [vmem:[#allocation11 + $0xd4] ss:$8 sps:$4 sm:$0xff]   ;;  %v18014_v19 = vld [vmem:[#allocation11 + $0xd0] ss:$8 sps:$4 sm:$0xff]  }
 0xa4e   : > { %v21328_v42 = vand.u32 %v8319_v43, %v8313_v50  ;;  %v17980_v2 = vld [vmem:[#allocation11 + $0x194] ss:$8 sps:$4 sm:$0xff]   ;;  %v17978_v50 = vld [vmem:[#allocation11 + $0x190] ss:$8 sps:$4 sm:$0xff]   ;;  %v18019_v43 = vld [vmem:[#allocation11 + $0xc4] ss:$8 sps:$4 sm:$0xff]  }
 0xa50   : > { %8338 = vmatprep.subr.bf16.mxu0 %v21328_v42  ;;  %8417 = vmatprep.subr.bf16.mxu1 %v21328_v42 }
 0xa51   : > { %8339 = vmatpush1.bf16.msra.mxu0 %v21330_v47  ;;  %8418 = vmatpush1.bf16.msra.mxu1 %v21330_v47 }
 0xa52   : > { %8340 = vmatprep.subr.bf16.mxu0 %v21321_v11  ;;  %8419 = vmatprep.subr.bf16.mxu1 %v21321_v11 }
 0xa55   : > { %8341 = vmatpush1.bf16.msra.mxu0 %v21319_v37  ;;  %8420 = vmatpush1.bf16.msra.mxu1 %v21319_v37 }
 0xa56   : > { %8643 = vmatprep.subr.bf16.mxu0 %v17938_v27  ;;  %8846 = vmatprep.subr.bf16.mxu1 %v17986_v10  ;;  %v17983_v27 = vld [vmem:[#allocation11 + $0x184] ss:$8 sps:$4 sm:$0xff]   ;;  %v18017_v10 = vld [vmem:[#allocation11 + $0xc0] ss:$8 sps:$4 sm:$0xff]  }
 0xa58   : > { %15829 = vmatmul.mubr.msk.bf16.vlgmr.msra.gmra.mxu1 %vm8314_vm10, %v21929_v59  ;;  %15828 = vmatmul.mubr.msk.bf16.vlgmr.msra.gmra.mxu0 %vm8314_vm10, %v21927_v46  ;;  %v17945_v59 = vld [vmem:[#allocation11 + $0x140] ss:$8 sps:$4 sm:$0xff]  }
 0xa59   : > { %8644 = vmatpush1.bf16.msra.mxu0 %v17936_v13  ;;  %8847 = vmatpush1.bf16.msra.mxu1 %v17984_v28  ;;  %v17993_v46 = vld [vmem:[#allocation11 + $0x40] ss:$8 sps:$4 sm:$0xff]   ;;  %v18022_v28 = vld [vmem:[#allocation11 + $0xb4] ss:$8 sps:$4 sm:$0xff]  }
 0xa5a   : > { %8645 = vmatprep.subr.bf16.mxu0 %v17941_v5  ;;  %8848 = vmatprep.subr.bf16.mxu1 %v17989_v53  ;;  %v17981_v13 = vld [vmem:[#allocation11 + $0x180] ss:$8 sps:$4 sm:$0xff]   ;;  %v18020_v5 = vld [vmem:[#allocation11 + $0xb0] ss:$8 sps:$4 sm:$0xff]   ;;  %v18025_v53 = vld [vmem:[#allocation11 + $0xa4] ss:$8 sps:$4 sm:$0xff]  }
 0xa5d   : > { %8646 = vmatpush1.bf16.msra.mxu0 %v17939_v38  ;;  %8849 = vmatpush1.bf16.msra.mxu1 %v17987_v6  ;;  %v18023_v38 = vld [vmem:[#allocation11 + $0xa0] ss:$8 sps:$4 sm:$0xff]   ;;  %v18028_v6 = vld [vmem:[#allocation11 + $0x94] ss:$8 sps:$4 sm:$0xff]  }
 0xa5e   : > { %8647 = vmatprep.subr.bf16.mxu0 %v17944_v44  ;;  %8850 = vmatprep.subr.bf16.mxu1 %v17992_v22  ;;  %v18026_v44 = vld [vmem:[#allocation11 + $0x90] ss:$8 sps:$4 sm:$0xff]   ;;  %v18031_v22 = vld [vmem:[#allocation11 + $0x84] ss:$8 sps:$4 sm:$0xff]  }
 0xa61   : > { %8648 = vmatpush1.bf16.msra.mxu0 %v17942_v23  ;;  %8851 = vmatpush1.bf16.msra.mxu1 %v17990_v48  ;;  %v18029_v23 = vld [vmem:[#allocation11 + $0x80] ss:$8 sps:$4 sm:$0xff]   ;;  %v18034_v48 = vld [vmem:[#allocation11 + $0x274] ss:$8 sps:$4 sm:$0xff]  }
 0xa62   : > { %8649 = vmatprep.subr.bf16.mxu0 %v17947_v56  ;;  %8852 = vmatprep.subr.bf16.mxu1 %v17995_v55 }
 0xa65   : > { %8650 = vmatpush1.bf16.msra.mxu0 %v17945_v59  ;;  %8853 = vmatpush1.bf16.msra.mxu1 %v17993_v46 }
 0xa66   : > { %8651 = vmatprep.subr.bf16.mxu0 %v17950_v49  ;;  %8854 = vmatprep.subr.bf16.mxu1 %v17998_v9 }
 0xa69   : > { %8652 = vmatpush1.bf16.msra.mxu0 %v17948_v51  ;;  %8855 = vmatpush1.bf16.msra.mxu1 %v17996_v60 }
 0xa6a   : > { %8653 = vmatprep.subr.bf16.mxu0 %v17953_v52  ;;  %8856 = vmatprep.subr.bf16.mxu1 %v18001_v62 }
 0xa6d   : > { %8654 = vmatpush1.bf16.msra.mxu0 %v17951_v40  ;;  %8857 = vmatpush1.bf16.msra.mxu1 %v17999_v36  ;;  %v18032_v36 = vld [vmem:[#allocation11 + $0x270] ss:$8 sps:$4 sm:$0xff]  }
 0xa6e   : > { %8655 = vmatprep.subr.bf16.mxu0 %v17956_v26  ;;  %8858 = vmatprep.subr.bf16.mxu1 %v18004_v33  ;;  %v18037_v26 = vld [vmem:[#allocation11 + $0x264] ss:$8 sps:$4 sm:$0xff]   ;;  %v18035_v33 = vld [vmem:[#allocation11 + $0x260] ss:$8 sps:$4 sm:$0xff]  }
 0xa71   : > { %8656 = vmatpush1.bf16.msra.mxu0 %v17954_v41  ;;  %8859 = vmatpush1.bf16.msra.mxu1 %v18002_v57  ;;  %v18040_v41 = vld [vmem:[#allocation11 + $0x254] ss:$8 sps:$4 sm:$0xff]   ;;  %v18038_v57 = vld [vmem:[#allocation11 + $0x250] ss:$8 sps:$4 sm:$0xff]  }
 0xa72   : > { %8657 = vmatprep.subr.bf16.mxu0 %v17959_v17  ;;  %8860 = vmatprep.subr.bf16.mxu1 %v18007_v14  ;;  %v18043_v17 = vld [vmem:[#allocation11 + $0x244] ss:$8 sps:$4 sm:$0xff]   ;;  %v18046_v14 = vld [vmem:[#allocation11 + $0x234] ss:$8 sps:$4 sm:$0xff]  }
 0xa75   : > { %8658 = vmatpush1.bf16.msra.mxu0 %v17957_v15  ;;  %8861 = vmatpush1.bf16.msra.mxu1 %v18005_v25  ;;  %v18049_v15 = vld [vmem:[#allocation11 + $0x224] ss:$8 sps:$4 sm:$0xff]   ;;  %v18047_v25 = vld [vmem:[#allocation11 + $0x220] ss:$8 sps:$4 sm:$0xff]  }
 0xa76   : > { %8659 = vmatprep.subr.bf16.mxu0 %v17962_v39  ;;  %8862 = vmatprep.subr.bf16.mxu1 %v18010_v3  ;;  %v18050_v39 = vld [vmem:[#allocation11 + $0x210] ss:$8 sps:$4 sm:$0xff]   ;;  %v18055_v3 = vld [vmem:[#allocation11 + $0x204] ss:$8 sps:$4 sm:$0xff]  }
 0xa79   : > { %8660 = vmatpush2.bf16.msra.mxu0 %v17960_v20  ;;  %8863 = vmatpush2.bf16.msra.mxu1 %v18008_v30  ;;  %v18058_v20 = vld [vmem:[#allocation11 + $0x2f4] ss:$8 sps:$4 sm:$0xff]   ;;  %v18056_v30 = vld [vmem:[#allocation11 + $0x2f0] ss:$8 sps:$4 sm:$0xff]  }
 0xa7a   : > { %8661 = vmatprep.subr.bf16.mxu0 %v17965_v45  ;;  %8864 = vmatprep.subr.bf16.mxu1 %v18013_v54  ;;  %v18061_v45 = vld [vmem:[#allocation11 + $0x2e4] ss:$8 sps:$4 sm:$0xff]   ;;  %v18059_v54 = vld [vmem:[#allocation11 + $0x2e0] ss:$8 sps:$4 sm:$0xff]  }
 0xa7d   : > { %8662 = vmatpush2.bf16.msra.mxu0 %v17963_v12  ;;  %8865 = vmatpush2.bf16.msra.mxu1 %v18011_v21  ;;  %v18064_v12 = vld [vmem:[#allocation11 + $0x2d4] ss:$8 sps:$4 sm:$0xff]   ;;  %v18062_v21 = vld [vmem:[#allocation11 + $0x2d0] ss:$8 sps:$4 sm:$0xff]  }
 0xa7e   : > { %8663 = vmatprep.subr.bf16.mxu0 %v17968_v35  ;;  %8866 = vmatprep.subr.bf16.mxu1 %v18016_v58  ;;  %v18067_v35 = vld [vmem:[#allocation11 + $0x2c4] ss:$8 sps:$4 sm:$0xff]  }
 0xa7f   : > { %v18079_v58 = vld [vmem:[#allocation11 + $0x284] ss:$8 sps:$4 sm:$0xff]  }
 0xa81   : > { %8664 = vmatpush2.bf16.msra.mxu0 %v17966_v31  ;;  %8867 = vmatpush2.bf16.msra.mxu1 %v18014_v19  ;;  %v18065_v31 = vld [vmem:[#allocation11 + $0x2c0] ss:$8 sps:$4 sm:$0xff]  }
 0xa82   : > { %8665 = vmatprep.subr.bf16.mxu0 %v17971_v29  ;;  %8868 = vmatprep.subr.bf16.mxu1 %v18019_v43  ;;  %v18070_v29 = vld [vmem:[#allocation11 + $0x2b4] ss:$8 sps:$4 sm:$0xff]  }
 0xa85   : > { %8666 = vmatpush2.bf16.msra.mxu0 %v17969_v1  ;;  %8869 = vmatpush2.bf16.msra.mxu1 %v18017_v10  ;;  %v18068_v1 = vld [vmem:[#allocation11 + $0x2b0] ss:$8 sps:$4 sm:$0xff]  }
 0xa86   : > { %8667 = vmatprep.subr.bf16.mxu0 %v17974_v34  ;;  %8870 = vmatprep.subr.bf16.mxu1 %v18022_v28  ;;  %v18073_v34 = vld [vmem:[#allocation11 + $0x2a4] ss:$8 sps:$4 sm:$0xff]  }
 0xa89   : > { %8668 = vmatpush2.bf16.msra.mxu0 %v17972_v16  ;;  %8871 = vmatpush2.bf16.msra.mxu1 %v18020_v5  ;;  %v18071_v16 = vld [vmem:[#allocation11 + $0x2a0] ss:$8 sps:$4 sm:$0xff]  }
 0xa8a   : > { %8669 = vmatprep.subr.bf16.mxu0 %v17977_v8  ;;  %8872 = vmatprep.subr.bf16.mxu1 %v18025_v53  ;;  %v18076_v8 = vld [vmem:[#allocation11 + $0x294] ss:$8 sps:$4 sm:$0xff]  }
 0xa8d   : > { %8670 = vmatpush2.bf16.msra.mxu0 %v17975_v63  ;;  %8873 = vmatpush2.bf16.msra.mxu1 %v18023_v38  ;;  %v18074_v63 = vld [vmem:[#allocation11 + $0x290] ss:$8 sps:$4 sm:$0xff]  }
 0xa8e   : > { %8671 = vmatprep.subr.bf16.mxu0 %v17980_v2  ;;  %8874 = vmatprep.subr.bf16.mxu1 %v18028_v6  ;;  %v18077_v2 = vld [vmem:[#allocation11 + $0x280] ss:$8 sps:$4 sm:$0xff]  }
 0xa8f   : > { %v18083_v6 = vld [vmem:[#allocation14 + $0x2e8] ss:$16 sps:$4 sm:$0xff]  }
 0xa91   : > { %8672 = vmatpush2.bf16.msra.mxu0 %v17978_v50  ;;  %8875 = vmatpush2.bf16.msra.mxu1 %v18026_v44  ;;  %v18085_v44 = vld [vmem:[#allocation14 + $0x2ec] ss:$16 sps:$4 sm:$0xff]  }
 0xa92   : > { %8673 = vmatprep.subr.bf16.mxu0 %v17983_v27  ;;  %8876 = vmatprep.subr.bf16.mxu1 %v18031_v22  ;;  %v18091_v22 = vld [vmem:[#allocation14 + $0x2cc] ss:$16 sps:$4 sm:$0xff]  }
 0xa95   : > { %8674 = vmatpush2.bf16.msra.mxu0 %v17981_v13  ;;  %8877 = vmatpush2.bf16.msra.mxu1 %v18029_v23  ;;  %v18089_v23 = vld [vmem:[#allocation14 + $0x2c8] ss:$16 sps:$4 sm:$0xff]  }
 0xa96   : > { %8903 = vmatprep.subr.bf16.mxu0 %v21328_v42  ;;  %9129 = vmatprep.subr.bf16.mxu1 %v18034_v48  ;;  %v18097_v48 = vld [vmem:[#allocation14 + $0x2ac] ss:$16 sps:$4 sm:$0xff]  }
 0xb18   : > { %v8439_v56 = vpop.f32.mrf.mxu1  ;;  %v8360_v55 = vpop.f32.mrf.mxu0 }
 0xb1a   : > { %v8441_v59 = vpop.f32.mrf.mxu1  ;;  %v8362_v46 = vpop.f32.mrf.mxu0 }
 0xb1c   : > { %v8443_v49 = vpop.f32.mrf.mxu1  ;;  %v8364_v9 = vpop.f32.mrf.mxu0 }
 0xb1d   : > { %v8369_v51 = vpack.c.bf16 %v8364_v9, %v8360_v55  ;;  %v8448_v40 = vpack.c.bf16 %v8443_v49, %v8439_v56  ;;  %v18095_v56 = vld [vmem:[#allocation14 + $0x2a8] ss:$16 sps:$4 sm:$0xff]   ;;  %v18103_v55 = vld [vmem:[#allocation14 + $0x28c] ss:$16 sps:$4 sm:$0xff]  }
 0xb1e   : > { %v8445_v42 = vpop.f32.mrf.mxu1  ;;  %v8366_v60 = vpop.f32.mrf.mxu0  ;;  %v18107_v49 = vld [vmem:[#allocation14 + $0x268] ss:$16 sps:$4 sm:$0xff]   ;;  %v18115_v9 = vld [vmem:[#allocation14 + $0x24c] ss:$16 sps:$4 sm:$0xff]  }
 0xb1f   : > { %v8449_v52 = vpack.c.bf16 %v8445_v42, %v8441_v59  ;;  %v8370_v62 = vpack.c.bf16 %v8366_v60, %v8362_v46  ;;  %v18101_v59 = vld [vmem:[#allocation14 + $0x288] ss:$16 sps:$4 sm:$0xff]   ;;  %v18109_v46 = vld [vmem:[#allocation14 + $0x26c] ss:$16 sps:$4 sm:$0xff]  }
 0xb20   : > { %v18113_v42 = vld [vmem:[#allocation14 + $0x248] ss:$16 sps:$4 sm:$0xff]  }
 0xb21   : > { %8675 = vmatprep.mubr.bf16.mxu0 %v8449_v52  ;;  %8878 = vmatprep.mubr.bf16.mxu1 %v8370_v62  ;;  %v18119_v60 = vld [vmem:[#allocation14 + $0x228] ss:$16 sps:$4 sm:$0xff]   ;;  %v18127_v52 = vld [vmem:[#allocation14 + $0x20c] ss:$16 sps:$4 sm:$0xff]  }
 0xb22   : > { %8676 = vmatmul.mubr.bf16.vlgmr.msra.gmra.mxu0 %v8448_v40  ;;  %8879 = vmatmul.mubr.bf16.vlgmr.msra.gmra.mxu1 %v8369_v51  ;;  %v18121_v51 = vld [vmem:[#allocation14 + $0x22c] ss:$16 sps:$4 sm:$0xff]   ;;  %v18125_v62 = vld [vmem:[#allocation14 + $0x208] ss:$16 sps:$4 sm:$0xff]  }
 0xb23   : > { %8904 = vmatpush1.bf16.msra.mxu0 %v21330_v47  ;;  %8923 = vmatprep.mubr.bf16.mxu0 %v21867_v0  ;;  %v18041_v47 = vld [vmem:[#allocation11 + $0x240] ss:$8 sps:$4 sm:$0xff]  }
 0xb24   : > { %8905 = vmatprep.subr.bf16.mxu0 %v21321_v11  ;;  %9130 = vmatpush1.bf16.msra.mxu1 %v18032_v36  ;;  %v18044_v11 = vld [vmem:[#allocation11 + $0x230] ss:$8 sps:$4 sm:$0xff]  }
 0xb25   : > { %9131 = vmatprep.subr.bf16.mxu1 %v18037_v26  ;;  %v18133_v40 = vld [vmem:[#allocation14 + $0x3ec] ss:$16 sps:$4 sm:$0xff]   ;;  %v18131_v36 = vld [vmem:[#allocation14 + $0x3e8] ss:$16 sps:$4 sm:$0xff]  }
 0xb26   : > { %v18139_v26 = vld [vmem:[#allocation14 + $0x3cc] ss:$16 sps:$4 sm:$0xff]  }
 0xb27   : > { %8906 = vmatpush1.bf16.msra.mxu0 %v21319_v37  ;;  %v18052_v37 = vld [vmem:[#allocation11 + $0x214] ss:$8 sps:$4 sm:$0xff]  }
 0xb28   : > { %9132 = vmatpush1.bf16.msra.mxu1 %v18035_v33  ;;  %v18137_v33 = vld [vmem:[#allocation14 + $0x3c8] ss:$16 sps:$4 sm:$0xff]  }
 0xb29   : > { %9133 = vmatprep.subr.bf16.mxu1 %v18040_v41  ;;  %v18145_v41 = vld [vmem:[#allocation14 + $0x3ac] ss:$16 sps:$4 sm:$0xff]  }
 0xb2a   : > { %15894 = vmatmul.mubr.msk.bf16.vlgmr.msra.gmra.mxu0 %vm8314_vm10, %v21958_v24  ;;  %v18053_v24 = vld [vmem:[#allocation11 + $0x200] ss:$8 sps:$4 sm:$0xff]  }
 0xb2b   : > { %9241 = vmatprep.mubr.bf16.mxu0 %v21867_v0 }
 0xb2c   : > { %9134 = vmatpush1.bf16.msra.mxu1 %v18038_v57  ;;  %v18143_v57 = vld [vmem:[#allocation14 + $0x3a8] ss:$16 sps:$4 sm:$0xff]  }
 0xb2d   : > { %9135 = vmatprep.subr.bf16.mxu1 %v18043_v17  ;;  %v18151_v17 = vld [vmem:[#allocation14 + $0x38c] ss:$16 sps:$4 sm:$0xff]  }
 0xb30   : > { %9136 = vmatpush1.bf16.msra.mxu1 %v18041_v47  ;;  %v18149_v47 = vld [vmem:[#allocation14 + $0x388] ss:$16 sps:$4 sm:$0xff]  }
 0xb31   : > { %9137 = vmatprep.subr.bf16.mxu1 %v18046_v14  ;;  %v18157_v14 = vld [vmem:[#allocation14 + $0x36c] ss:$16 sps:$4 sm:$0xff]  }
 0xb34   : > { %9138 = vmatpush1.bf16.msra.mxu1 %v18044_v11  ;;  %v18155_v11 = vld [vmem:[#allocation14 + $0x368] ss:$16 sps:$4 sm:$0xff]  }
 0xb35   : > { %9139 = vmatprep.subr.bf16.mxu1 %v18049_v15 }
 0xb38   : > { %9140 = vmatpush1.bf16.msra.mxu1 %v18047_v25 }
 0xb39   : > { %9141 = vmatprep.subr.bf16.mxu1 %v18052_v37 }
 0xb3c   : > { %9142 = vmatpush1.bf16.msra.mxu1 %v18050_v39 }
 0xb3d   : > { %9143 = vmatprep.subr.bf16.mxu1 %v18055_v3  ;;  %v9176_v3 = vld [vmem:[#allocation13] sm:$0x3] }
 0xb40   : > { %9144 = vmatpush1.bf16.msra.mxu1 %v18053_v24 }
 0xb41   : > { %9145 = vmatprep.subr.bf16.mxu1 %v18058_v20 }
 0xb44   : > { %9146 = vmatpush2.bf16.msra.mxu1 %v18056_v30 }
 0xb45   : > { %9147 = vmatprep.subr.bf16.mxu1 %v18061_v45 }
 0xb48   : > { %9148 = vmatpush2.bf16.msra.mxu1 %v18059_v54  ;;  %v9181_v54 = vrot.slane %v9176_v3, %v21960_v4 }
 0xb49   : > { %9149 = vmatprep.subr.bf16.mxu1 %v18064_v12 }
 0xb4c   : > { %9150 = vmatpush2.bf16.msra.mxu1 %v18062_v21 }
 0xb4d   : > { %9151 = vmatprep.subr.bf16.mxu1 %v18067_v35 }
 0xb50   : > { %9152 = vmatpush2.bf16.msra.mxu1 %v18065_v31  ;;  %v9185_v31 = vrot.slane %v9176_v3, %v21034_v7  ;;  %v18158_v3 = vld [vmem:[#allocation14 + $0x340] ss:$16 sps:$4 sm:$0xff]  }
 0xb51   : > { %9153 = vmatprep.subr.bf16.mxu1 %v18070_v29 }
 0xb54   : > { %9154 = vmatpush2.bf16.msra.mxu1 %v18068_v1 }
 0xb55   : > { %9155 = vmatprep.subr.bf16.mxu1 %v18073_v34 }
 0xb58   : > { %9156 = vmatpush2.bf16.msra.mxu1 %v18071_v16 }
 0xb59   : > { %9157 = vmatprep.subr.bf16.mxu1 %v18076_v8 }
 0xb5c   : > { %9158 = vmatpush2.bf16.msra.mxu1 %v18074_v63 }
 0xb5d   : > { %9159 = vmatprep.subr.bf16.mxu1 %v18079_v58 }
 0xb60   : > { %9160 = vmatpush2.bf16.msra.mxu1 %v18077_v2 }
 0xb61   : > { %9789 = vmatprep.subr.bf16.mxu1 %v18085_v44  ;;  %v21963_v44 = vld [vmem:[#allocation75_spill] sm:$0xff] }
 0xbe2   : > { %v21352_v19 = vpop.f32.mrf.mxu0  ;;  %v8880_v15 = vpop.f32.mrf.mxu1 }
 0xbe3   : > { %v8881_v24 = vadd.f32 %v8880_v15, %v21352_v19  ;;  %v18154_v15 = vld [vmem:[#allocation14 + $0x364] ss:$16 sps:$4 sm:$0xff]  }
 0xbe4   : > { %v21354_v50 = vpop.f32.mrf.mxu0  ;;  %v8882_v25 = vpop.f32.mrf.mxu1 }
 0xbe5   : > { %v8883_v30 = vadd.f32 %v8882_v25, %v21354_v50  ;;  %v18152_v25 = vld [vmem:[#allocation14 + $0x360] ss:$16 sps:$4 sm:$0xff]  }
 0xbe6   : > { %v21356_v43 = vpop.f32.mrf.mxu0  ;;  %v8884_v37 = vpop.f32.mrf.mxu1 }
 0xbe7   : > { %v8885_v21 = vadd.f32 %v8884_v37, %v21356_v43  ;;  %v18160_v37 = vld [vmem:[#allocation14 + $0x344] ss:$16 sps:$4 sm:$0xff]  }
 0xbe8   : > { %v21358_v27 = vpop.f32.mrf.mxu0  ;;  %v8886_v39 = vpop.f32.mrf.mxu1 }
 0xbe9   : > { %v8887_v1 = vadd.f32 %v8886_v39, %v21358_v27  ;;  %v18163_v39 = vld [vmem:[#allocation14 + $0x34c] ss:$16 sps:$4 sm:$0xff]  }
 0xbea   : > { %v8925_v10 = vpop.f32.mrf.mxu0 }
 0xbec   : > { %v8927_v13 = vpop.f32.mrf.mxu0 }
 0xbee   : > { %v8929_v28 = vpop.f32.mrf.mxu0 }
 0xbef   : > { %v8934_v38 = vpack.c.bf16 %v8929_v28, %v8925_v10 }
 0xbf0   : > { %v8931_v5 = vpop.f32.mrf.mxu0 }
 0xbf1   : > { %v8935_v53 = vpack.c.bf16 %v8931_v5, %v8927_v13 }
 0xbf3   : > { %9161 = vmatprep.mubr.bf16.mxu1 %v8935_v53 }
 0xbf4   : > { %9162 = vmatmul.mubr.bf16.vlgmr.msra.gmra.mxu1 %v8934_v38  ;;  %v21962_v38 = vld [vmem:[#allocation66_spill] sm:$0xff] }
 0xbf5   : > { %9790 = vmatpush1.bf16.msra.mxu1 %v18083_v6  ;;  %v9198_v27 = vpack.c.bf16 %v21962_v38, %v21962_v38  ;;  %v18082_v6 = vld [vmem:[#allocation14 + $0x2e4] ss:$16 sps:$4 sm:$0xff]  }
 0xbf6   : > { %9791 = vmatprep.subr.bf16.mxu1 %v18091_v22  ;;  %v9316_v22 = vpack.c.bf16 %v21963_v44, %v21963_v44  ;;  %v18190_v44 = vld [vmem:[#allocation14 + $0xa4] ss:$16 sps:$4 sm:$0xff]  }
 0xbf9   : > { %9792 = vmatpush1.bf16.msra.mxu1 %v18089_v23  ;;  %v18080_v23 = vld [vmem:[#allocation14 + $0x2e0] ss:$16 sps:$4 sm:$0xff]  }
 0xbfa   : > { %9793 = vmatprep.subr.bf16.mxu1 %v18097_v48  ;;  %v18088_v48 = vld [vmem:[#allocation14 + $0x2c4] ss:$16 sps:$4 sm:$0xff]  }
 0xbfd   : > { %9794 = vmatpush1.bf16.msra.mxu1 %v18095_v56  ;;  %v18086_v56 = vld [vmem:[#allocation14 + $0x2c0] ss:$16 sps:$4 sm:$0xff]  }
 0xbfe   : > { %9795 = vmatprep.subr.bf16.mxu1 %v18103_v55  ;;  %v18094_v55 = vld [vmem:[#allocation14 + $0x2a4] ss:$16 sps:$4 sm:$0xff]  }
 0xc01   : > { %9796 = vmatpush1.bf16.msra.mxu1 %v18101_v59  ;;  %v18092_v59 = vld [vmem:[#allocation14 + $0x2a0] ss:$16 sps:$4 sm:$0xff]  }
 0xc02   : > { %9797 = vmatprep.subr.bf16.mxu1 %v18109_v46  ;;  %v18100_v46 = vld [vmem:[#allocation14 + $0x284] ss:$16 sps:$4 sm:$0xff]  }
 0xc05   : > { %9798 = vmatpush1.bf16.msra.mxu1 %v18107_v49  ;;  %v18098_v49 = vld [vmem:[#allocation14 + $0x280] ss:$16 sps:$4 sm:$0xff]  }
 0xc06   : > { %9799 = vmatprep.subr.bf16.mxu1 %v18115_v9  ;;  %v18106_v9 = vld [vmem:[#allocation14 + $0x264] ss:$16 sps:$4 sm:$0xff]  }
 0xc09   : > { %9800 = vmatpush1.bf16.msra.mxu1 %v18113_v42  ;;  %v18104_v42 = vld [vmem:[#allocation14 + $0x260] ss:$16 sps:$4 sm:$0xff]  }
 0xc0a   : > { %9801 = vmatprep.subr.bf16.mxu1 %v18121_v51  ;;  %v18112_v51 = vld [vmem:[#allocation14 + $0x244] ss:$16 sps:$4 sm:$0xff]  }
 0xc0d   : > { %9802 = vmatpush1.bf16.msra.mxu1 %v18119_v60  ;;  %v18110_v60 = vld [vmem:[#allocation14 + $0x240] ss:$16 sps:$4 sm:$0xff]  }
 0xc0e   : > { %9803 = vmatprep.subr.bf16.mxu1 %v18127_v52  ;;  %v18118_v52 = vld [vmem:[#allocation14 + $0x224] ss:$16 sps:$4 sm:$0xff]  }
 0xc11   : > { %9804 = vmatpush1.bf16.msra.mxu1 %v18125_v62  ;;  %v18116_v62 = vld [vmem:[#allocation14 + $0x220] ss:$16 sps:$4 sm:$0xff]  }
 0xc12   : > { %9805 = vmatprep.subr.bf16.mxu1 %v18133_v40  ;;  %v18124_v40 = vld [vmem:[#allocation14 + $0x204] ss:$16 sps:$4 sm:$0xff]  }
 0xc15   : > { %9806 = vmatpush2.bf16.msra.mxu1 %v18131_v36  ;;  %v18122_v36 = vld [vmem:[#allocation14 + $0x200] ss:$16 sps:$4 sm:$0xff]  }
 0xc16   : > { %9807 = vmatprep.subr.bf16.mxu1 %v18139_v26  ;;  %v18130_v26 = vld [vmem:[#allocation14 + $0x3e4] ss:$16 sps:$4 sm:$0xff]  }
 0xc19   : > { %9808 = vmatpush2.bf16.msra.mxu1 %v18137_v33  ;;  %v18128_v33 = vld [vmem:[#allocation14 + $0x3e0] ss:$16 sps:$4 sm:$0xff]  }
 0xc1a   : > { %9809 = vmatprep.subr.bf16.mxu1 %v18145_v41  ;;  %v18136_v41 = vld [vmem:[#allocation14 + $0x3c4] ss:$16 sps:$4 sm:$0xff]  }
 0xc1d   : > { %9810 = vmatpush2.bf16.msra.mxu1 %v18143_v57  ;;  %v18134_v57 = vld [vmem:[#allocation14 + $0x3c0] ss:$16 sps:$4 sm:$0xff]  }
 0xc1e   : > { %9811 = vmatprep.subr.bf16.mxu1 %v18151_v17  ;;  %v18142_v17 = vld [vmem:[#allocation14 + $0x3a4] ss:$16 sps:$4 sm:$0xff]  }
 0xc21   : > { %9812 = vmatpush2.bf16.msra.mxu1 %v18149_v47  ;;  %v18140_v47 = vld [vmem:[#allocation14 + $0x3a0] ss:$16 sps:$4 sm:$0xff]  }
 0xc22   : > { %9813 = vmatprep.subr.bf16.mxu1 %v18157_v14  ;;  %v18148_v14 = vld [vmem:[#allocation14 + $0x384] ss:$16 sps:$4 sm:$0xff]  }
 0xc25   : > { %9814 = vmatpush2.bf16.msra.mxu1 %v18155_v11  ;;  %v18146_v11 = vld [vmem:[#allocation14 + $0x380] ss:$16 sps:$4 sm:$0xff]  }
 0xc26   : > { %9815 = vmatprep.subr.bf16.mxu1 %v18163_v39  ;;  %v18232_v39 = vld [vmem:[#allocation14 + $0x1c4] ss:$16 sps:$4 sm:$0xff]  }
 0xcb4   : > { %v9163_v20 = vpop.f32.mrf.mxu1 }
 0xcb5   : > { %v9172_v45 = vadd.f32 %v9163_v20, %v8881_v24  ;;  %v18161_v24 = vld [vmem:[#allocation14 + $0x348] ss:$16 sps:$4 sm:$0xff]   ;;  %v18164_v20 = vld [vmem:[#allocation14 + $0x320] ss:$16 sps:$4 sm:$0xff]  }
 0xcb6   : > { %v9165_v12 = vpop.f32.mrf.mxu1  ;;  %9816 = vmatpush2.bf16.msra.mxu1 %v18161_v24  ;;  %v18230_v24 = vld [vmem:[#allocation14 + $0x1c0] ss:$16 sps:$4 sm:$0xff]  }
 0xcb7   : > { %v9173_v35 = vadd.f32 %v9165_v12, %v8883_v30  ;;  %v9188_v34 = vadd.f32 %v9181_v54, %v9172_v45  ;;  %v18166_v30 = vld [vmem:[#allocation14 + $0x324] ss:$16 sps:$4 sm:$0xff]   ;;  %v18167_v45 = vld [vmem:[#allocation14 + $0x328] ss:$16 sps:$4 sm:$0xff]  }
 0xcb8   : > { %v9167_v29 = vpop.f32.mrf.mxu1  ;;  %v18172_v12 = vld [vmem:[#allocation14 + $0x304] ss:$16 sps:$4 sm:$0xff]  }
 0xcb9   : > { %v9174_v16 = vadd.f32 %v9167_v29, %v8885_v21  ;;  %v9189_v63 = vadd.f32 %v9185_v31, %v9173_v35  ;;  %v9192_v19 = vmax.f32 %v9188_v34, 0.0  ;;  %v18175_v21 = vld [vmem:[#allocation14 + $0x30c] ss:$16 sps:$4 sm:$0xff]   ;;  %v18170_v35 = vld [vmem:[#allocation14 + $0x300] ss:$16 sps:$4 sm:$0xff]  }
 0xcba   : > { %v9169_v8 = vpop.f32.mrf.mxu1  ;;  %v18178_v29 = vld [vmem:[#allocation14 + $0xe4] ss:$16 sps:$4 sm:$0xff]  }
 0xcbb   : > { %v9190_v58 = vadd.f32 %v9181_v54, %v9174_v16  ;;  %v9175_v2 = vadd.f32 %v9169_v8, %v8887_v1  ;;  %v9193_v13 = vmax.f32 %v9189_v63, 0.0  ;;  %v18169_v54 = vld [vmem:[#allocation14 + $0x32c] ss:$16 sps:$4 sm:$0xff]  }
 0xcbc   : > { %9817 = vmatprep.subr.bf16.mxu1 %v18169_v54  ;;  %v18181_v1 = vld [vmem:[#allocation14 + $0xec] ss:$16 sps:$4 sm:$0xff]   ;;  %v18236_v54 = vld [vmem:[#allocation14 + $0x1a0] ss:$16 sps:$4 sm:$0xff]  }
 0xcbd   : > { %v9194_v50 = vmax.f32 %v9190_v58, 0.0  ;;  %v9191_v10 = vadd.f32 %v9185_v31, %v9175_v2  ;;  %9818 = vmatpush2.bf16.msra.mxu1 %v18167_v45  ;;  %v18173_v31 = vld [vmem:[#allocation14 + $0x308] ss:$16 sps:$4 sm:$0xff]   ;;  %v18241_v45 = vld [vmem:[#allocation14 + $0x1ac] ss:$16 sps:$4 sm:$0xff]  }
 0xcbe   : > { %9819 = vmatprep.subr.bf16.mxu1 %v18175_v21  ;;  %v18244_v21 = vld [vmem:[#allocation14 + $0x184] ss:$16 sps:$4 sm:$0xff]  }
 0xcbf   : > { %v9196_v28 = vpack.c.bf16 %v9194_v50, %v9192_v19  ;;  %v9195_v5 = vmax.f32 %v9191_v10, 0.0  ;;  %v18176_v50 = vld [vmem:[#allocation14 + $0xe0] ss:$16 sps:$4 sm:$0xff]   ;;  %v18179_v10 = vld [vmem:[#allocation14 + $0xe8] ss:$16 sps:$4 sm:$0xff]  }
 0xcc1   : > { %v9197_v53 = vpack.c.bf16 %v9195_v5, %v9193_v13  ;;  %v9204_v43 = vsel %vm8317_vm9, %v9196_v28, 0  ;;  %9820 = vmatpush2.bf16.msra.mxu1 %v18173_v31  ;;  %v18184_v28 = vld [vmem:[#allocation14 + $0xc4] ss:$16 sps:$4 sm:$0xff]   ;;  %v18187_v5 = vld [vmem:[#allocation14 + $0xcc] ss:$16 sps:$4 sm:$0xff]  }
 0xcc2   : > { %10191 = vmatprep.subr.bf16.mxu1 %v18181_v1  ;;  %v18242_v31 = vld [vmem:[#allocation14 + $0x180] ss:$16 sps:$4 sm:$0xff]   ;;  %v18250_v1 = vld [vmem:[#allocation14 + $0x164] ss:$16 sps:$4 sm:$0xff]  }
 0xcc3   : > { %15927 = vmatprep.subr.msk.bf16.mxu0 %vm8317_vm9, %v9197_v53 }
 0xcc4   : > { %9224 = vmatpush1.bf16.msra.mxu0 %v9204_v43 }
 0xcc5   : > { %15929 = vmatprep.subr.msk.bf16.mxu0 %vm8317_vm9, %v9197_v53 }
 0xcc7   : > { %15928 = vmatmul.mubr.msk.bf16.vlgmr.msra.gmra.mxu0 %vm9199_vm11, %v9198_v27  ;;  %v18182_v27 = vld [vmem:[#allocation14 + $0xc0] ss:$16 sps:$4 sm:$0xff]  }
 0xcc8   : > { %9335 = vmatpush1.bf16.msra.mxu0 %v9204_v43  ;;  %9352 = vmatprep.mubr.bf16.mxu0 %v21867_v0 }
 0xcc9   : > { %9748 = vmatprep.subr.bf16.mxu0 %v18082_v6  ;;  %v18185_v6 = vld [vmem:[#allocation14 + $0xc8] ss:$16 sps:$4 sm:$0xff]  }
 0xccf   : > { %15930 = vmatmul.mubr.msk.bf16.vlgmr.msra.gmra.mxu0 %vm9199_vm11, %v9316_v22  ;;  %v18193_v22 = vld [vmem:[#allocation14 + $0xac] ss:$16 sps:$4 sm:$0xff]  }
 0xcd0   : > { %9749 = vmatpush1.bf16.msra.mxu0 %v18080_v23  ;;  %v18188_v23 = vld [vmem:[#allocation14 + $0xa0] ss:$16 sps:$4 sm:$0xff]  }
 0xcd1   : > { %9750 = vmatprep.subr.bf16.mxu0 %v18088_v48  ;;  %v18191_v48 = vld [vmem:[#allocation14 + $0xa8] ss:$16 sps:$4 sm:$0xff]  }
 0xcd4   : > { %9751 = vmatpush1.bf16.msra.mxu0 %v18086_v56  ;;  %v18196_v56 = vld [vmem:[#allocation14 + $0x84] ss:$16 sps:$4 sm:$0xff]  }
 0xcd5   : > { %9752 = vmatprep.subr.bf16.mxu0 %v18094_v55  ;;  %v18199_v55 = vld [vmem:[#allocation14 + $0x8c] ss:$16 sps:$4 sm:$0xff]  }
 0xcd8   : > { %9753 = vmatpush1.bf16.msra.mxu0 %v18092_v59  ;;  %v18194_v59 = vld [vmem:[#allocation14 + $0x80] ss:$16 sps:$4 sm:$0xff]  }
 0xcd9   : > { %9754 = vmatprep.subr.bf16.mxu0 %v18100_v46  ;;  %v18197_v46 = vld [vmem:[#allocation14 + $0x88] ss:$16 sps:$4 sm:$0xff]  }
 0xcdc   : > { %9755 = vmatpush1.bf16.msra.mxu0 %v18098_v49  ;;  %v18202_v49 = vld [vmem:[#allocation14 + $0x64] ss:$16 sps:$4 sm:$0xff]  }
 0xcdd   : > { %9756 = vmatprep.subr.bf16.mxu0 %v18106_v9  ;;  %v18205_v9 = vld [vmem:[#allocation14 + $0x6c] ss:$16 sps:$4 sm:$0xff]  }
 0xce0   : > { %9757 = vmatpush1.bf16.msra.mxu0 %v18104_v42  ;;  %v18200_v42 = vld [vmem:[#allocation14 + $0x60] ss:$16 sps:$4 sm:$0xff]  }
 0xce1   : > { %9758 = vmatprep.subr.bf16.mxu0 %v18112_v51  ;;  %v18203_v51 = vld [vmem:[#allocation14 + $0x68] ss:$16 sps:$4 sm:$0xff]  }
 0xce4   : > { %9759 = vmatpush1.bf16.msra.mxu0 %v18110_v60  ;;  %v18208_v60 = vld [vmem:[#allocation14 + $0x44] ss:$16 sps:$4 sm:$0xff]  }
 0xce5   : > { %9760 = vmatprep.subr.bf16.mxu0 %v18118_v52  ;;  %v18211_v52 = vld [vmem:[#allocation14 + $0x4c] ss:$16 sps:$4 sm:$0xff]  }
 0xce8   : > { %9761 = vmatpush1.bf16.msra.mxu0 %v18116_v62  ;;  %v18206_v62 = vld [vmem:[#allocation14 + $0x40] ss:$16 sps:$4 sm:$0xff]  }
 0xce9   : > { %9762 = vmatprep.subr.bf16.mxu0 %v18124_v40  ;;  %v18209_v40 = vld [vmem:[#allocation14 + $0x48] ss:$16 sps:$4 sm:$0xff]  }
 0xcec   : > { %9763 = vmatpush1.bf16.msra.mxu0 %v18122_v36  ;;  %v18214_v36 = vld [vmem:[#allocation14 + $0x24] ss:$16 sps:$4 sm:$0xff]  }
 0xced   : > { %9764 = vmatprep.subr.bf16.mxu0 %v18130_v26  ;;  %v18217_v26 = vld [vmem:[#allocation14 + $0x2c] ss:$16 sps:$4 sm:$0xff]  }
 0xcf0   : > { %9765 = vmatpush2.bf16.msra.mxu0 %v18128_v33  ;;  %v18212_v33 = vld [vmem:[#allocation14 + $0x20] ss:$16 sps:$4 sm:$0xff]  }
 0xcf1   : > { %9766 = vmatprep.subr.bf16.mxu0 %v18136_v41  ;;  %v18215_v41 = vld [vmem:[#allocation14 + $0x28] ss:$16 sps:$4 sm:$0xff]  }
 0xcf4   : > { %9767 = vmatpush2.bf16.msra.mxu0 %v18134_v57  ;;  %v18220_v57 = vld [vmem:[#allocation14 + $0x4] ss:$16 sps:$4 sm:$0xff]  }
 0xcf5   : > { %9768 = vmatprep.subr.bf16.mxu0 %v18142_v17  ;;  %v18223_v17 = vld [vmem:[#allocation14 + $0xc] ss:$16 sps:$4 sm:$0xff]  }
 0xcf8   : > { %9769 = vmatpush2.bf16.msra.mxu0 %v18140_v47  ;;  %v18218_v47 = vld [vmem:[#allocation14] ss:$16 sps:$4 sm:$0xff]  }
 0xcf9   : > { %9770 = vmatprep.subr.bf16.mxu0 %v18148_v14  ;;  %v18221_v14 = vld [vmem:[#allocation14 + $0x8] ss:$16 sps:$4 sm:$0xff]  }
 0xcfc   : > { %9771 = vmatpush2.bf16.msra.mxu0 %v18146_v11  ;;  %v18226_v11 = vld [vmem:[#allocation14 + $0x1e4] ss:$16 sps:$4 sm:$0xff]  }
 0xcfd   : > { %9772 = vmatprep.subr.bf16.mxu0 %v18154_v15  ;;  %v18229_v15 = vld [vmem:[#allocation14 + $0x1ec] ss:$16 sps:$4 sm:$0xff]  }
 0xd00   : > { %9773 = vmatpush2.bf16.msra.mxu0 %v18152_v25  ;;  %v18224_v25 = vld [vmem:[#allocation14 + $0x1e0] ss:$16 sps:$4 sm:$0xff]  }
 0xd01   : > { %9774 = vmatprep.subr.bf16.mxu0 %v18160_v37  ;;  %v18227_v37 = vld [vmem:[#allocation14 + $0x1e8] ss:$16 sps:$4 sm:$0xff]  }
 0xd04   : > { %9775 = vmatpush2.bf16.msra.mxu0 %v18158_v3  ;;  %v18235_v3 = vld [vmem:[#allocation14 + $0x1cc] ss:$16 sps:$4 sm:$0xff]  }
 0xd05   : > { %9776 = vmatprep.subr.bf16.mxu0 %v18166_v30  ;;  %v18238_v30 = vld [vmem:[#allocation14 + $0x1a4] ss:$16 sps:$4 sm:$0xff]  }
 0xd08   : > { %9777 = vmatpush2.bf16.msra.mxu0 %v18164_v20  ;;  %v18233_v20 = vld [vmem:[#allocation14 + $0x1c8] ss:$16 sps:$4 sm:$0xff]  }
 0xd09   : > { %9778 = vmatprep.subr.bf16.mxu0 %v18172_v12  ;;  %v18239_v12 = vld [vmem:[#allocation14 + $0x1a8] ss:$16 sps:$4 sm:$0xff]  }
 0xd0c   : > { %9779 = vmatpush2.bf16.msra.mxu0 %v18170_v35  ;;  %v18247_v35 = vld [vmem:[#allocation14 + $0x18c] ss:$16 sps:$4 sm:$0xff]  }
 0xd0d   : > { %10150 = vmatprep.subr.bf16.mxu0 %v18178_v29  ;;  %v18245_v29 = vld [vmem:[#allocation14 + $0x188] ss:$16 sps:$4 sm:$0xff]  }
 0xd87   : > { %v21374_v34 = vpop.f32.mrf.mxu0 }
 0xd89   : > { %v9245_v16 = vpop.f32.mrf.mxu0 }
 0xd8a   : > { %v9251_v38 = vpack.c.bf16 %v9245_v16, %v9245_v16  ;;  %v18253_v16 = vld [vmem:[#allocation14 + $0x16c] ss:$16 sps:$4 sm:$0xff]  }
 0xd8b   : > { %v9247_v8 = vpop.f32.mrf.mxu0 }
 0xd8c   : > { %v18248_v8 = vld [vmem:[#allocation14 + $0x160] ss:$16 sps:$4 sm:$0xff]  }
 0xd8d   : > { %v9248_v63 = vpop.f32.mrf.mxu0 }
 0xd8e   : > { %v18251_v63 = vld [vmem:[#allocation14 + $0x168] ss:$16 sps:$4 sm:$0xff]  }
 0xd8f   : > { %v9354_v58 = vpop.f32.mrf.mxu0 }
 0xd90   : > { %v9361_v13 = vpack.c.bf16 %v9354_v58, %v9354_v58  ;;  %v18256_v58 = vld [vmem:[#allocation14 + $0x144] ss:$16 sps:$4 sm:$0xff]  }
 0xd91   : > { %v9356_v2 = vpop.f32.mrf.mxu0 }
 0xd92   : > { %v9362_v19 = vpack.c.bf16 %v9356_v2, %v9356_v2  ;;  %v18259_v2 = vld [vmem:[#allocation14 + $0x14c] ss:$16 sps:$4 sm:$0xff]  }
 0xd93   : > { %v9358_v53 = vpop.f32.mrf.mxu0 }
 0xd94   : > { %9780 = vmatprep.mubr.bf16.mxu0 %v9362_v19  ;;  %9821 = vmatprep.mubr.bf16.mxu1 %v9362_v19  ;;  %v18254_v19 = vld [vmem:[#allocation14 + $0x140] ss:$16 sps:$4 sm:$0xff]   ;;  %v18268_v53 = vld [vmem:[#allocation14 + $0x104] ss:$16 sps:$4 sm:$0xff]  }
 0xd95   : > { %9781 = vmatmul.mubr.bf16.vlgmr.msra.gmra.mxu0 %v9361_v13  ;;  %9822 = vmatmul.mubr.bf16.vlgmr.msra.gmra.mxu1 %v9361_v13  ;;  %v9359_v43 = vpop.f32.mrf.mxu0  ;;  %v18265_v13 = vld [vmem:[#allocation14 + $0x12c] ss:$16 sps:$4 sm:$0xff]  }
 0xd96   : > { %10151 = vmatpush1.bf16.msra.mxu0 %v18176_v50  ;;  %10192 = vmatpush1.bf16.msra.mxu1 %v18179_v10  ;;  %v18257_v50 = vld [vmem:[#allocation14 + $0x148] ss:$16 sps:$4 sm:$0xff]   ;;  %v18262_v10 = vld [vmem:[#allocation14 + $0x124] ss:$16 sps:$4 sm:$0xff]   ;;  %v18271_v43 = vld [vmem:[#allocation14 + $0x10c] ss:$16 sps:$4 sm:$0xff]  }
 0xd97   : > { %10152 = vmatprep.subr.bf16.mxu0 %v18184_v28  ;;  %10193 = vmatprep.subr.bf16.mxu1 %v18187_v5  ;;  %v18260_v28 = vld [vmem:[#allocation14 + $0x120] ss:$16 sps:$4 sm:$0xff]   ;;  %v18263_v5 = vld [vmem:[#allocation14 + $0x128] ss:$16 sps:$4 sm:$0xff]  }
 0xd98   : > { %10182 = vmatprep.mubr.bf16.mxu0 %v9251_v38  ;;  %10223 = vmatprep.mubr.bf16.mxu1 %v9251_v38  ;;  %v18266_v38 = vld [vmem:[#allocation14 + $0x100] ss:$16 sps:$4 sm:$0xff]  }
 0xd9a   : > { %10153 = vmatpush1.bf16.msra.mxu0 %v18182_v27  ;;  %10194 = vmatpush1.bf16.msra.mxu1 %v18185_v6  ;;  %v18269_v27 = vld [vmem:[#allocation14 + $0x108] ss:$16 sps:$4 sm:$0xff]   ;;  %v9250_v6 = vpack.c.bf16 %v21374_v34, %v21374_v34  ;;  %v18305_v34 = vld [vmem:[#allocation17 + $0x660] ss:$16 sps:$4 sm:$0xff]  }
 0xd9b   : > { %10154 = vmatprep.subr.bf16.mxu0 %v18190_v44  ;;  %10195 = vmatprep.subr.bf16.mxu1 %v18193_v22  ;;  %v18281_v44 = vld [vmem:[#allocation17 + $0x6e0] ss:$16 sps:$4 sm:$0xff]   ;;  %v18283_v22 = vld [vmem:[#allocation17 + $0x6e4] ss:$16 sps:$4 sm:$0xff]  }
 0xd9e   : > { %10155 = vmatpush1.bf16.msra.mxu0 %v18188_v23  ;;  %10196 = vmatpush1.bf16.msra.mxu1 %v18191_v48  ;;  %v18287_v23 = vld [vmem:[#allocation17 + $0x6c0] ss:$16 sps:$4 sm:$0xff]   ;;  %v18289_v48 = vld [vmem:[#allocation17 + $0x6c4] ss:$16 sps:$4 sm:$0xff]  }
 0xd9f   : > { %10156 = vmatprep.subr.bf16.mxu0 %v18196_v56  ;;  %10197 = vmatprep.subr.bf16.mxu1 %v18199_v55  ;;  %v18293_v56 = vld [vmem:[#allocation17 + $0x6a0] ss:$16 sps:$4 sm:$0xff]   ;;  %v18295_v55 = vld [vmem:[#allocation17 + $0x6a4] ss:$16 sps:$4 sm:$0xff]  }
 0xda2   : > { %10157 = vmatpush1.bf16.msra.mxu0 %v18194_v59  ;;  %10198 = vmatpush1.bf16.msra.mxu1 %v18197_v46  ;;  %v18299_v59 = vld [vmem:[#allocation17 + $0x680] ss:$16 sps:$4 sm:$0xff]   ;;  %v18301_v46 = vld [vmem:[#allocation17 + $0x684] ss:$16 sps:$4 sm:$0xff]  }
 0xda3   : > { %10158 = vmatprep.subr.bf16.mxu0 %v18202_v49  ;;  %10199 = vmatprep.subr.bf16.mxu1 %v18205_v9  ;;  %v18307_v49 = vld [vmem:[#allocation17 + $0x664] ss:$16 sps:$4 sm:$0xff]  }
 0xda6   : > { %10159 = vmatpush1.bf16.msra.mxu0 %v18200_v42  ;;  %10200 = vmatpush1.bf16.msra.mxu1 %v18203_v51 }
 0xda7   : > { %10160 = vmatprep.subr.bf16.mxu0 %v18208_v60  ;;  %10201 = vmatprep.subr.bf16.mxu1 %v18211_v52  ;;  %v18311_v52 = vld [vmem:[#allocation17 + $0x640] ss:$16 sps:$4 sm:$0xff]  }
 0xdaa   : > { %10161 = vmatpush1.bf16.msra.mxu0 %v18206_v62  ;;  %10202 = vmatpush1.bf16.msra.mxu1 %v18209_v40  ;;  %v18313_v62 = vld [vmem:[#allocation17 + $0x644] ss:$16 sps:$4 sm:$0xff]  }
 0xdab   : > { %10162 = vmatprep.subr.bf16.mxu0 %v18214_v36  ;;  %10203 = vmatprep.subr.bf16.mxu1 %v18217_v26 }
 0xdae   : > { %10163 = vmatpush1.bf16.msra.mxu0 %v18212_v33  ;;  %10204 = vmatpush1.bf16.msra.mxu1 %v18215_v41  ;;  %v18317_v41 = vld [vmem:[#allocation17 + $0x620] ss:$16 sps:$4 sm:$0xff]  }
 0xdaf   : > { %10164 = vmatprep.subr.bf16.mxu0 %v18220_v57  ;;  %10205 = vmatprep.subr.bf16.mxu1 %v18223_v17  ;;  %v18319_v57 = vld [vmem:[#allocation17 + $0x624] ss:$16 sps:$4 sm:$0xff]   ;;  %v18323_v17 = vld [vmem:[#allocation17 + $0x600] ss:$16 sps:$4 sm:$0xff]  }
 0xdb2   : > { %10165 = vmatpush1.bf16.msra.mxu0 %v18218_v47  ;;  %10206 = vmatpush1.bf16.msra.mxu1 %v18221_v14  ;;  %v18325_v47 = vld [vmem:[#allocation17 + $0x604] ss:$16 sps:$4 sm:$0xff]   ;;  %v18329_v14 = vld [vmem:[#allocation17 + $0x7e0] ss:$16 sps:$4 sm:$0xff]  }
 0xdb3   : > { %10166 = vmatprep.subr.bf16.mxu0 %v18226_v11  ;;  %10207 = vmatprep.subr.bf16.mxu1 %v18229_v15  ;;  %v18331_v11 = vld [vmem:[#allocation17 + $0x7e4] ss:$16 sps:$4 sm:$0xff]   ;;  %v10232_v15 = vld [vmem:[#allocation16] sm:$0xf] }
 0xdb6   : > { %10167 = vmatpush2.bf16.msra.mxu0 %v18224_v25  ;;  %10208 = vmatpush2.bf16.msra.mxu1 %v18227_v37  ;;  %v10237_v25 = vrot.slane %v10232_v15, %v21960_v4 }
 0xdb7   : > { %10168 = vmatprep.subr.bf16.mxu0 %v18232_v39  ;;  %10209 = vmatprep.subr.bf16.mxu1 %v18235_v3  ;;  %v10245_v3 = vrot.slane %v10232_v15, %v21092_v61 }
 0xdba   : > { %10169 = vmatpush2.bf16.msra.mxu0 %v18230_v24  ;;  %10210 = vmatpush2.bf16.msra.mxu1 %v18233_v20 }
 0xdbb   : > { %10170 = vmatprep.subr.bf16.mxu0 %v18238_v30  ;;  %10211 = vmatprep.subr.bf16.mxu1 %v18241_v45  ;;  %v10241_v30 = vrot.slane %v10232_v15, %v21034_v7  ;;  %v10249_v45 = vrot.slane %v10232_v15, %v21160_v32  ;;  %v18316_v15 = vld [vmem:[#allocation17 + $0x5e4] ss:$16 sps:$4 sm:$0xff]  }
 0xdbe   : > { %10171 = vmatpush2.bf16.msra.mxu0 %v18236_v54  ;;  %10212 = vmatpush2.bf16.msra.mxu1 %v18239_v12 }
 0xdbf   : > { %10172 = vmatprep.subr.bf16.mxu0 %v18244_v21  ;;  %10213 = vmatprep.subr.bf16.mxu1 %v18247_v35 }
 0xdc2   : > { %10173 = vmatpush2.bf16.msra.mxu0 %v18242_v31  ;;  %10214 = vmatpush2.bf16.msra.mxu1 %v18245_v29 }
 0xdc3   : > { %10174 = vmatprep.subr.bf16.mxu0 %v18250_v1  ;;  %10215 = vmatprep.subr.bf16.mxu1 %v18253_v16 }
 0xdc6   : > { %10175 = vmatpush2.bf16.msra.mxu0 %v18248_v8  ;;  %10216 = vmatpush2.bf16.msra.mxu1 %v18251_v63 }
 0xdc7   : > { %10176 = vmatprep.subr.bf16.mxu0 %v18256_v58  ;;  %10217 = vmatprep.subr.bf16.mxu1 %v18259_v2  ;;  %v10274_v2 = vsel %vm10273_vm12, 4294967295, %v21961_v18 }
 0xdca   : > { %10177 = vmatpush2.bf16.msra.mxu0 %v18254_v19  ;;  %10218 = vmatpush2.bf16.msra.mxu1 %v18257_v50 }
 0xdcb   : > { %10178 = vmatprep.subr.bf16.mxu0 %v18262_v10  ;;  %10219 = vmatprep.subr.bf16.mxu1 %v18265_v13 }
 0xdce   : > { %10179 = vmatpush2.bf16.msra.mxu0 %v18260_v28  ;;  %10220 = vmatpush2.bf16.msra.mxu1 %v18263_v5  ;;  %v21964_v28 = vld [vmem:[#allocation49_spill] sm:$0xff]  ;;  %v21965_v5 = vld [vmem:[#allocation38_spill] sm:$0xff] }
 0xdcf   : > { %10180 = vmatprep.subr.bf16.mxu0 %v18268_v53  ;;  %10221 = vmatprep.subr.bf16.mxu1 %v18271_v43  ;;  %vm10266_vm13 = vcmp.eq.s32.totalorder %v21965_v5, %v21964_v28 }
 0xdd2   : > { %10181 = vmatpush2.bf16.msra.mxu0 %v18266_v38  ;;  %10222 = vmatpush2.bf16.msra.mxu1 %v18269_v27  ;;  %v10275_v38 = vsel %vm1241_vm1, %v10274_v2, 0  ;;  %v18350_v2 = vld [vmem:[#allocation17 + $0x520] ss:$16 sps:$4 sm:$0xff]  }
 0xdd3   : > { %11405 = vmatprep.subr.bf16.mxu1 %v18283_v22 }
 0xdd5   : > { %10183 = vmatmul.mubr.bf16.vlgmr.msra.gmra.mxu0 %v9250_v6  ;;  %10224 = vmatmul.mubr.bf16.vlgmr.msra.gmra.mxu1 %v9250_v6 }
 0xdd6   : > { %10320 = vmatprep.mubr.bf16.mxu0 %v21867_v0  ;;  %11406 = vmatpush1.bf16.msra.mxu1 %v18281_v44  ;;  %v21966_v44 = vmov 0.0  }
 0xdd7   : > { %11407 = vmatprep.subr.bf16.mxu1 %v18289_v48  ;;  %v10267_v22 = vsel %vm10266_vm13, 1.0, %v21966_v44 }
 0xdda   : > { %11408 = vmatpush1.bf16.msra.mxu1 %v18287_v23 }
 0xddb   : > { %11409 = vmatprep.subr.bf16.mxu1 %v18295_v55  ;;  %v10268_v55 = vpack.c.bf16 %v10267_v22, %v10267_v22  ;;  %v18368_v22 = vld [vmem:[#allocation17 + $0x700] ss:$16 sps:$4 sm:$0xff]  }
 0xdde   : > { %11410 = vmatpush1.bf16.msra.mxu1 %v18293_v56 }
 0xddf   : > { %11411 = vmatprep.subr.bf16.mxu1 %v18301_v46  ;;  %v10502_v46 = vadd.s32 1, %v21964_v28 }
 0xde1   : > { %vm10503_vm15 = vcmp.eq.s32.totalorder %v21965_v5, %v10502_v46 }
 0xde2   : > { %11412 = vmatpush1.bf16.msra.mxu1 %v18299_v59 }
 0xde3   : > { %11413 = vmatprep.subr.bf16.mxu1 %v18307_v49 }
 0xde6   : > { %11414 = vmatpush1.bf16.msra.mxu1 %v18305_v34  ;;  %v10504_v34 = vsel %vm10503_vm15, 1.0, %v21966_v44 }
 0xde7   : > { %11415 = vmatprep.subr.bf16.mxu1 %v18313_v62  ;;  %v10505_v49 = vpack.c.bf16 %v10504_v34, %v10504_v34  ;;  %v18278_v62 = vld [vmem:[#allocation17 + $0x4a0] ss:$16 sps:$4 sm:$0xff]  }
 0xdea   : > { %11416 = vmatpush1.bf16.msra.mxu1 %v18311_v52  ;;  %v18280_v52 = vld [vmem:[#allocation17 + $0x4a4] ss:$16 sps:$4 sm:$0xff]  }
 0xdeb   : > { %11417 = vmatprep.subr.bf16.mxu1 %v18319_v57  ;;  %v18296_v57 = vld [vmem:[#allocation17 + $0x440] ss:$16 sps:$4 sm:$0xff]  }
 0xdee   : > { %11418 = vmatpush1.bf16.msra.mxu1 %v18317_v41  ;;  %v18298_v41 = vld [vmem:[#allocation17 + $0x444] ss:$16 sps:$4 sm:$0xff]  }
 0xdef   : > { %11419 = vmatprep.subr.bf16.mxu1 %v18325_v47  ;;  %v18302_v47 = vld [vmem:[#allocation17 + $0x420] ss:$16 sps:$4 sm:$0xff]  }
 0xdf2   : > { %11420 = vmatpush1.bf16.msra.mxu1 %v18323_v17  ;;  %v18304_v17 = vld [vmem:[#allocation17 + $0x424] ss:$16 sps:$4 sm:$0xff]  }
 0xdf3   : > { %11421 = vmatprep.subr.bf16.mxu1 %v18331_v11  ;;  %v18308_v11 = vld [vmem:[#allocation17 + $0x400] ss:$16 sps:$4 sm:$0xff]  }
 0xdf6   : > { %11422 = vmatpush2.bf16.msra.mxu1 %v18329_v14  ;;  %v18310_v14 = vld [vmem:[#allocation17 + $0x404] ss:$16 sps:$4 sm:$0xff]  }
 0xe55   : > { %v9782_v9 = vpop.f32.mrf.mxu0  ;;  %v9823_v42 = vpop.f32.mrf.mxu1 }
 0xe57   : > { %v9784_v51 = vpop.f32.mrf.mxu0  ;;  %v9825_v60 = vpop.f32.mrf.mxu1 }
 0xe59   : > { %v9786_v40 = vpop.f32.mrf.mxu0  ;;  %v9827_v36 = vpop.f32.mrf.mxu1 }
 0xe5a   : > { %v18286_v40 = vld [vmem:[#allocation17 + $0x484] ss:$16 sps:$4 sm:$0xff]   ;;  %v18284_v36 = vld [vmem:[#allocation17 + $0x480] ss:$16 sps:$4 sm:$0xff]  }
 0xe5b   : > { %v9787_v26 = vpop.f32.mrf.mxu0  ;;  %v9828_v33 = vpop.f32.mrf.mxu1 }
 0xe5c   : > { %v18292_v26 = vld [vmem:[#allocation17 + $0x464] ss:$16 sps:$4 sm:$0xff]   ;;  %v18290_v33 = vld [vmem:[#allocation17 + $0x460] ss:$16 sps:$4 sm:$0xff]  }
 0xe95   : > { %v10184_v37 = vpop.f32.mrf.mxu0  ;;  %v10225_v39 = vpop.f32.mrf.mxu1 }
 0xe96   : > { %v10185_v24 = vadd.f32 %v10184_v37, %v9782_v9  ;;  %v10226_v20 = vadd.f32 %v10225_v39, %v9823_v42  ;;  %v18274_v9 = vld [vmem:[#allocation17 + $0x4e4] ss:$16 sps:$4 sm:$0xff]   ;;  %v18272_v42 = vld [vmem:[#allocation17 + $0x4e0] ss:$16 sps:$4 sm:$0xff]  }
 0xe97   : > { %v10186_v54 = vpop.f32.mrf.mxu0  ;;  %v10227_v12 = vpop.f32.mrf.mxu1  ;;  %v18322_v37 = vld [vmem:[#allocation17 + $0x5c4] ss:$16 sps:$4 sm:$0xff]   ;;  %v18320_v39 = vld [vmem:[#allocation17 + $0x5c0] ss:$16 sps:$4 sm:$0xff]  }
 0xe98   : > { %v10254_v21 = vadd.f32 %v10237_v25, %v10185_v24  ;;  %v10187_v35 = vadd.f32 %v10186_v54, %v9784_v51  ;;  %v10228_v31 = vadd.f32 %v10227_v12, %v9825_v60  ;;  %v10256_v29 = vadd.f32 %v10245_v3, %v10226_v20  ;;  %v18277_v51 = vld [vmem:[#allocation17 + $0x4c4] ss:$16 sps:$4 sm:$0xff]   ;;  %v18275_v60 = vld [vmem:[#allocation17 + $0x4c0] ss:$16 sps:$4 sm:$0xff]  }
 0xe99   : > { %v10188_v1 = vpop.f32.mrf.mxu0  ;;  %v10229_v16 = vpop.f32.mrf.mxu1  ;;  %v18314_v25 = vld [vmem:[#allocation17 + $0x5e0] ss:$16 sps:$4 sm:$0xff]   ;;  %v18328_v3 = vld [vmem:[#allocation17 + $0x5a4] ss:$16 sps:$4 sm:$0xff]  }
 0xe9a   : > { %v10258_v8 = vmax.f32 %v10254_v21, 0.0  ;;  %v10255_v63 = vadd.f32 %v10241_v30, %v10187_v35  ;;  %v10257_v58 = vadd.f32 %v10249_v45, %v10228_v31  ;;  %v10260_v43 = vmax.f32 %v10256_v29, 0.0  ;;  %v18326_v24 = vld [vmem:[#allocation17 + $0x5a0] ss:$16 sps:$4 sm:$0xff]   ;;  %v18334_v20 = vld [vmem:[#allocation17 + $0x584] ss:$16 sps:$4 sm:$0xff]  }
 0xe9b   : > { %v10189_v19 = vpop.f32.mrf.mxu0  ;;  %v10230_v50 = vpop.f32.mrf.mxu1  ;;  %v18337_v30 = vld [vmem:[#allocation17 + $0x7c4] ss:$16 sps:$4 sm:$0xff]   ;;  %v18332_v45 = vld [vmem:[#allocation17 + $0x580] ss:$16 sps:$4 sm:$0xff]  }
 0xe9c   : > { %v10259_v10 = vmax.f32 %v10255_v63, 0.0  ;;  %v10261_v13 = vmax.f32 %v10257_v58, 0.0  ;;  %v10262_v53 = vpack.c.bf16 %v10258_v8, %v10258_v8  ;;  %v10264_v18 = vpack.c.bf16 %v10260_v43, %v10260_v43  ;;  %v18335_v54 = vld [vmem:[#allocation17 + $0x7c0] ss:$16 sps:$4 sm:$0xff]   ;;  %11423 = vmatprep.subr.bf16.mxu1 %v18337_v30  ;;  %v18340_v12 = vld [vmem:[#allocation17 + $0x564] ss:$16 sps:$4 sm:$0xff]  }
 0xe9d   : > { %11424 = vmatpush2.bf16.msra.mxu1 %v18335_v54  ;;  %v18341_v21 = vld [vmem:[#allocation17 + $0x7a0] ss:$16 sps:$4 sm:$0xff]   ;;  %v18343_v31 = vld [vmem:[#allocation17 + $0x7a4] ss:$16 sps:$4 sm:$0xff]   ;;  %v18383_v54 = vld [vmem:[#allocation17 + $0x6c8] ss:$16 sps:$4 sm:$0xff]  }
 0xe9e   : > { %v10263_v27 = vpack.c.bf16 %v10259_v10, %v10259_v10  ;;  %v10265_v6 = vpack.c.bf16 %v10261_v13, %v10261_v13  ;;  %v21390_v48 = vand.u32 %v10275_v38, %v10262_v53  ;;  %v21397_v59 = vand.u32 %v10275_v38, %v10264_v18  ;;  %v18338_v35 = vld [vmem:[#allocation17 + $0x560] ss:$16 sps:$4 sm:$0xff]   ;;  %11425 = vmatprep.subr.bf16.mxu1 %v18343_v31  ;;  %v18346_v29 = vld [vmem:[#allocation17 + $0x544] ss:$16 sps:$4 sm:$0xff]   ;;  %v18379_v18 = vld [vmem:[#allocation17 + $0x6ec] ss:$16 sps:$4 sm:$0xff]  }
 0xe9f   : > { %v18349_v1 = vld [vmem:[#allocation17 + $0x784] ss:$16 sps:$4 sm:$0xff]   ;;  %v18344_v16 = vld [vmem:[#allocation17 + $0x540] ss:$16 sps:$4 sm:$0xff]   ;;  %v18389_v31 = vld [vmem:[#allocation17 + $0x6a8] ss:$16 sps:$4 sm:$0xff]  }
 0xea0   : > { %v21388_v23 = vand.u32 %v10275_v38, %v10263_v27  ;;  %v21392_v56 = vand.u32 %v10275_v38, %v10265_v6  ;;  %v18347_v8 = vld [vmem:[#allocation17 + $0x780] ss:$16 sps:$4 sm:$0xff]   ;;  %v18352_v63 = vld [vmem:[#allocation17 + $0x524] ss:$16 sps:$4 sm:$0xff]   ;;  %v18367_v38 = vld [vmem:[#allocation17 + $0x4ec] ss:$16 sps:$4 sm:$0xff]  }
 0xea1   : > { %11426 = vmatpush2.bf16.msra.mxu1 %v18341_v21  ;;  %v18353_v58 = vld [vmem:[#allocation17 + $0x760] ss:$16 sps:$4 sm:$0xff]   ;;  %v18355_v19 = vld [vmem:[#allocation17 + $0x764] ss:$16 sps:$4 sm:$0xff]   ;;  %v18391_v21 = vld [vmem:[#allocation17 + $0x6ac] ss:$16 sps:$4 sm:$0xff]  }
 0xea2   : > { %10302 = vmatprep.subr.bf16.mxu0 %v21388_v23  ;;  %11427 = vmatprep.subr.bf16.mxu1 %v18349_v1  ;;  %v18358_v50 = vld [vmem:[#allocation17 + $0x504] ss:$16 sps:$4 sm:$0xff]   ;;  %v18356_v13 = vld [vmem:[#allocation17 + $0x500] ss:$16 sps:$4 sm:$0xff]   ;;  %v18397_v1 = vld [vmem:[#allocation17 + $0x68c] ss:$16 sps:$4 sm:$0xff]  }
 0xea3   : > { %10303 = vmatpush1.bf16.msra.mxu0 %v21390_v48  ;;  %v18361_v10 = vld [vmem:[#allocation17 + $0x744] ss:$16 sps:$4 sm:$0xff]   ;;  %v18359_v53 = vld [vmem:[#allocation17 + $0x740] ss:$16 sps:$4 sm:$0xff]  }
 0xea4   : > { %10343 = vmatprep.subr.bf16.mxu0 %v21392_v56  ;;  %v18364_v43 = vld [vmem:[#allocation17 + $0x724] ss:$16 sps:$4 sm:$0xff]   ;;  %v18362_v27 = vld [vmem:[#allocation17 + $0x720] ss:$16 sps:$4 sm:$0xff]  }
 0xea5   : > { %11428 = vmatpush2.bf16.msra.mxu1 %v18347_v8  ;;  %v18370_v6 = vld [vmem:[#allocation17 + $0x704] ss:$16 sps:$4 sm:$0xff]   ;;  %v18395_v8 = vld [vmem:[#allocation17 + $0x688] ss:$16 sps:$4 sm:$0xff]  }
 0xea6   : > { %16059 = vmatmul.mubr.msk.bf16.vlgmr.msra.gmra.mxu0 %vm10269_vm14, %v10268_v55  ;;  %11429 = vmatprep.subr.bf16.mxu1 %v18355_v19  ;;  %v18401_v19 = vld [vmem:[#allocation17 + $0x668] ss:$16 sps:$4 sm:$0xff]  }
 0xea7   : > { %10344 = vmatpush1.bf16.msra.mxu0 %v21397_v59  ;;  %10361 = vmatprep.mubr.bf16.mxu0 %v21867_v0 }
 0xea8   : > { %10523 = vmatprep.subr.bf16.mxu0 %v21388_v23 }
 0xea9   : > { %11430 = vmatpush2.bf16.msra.mxu1 %v18353_v58  ;;  %v18403_v58 = vld [vmem:[#allocation17 + $0x66c] ss:$16 sps:$4 sm:$0xff]  }
 0xeaa   : > { %11431 = vmatprep.subr.bf16.mxu1 %v18361_v10  ;;  %v18409_v10 = vld [vmem:[#allocation17 + $0x64c] ss:$16 sps:$4 sm:$0xff]  }
 0xead   : > { %11432 = vmatpush2.bf16.msra.mxu1 %v18359_v53  ;;  %v18407_v53 = vld [vmem:[#allocation17 + $0x648] ss:$16 sps:$4 sm:$0xff]  }
 0xeae   : > { %16060 = vmatmul.mubr.msk.bf16.vlgmr.msra.gmra.mxu0 %vm10269_vm14, %v10268_v55  ;;  %11433 = vmatprep.subr.bf16.mxu1 %v18364_v43  ;;  %v18412_v43 = vld [vmem:[#allocation17 + $0x5ec] ss:$16 sps:$4 sm:$0xff]  }
 0xeaf   : > { %10524 = vmatpush1.bf16.msra.mxu0 %v21390_v48  ;;  %10541 = vmatprep.mubr.bf16.mxu0 %v21867_v0 }
 0xeb0   : > { %10564 = vmatprep.subr.bf16.mxu0 %v21392_v56 }
 0xeb1   : > { %11434 = vmatpush2.bf16.msra.mxu1 %v18362_v27  ;;  %v18410_v27 = vld [vmem:[#allocation17 + $0x5e8] ss:$16 sps:$4 sm:$0xff]  }
 0xeb2   : > { %11435 = vmatprep.subr.bf16.mxu1 %v18370_v6  ;;  %v18413_v6 = vld [vmem:[#allocation17 + $0x628] ss:$16 sps:$4 sm:$0xff]  }
 0xeb5   : > { %11436 = vmatpush2.bf16.msra.mxu1 %v18368_v22  ;;  %v18418_v22 = vld [vmem:[#allocation17 + $0x5cc] ss:$16 sps:$4 sm:$0xff]  }
 0xeb6   : > { %16061 = vmatmul.mubr.msk.bf16.vlgmr.msra.gmra.mxu0 %vm10269_vm14, %v10505_v49  ;;  %11487 = vmatprep.subr.bf16.mxu1 %v18379_v18  ;;  %v18421_v18 = vld [vmem:[#allocation17 + $0x60c] ss:$16 sps:$4 sm:$0xff]  }
 0xeb7   : > { %10565 = vmatpush1.bf16.msra.mxu0 %v21397_v59  ;;  %10582 = vmatprep.mubr.bf16.mxu0 %v21867_v0 }
 0xeb8   : > { %11364 = vmatprep.subr.bf16.mxu0 %v18274_v9 }
 0xebe   : > { %16062 = vmatmul.mubr.msk.bf16.vlgmr.msra.gmra.mxu0 %vm10269_vm14, %v10505_v49 }
 0xebf   : > { %11365 = vmatpush1.bf16.msra.mxu0 %v18272_v42 }
 0xec0   : > { %11366 = vmatprep.subr.bf16.mxu0 %v18277_v51 }
 0xec3   : > { %11367 = vmatpush1.bf16.msra.mxu0 %v18275_v60 }
 0xec4   : > { %11368 = vmatprep.subr.bf16.mxu0 %v18280_v52 }
 0xec7   : > { %11369 = vmatpush1.bf16.msra.mxu0 %v18278_v62 }
 0xec8   : > { %11370 = vmatprep.subr.bf16.mxu0 %v18286_v40 }
 0xecb   : > { %11371 = vmatpush1.bf16.msra.mxu0 %v18284_v36  ;;  %v18365_v36 = vld [vmem:[#allocation17 + $0x4e8] ss:$16 sps:$4 sm:$0xff]  }
 0xecc   : > { %11372 = vmatprep.subr.bf16.mxu0 %v18292_v26 }
 0xecf   : > { %11373 = vmatpush1.bf16.msra.mxu0 %v18290_v33 }
 0xed0   : > { %11374 = vmatprep.subr.bf16.mxu0 %v18298_v41  ;;  %v18373_v41 = vld [vmem:[#allocation17 + $0x4cc] ss:$16 sps:$4 sm:$0xff]  }
 0xed3   : > { %11375 = vmatpush1.bf16.msra.mxu0 %v18296_v57 }
 0xed4   : > { %11376 = vmatprep.subr.bf16.mxu0 %v18304_v17  ;;  %v18371_v17 = vld [vmem:[#allocation17 + $0x4c8] ss:$16 sps:$4 sm:$0xff]  }
 0xed7   : > { %11377 = vmatpush1.bf16.msra.mxu0 %v18302_v47 }
 0xed8   : > { %11378 = vmatprep.subr.bf16.mxu0 %v18310_v14  ;;  %v18376_v14 = vld [vmem:[#allocation17 + $0x4ac] ss:$16 sps:$4 sm:$0xff]  }
 0xedb   : > { %11379 = vmatpush1.bf16.msra.mxu0 %v18308_v11 }
 0xedc   : > { %11380 = vmatprep.subr.bf16.mxu0 %v18316_v15 }
 0xedf   : > { %11381 = vmatpush2.bf16.msra.mxu0 %v18314_v25 }
 0xee0   : > { %11382 = vmatprep.subr.bf16.mxu0 %v18322_v37  ;;  %v18374_v37 = vld [vmem:[#allocation17 + $0x4a8] ss:$16 sps:$4 sm:$0xff]  }
 0xee3   : > { %11383 = vmatpush2.bf16.msra.mxu0 %v18320_v39  ;;  %v18377_v39 = vld [vmem:[#allocation17 + $0x6e8] ss:$16 sps:$4 sm:$0xff]  }
 0xee4   : > { %11384 = vmatprep.subr.bf16.mxu0 %v18328_v3  ;;  %v18382_v3 = vld [vmem:[#allocation17 + $0x48c] ss:$16 sps:$4 sm:$0xff]  }
 0xee7   : > { %11385 = vmatpush2.bf16.msra.mxu0 %v18326_v24  ;;  %v18385_v24 = vld [vmem:[#allocation17 + $0x6cc] ss:$16 sps:$4 sm:$0xff]  }
 0xee8   : > { %11386 = vmatprep.subr.bf16.mxu0 %v18334_v20 }
 0xeeb   : > { %11387 = vmatpush2.bf16.msra.mxu0 %v18332_v45  ;;  %v18380_v45 = vld [vmem:[#allocation17 + $0x488] ss:$16 sps:$4 sm:$0xff]  }
 0xeec   : > { %11388 = vmatprep.subr.bf16.mxu0 %v18340_v12  ;;  %v18388_v12 = vld [vmem:[#allocation17 + $0x46c] ss:$16 sps:$4 sm:$0xff]  }
 0xeef   : > { %11389 = vmatpush2.bf16.msra.mxu0 %v18338_v35  ;;  %v18386_v35 = vld [vmem:[#allocation17 + $0x468] ss:$16 sps:$4 sm:$0xff]  }
 0xef0   : > { %11390 = vmatprep.subr.bf16.mxu0 %v18346_v29  ;;  %v18394_v29 = vld [vmem:[#allocation17 + $0x44c] ss:$16 sps:$4 sm:$0xff]  }
 0xef3   : > { %11391 = vmatpush2.bf16.msra.mxu0 %v18344_v16  ;;  %v18392_v16 = vld [vmem:[#allocation17 + $0x448] ss:$16 sps:$4 sm:$0xff]  }
 0xef4   : > { %11392 = vmatprep.subr.bf16.mxu0 %v18352_v63  ;;  %v18400_v63 = vld [vmem:[#allocation17 + $0x42c] ss:$16 sps:$4 sm:$0xff]  }
 0xef7   : > { %11393 = vmatpush2.bf16.msra.mxu0 %v18350_v2  ;;  %v18398_v2 = vld [vmem:[#allocation17 + $0x428] ss:$16 sps:$4 sm:$0xff]  }
 0xef8   : > { %11394 = vmatprep.subr.bf16.mxu0 %v18358_v50  ;;  %v18406_v50 = vld [vmem:[#allocation17 + $0x40c] ss:$16 sps:$4 sm:$0xff]  }
 0xefb   : > { %11395 = vmatpush2.bf16.msra.mxu0 %v18356_v13  ;;  %v18404_v13 = vld [vmem:[#allocation17 + $0x408] ss:$16 sps:$4 sm:$0xff]  }
 0xefc   : > { %11446 = vmatprep.subr.bf16.mxu0 %v18367_v38  ;;  %v18415_v38 = vld [vmem:[#allocation17 + $0x62c] ss:$16 sps:$4 sm:$0xff]  }
 0xf66   : > { %v21414_v55 = vpop.f32.mrf.mxu0 }
 0xf68   : > { %v21416_v46 = vpop.f32.mrf.mxu0 }
 0xf6a   : > { %v10326_v34 = vpop.f32.mrf.mxu0 }
 0xf6b   : > { %v18416_v34 = vld [vmem:[#allocation17 + $0x5c8] ss:$16 sps:$4 sm:$0xff]  }
 0xf6c   : > { %v10327_v49 = vpop.f32.mrf.mxu0 }
 0xf6d   : > { %v18419_v49 = vld [vmem:[#allocation17 + $0x608] ss:$16 sps:$4 sm:$0xff]  }
 0xf6e   : > { %v21418_v9 = vpop.f32.mrf.mxu0 }
 0xf70   : > { %v21420_v42 = vpop.f32.mrf.mxu0 }
 0xf72   : > { %v10367_v51 = vpop.f32.mrf.mxu0 }
 0xf73   : > { %v18424_v51 = vld [vmem:[#allocation17 + $0x5ac] ss:$16 sps:$4 sm:$0xff]  }
 0xf74   : > { %v10368_v60 = vpop.f32.mrf.mxu0 }
 0xf75   : > { %v18427_v60 = vld [vmem:[#allocation17 + $0x7ec] ss:$16 sps:$4 sm:$0xff]  }
 0xf76   : > { %v10543_v52 = vpop.f32.mrf.mxu0 }
 0xf77   : > { %v21422_v26 = vpack.c.bf16 %v10543_v52, %v10543_v52  ;;  %v18422_v52 = vld [vmem:[#allocation17 + $0x5a8] ss:$16 sps:$4 sm:$0xff]  }
 0xf78   : > { %v10545_v62 = vpop.f32.mrf.mxu0 }
 0xf79   : > { %v10592_v40 = vpack.c.bf16 %v10545_v62, %v10545_v62  ;;  %v18425_v62 = vld [vmem:[#allocation17 + $0x7e8] ss:$16 sps:$4 sm:$0xff]  }
 0xf7a   : > { %v10547_v33 = vpop.f32.mrf.mxu0 }
 0xf7b   : > { %11396 = vmatprep.mubr.bf16.mxu0 %v10592_v40  ;;  %v18428_v33 = vld [vmem:[#allocation17 + $0x588] ss:$16 sps:$4 sm:$0xff]  }
 0xf7c   : > { %v10548_v57 = vpop.f32.mrf.mxu0  ;;  %11397 = vmatmul.mubr.bf16.vlgmr.msra.gmra.mxu0 %v21422_v26 }
 0xf7d   : > { %11447 = vmatpush1.bf16.msra.mxu0 %v18365_v36  ;;  %11478 = vmatprep.mubr.bf16.mxu0 %v10592_v40  ;;  %v18430_v40 = vld [vmem:[#allocation17 + $0x58c] ss:$16 sps:$4 sm:$0xff]  }
 0xf7e   : > { %v10584_v47 = vpop.f32.mrf.mxu0  ;;  %11448 = vmatprep.subr.bf16.mxu0 %v18373_v41  ;;  %v18433_v36 = vld [vmem:[#allocation17 + $0x7cc] ss:$16 sps:$4 sm:$0xff]   ;;  %v18431_v41 = vld [vmem:[#allocation17 + $0x7c8] ss:$16 sps:$4 sm:$0xff]  }
 0xf7f   : > { %v21425_v11 = vpack.c.bf16 %v10584_v47, %v10584_v47  ;;  %v18436_v57 = vld [vmem:[#allocation17 + $0x56c] ss:$16 sps:$4 sm:$0xff]   ;;  %v18434_v47 = vld [vmem:[#allocation17 + $0x568] ss:$16 sps:$4 sm:$0xff]  }
 0xf80   : > { %v10586_v15 = vpop.f32.mrf.mxu0 }
 0xf81   : > { %v10594_v25 = vpack.c.bf16 %v10586_v15, %v10586_v15  ;;  %11449 = vmatpush1.bf16.msra.mxu0 %v18371_v17  ;;  %v18439_v17 = vld [vmem:[#allocation17 + $0x7ac] ss:$16 sps:$4 sm:$0xff]  }
 0xf82   : > { %11450 = vmatprep.subr.bf16.mxu0 %v18376_v14  ;;  %v10588_v20 = vpop.f32.mrf.mxu0  ;;  %v18437_v14 = vld [vmem:[#allocation17 + $0x7a8] ss:$16 sps:$4 sm:$0xff]   ;;  %v18442_v15 = vld [vmem:[#allocation17 + $0x54c] ss:$16 sps:$4 sm:$0xff]  }
 0xf83   : > { %11437 = vmatprep.mubr.bf16.mxu1 %v10594_v25  ;;  %v18446_v20 = vld [vmem:[#allocation17 + $0x528] ss:$16 sps:$4 sm:$0xff]  }
 0xf84   : > { %11438 = vmatmul.mubr.bf16.vlgmr.msra.gmra.mxu1 %v21425_v11  ;;  %v10589_v30 = vpop.f32.mrf.mxu0 }
 0xf85   : > { %11451 = vmatpush1.bf16.msra.mxu0 %v18374_v37  ;;  %11488 = vmatpush1.bf16.msra.mxu1 %v18377_v39  ;;  %v18440_v37 = vld [vmem:[#allocation17 + $0x548] ss:$16 sps:$4 sm:$0xff]  }
 0xf86   : > { %11452 = vmatprep.subr.bf16.mxu0 %v18382_v3  ;;  %11489 = vmatprep.subr.bf16.mxu1 %v18385_v24  ;;  %v18443_v39 = vld [vmem:[#allocation17 + $0x788] ss:$16 sps:$4 sm:$0xff]   ;;  %v18448_v3 = vld [vmem:[#allocation17 + $0x52c] ss:$16 sps:$4 sm:$0xff]  }
 0xf87   : > { %11519 = vmatprep.mubr.bf16.mxu1 %v10594_v25  ;;  %v18445_v25 = vld [vmem:[#allocation17 + $0x78c] ss:$16 sps:$4 sm:$0xff]   ;;  %v18449_v30 = vld [vmem:[#allocation17 + $0x768] ss:$16 sps:$4 sm:$0xff]  }
 0xf88   : > { %v18451_v24 = vld [vmem:[#allocation17 + $0x76c] ss:$16 sps:$4 sm:$0xff]  }
 0xf89   : > { %11453 = vmatpush1.bf16.msra.mxu0 %v18380_v45  ;;  %11490 = vmatpush1.bf16.msra.mxu1 %v18383_v54  ;;  %v18454_v45 = vld [vmem:[#allocation17 + $0x50c] ss:$16 sps:$4 sm:$0xff]  }
 0xf8a   : > { %11454 = vmatprep.subr.bf16.mxu0 %v18388_v12  ;;  %11491 = vmatprep.subr.bf16.mxu1 %v18391_v21  ;;  %v18457_v54 = vld [vmem:[#allocation17 + $0x74c] ss:$16 sps:$4 sm:$0xff]   ;;  %v18452_v12 = vld [vmem:[#allocation17 + $0x508] ss:$16 sps:$4 sm:$0xff]  }
 0xf8b   : > { %v18455_v21 = vld [vmem:[#allocation17 + $0x748] ss:$16 sps:$4 sm:$0xff]  }
 0xf8d   : > { %11455 = vmatpush1.bf16.msra.mxu0 %v18386_v35  ;;  %11492 = vmatpush1.bf16.msra.mxu1 %v18389_v31  ;;  %v18460_v35 = vld [vmem:[#allocation17 + $0x72c] ss:$16 sps:$4 sm:$0xff]   ;;  %v18463_v31 = vld [vmem:[#allocation17 + $0xe4] ss:$16 sps:$4 sm:$0xff]  }
 0xf8e   : > { %11456 = vmatprep.subr.bf16.mxu0 %v18394_v29  ;;  %11493 = vmatprep.subr.bf16.mxu1 %v18397_v1  ;;  %v18458_v29 = vld [vmem:[#allocation17 + $0x728] ss:$16 sps:$4 sm:$0xff]   ;;  %v18461_v1 = vld [vmem:[#allocation17 + $0xe0] ss:$16 sps:$4 sm:$0xff]  }
 0xf91   : > { %11457 = vmatpush1.bf16.msra.mxu0 %v18392_v16  ;;  %11494 = vmatpush1.bf16.msra.mxu1 %v18395_v8  ;;  %v18466_v16 = vld [vmem:[#allocation17 + $0x70c] ss:$16 sps:$4 sm:$0xff]   ;;  %v18469_v8 = vld [vmem:[#allocation17 + $0xc4] ss:$16 sps:$4 sm:$0xff]  }
 0xf92   : > { %11458 = vmatprep.subr.bf16.mxu0 %v18400_v63  ;;  %11495 = vmatprep.subr.bf16.mxu1 %v18403_v58  ;;  %v21430_v63 = vpack.c.bf16 %v21416_v46, %v21416_v46  ;;  %v18464_v58 = vld [vmem:[#allocation17 + $0x708] ss:$16 sps:$4 sm:$0xff]   ;;  %v18478_v46 = vld [vmem:[#allocation17 + $0x84] ss:$16 sps:$4 sm:$0xff]  }
 0xf95   : > { %11459 = vmatpush1.bf16.msra.mxu0 %v18398_v2  ;;  %11496 = vmatpush1.bf16.msra.mxu1 %v18401_v19  ;;  %v18467_v2 = vld [vmem:[#allocation17 + $0xc0] ss:$16 sps:$4 sm:$0xff]   ;;  %v18472_v19 = vld [vmem:[#allocation17 + $0xa4] ss:$16 sps:$4 sm:$0xff]  }
 0xf96   : > { %11460 = vmatprep.subr.bf16.mxu0 %v18406_v50  ;;  %11497 = vmatprep.subr.bf16.mxu1 %v18409_v10  ;;  %v18475_v50 = vld [vmem:[#allocation17 + $0x2e4] ss:$16 sps:$4 sm:$0xff]   ;;  %v18470_v10 = vld [vmem:[#allocation17 + $0xa0] ss:$16 sps:$4 sm:$0xff]  }
 0xf99   : > { %11461 = vmatpush1.bf16.msra.mxu0 %v18404_v13  ;;  %11498 = vmatpush1.bf16.msra.mxu1 %v18407_v53  ;;  %v18473_v13 = vld [vmem:[#allocation17 + $0x2e0] ss:$16 sps:$4 sm:$0xff]   ;;  %v18481_v53 = vld [vmem:[#allocation17 + $0x2c4] ss:$16 sps:$4 sm:$0xff]  }
 0xf9a   : > { %11462 = vmatprep.subr.bf16.mxu0 %v18412_v43  ;;  %11499 = vmatprep.subr.bf16.mxu1 %v18415_v38  ;;  %v18476_v43 = vld [vmem:[#allocation17 + $0x80] ss:$16 sps:$4 sm:$0xff]  }
 0xf9b   : > { %v18479_v38 = vld [vmem:[#allocation17 + $0x2c0] ss:$16 sps:$4 sm:$0xff]  }
 0xf9d   : > { %11463 = vmatpush2.bf16.msra.mxu0 %v18410_v27  ;;  %11500 = vmatpush1.bf16.msra.mxu1 %v18413_v6  ;;  %v18484_v27 = vld [vmem:[#allocation17 + $0x64] ss:$16 sps:$4 sm:$0xff]  }
 0xf9e   : > { %11464 = vmatprep.subr.bf16.mxu0 %v18418_v22  ;;  %11501 = vmatprep.subr.bf16.mxu1 %v18421_v18  ;;  %v18487_v6 = vld [vmem:[#allocation17 + $0x2a4] ss:$16 sps:$4 sm:$0xff]   ;;  %v18482_v22 = vld [vmem:[#allocation17 + $0x60] ss:$16 sps:$4 sm:$0xff]  }
 0xf9f   : > { %v18485_v18 = vld [vmem:[#allocation17 + $0x2a0] ss:$16 sps:$4 sm:$0xff]  }
 0xfa1   : > { %11465 = vmatpush2.bf16.msra.mxu0 %v18416_v34  ;;  %11502 = vmatpush1.bf16.msra.mxu1 %v18419_v49  ;;  %v18493_v34 = vld [vmem:[#allocation17 + $0x284] ss:$16 sps:$4 sm:$0xff]   ;;  %v18491_v49 = vld [vmem:[#allocation17 + $0x280] ss:$16 sps:$4 sm:$0xff]  }
 0xfa2   : > { %11466 = vmatprep.subr.bf16.mxu0 %v18424_v51  ;;  %11503 = vmatprep.subr.bf16.mxu1 %v18427_v60  ;;  %v18496_v51 = vld [vmem:[#allocation17 + $0x24] ss:$16 sps:$4 sm:$0xff]  }
 0xfa3   : > { %v18499_v60 = vld [vmem:[#allocation17 + $0x264] ss:$16 sps:$4 sm:$0xff]  }
 0xfa5   : > { %11467 = vmatpush2.bf16.msra.mxu0 %v18422_v52  ;;  %11504 = vmatpush2.bf16.msra.mxu1 %v18425_v62  ;;  %v18494_v52 = vld [vmem:[#allocation17 + $0x20] ss:$16 sps:$4 sm:$0xff]  }
 0xfa6   : > { %11468 = vmatprep.subr.bf16.mxu0 %v18430_v40  ;;  %11505 = vmatprep.subr.bf16.mxu1 %v18433_v36  ;;  %v18497_v62 = vld [vmem:[#allocation17 + $0x260] ss:$16 sps:$4 sm:$0xff]   ;;  %v18502_v40 = vld [vmem:[#allocation17 + $0x4] ss:$16 sps:$4 sm:$0xff]  }
 0xfa7   : > { %v18505_v36 = vld [vmem:[#allocation17 + $0x244] ss:$16 sps:$4 sm:$0xff]  }
 0xfa9   : > { %11469 = vmatpush2.bf16.msra.mxu0 %v18428_v33  ;;  %11506 = vmatpush2.bf16.msra.mxu1 %v18431_v41  ;;  %v18500_v33 = vld [vmem:[#allocation17] ss:$16 sps:$4 sm:$0xff]  }
 0xfaa   : > { %11470 = vmatprep.subr.bf16.mxu0 %v18436_v57  ;;  %11507 = vmatprep.subr.bf16.mxu1 %v18439_v17  ;;  %v18503_v41 = vld [vmem:[#allocation17 + $0x240] ss:$16 sps:$4 sm:$0xff]   ;;  %v18508_v57 = vld [vmem:[#allocation17 + $0x1e4] ss:$16 sps:$4 sm:$0xff]  }
 0xfab   : > { %v18511_v17 = vld [vmem:[#allocation17 + $0x224] ss:$16 sps:$4 sm:$0xff]  }
 0xfad   : > { %11471 = vmatpush2.bf16.msra.mxu0 %v18434_v47  ;;  %11508 = vmatpush2.bf16.msra.mxu1 %v18437_v14  ;;  %v18506_v47 = vld [vmem:[#allocation17 + $0x1e0] ss:$16 sps:$4 sm:$0xff]  }
 0xfae   : > { %11472 = vmatprep.subr.bf16.mxu0 %v18442_v15  ;;  %11509 = vmatprep.subr.bf16.mxu1 %v18445_v25  ;;  %v18509_v14 = vld [vmem:[#allocation17 + $0x220] ss:$16 sps:$4 sm:$0xff]   ;;  %v18514_v15 = vld [vmem:[#allocation17 + $0x1c4] ss:$16 sps:$4 sm:$0xff]  }
 0xfaf   : > { %v18517_v25 = vld [vmem:[#allocation17 + $0x204] ss:$16 sps:$4 sm:$0xff]  }
 0xfb1   : > { %11473 = vmatpush2.bf16.msra.mxu0 %v18440_v37  ;;  %11510 = vmatpush2.bf16.msra.mxu1 %v18443_v39  ;;  %v18512_v37 = vld [vmem:[#allocation17 + $0x1c0] ss:$16 sps:$4 sm:$0xff]  }
 0xfb2   : > { %11474 = vmatprep.subr.bf16.mxu0 %v18448_v3  ;;  %11511 = vmatprep.subr.bf16.mxu1 %v18451_v24  ;;  %v18515_v39 = vld [vmem:[#allocation17 + $0x200] ss:$16 sps:$4 sm:$0xff]   ;;  %v18520_v3 = vld [vmem:[#allocation17 + $0x1a4] ss:$16 sps:$4 sm:$0xff]  }
 0xfb3   : > { %v18523_v24 = vld [vmem:[#allocation17 + $0x3e4] ss:$16 sps:$4 sm:$0xff]  }
 0xfb5   : > { %11475 = vmatpush2.bf16.msra.mxu0 %v18446_v20  ;;  %11512 = vmatpush2.bf16.msra.mxu1 %v18449_v30  ;;  %v18518_v20 = vld [vmem:[#allocation17 + $0x1a0] ss:$16 sps:$4 sm:$0xff]  }
 0xfb6   : > { %11476 = vmatprep.subr.bf16.mxu0 %v18454_v45  ;;  %11513 = vmatprep.subr.bf16.mxu1 %v18457_v54  ;;  %v18521_v30 = vld [vmem:[#allocation17 + $0x3e0] ss:$16 sps:$4 sm:$0xff]   ;;  %v18526_v45 = vld [vmem:[#allocation17 + $0x184] ss:$16 sps:$4 sm:$0xff]  }
 0xfb7   : > { %v18529_v54 = vld [vmem:[#allocation17 + $0x3c4] ss:$16 sps:$4 sm:$0xff]  }
 0xfb9   : > { %11477 = vmatpush2.bf16.msra.mxu0 %v18452_v12  ;;  %11514 = vmatpush2.bf16.msra.mxu1 %v18455_v21  ;;  %v18524_v12 = vld [vmem:[#allocation17 + $0x180] ss:$16 sps:$4 sm:$0xff]  }
 0xfba   : > { %11515 = vmatprep.subr.bf16.mxu1 %v18460_v35  ;;  %12168 = vmatprep.subr.bf16.mxu0 %v18463_v31  ;;  %v18527_v21 = vld [vmem:[#allocation17 + $0x3c0] ss:$16 sps:$4 sm:$0xff]   ;;  %v18532_v35 = vld [vmem:[#allocation17 + $0x164] ss:$16 sps:$4 sm:$0xff]  }
 0xfbb   : > { %v18535_v31 = vld [vmem:[#allocation17 + $0x3a4] ss:$16 sps:$4 sm:$0xff]  }
 0xfbc   : > { %11479 = vmatmul.mubr.bf16.vlgmr.msra.gmra.mxu0 %v21422_v26  ;;  %v21436_v26 = vpack.c.bf16 %v21420_v42, %v21420_v42  ;;  %v18490_v42 = vld [vmem:[#allocation17 + $0x44] ss:$16 sps:$4 sm:$0xff]  }
 0xfbd   : > { %11516 = vmatpush2.bf16.msra.mxu1 %v18458_v29  ;;  %12169 = vmatpush1.bf16.msra.mxu0 %v18461_v1  ;;  %v18530_v29 = vld [vmem:[#allocation17 + $0x160] ss:$16 sps:$4 sm:$0xff]  }
 0xfbe   : > { %12200 = vmatprep.mubr.bf16.mxu0 %v21430_v63  ;;  %11517 = vmatprep.subr.bf16.mxu1 %v18466_v16  ;;  %v18533_v1 = vld [vmem:[#allocation17 + $0x3a0] ss:$16 sps:$4 sm:$0xff]   ;;  %v18538_v16 = vld [vmem:[#allocation17 + $0x144] ss:$16 sps:$4 sm:$0xff]  }
 0xfbf   : > { %12170 = vmatprep.subr.bf16.mxu0 %v18469_v8  ;;  %v18541_v8 = vld [vmem:[#allocation17 + $0x384] ss:$16 sps:$4 sm:$0xff]  }
 0xfc1   : > { %11518 = vmatpush2.bf16.msra.mxu1 %v18464_v58  ;;  %12171 = vmatpush1.bf16.msra.mxu0 %v18467_v2  ;;  %v18536_v58 = vld [vmem:[#allocation17 + $0x140] ss:$16 sps:$4 sm:$0xff]  }
 0xfc2   : > { %12172 = vmatprep.subr.bf16.mxu0 %v18472_v19  ;;  %12209 = vmatprep.subr.bf16.mxu1 %v18475_v50  ;;  %v18539_v2 = vld [vmem:[#allocation17 + $0x380] ss:$16 sps:$4 sm:$0xff]   ;;  %v18544_v19 = vld [vmem:[#allocation17 + $0x124] ss:$16 sps:$4 sm:$0xff]  }
 0xfc3   : > { %v18547_v50 = vld [vmem:[#allocation17 + $0x364] ss:$16 sps:$4 sm:$0xff]  }
 0xfc4   : > { %11520 = vmatmul.mubr.bf16.vlgmr.msra.gmra.mxu1 %v21425_v11  ;;  %v18488_v11 = vld [vmem:[#allocation17 + $0x40] ss:$16 sps:$4 sm:$0xff]  }
 0xfc5   : > { %12173 = vmatpush1.bf16.msra.mxu0 %v18470_v10  ;;  %12210 = vmatpush1.bf16.msra.mxu1 %v18473_v13  ;;  %v18542_v10 = vld [vmem:[#allocation17 + $0x120] ss:$16 sps:$4 sm:$0xff]  }
 0xfc6   : > { %12241 = vmatprep.mubr.bf16.mxu1 %v21436_v26  ;;  %12174 = vmatprep.subr.bf16.mxu0 %v18478_v46  ;;  %v18545_v13 = vld [vmem:[#allocation17 + $0x360] ss:$16 sps:$4 sm:$0xff]   ;;  %v18550_v46 = vld [vmem:[#allocation17 + $0x104] ss:$16 sps:$4 sm:$0xff]  }
 0xfc7   : > { %12211 = vmatprep.subr.bf16.mxu1 %v18481_v53  ;;  %v18553_v53 = vld [vmem:[#allocation17 + $0x344] ss:$16 sps:$4 sm:$0xff]  }
 0xfc9   : > { %12175 = vmatpush1.bf16.msra.mxu0 %v18476_v43  ;;  %12212 = vmatpush1.bf16.msra.mxu1 %v18479_v38  ;;  %v18548_v43 = vld [vmem:[#allocation17 + $0x100] ss:$16 sps:$4 sm:$0xff]  }
 0xfca   : > { %12176 = vmatprep.subr.bf16.mxu0 %v18484_v27  ;;  %12213 = vmatprep.subr.bf16.mxu1 %v18487_v6  ;;  %v18551_v38 = vld [vmem:[#allocation17 + $0x340] ss:$16 sps:$4 sm:$0xff]   ;;  %v18556_v27 = vld [vmem:[#allocation17 + $0x324] ss:$16 sps:$4 sm:$0xff]   ;;  %v18559_v6 = vld [vmem:[#allocation17 + $0xec] ss:$16 sps:$4 sm:$0xff]  }
 0xfcd   : > { %12177 = vmatpush1.bf16.msra.mxu0 %v18482_v22  ;;  %12214 = vmatpush1.bf16.msra.mxu1 %v18485_v18  ;;  %v18554_v22 = vld [vmem:[#allocation17 + $0x320] ss:$16 sps:$4 sm:$0xff]   ;;  %v18557_v18 = vld [vmem:[#allocation17 + $0xe8] ss:$16 sps:$4 sm:$0xff]  }
 0xfce   : > { %12178 = vmatprep.subr.bf16.mxu0 %v18490_v42  ;;  %12215 = vmatprep.subr.bf16.mxu1 %v18493_v34  ;;  %v21442_v42 = vpack.c.bf16 %v21414_v55, %v21414_v55  ;;  %v18562_v34 = vld [vmem:[#allocation17 + $0x304] ss:$16 sps:$4 sm:$0xff]   ;;  %v18566_v55 = vld [vmem:[#allocation17 + $0xa8] ss:$16 sps:$4 sm:$0xff]  }
 0xfd1   : > { %12179 = vmatpush1.bf16.msra.mxu0 %v18488_v11  ;;  %12216 = vmatpush1.bf16.msra.mxu1 %v18491_v49  ;;  %v18565_v11 = vld [vmem:[#allocation17 + $0xcc] ss:$16 sps:$4 sm:$0xff]   ;;  %v18560_v49 = vld [vmem:[#allocation17 + $0x300] ss:$16 sps:$4 sm:$0xff]  }
 0xfd2   : > { %12180 = vmatprep.subr.bf16.mxu0 %v18496_v51  ;;  %12217 = vmatprep.subr.bf16.mxu1 %v18499_v60  ;;  %v18563_v51 = vld [vmem:[#allocation17 + $0xc8] ss:$16 sps:$4 sm:$0xff]   ;;  %v18568_v60 = vld [vmem:[#allocation17 + $0xac] ss:$16 sps:$4 sm:$0xff]  }
 0xfd5   : > { %12181 = vmatpush1.bf16.msra.mxu0 %v18494_v52  ;;  %12218 = vmatpush1.bf16.msra.mxu1 %v18497_v62  ;;  %v18571_v52 = vld [vmem:[#allocation17 + $0x2ec] ss:$16 sps:$4 sm:$0xff]   ;;  %v18569_v62 = vld [vmem:[#allocation17 + $0x2e8] ss:$16 sps:$4 sm:$0xff]  }
 0xfd6   : > { %12182 = vmatprep.subr.bf16.mxu0 %v18502_v40  ;;  %12219 = vmatprep.subr.bf16.mxu1 %v18505_v36  ;;  %v21448_v40 = vpack.c.bf16 %v21418_v9, %v21418_v9  ;;  %v18574_v36 = vld [vmem:[#allocation17 + $0x8c] ss:$16 sps:$4 sm:$0xff]   ;;  %v18578_v9 = vld [vmem:[#allocation17 + $0x68] ss:$16 sps:$4 sm:$0xff]  }
 0xfd9   : > { %12183 = vmatpush1.bf16.msra.mxu0 %v18500_v33  ;;  %12220 = vmatpush1.bf16.msra.mxu1 %v18503_v41  ;;  %v18577_v33 = vld [vmem:[#allocation17 + $0x2cc] ss:$16 sps:$4 sm:$0xff]   ;;  %v18575_v41 = vld [vmem:[#allocation17 + $0x2c8] ss:$16 sps:$4 sm:$0xff]  }
 0xfda   : > { %12184 = vmatprep.subr.bf16.mxu0 %v18508_v57  ;;  %12221 = vmatprep.subr.bf16.mxu1 %v18511_v17  ;;  %v18580_v57 = vld [vmem:[#allocation17 + $0x6c] ss:$16 sps:$4 sm:$0xff]  }
 0xfdb   : > { %v18583_v17 = vld [vmem:[#allocation17 + $0x2ac] ss:$16 sps:$4 sm:$0xff]  }
 0xfdd   : > { %12185 = vmatpush2.bf16.msra.mxu0 %v18506_v47  ;;  %12222 = vmatpush1.bf16.msra.mxu1 %v18509_v14  ;;  %v18581_v47 = vld [vmem:[#allocation17 + $0x2a8] ss:$16 sps:$4 sm:$0xff]   ;;  %v18586_v14 = vld [vmem:[#allocation17 + $0x4c] ss:$16 sps:$4 sm:$0xff]  }
 0xfde   : > { %12186 = vmatprep.subr.bf16.mxu0 %v18514_v15  ;;  %12223 = vmatprep.subr.bf16.mxu1 %v18517_v25  ;;  %v18589_v15 = vld [vmem:[#allocation17 + $0x28c] ss:$16 sps:$4 sm:$0xff]   ;;  %v18584_v25 = vld [vmem:[#allocation17 + $0x48] ss:$16 sps:$4 sm:$0xff]  }
 0xfe1   : > { %12187 = vmatpush2.bf16.msra.mxu0 %v18512_v37  ;;  %12224 = vmatpush1.bf16.msra.mxu1 %v18515_v39  ;;  %v18587_v37 = vld [vmem:[#allocation17 + $0x288] ss:$16 sps:$4 sm:$0xff]   ;;  %v18592_v39 = vld [vmem:[#allocation17 + $0x2c] ss:$16 sps:$4 sm:$0xff]  }
 0xfe2   : > { %12188 = vmatprep.subr.bf16.mxu0 %v18520_v3  ;;  %12225 = vmatprep.subr.bf16.mxu1 %v18523_v24  ;;  %v18590_v3 = vld [vmem:[#allocation17 + $0x28] ss:$16 sps:$4 sm:$0xff]  }
 0xfe3   : > { %v18593_v24 = vld [vmem:[#allocation17 + $0x268] ss:$16 sps:$4 sm:$0xff]  }
 0xfe5   : > { %12189 = vmatpush2.bf16.msra.mxu0 %v18518_v20  ;;  %12226 = vmatpush2.bf16.msra.mxu1 %v18521_v30  ;;  %v18598_v20 = vld [vmem:[#allocation17 + $0xc] ss:$16 sps:$4 sm:$0xff]  }
 0xfe6   : > { %12190 = vmatprep.subr.bf16.mxu0 %v18526_v45  ;;  %12227 = vmatprep.subr.bf16.mxu1 %v18529_v54  ;;  %v18601_v30 = vld [vmem:[#allocation17 + $0x24c] ss:$16 sps:$4 sm:$0xff]   ;;  %v18596_v45 = vld [vmem:[#allocation17 + $0x8] ss:$16 sps:$4 sm:$0xff]  }
 0xfe7   : > { %v18599_v54 = vld [vmem:[#allocation17 + $0x248] ss:$16 sps:$4 sm:$0xff]  }
 0xfe9   : > { %12191 = vmatpush2.bf16.msra.mxu0 %v18524_v12  ;;  %12228 = vmatpush2.bf16.msra.mxu1 %v18527_v21  ;;  %v18604_v12 = vld [vmem:[#allocation17 + $0x1ec] ss:$16 sps:$4 sm:$0xff]  }
 0xfea   : > { %12192 = vmatprep.subr.bf16.mxu0 %v18532_v35  ;;  %12229 = vmatprep.subr.bf16.mxu1 %v18535_v31  ;;  %v18607_v21 = vld [vmem:[#allocation17 + $0x22c] ss:$16 sps:$4 sm:$0xff]   ;;  %v18602_v35 = vld [vmem:[#allocation17 + $0x1e8] ss:$16 sps:$4 sm:$0xff]  }
 0xfeb   : > { %v18605_v31 = vld [vmem:[#allocation17 + $0x228] ss:$16 sps:$4 sm:$0xff]  }
 0xfed   : > { %12193 = vmatpush2.bf16.msra.mxu0 %v18530_v29  ;;  %12230 = vmatpush2.bf16.msra.mxu1 %v18533_v1  ;;  %v18610_v29 = vld [vmem:[#allocation17 + $0x1cc] ss:$16 sps:$4 sm:$0xff]  }
 0xfee   : > { %12194 = vmatprep.subr.bf16.mxu0 %v18538_v16  ;;  %12231 = vmatprep.subr.bf16.mxu1 %v18541_v8  ;;  %v18613_v1 = vld [vmem:[#allocation17 + $0x20c] ss:$16 sps:$4 sm:$0xff]   ;;  %v18608_v16 = vld [vmem:[#allocation17 + $0x1c8] ss:$16 sps:$4 sm:$0xff]  }
 0xfef   : > { %v18611_v8 = vld [vmem:[#allocation17 + $0x208] ss:$16 sps:$4 sm:$0xff]  }
 0xff1   : > { %12195 = vmatpush2.bf16.msra.mxu0 %v18536_v58  ;;  %12232 = vmatpush2.bf16.msra.mxu1 %v18539_v2  ;;  %v18616_v58 = vld [vmem:[#allocation17 + $0x1ac] ss:$16 sps:$4 sm:$0xff]  }
 0xff2   : > { %12196 = vmatprep.subr.bf16.mxu0 %v18544_v19  ;;  %12233 = vmatprep.subr.bf16.mxu1 %v18547_v50  ;;  %v18619_v2 = vld [vmem:[#allocation17 + $0x3ec] ss:$16 sps:$4 sm:$0xff]   ;;  %v18614_v19 = vld [vmem:[#allocation17 + $0x1a8] ss:$16 sps:$4 sm:$0xff]  }
 0xff3   : > { %v18617_v50 = vld [vmem:[#allocation17 + $0x3e8] ss:$16 sps:$4 sm:$0xff]  }
 0xff5   : > { %12197 = vmatpush2.bf16.msra.mxu0 %v18542_v10  ;;  %12234 = vmatpush2.bf16.msra.mxu1 %v18545_v13  ;;  %v18622_v10 = vld [vmem:[#allocation17 + $0x18c] ss:$16 sps:$4 sm:$0xff]  }
 0xff6   : > { %12198 = vmatprep.subr.bf16.mxu0 %v18550_v46  ;;  %12235 = vmatprep.subr.bf16.mxu1 %v18553_v53  ;;  %v18625_v13 = vld [vmem:[#allocation17 + $0x3cc] ss:$16 sps:$4 sm:$0xff]   ;;  %v18620_v46 = vld [vmem:[#allocation17 + $0x188] ss:$16 sps:$4 sm:$0xff]  }
 0xff7   : > { %v18623_v53 = vld [vmem:[#allocation17 + $0x3c8] ss:$16 sps:$4 sm:$0xff]  }
 0xff9   : > { %12199 = vmatpush2.bf16.msra.mxu0 %v18548_v43  ;;  %12236 = vmatpush2.bf16.msra.mxu1 %v18551_v38  ;;  %v18628_v43 = vld [vmem:[#allocation17 + $0x16c] ss:$16 sps:$4 sm:$0xff]  }
 0xffa   : > { %12237 = vmatprep.subr.bf16.mxu1 %v18556_v27  ;;  %12250 = vmatprep.subr.bf16.mxu0 %v18559_v6  ;;  %v18631_v38 = vld [vmem:[#allocation17 + $0x3ac] ss:$16 sps:$4 sm:$0xff]   ;;  %v18626_v27 = vld [vmem:[#allocation17 + $0x168] ss:$16 sps:$4 sm:$0xff]  }
 0xffb   : > { %v18629_v6 = vld [vmem:[#allocation17 + $0x3a8] ss:$16 sps:$4 sm:$0xff]  }
 0xffc   : > { %12201 = vmatmul.mubr.bf16.vlgmr.msra.gmra.mxu0 %v21442_v42 }
 0xffd   : > { %12238 = vmatpush2.bf16.msra.mxu1 %v18554_v22  ;;  %12251 = vmatpush1.bf16.msra.mxu0 %v18557_v18  ;;  %v18634_v22 = vld [vmem:[#allocation17 + $0x14c] ss:$16 sps:$4 sm:$0xff]  }
 0xffe   : > { %12282 = vmatprep.mubr.bf16.mxu0 %v21430_v63  ;;  %12239 = vmatprep.subr.bf16.mxu1 %v18562_v34  ;;  %v18572_v63 = vld [vmem:[#allocation17 + $0x88] ss:$16 sps:$4 sm:$0xff]   ;;  %v18637_v18 = vld [vmem:[#allocation17 + $0x38c] ss:$16 sps:$4 sm:$0xff]  }
 0xfff   : > { %12252 = vmatprep.subr.bf16.mxu0 %v18565_v11  ;;  %v18632_v34 = vld [vmem:[#allocation17 + $0x148] ss:$16 sps:$4 sm:$0xff]  }
0x1000   : > { %v18635_v11 = vld [vmem:[#allocation17 + $0x388] ss:$16 sps:$4 sm:$0xff]  }
0x1001   : > { %12240 = vmatpush2.bf16.msra.mxu1 %v18560_v49  ;;  %12253 = vmatpush1.bf16.msra.mxu0 %v18563_v51  ;;  %v18640_v49 = vld [vmem:[#allocation17 + $0x12c] ss:$16 sps:$4 sm:$0xff]  }
0x1002   : > { %12254 = vmatprep.subr.bf16.mxu0 %v18568_v60  ;;  %12291 = vmatprep.subr.bf16.mxu1 %v18571_v52  ;;  %v18643_v51 = vld [vmem:[#allocation17 + $0x36c] ss:$16 sps:$4 sm:$0xff]   ;;  %v18638_v60 = vld [vmem:[#allocation17 + $0x128] ss:$16 sps:$4 sm:$0xff]  }
0x1003   : > { %v18641_v52 = vld [vmem:[#allocation17 + $0x368] ss:$16 sps:$4 sm:$0xff]  }
0x1004   : > { %12242 = vmatmul.mubr.bf16.vlgmr.msra.gmra.mxu1 %v21448_v40 }
0x1005   : > { %12255 = vmatpush1.bf16.msra.mxu0 %v18566_v55  ;;  %12292 = vmatpush1.bf16.msra.mxu1 %v18569_v62  ;;  %v18646_v55 = vld [vmem:[#allocation17 + $0x10c] ss:$16 sps:$4 sm:$0xff]  }
0x1006   : > { %12323 = vmatprep.mubr.bf16.mxu1 %v21436_v26  ;;  %12256 = vmatprep.subr.bf16.mxu0 %v18574_v36  ;;  %v18595_v26 = vld [vmem:[#allocation17 + $0x26c] ss:$16 sps:$4 sm:$0xff]   ;;  %v18644_v36 = vld [vmem:[#allocation17 + $0x108] ss:$16 sps:$4 sm:$0xff]  }
0x1007   : > { %12293 = vmatprep.subr.bf16.mxu1 %v18577_v33  ;;  %v18649_v62 = vld [vmem:[#allocation17 + $0x34c] ss:$16 sps:$4 sm:$0xff]   ;;  %v18647_v33 = vld [vmem:[#allocation17 + $0x348] ss:$16 sps:$4 sm:$0xff]  }
0x1009   : > { %12257 = vmatpush1.bf16.msra.mxu0 %v18572_v63  ;;  %12294 = vmatpush1.bf16.msra.mxu1 %v18575_v41  ;;  %v18652_v63 = vld [vmem:[#allocation17 + $0x32c] ss:$16 sps:$4 sm:$0xff]   ;;  %v12332_v41 = vadd.s32 2, %v21964_v28 }
0x100a   : > { %12258 = vmatprep.subr.bf16.mxu0 %v18580_v57  ;;  %12295 = vmatprep.subr.bf16.mxu1 %v18583_v17  ;;  %v18650_v57 = vld [vmem:[#allocation17 + $0x328] ss:$16 sps:$4 sm:$0xff]   ;;  %v18655_v17 = vld [vmem:[#allocation17 + $0x30c] ss:$16 sps:$4 sm:$0xff]  }
0x100b   : > { %vm12333_vm0 = vcmp.eq.s32.totalorder %v21965_v5, %v12332_v41  ;;  %v18713_v41 = vld [vmem:[#allocation17 + $0xbe0] ss:$16 sps:$4 sm:$0xff]  }
0x100d   : > { %12259 = vmatpush1.bf16.msra.mxu0 %v18578_v9  ;;  %12296 = vmatpush1.bf16.msra.mxu1 %v18581_v47  ;;  %v18653_v47 = vld [vmem:[#allocation17 + $0x308] ss:$16 sps:$4 sm:$0xff]  }
0x100e   : > { %12260 = vmatprep.subr.bf16.mxu0 %v18586_v14  ;;  %12297 = vmatprep.subr.bf16.mxu1 %v18589_v15  ;;  %v12334_v14 = vsel %vm12333_vm0, 1.0, %v21966_v44 }
0x1011   : > { %12261 = vmatpush1.bf16.msra.mxu0 %v18584_v25  ;;  %12298 = vmatpush1.bf16.msra.mxu1 %v18587_v37  ;;  %v12335_v25 = vpack.c.bf16 %v12334_v14, %v12334_v14  ;;  %v18710_v14 = vld [vmem:[#allocation17 + $0x9a0] ss:$16 sps:$4 sm:$0xff]  }
0x1012   : > { %12262 = vmatprep.subr.bf16.mxu0 %v18592_v39  ;;  %12299 = vmatprep.subr.bf16.mxu1 %v18595_v26 }
0x1015   : > { %12263 = vmatpush1.bf16.msra.mxu0 %v18590_v3  ;;  %12300 = vmatpush1.bf16.msra.mxu1 %v18593_v24 }
0x1016   : > { %12264 = vmatprep.subr.bf16.mxu0 %v18598_v20  ;;  %12301 = vmatprep.subr.bf16.mxu1 %v18601_v30  ;;  %v18656_v30 = vld [vmem:[#allocation17 + $0x8e0] ss:$16 sps:$4 sm:$0xff]  }
0x1019   : > { %12265 = vmatpush1.bf16.msra.mxu0 %v18596_v45  ;;  %12302 = vmatpush1.bf16.msra.mxu1 %v18599_v54  ;;  %v18658_v45 = vld [vmem:[#allocation17 + $0x8e4] ss:$16 sps:$4 sm:$0xff]  }
0x101a   : > { %12266 = vmatprep.subr.bf16.mxu0 %v18604_v12  ;;  %12303 = vmatprep.subr.bf16.mxu1 %v18607_v21  ;;  %v18661_v12 = vld [vmem:[#allocation17 + $0x8c4] ss:$16 sps:$4 sm:$0xff]   ;;  %v18665_v21 = vld [vmem:[#allocation17 + $0xae0] ss:$16 sps:$4 sm:$0xff]  }
0x101d   : > { %12267 = vmatpush2.bf16.msra.mxu0 %v18602_v35  ;;  %12304 = vmatpush1.bf16.msra.mxu1 %v18605_v31  ;;  %v18667_v35 = vld [vmem:[#allocation17 + $0xae4] ss:$16 sps:$4 sm:$0xff]  }
0x101e   : > { %12268 = vmatprep.subr.bf16.mxu0 %v18610_v29  ;;  %12305 = vmatprep.subr.bf16.mxu1 %v18613_v1  ;;  %v18664_v31 = vld [vmem:[#allocation17 + $0x8a4] ss:$16 sps:$4 sm:$0xff]   ;;  %v18671_v1 = vld [vmem:[#allocation17 + $0xac0] ss:$16 sps:$4 sm:$0xff]  }
0x101f   : > { %v18673_v29 = vld [vmem:[#allocation17 + $0xac4] ss:$16 sps:$4 sm:$0xff]  }
0x1021   : > { %12269 = vmatpush2.bf16.msra.mxu0 %v18608_v16  ;;  %12306 = vmatpush1.bf16.msra.mxu1 %v18611_v8  ;;  %v18662_v16 = vld [vmem:[#allocation17 + $0x8a0] ss:$16 sps:$4 sm:$0xff]   ;;  %v18679_v8 = vld [vmem:[#allocation17 + $0xaa4] ss:$16 sps:$4 sm:$0xff]  }
0x1022   : > { %12270 = vmatprep.subr.bf16.mxu0 %v18616_v58  ;;  %12307 = vmatprep.subr.bf16.mxu1 %v18619_v2  ;;  %v18670_v58 = vld [vmem:[#allocation17 + $0x884] ss:$16 sps:$4 sm:$0xff]   ;;  %v18677_v2 = vld [vmem:[#allocation17 + $0xaa0] ss:$16 sps:$4 sm:$0xff]  }
0x1025   : > { %12271 = vmatpush2.bf16.msra.mxu0 %v18614_v19  ;;  %12308 = vmatpush2.bf16.msra.mxu1 %v18617_v50  ;;  %v18668_v19 = vld [vmem:[#allocation17 + $0x880] ss:$16 sps:$4 sm:$0xff]   ;;  %v18685_v50 = vld [vmem:[#allocation17 + $0xa84] ss:$16 sps:$4 sm:$0xff]  }
0x1026   : > { %12272 = vmatprep.subr.bf16.mxu0 %v18622_v10  ;;  %12309 = vmatprep.subr.bf16.mxu1 %v18625_v13  ;;  %v18676_v10 = vld [vmem:[#allocation17 + $0x864] ss:$16 sps:$4 sm:$0xff]   ;;  %v18683_v13 = vld [vmem:[#allocation17 + $0xa80] ss:$16 sps:$4 sm:$0xff]  }
0x1029   : > { %12273 = vmatpush2.bf16.msra.mxu0 %v18620_v46  ;;  %12310 = vmatpush2.bf16.msra.mxu1 %v18623_v53  ;;  %v18674_v46 = vld [vmem:[#allocation17 + $0x860] ss:$16 sps:$4 sm:$0xff]   ;;  %v18691_v53 = vld [vmem:[#allocation17 + $0xa64] ss:$16 sps:$4 sm:$0xff]  }
0x102a   : > { %12274 = vmatprep.subr.bf16.mxu0 %v18628_v43  ;;  %12311 = vmatprep.subr.bf16.mxu1 %v18631_v38  ;;  %v18682_v43 = vld [vmem:[#allocation17 + $0x844] ss:$16 sps:$4 sm:$0xff]   ;;  %v18689_v38 = vld [vmem:[#allocation17 + $0xa60] ss:$16 sps:$4 sm:$0xff]  }
0x102d   : > { %12275 = vmatpush2.bf16.msra.mxu0 %v18626_v27  ;;  %12312 = vmatpush2.bf16.msra.mxu1 %v18629_v6  ;;  %v18680_v27 = vld [vmem:[#allocation17 + $0x840] ss:$16 sps:$4 sm:$0xff]   ;;  %v18697_v6 = vld [vmem:[#allocation17 + $0xa44] ss:$16 sps:$4 sm:$0xff]  }
0x102e   : > { %12276 = vmatprep.subr.bf16.mxu0 %v18634_v22  ;;  %12313 = vmatprep.subr.bf16.mxu1 %v18637_v18  ;;  %v18688_v22 = vld [vmem:[#allocation17 + $0x824] ss:$16 sps:$4 sm:$0xff]   ;;  %v18695_v18 = vld [vmem:[#allocation17 + $0xa40] ss:$16 sps:$4 sm:$0xff]  }
0x1031   : > { %12277 = vmatpush2.bf16.msra.mxu0 %v18632_v34  ;;  %12314 = vmatpush2.bf16.msra.mxu1 %v18635_v11  ;;  %v18686_v34 = vld [vmem:[#allocation17 + $0x820] ss:$16 sps:$4 sm:$0xff]   ;;  %v18703_v11 = vld [vmem:[#allocation17 + $0xa24] ss:$16 sps:$4 sm:$0xff]  }
0x1032   : > { %12278 = vmatprep.subr.bf16.mxu0 %v18640_v49  ;;  %12315 = vmatprep.subr.bf16.mxu1 %v18643_v51  ;;  %v18694_v49 = vld [vmem:[#allocation17 + $0x804] ss:$16 sps:$4 sm:$0xff]   ;;  %v18701_v51 = vld [vmem:[#allocation17 + $0xa20] ss:$16 sps:$4 sm:$0xff]  }
0x1035   : > { %12279 = vmatpush2.bf16.msra.mxu0 %v18638_v60  ;;  %12316 = vmatpush2.bf16.msra.mxu1 %v18641_v52  ;;  %v18692_v60 = vld [vmem:[#allocation17 + $0x800] ss:$16 sps:$4 sm:$0xff]   ;;  %v18709_v52 = vld [vmem:[#allocation17 + $0xa04] ss:$16 sps:$4 sm:$0xff]  }
0x1036   : > { %12280 = vmatprep.subr.bf16.mxu0 %v18646_v55  ;;  %12317 = vmatprep.subr.bf16.mxu1 %v18649_v62  ;;  %v18700_v55 = vld [vmem:[#allocation17 + $0x9e4] ss:$16 sps:$4 sm:$0xff]   ;;  %v18707_v62 = vld [vmem:[#allocation17 + $0xa00] ss:$16 sps:$4 sm:$0xff]  }
0x1039   : > { %12281 = vmatpush2.bf16.msra.mxu0 %v18644_v36  ;;  %12318 = vmatpush2.bf16.msra.mxu1 %v18647_v33  ;;  %v18698_v36 = vld [vmem:[#allocation17 + $0x9e0] ss:$16 sps:$4 sm:$0xff]   ;;  %v18715_v33 = vld [vmem:[#allocation17 + $0xbe4] ss:$16 sps:$4 sm:$0xff]  }
0x103a   : > { %12353 = vmatprep.subr.bf16.mxu0 %v21388_v23  ;;  %12319 = vmatprep.subr.bf16.mxu1 %v18652_v63  ;;  %v18706_v63 = vld [vmem:[#allocation17 + $0x9c4] ss:$16 sps:$4 sm:$0xff]  }
0x103c   : > { %12283 = vmatmul.mubr.bf16.vlgmr.msra.gmra.mxu0 %v21442_v42  ;;  %v11398_v9 = vpop.f32.mrf.mxu0 }
0x103d   : > { %12320 = vmatpush2.bf16.msra.mxu1 %v18650_v57  ;;  %12354 = vmatpush1.bf16.msra.mxu0 %v21390_v48  ;;  %v18704_v57 = vld [vmem:[#allocation17 + $0x9c0] ss:$16 sps:$4 sm:$0xff]  }
0x103e   : > { %12394 = vmatprep.subr.bf16.mxu0 %v21392_v56  ;;  %12321 = vmatprep.subr.bf16.mxu1 %v18655_v17  ;;  %v11400_v15 = vpop.f32.mrf.mxu0  ;;  %v18721_v17 = vld [vmem:[#allocation17 + $0xbc4] ss:$16 sps:$4 sm:$0xff]  }
0x103f   : > { %12371 = vmatprep.mubr.bf16.mxu0 %v21867_v0 }
0x1040   : > { %v11402_v37 = vpop.f32.mrf.mxu0 }
0x1041   : > { %12322 = vmatpush2.bf16.msra.mxu1 %v18653_v47  ;;  %v18719_v47 = vld [vmem:[#allocation17 + $0xbc0] ss:$16 sps:$4 sm:$0xff]  }
0x1042   : > { %v11403_v39 = vpop.f32.mrf.mxu0  ;;  %13194 = vmatprep.subr.bf16.mxu1 %v18658_v45  ;;  %v18725_v37 = vld [vmem:[#allocation17 + $0xba0] ss:$16 sps:$4 sm:$0xff]   ;;  %v18733_v45 = vld [vmem:[#allocation17 + $0xb84] ss:$16 sps:$4 sm:$0xff]  }
0x1043   : > { %v18716_v39 = vld [vmem:[#allocation17 + $0x980] ss:$16 sps:$4 sm:$0xff]  }
0x1044   : > { %12324 = vmatmul.mubr.bf16.vlgmr.msra.gmra.mxu1 %v21448_v40  ;;  %16319 = vmatmul.mubr.msk.bf16.vlgmr.msra.gmra.mxu0 %vm10269_vm14, %v12335_v25  ;;  %v11439_v42 = vpop.f32.mrf.mxu1  ;;  %v18659_v40 = vld [vmem:[#allocation17 + $0x8c0] ss:$16 sps:$4 sm:$0xff]  }
0x1045   : > { %12395 = vmatpush1.bf16.msra.mxu0 %v21397_v59  ;;  %12412 = vmatprep.mubr.bf16.mxu0 %v21867_v0  ;;  %v21464_v26 = vadd.f32 %v11439_v42, %v11398_v9  ;;  %v18712_v9 = vld [vmem:[#allocation17 + $0x9a4] ss:$16 sps:$4 sm:$0xff]  }
0x1046   : > { %v11441_v3 = vpop.f32.mrf.mxu1  ;;  %13195 = vmatpush1.bf16.msra.mxu1 %v18656_v30  ;;  %13235 = vmatprep.subr.bf16.mxu0 %v18667_v35  ;;  %v18724_v42 = vld [vmem:[#allocation17 + $0x964] ss:$16 sps:$4 sm:$0xff]   ;;  %v18734_v35 = vld [vmem:[#allocation17 + $0x920] ss:$16 sps:$4 sm:$0xff]  }
0x1047   : > { %v21466_v24 = vadd.f32 %v11441_v3, %v11400_v15  ;;  %13196 = vmatprep.subr.bf16.mxu1 %v18661_v12  ;;  %v18727_v15 = vld [vmem:[#allocation17 + $0xba4] ss:$16 sps:$4 sm:$0xff]   ;;  %v18722_v3 = vld [vmem:[#allocation17 + $0x960] ss:$16 sps:$4 sm:$0xff]  }
0x1048   : > { %v11443_v20 = vpop.f32.mrf.mxu1  ;;  %v18730_v30 = vld [vmem:[#allocation17 + $0x944] ss:$16 sps:$4 sm:$0xff]   ;;  %v18731_v12 = vld [vmem:[#allocation17 + $0xb80] ss:$16 sps:$4 sm:$0xff]  }
0x104a   : > { %v11444_v54 = vpop.f32.mrf.mxu1  ;;  %13197 = vmatpush1.bf16.msra.mxu1 %v18659_v40 }
0x104b   : > { %13198 = vmatprep.subr.bf16.mxu1 %v18664_v31  ;;  %v18728_v54 = vld [vmem:[#allocation17 + $0x940] ss:$16 sps:$4 sm:$0xff]   ;;  %v18736_v31 = vld [vmem:[#allocation17 + $0x924] ss:$16 sps:$4 sm:$0xff]  }
0x104c   : > { %16320 = vmatmul.mubr.msk.bf16.vlgmr.msra.gmra.mxu0 %vm10269_vm14, %v12335_v25  ;;  %v18718_v25 = vld [vmem:[#allocation17 + $0x984] ss:$16 sps:$4 sm:$0xff]  }
0x104d   : > { %13236 = vmatpush1.bf16.msra.mxu0 %v18665_v21 }
0x104e   : > { %13237 = vmatprep.subr.bf16.mxu0 %v18673_v29  ;;  %13199 = vmatpush1.bf16.msra.mxu1 %v18662_v16  ;;  %v18737_v29 = vld [vmem:[#allocation17 + $0xb60] ss:$16 sps:$4 sm:$0xff]  }
0x104f   : > { %13200 = vmatprep.subr.bf16.mxu1 %v18670_v58  ;;  %v18742_v58 = vld [vmem:[#allocation17 + $0x904] ss:$16 sps:$4 sm:$0xff]  }
0x1051   : > { %13238 = vmatpush1.bf16.msra.mxu0 %v18671_v1  ;;  %v18739_v1 = vld [vmem:[#allocation17 + $0xb64] ss:$16 sps:$4 sm:$0xff]  }
0x1052   : > { %13239 = vmatprep.subr.bf16.mxu0 %v18679_v8  ;;  %13201 = vmatpush1.bf16.msra.mxu1 %v18668_v19 }
0x1053   : > { %13202 = vmatprep.subr.bf16.mxu1 %v18676_v10  ;;  %v18743_v10 = vld [vmem:[#allocation17 + $0xb40] ss:$16 sps:$4 sm:$0xff]  }
0x1055   : > { %13240 = vmatpush1.bf16.msra.mxu0 %v18677_v2  ;;  %v18745_v2 = vld [vmem:[#allocation17 + $0xb44] ss:$16 sps:$4 sm:$0xff]  }
0x1056   : > { %13241 = vmatprep.subr.bf16.mxu0 %v18685_v50  ;;  %13203 = vmatpush1.bf16.msra.mxu1 %v18674_v46  ;;  %v18740_v50 = vld [vmem:[#allocation17 + $0x900] ss:$16 sps:$4 sm:$0xff]  }
0x1057   : > { %13204 = vmatprep.subr.bf16.mxu1 %v18682_v43  ;;  %v18748_v43 = vld [vmem:[#allocation17 + $0xb24] ss:$16 sps:$4 sm:$0xff]  }
0x1059   : > { %13242 = vmatpush1.bf16.msra.mxu0 %v18683_v13 }
0x105a   : > { %13243 = vmatprep.subr.bf16.mxu0 %v18691_v53  ;;  %13205 = vmatpush1.bf16.msra.mxu1 %v18680_v27  ;;  %v18746_v27 = vld [vmem:[#allocation17 + $0xb20] ss:$16 sps:$4 sm:$0xff]  }
0x105b   : > { %13206 = vmatprep.subr.bf16.mxu1 %v18688_v22  ;;  %v18754_v22 = vld [vmem:[#allocation17 + $0xb04] ss:$16 sps:$4 sm:$0xff]  }
0x105d   : > { %13244 = vmatpush1.bf16.msra.mxu0 %v18689_v38  ;;  %v18751_v38 = vld [vmem:[#allocation17 + $0x8ec] ss:$16 sps:$4 sm:$0xff]  }
0x105e   : > { %13245 = vmatprep.subr.bf16.mxu0 %v18697_v6  ;;  %13207 = vmatpush1.bf16.msra.mxu1 %v18686_v34  ;;  %v18763_v34 = vld [vmem:[#allocation17 + $0xaec] ss:$16 sps:$4 sm:$0xff]  }
0x105f   : > { %13208 = vmatprep.subr.bf16.mxu1 %v18694_v49 }
0x1061   : > { %13246 = vmatpush1.bf16.msra.mxu0 %v18695_v18  ;;  %v18752_v18 = vld [vmem:[#allocation17 + $0xb00] ss:$16 sps:$4 sm:$0xff]  }
0x1062   : > { %13247 = vmatprep.subr.bf16.mxu0 %v18703_v11  ;;  %13209 = vmatpush1.bf16.msra.mxu1 %v18692_v60 }
0x1063   : > { %13210 = vmatprep.subr.bf16.mxu1 %v18700_v55 }
0x1065   : > { %13248 = vmatpush1.bf16.msra.mxu0 %v18701_v51 }
0x1066   : > { %13249 = vmatprep.subr.bf16.mxu0 %v18709_v52  ;;  %13211 = vmatpush2.bf16.msra.mxu1 %v18698_v36 }
0x1067   : > { %13212 = vmatprep.subr.bf16.mxu1 %v18706_v63 }
0x1069   : > { %13250 = vmatpush1.bf16.msra.mxu0 %v18707_v62 }
0x106a   : > { %13251 = vmatprep.subr.bf16.mxu0 %v18715_v33  ;;  %13213 = vmatpush2.bf16.msra.mxu1 %v18704_v57 }
0x106b   : > { %13214 = vmatprep.subr.bf16.mxu1 %v18712_v9 }
0x106d   : > { %13252 = vmatpush2.bf16.msra.mxu0 %v18713_v41 }
0x106e   : > { %13253 = vmatprep.subr.bf16.mxu0 %v18721_v17  ;;  %13215 = vmatpush2.bf16.msra.mxu1 %v18710_v14 }
0x106f   : > { %13216 = vmatprep.subr.bf16.mxu1 %v18718_v25 }
0x1071   : > { %13254 = vmatpush2.bf16.msra.mxu0 %v18719_v47 }
0x1072   : > { %13255 = vmatprep.subr.bf16.mxu0 %v18727_v15  ;;  %13217 = vmatpush2.bf16.msra.mxu1 %v18716_v39 }
0x1073   : > { %13218 = vmatprep.subr.bf16.mxu1 %v18724_v42 }
0x1075   : > { %13256 = vmatpush2.bf16.msra.mxu0 %v18725_v37 }
0x1076   : > { %13219 = vmatpush2.bf16.msra.mxu1 %v18722_v3  ;;  %13257 = vmatprep.subr.bf16.mxu0 %v18733_v45 }
0x1077   : > { %13220 = vmatprep.subr.bf16.mxu1 %v18730_v30  ;;  %v18749_v30 = vld [vmem:[#allocation17 + $0x8e8] ss:$16 sps:$4 sm:$0xff]  }
0x1079   : > { %13258 = vmatpush2.bf16.msra.mxu0 %v18731_v12 }
0x107a   : > { %13221 = vmatpush2.bf16.msra.mxu1 %v18728_v54  ;;  %13259 = vmatprep.subr.bf16.mxu0 %v18739_v1  ;;  %v18760_v1 = vld [vmem:[#allocation17 + $0x8ac] ss:$16 sps:$4 sm:$0xff]  }
0x107b   : > { %13222 = vmatprep.subr.bf16.mxu1 %v18736_v31  ;;  %v18755_v31 = vld [vmem:[#allocation17 + $0x8c8] ss:$16 sps:$4 sm:$0xff]  }
0x107c   : > { %v11480_v20 = vpop.f32.mrf.mxu0 }
0x107d   : > { %13260 = vmatpush2.bf16.msra.mxu0 %v18737_v29 }
0x107e   : > { %v11482_v40 = vpop.f32.mrf.mxu0  ;;  %13223 = vmatpush2.bf16.msra.mxu1 %v18734_v35  ;;  %13261 = vmatprep.subr.bf16.mxu0 %v18745_v2  ;;  %v18761_v2 = vld [vmem:[#allocation17 + $0xae8] ss:$16 sps:$4 sm:$0xff]  }
0x107f   : > { %13224 = vmatprep.subr.bf16.mxu1 %v18742_v58  ;;  %v18758_v58 = vld [vmem:[#allocation17 + $0x8a8] ss:$16 sps:$4 sm:$0xff]  }
0x1080   : > { %v11484_v21 = vpop.f32.mrf.mxu0 }
0x1081   : > { %13262 = vmatpush2.bf16.msra.mxu0 %v18743_v10  ;;  %v18769_v10 = vld [vmem:[#allocation17 + $0xacc] ss:$16 sps:$4 sm:$0xff]  }
0x1082   : > { %v11485_v16 = vpop.f32.mrf.mxu0  ;;  %13225 = vmatpush2.bf16.msra.mxu1 %v18740_v50  ;;  %13263 = vmatprep.subr.bf16.mxu0 %v18748_v43  ;;  %v18766_v50 = vld [vmem:[#allocation17 + $0x88c] ss:$16 sps:$4 sm:$0xff]   ;;  %v18767_v43 = vld [vmem:[#allocation17 + $0xac8] ss:$16 sps:$4 sm:$0xff]  }
0x1083   : > { %13276 = vmatprep.subr.bf16.mxu1 %v18751_v38  ;;  %v18772_v38 = vld [vmem:[#allocation17 + $0x86c] ss:$16 sps:$4 sm:$0xff]  }
0x1084   : > { %v11521_v8 = vpop.f32.mrf.mxu1 }
0x1085   : > { %v11522_v19 = vadd.f32 %v11521_v8, %v11480_v20  ;;  %13264 = vmatpush2.bf16.msra.mxu0 %v18746_v27  ;;  %v18775_v27 = vld [vmem:[#allocation17 + $0xaac] ss:$16 sps:$4 sm:$0xff]  }
0x1086   : > { %v11523_v13 = vpop.f32.mrf.mxu1  ;;  %13265 = vmatprep.subr.bf16.mxu0 %v18754_v22  ;;  %v18773_v22 = vld [vmem:[#allocation17 + $0xaa8] ss:$16 sps:$4 sm:$0xff]  }
0x1087   : > { %v11524_v46 = vadd.f32 %v11523_v13, %v11482_v40  ;;  %v18757_v40 = vld [vmem:[#allocation17 + $0x8cc] ss:$16 sps:$4 sm:$0xff]  }
0x1088   : > { %v11525_v53 = vpop.f32.mrf.mxu1 }
0x1089   : > { %13266 = vmatpush2.bf16.msra.mxu0 %v18752_v18  ;;  %v18764_v53 = vld [vmem:[#allocation17 + $0x888] ss:$16 sps:$4 sm:$0xff]   ;;  %v18778_v18 = vld [vmem:[#allocation17 + $0x84c] ss:$16 sps:$4 sm:$0xff]  }
0x108a   : > { %v11526_v6 = vpop.f32.mrf.mxu1  ;;  %13317 = vmatprep.subr.bf16.mxu0 %v18763_v34  ;;  %v18781_v34 = vld [vmem:[#allocation17 + $0xa8c] ss:$16 sps:$4 sm:$0xff]  }
0x108b   : > { %v18770_v6 = vld [vmem:[#allocation17 + $0x868] ss:$16 sps:$4 sm:$0xff]  }
0x10bc   : > { %v12202_v11 = vpop.f32.mrf.mxu0 }
0x10bd   : > { %v12203_v49 = vadd.f32 %v12202_v11, %v21464_v26  ;;  %v18776_v11 = vld [vmem:[#allocation17 + $0x848] ss:$16 sps:$4 sm:$0xff]  }
0x10be   : > { %v12204_v51 = vpop.f32.mrf.mxu0 }
0x10bf   : > { %v12205_v60 = vadd.f32 %v12204_v51, %v21466_v24  ;;  %v18784_v51 = vld [vmem:[#allocation17 + $0x82c] ss:$16 sps:$4 sm:$0xff]  }
0x10c0   : > { %v12206_v52 = vpop.f32.mrf.mxu0 }
0x10c1   : > { %v18782_v52 = vld [vmem:[#allocation17 + $0x828] ss:$16 sps:$4 sm:$0xff]  }
0x10c2   : > { %v12207_v55 = vpop.f32.mrf.mxu0 }
0x10c3   : > { %v18785_v55 = vld [vmem:[#allocation17 + $0xa68] ss:$16 sps:$4 sm:$0xff]  }
0x10c4   : > { %v12243_v62 = vpop.f32.mrf.mxu1 }
0x10c5   : > { %v21471_v36 = vadd.f32 %v12243_v62, %v12203_v49  ;;  %v18779_v49 = vld [vmem:[#allocation17 + $0xa88] ss:$16 sps:$4 sm:$0xff]   ;;  %v18790_v62 = vld [vmem:[#allocation17 + $0x80c] ss:$16 sps:$4 sm:$0xff]  }
0x10c6   : > { %v12245_v33 = vpop.f32.mrf.mxu1 }
0x10c7   : > { %v21473_v63 = vadd.f32 %v12245_v33, %v12205_v60  ;;  %v18787_v60 = vld [vmem:[#allocation17 + $0xa6c] ss:$16 sps:$4 sm:$0xff]  }
0x10c8   : > { %v12247_v41 = vpop.f32.mrf.mxu1  ;;  %v18793_v33 = vld [vmem:[#allocation17 + $0xa4c] ss:$16 sps:$4 sm:$0xff]  }
0x10c9   : > { %v18788_v41 = vld [vmem:[#allocation17 + $0x808] ss:$16 sps:$4 sm:$0xff]  }
0x10ca   : > { %v12248_v57 = vpop.f32.mrf.mxu1 }
0x10cb   : > { %v18791_v57 = vld [vmem:[#allocation17 + $0xa48] ss:$16 sps:$4 sm:$0xff]  }
0x10fc   : > { %v12284_v17 = vpop.f32.mrf.mxu0 }
0x10fd   : > { %v12285_v9 = vadd.f32 %v12284_v17, %v11522_v19  ;;  %v18796_v17 = vld [vmem:[#allocation17 + $0x9ec] ss:$16 sps:$4 sm:$0xff]  }
0x10fe   : > { %v12286_v47 = vpop.f32.mrf.mxu0 }
0x10ff   : > { %v12287_v14 = vadd.f32 %v12286_v47, %v11524_v46  ;;  %v18794_v47 = vld [vmem:[#allocation17 + $0x9e8] ss:$16 sps:$4 sm:$0xff]  }
0x1100   : > { %v12288_v15 = vpop.f32.mrf.mxu0 }
0x1101   : > { %v18802_v15 = vld [vmem:[#allocation17 + $0x9cc] ss:$16 sps:$4 sm:$0xff]  }
0x1102   : > { %v12289_v25 = vpop.f32.mrf.mxu0 }
0x1103   : > { %v18805_v25 = vld [vmem:[#allocation17 + $0xa0c] ss:$16 sps:$4 sm:$0xff]  }
0x1104   : > { %v12325_v26 = vpop.f32.mrf.mxu1  ;;  %v12373_v37 = vpop.f32.mrf.mxu0 }
0x1105   : > { %v21475_v39 = vadd.f32 %v12325_v26, %v12285_v9  ;;  %v21479_v45 = vpack.c.bf16 %v12373_v37, %v12373_v37  ;;  %v18799_v9 = vld [vmem:[#allocation17 + $0xa2c] ss:$16 sps:$4 sm:$0xff]   ;;  %v18800_v26 = vld [vmem:[#allocation17 + $0x9c8] ss:$16 sps:$4 sm:$0xff]  }
0x1106   : > { %v12327_v24 = vpop.f32.mrf.mxu1  ;;  %v12375_v42 = vpop.f32.mrf.mxu0  ;;  %v18803_v37 = vld [vmem:[#allocation17 + $0xa08] ss:$16 sps:$4 sm:$0xff]  }
0x1107   : > { %v21477_v3 = vadd.f32 %v12327_v24, %v12287_v14  ;;  %v12422_v20 = vpack.c.bf16 %v12375_v42, %v12375_v42  ;;  %v18797_v14 = vld [vmem:[#allocation17 + $0xa28] ss:$16 sps:$4 sm:$0xff]   ;;  %v18808_v24 = vld [vmem:[#allocation17 + $0x9ac] ss:$16 sps:$4 sm:$0xff]  }
0x1108   : > { %v12329_v54 = vpop.f32.mrf.mxu1  ;;  %v12377_v12 = vpop.f32.mrf.mxu0  ;;  %v18811_v42 = vld [vmem:[#allocation17 + $0xbec] ss:$16 sps:$4 sm:$0xff]  }
0x1109   : > { %13226 = vmatprep.mubr.bf16.mxu1 %v12422_v20  ;;  %v18814_v54 = vld [vmem:[#allocation17 + $0x98c] ss:$16 sps:$4 sm:$0xff]  }
0x110a   : > { %v12330_v21 = vpop.f32.mrf.mxu1  ;;  %v12378_v35 = vpop.f32.mrf.mxu0  ;;  %13227 = vmatmul.mubr.bf16.vlgmr.msra.gmra.mxu1 %v21479_v45  ;;  %v18817_v12 = vld [vmem:[#allocation17 + $0xbcc] ss:$16 sps:$4 sm:$0xff]  }
0x110b   : > { %13277 = vmatpush1.bf16.msra.mxu1 %v18749_v30  ;;  %13308 = vmatprep.mubr.bf16.mxu1 %v12422_v20  ;;  %v18806_v20 = vld [vmem:[#allocation17 + $0x9a8] ss:$16 sps:$4 sm:$0xff]   ;;  %v18820_v35 = vld [vmem:[#allocation17 + $0x96c] ss:$16 sps:$4 sm:$0xff]  }
0x110c   : > { %v12414_v29 = vpop.f32.mrf.mxu0  ;;  %13278 = vmatprep.subr.bf16.mxu1 %v18757_v40  ;;  %v18809_v30 = vld [vmem:[#allocation17 + $0xbe8] ss:$16 sps:$4 sm:$0xff]  }
0x110d   : > { %v21482_v19 = vpack.c.bf16 %v12414_v29, %v12414_v29  ;;  %v18812_v40 = vld [vmem:[#allocation17 + $0x988] ss:$16 sps:$4 sm:$0xff]  }
0x110e   : > { %v12416_v16 = vpop.f32.mrf.mxu0  ;;  %v18815_v21 = vld [vmem:[#allocation17 + $0xbc8] ss:$16 sps:$4 sm:$0xff]  }
0x110f   : > { %v12424_v8 = vpack.c.bf16 %v12416_v16, %v12416_v16  ;;  %13279 = vmatpush1.bf16.msra.mxu1 %v18755_v31  ;;  %v18823_v31 = vld [vmem:[#allocation17 + $0xbac] ss:$16 sps:$4 sm:$0xff]   ;;  %v18818_v29 = vld [vmem:[#allocation17 + $0x968] ss:$16 sps:$4 sm:$0xff]  }
0x1110   : > { %13280 = vmatprep.subr.bf16.mxu1 %v18760_v1  ;;  %v12418_v13 = vpop.f32.mrf.mxu0  ;;  %v18821_v1 = vld [vmem:[#allocation17 + $0xba8] ss:$16 sps:$4 sm:$0xff]   ;;  %v18826_v16 = vld [vmem:[#allocation17 + $0x94c] ss:$16 sps:$4 sm:$0xff]  }
0x1111   : > { %13267 = vmatprep.mubr.bf16.mxu0 %v12424_v8  ;;  %v18830_v13 = vld [vmem:[#allocation17 + $0x928] ss:$16 sps:$4 sm:$0xff]  }
0x1112   : > { %13268 = vmatmul.mubr.bf16.vlgmr.msra.gmra.mxu0 %v21482_v19  ;;  %v12419_v46 = vpop.f32.mrf.mxu0 }
0x1113   : > { %13281 = vmatpush1.bf16.msra.mxu1 %v18758_v58  ;;  %13318 = vmatpush1.bf16.msra.mxu0 %v18761_v2  ;;  %v18824_v58 = vld [vmem:[#allocation17 + $0x948] ss:$16 sps:$4 sm:$0xff]  }
0x1114   : > { %13282 = vmatprep.subr.bf16.mxu1 %v18766_v50  ;;  %13319 = vmatprep.subr.bf16.mxu0 %v18769_v10  ;;  %v18827_v2 = vld [vmem:[#allocation17 + $0xb88] ss:$16 sps:$4 sm:$0xff]   ;;  %v18832_v50 = vld [vmem:[#allocation17 + $0x92c] ss:$16 sps:$4 sm:$0xff]  }
0x1115   : > { %13349 = vmatprep.mubr.bf16.mxu0 %v12424_v8  ;;  %v18829_v8 = vld [vmem:[#allocation17 + $0xb8c] ss:$16 sps:$4 sm:$0xff]   ;;  %v18833_v46 = vld [vmem:[#allocation17 + $0xb68] ss:$16 sps:$4 sm:$0xff]  }
0x1116   : > { %v18835_v10 = vld [vmem:[#allocation17 + $0xb6c] ss:$16 sps:$4 sm:$0xff]  }
0x1117   : > { %13283 = vmatpush1.bf16.msra.mxu1 %v18764_v53  ;;  %13320 = vmatpush1.bf16.msra.mxu0 %v18767_v43  ;;  %v18838_v53 = vld [vmem:[#allocation17 + $0x90c] ss:$16 sps:$4 sm:$0xff]  }
0x1118   : > { %13284 = vmatprep.subr.bf16.mxu1 %v18772_v38  ;;  %13321 = vmatprep.subr.bf16.mxu0 %v18775_v27  ;;  %v18841_v43 = vld [vmem:[#allocation17 + $0xb4c] ss:$16 sps:$4 sm:$0xff]   ;;  %v18836_v38 = vld [vmem:[#allocation17 + $0x908] ss:$16 sps:$4 sm:$0xff]  }
0x1119   : > { %v18839_v27 = vld [vmem:[#allocation17 + $0xb48] ss:$16 sps:$4 sm:$0xff]  }
0x111b   : > { %13285 = vmatpush1.bf16.msra.mxu1 %v18770_v6  ;;  %13322 = vmatpush1.bf16.msra.mxu0 %v18773_v22  ;;  %v18844_v6 = vld [vmem:[#allocation17 + $0xb2c] ss:$16 sps:$4 sm:$0xff]   ;;  %v13362_v22 = vadd.s32 3, %v21964_v28 }
0x111c   : > { %13286 = vmatprep.subr.bf16.mxu1 %v18778_v18  ;;  %13323 = vmatprep.subr.bf16.mxu0 %v18781_v34  ;;  %v18842_v18 = vld [vmem:[#allocation17 + $0xb28] ss:$16 sps:$4 sm:$0xff]   ;;  %v18847_v34 = vld [vmem:[#allocation17 + $0xb0c] ss:$16 sps:$4 sm:$0xff]  }
0x111d   : > { %vm13363_vm2 = vcmp.eq.s32.totalorder %v21965_v5, %v13362_v22  ;;  %v18850_v5 = vld [vmem:[#allocation17 + $0xce4] ss:$16 sps:$4 sm:$0xff]   ;;  %v18923_v22 = vld [vmem:[#allocation17 + $0xf80] ss:$16 sps:$4 sm:$0xff]  }
0x111f   : > { %13287 = vmatpush1.bf16.msra.mxu1 %v18776_v11  ;;  %13324 = vmatpush1.bf16.msra.mxu0 %v18779_v49  ;;  %v18845_v11 = vld [vmem:[#allocation17 + $0xb08] ss:$16 sps:$4 sm:$0xff]   ;;  %v13364_v49 = vsel %vm13363_vm2, 1.0, %v21966_v44  ;;  %v18857_v44 = vld [vmem:[#allocation17 + $0xee0] ss:$16 sps:$4 sm:$0xff]  }
0x1120   : > { %13288 = vmatprep.subr.bf16.mxu1 %v18784_v51  ;;  %13325 = vmatprep.subr.bf16.mxu0 %v18787_v60  ;;  %v13365_v28 = vpack.c.bf16 %v13364_v49, %v13364_v49  ;;  %v18859_v51 = vld [vmem:[#allocation17 + $0xee4] ss:$16 sps:$4 sm:$0xff]   ;;  %v18929_v49 = vld [vmem:[#allocation17 + $0xf60] ss:$16 sps:$4 sm:$0xff]  }
0x1121   : > { %v18865_v60 = vld [vmem:[#allocation17 + $0xec4] ss:$16 sps:$4 sm:$0xff]  }
0x1123   : > { %13289 = vmatpush1.bf16.msra.mxu1 %v18782_v52  ;;  %13326 = vmatpush1.bf16.msra.mxu0 %v18785_v55  ;;  %v18862_v52 = vld [vmem:[#allocation17 + $0xc84] ss:$16 sps:$4 sm:$0xff]   ;;  %v18869_v55 = vld [vmem:[#allocation17 + $0xea0] ss:$16 sps:$4 sm:$0xff]  }
0x1124   : > { %13290 = vmatprep.subr.bf16.mxu1 %v18790_v62  ;;  %13327 = vmatprep.subr.bf16.mxu0 %v18793_v33  ;;  %v18860_v62 = vld [vmem:[#allocation17 + $0xc80] ss:$16 sps:$4 sm:$0xff]   ;;  %v18877_v33 = vld [vmem:[#allocation17 + $0xe84] ss:$16 sps:$4 sm:$0xff]  }
0x1127   : > { %13291 = vmatpush1.bf16.msra.mxu1 %v18788_v41  ;;  %13328 = vmatpush1.bf16.msra.mxu0 %v18791_v57  ;;  %v18868_v41 = vld [vmem:[#allocation17 + $0xc64] ss:$16 sps:$4 sm:$0xff]   ;;  %v18875_v57 = vld [vmem:[#allocation17 + $0xe80] ss:$16 sps:$4 sm:$0xff]  }
0x1128   : > { %13292 = vmatprep.subr.bf16.mxu1 %v18796_v17  ;;  %13329 = vmatprep.subr.bf16.mxu0 %v18799_v9  ;;  %v18866_v17 = vld [vmem:[#allocation17 + $0xc60] ss:$16 sps:$4 sm:$0xff]   ;;  %v18883_v9 = vld [vmem:[#allocation17 + $0xe64] ss:$16 sps:$4 sm:$0xff]  }
0x112b   : > { %13293 = vmatpush2.bf16.msra.mxu1 %v18794_v47  ;;  %13330 = vmatpush1.bf16.msra.mxu0 %v18797_v14  ;;  %v18874_v47 = vld [vmem:[#allocation17 + $0xc44] ss:$16 sps:$4 sm:$0xff]   ;;  %v18881_v14 = vld [vmem:[#allocation17 + $0xe60] ss:$16 sps:$4 sm:$0xff]  }
0x112c   : > { %13294 = vmatprep.subr.bf16.mxu1 %v18802_v15  ;;  %13331 = vmatprep.subr.bf16.mxu0 %v18805_v25  ;;  %v18872_v15 = vld [vmem:[#allocation17 + $0xc40] ss:$16 sps:$4 sm:$0xff]   ;;  %v18889_v25 = vld [vmem:[#allocation17 + $0xe44] ss:$16 sps:$4 sm:$0xff]  }
0x112f   : > { %13295 = vmatpush2.bf16.msra.mxu1 %v18800_v26  ;;  %13332 = vmatpush1.bf16.msra.mxu0 %v18803_v37  ;;  %v18880_v26 = vld [vmem:[#allocation17 + $0xc24] ss:$16 sps:$4 sm:$0xff]   ;;  %v18887_v37 = vld [vmem:[#allocation17 + $0xe40] ss:$16 sps:$4 sm:$0xff]  }
0x1130   : > { %13296 = vmatprep.subr.bf16.mxu1 %v18808_v24  ;;  %13333 = vmatprep.subr.bf16.mxu0 %v18811_v42  ;;  %v18878_v24 = vld [vmem:[#allocation17 + $0xc20] ss:$16 sps:$4 sm:$0xff]   ;;  %v18895_v42 = vld [vmem:[#allocation17 + $0xe24] ss:$16 sps:$4 sm:$0xff]  }
0x1133   : > { %13297 = vmatpush2.bf16.msra.mxu1 %v18806_v20  ;;  %13334 = vmatpush2.bf16.msra.mxu0 %v18809_v30  ;;  %v18886_v20 = vld [vmem:[#allocation17 + $0xc04] ss:$16 sps:$4 sm:$0xff]   ;;  %v18893_v30 = vld [vmem:[#allocation17 + $0xe20] ss:$16 sps:$4 sm:$0xff]  }
0x1134   : > { %13298 = vmatprep.subr.bf16.mxu1 %v18814_v54  ;;  %13335 = vmatprep.subr.bf16.mxu0 %v18817_v12  ;;  %v18884_v54 = vld [vmem:[#allocation17 + $0xc00] ss:$16 sps:$4 sm:$0xff]   ;;  %v18901_v12 = vld [vmem:[#allocation17 + $0xe04] ss:$16 sps:$4 sm:$0xff]  }
0x1137   : > { %13299 = vmatpush2.bf16.msra.mxu1 %v18812_v40  ;;  %13336 = vmatpush2.bf16.msra.mxu0 %v18815_v21  ;;  %v18892_v40 = vld [vmem:[#allocation17 + $0xde4] ss:$16 sps:$4 sm:$0xff]   ;;  %v18899_v21 = vld [vmem:[#allocation17 + $0xe00] ss:$16 sps:$4 sm:$0xff]  }
0x1138   : > { %13300 = vmatprep.subr.bf16.mxu1 %v18820_v35  ;;  %13337 = vmatprep.subr.bf16.mxu0 %v18823_v31  ;;  %v18890_v35 = vld [vmem:[#allocation17 + $0xde0] ss:$16 sps:$4 sm:$0xff]   ;;  %v18907_v31 = vld [vmem:[#allocation17 + $0xfe4] ss:$16 sps:$4 sm:$0xff]  }
0x113b   : > { %13301 = vmatpush2.bf16.msra.mxu1 %v18818_v29  ;;  %13338 = vmatpush2.bf16.msra.mxu0 %v18821_v1  ;;  %v18898_v29 = vld [vmem:[#allocation17 + $0xdc4] ss:$16 sps:$4 sm:$0xff]   ;;  %v18905_v1 = vld [vmem:[#allocation17 + $0xfe0] ss:$16 sps:$4 sm:$0xff]  }
0x113c   : > { %13302 = vmatprep.subr.bf16.mxu1 %v18826_v16  ;;  %13339 = vmatprep.subr.bf16.mxu0 %v18829_v8  ;;  %v18896_v16 = vld [vmem:[#allocation17 + $0xdc0] ss:$16 sps:$4 sm:$0xff]   ;;  %v18913_v8 = vld [vmem:[#allocation17 + $0xfc4] ss:$16 sps:$4 sm:$0xff]  }
0x113f   : > { %13303 = vmatpush2.bf16.msra.mxu1 %v18824_v58  ;;  %13340 = vmatpush2.bf16.msra.mxu0 %v18827_v2  ;;  %v18904_v58 = vld [vmem:[#allocation17 + $0xda4] ss:$16 sps:$4 sm:$0xff]   ;;  %v18911_v2 = vld [vmem:[#allocation17 + $0xfc0] ss:$16 sps:$4 sm:$0xff]  }
0x1140   : > { %13304 = vmatprep.subr.bf16.mxu1 %v18832_v50  ;;  %13341 = vmatprep.subr.bf16.mxu0 %v18835_v10  ;;  %v18902_v50 = vld [vmem:[#allocation17 + $0xda0] ss:$16 sps:$4 sm:$0xff]   ;;  %v18919_v10 = vld [vmem:[#allocation17 + $0xfa4] ss:$16 sps:$4 sm:$0xff]  }
0x1143   : > { %13305 = vmatpush2.bf16.msra.mxu1 %v18830_v13  ;;  %13342 = vmatpush2.bf16.msra.mxu0 %v18833_v46  ;;  %v18910_v13 = vld [vmem:[#allocation17 + $0xd84] ss:$16 sps:$4 sm:$0xff]   ;;  %v18917_v46 = vld [vmem:[#allocation17 + $0xfa0] ss:$16 sps:$4 sm:$0xff]  }
0x1144   : > { %13306 = vmatprep.subr.bf16.mxu1 %v18838_v53  ;;  %13343 = vmatprep.subr.bf16.mxu0 %v18841_v43  ;;  %v18908_v53 = vld [vmem:[#allocation17 + $0xd80] ss:$16 sps:$4 sm:$0xff]   ;;  %v18916_v43 = vld [vmem:[#allocation17 + $0xd64] ss:$16 sps:$4 sm:$0xff]  }
0x1147   : > { %13307 = vmatpush2.bf16.msra.mxu1 %v18836_v38  ;;  %13344 = vmatpush2.bf16.msra.mxu0 %v18839_v27  ;;  %v18914_v38 = vld [vmem:[#allocation17 + $0xd60] ss:$16 sps:$4 sm:$0xff]  }
0x1148   : > { %13383 = vmatprep.subr.bf16.mxu1 %v21388_v23  ;;  %13345 = vmatprep.subr.bf16.mxu0 %v18844_v6  ;;  %v18848_v23 = vld [vmem:[#allocation17 + $0xce0] ss:$16 sps:$4 sm:$0xff]   ;;  %v18922_v6 = vld [vmem:[#allocation17 + $0xd44] ss:$16 sps:$4 sm:$0xff]  }
0x1149   : > { %v18920_v27 = vld [vmem:[#allocation17 + $0xd40] ss:$16 sps:$4 sm:$0xff]  }
0x114a   : > { %13309 = vmatmul.mubr.bf16.vlgmr.msra.gmra.mxu1 %v21479_v45  ;;  %v18851_v45 = vld [vmem:[#allocation17 + $0xcc0] ss:$16 sps:$4 sm:$0xff]  }
0x114b   : > { %13346 = vmatpush2.bf16.msra.mxu0 %v18842_v18  ;;  %13384 = vmatpush1.bf16.msra.mxu1 %v21390_v48  ;;  %v18853_v48 = vld [vmem:[#allocation17 + $0xcc4] ss:$16 sps:$4 sm:$0xff]  }
0x114c   : > { %13347 = vmatprep.subr.bf16.mxu0 %v18847_v34  ;;  %13401 = vmatprep.mubr.bf16.mxu1 %v21867_v0  ;;  %v18925_v18 = vld [vmem:[#allocation17 + $0xf84] ss:$16 sps:$4 sm:$0xff]   ;;  %v18926_v34 = vld [vmem:[#allocation17 + $0xd20] ss:$16 sps:$4 sm:$0xff]  }
0x114d   : > { %14224 = vmatprep.subr.bf16.mxu1 %v18850_v5  ;;  %v18934_v5 = vld [vmem:[#allocation17 + $0xd04] ss:$16 sps:$4 sm:$0xff]  }
0x114f   : > { %13348 = vmatpush2.bf16.msra.mxu0 %v18845_v11  ;;  %v18928_v11 = vld [vmem:[#allocation17 + $0xd24] ss:$16 sps:$4 sm:$0xff]  }
0x1150   : > { %13424 = vmatprep.subr.bf16.mxu0 %v21392_v56  ;;  %v18856_v56 = vld [vmem:[#allocation17 + $0xca4] ss:$16 sps:$4 sm:$0xff]  }
0x1152   : > { %13350 = vmatmul.mubr.bf16.vlgmr.msra.gmra.mxu0 %v21482_v19  ;;  %16449 = vmatmul.mubr.msk.bf16.vlgmr.msra.gmra.mxu1 %vm10269_vm14, %v13365_v28  ;;  %v18863_v19 = vld [vmem:[#allocation17 + $0xec0] ss:$16 sps:$4 sm:$0xff]  }
0x1153   : > { %13425 = vmatpush1.bf16.msra.mxu0 %v21397_v59  ;;  %13442 = vmatprep.mubr.bf16.mxu0 %v21867_v0  ;;  %v18854_v59 = vld [vmem:[#allocation17 + $0xca0] ss:$16 sps:$4 sm:$0xff]   ;;  %v18871_v0 = vld [vmem:[#allocation17 + $0xea4] ss:$16 sps:$4 sm:$0xff]  }
0x1154   : > { %14225 = vmatpush1.bf16.msra.mxu1 %v18848_v23  ;;  %14265 = vmatprep.subr.bf16.mxu0 %v18859_v51  ;;  %v18937_v23 = vld [vmem:[#allocation17 + $0xf44] ss:$16 sps:$4 sm:$0xff]   ;;  %v18943_v51 = vld [vmem:[#allocation17 + $0xcec] ss:$16 sps:$4 sm:$0xff]  }
0x1155   : > { %14226 = vmatprep.subr.bf16.mxu1 %v18853_v48  ;;  %v18932_v48 = vld [vmem:[#allocation17 + $0xd00] ss:$16 sps:$4 sm:$0xff]  }
0x1158   : > { %14227 = vmatpush1.bf16.msra.mxu1 %v18851_v45  ;;  %v18940_v45 = vld [vmem:[#allocation17 + $0xf24] ss:$16 sps:$4 sm:$0xff]  }
0x1159   : > { %14228 = vmatprep.subr.bf16.mxu1 %v18856_v56  ;;  %v18938_v56 = vld [vmem:[#allocation17 + $0xf20] ss:$16 sps:$4 sm:$0xff]  }
0x115a   : > { %16450 = vmatmul.mubr.msk.bf16.vlgmr.msra.gmra.mxu0 %vm10269_vm14, %v13365_v28  ;;  %v18931_v28 = vld [vmem:[#allocation17 + $0xf64] ss:$16 sps:$4 sm:$0xff]  }
0x115b   : > { %14266 = vmatpush1.bf16.msra.mxu0 %v18857_v44  ;;  %v18935_v44 = vld [vmem:[#allocation17 + $0xf40] ss:$16 sps:$4 sm:$0xff]  }
0x115c   : > { %14267 = vmatprep.subr.bf16.mxu0 %v18865_v60  ;;  %14229 = vmatpush1.bf16.msra.mxu1 %v18854_v59  ;;  %v18946_v60 = vld [vmem:[#allocation17 + $0xf04] ss:$16 sps:$4 sm:$0xff]   ;;  %v18955_v59 = vld [vmem:[#allocation17 + $0xeec] ss:$16 sps:$4 sm:$0xff]  }
0x115d   : > { %14230 = vmatprep.subr.bf16.mxu1 %v18862_v52 }
0x115f   : > { %14268 = vmatpush1.bf16.msra.mxu0 %v18863_v19  ;;  %v18944_v19 = vld [vmem:[#allocation17 + $0xf00] ss:$16 sps:$4 sm:$0xff]  }
0x1160   : > { %14269 = vmatprep.subr.bf16.mxu0 %v18871_v0  ;;  %14231 = vmatpush1.bf16.msra.mxu1 %v18860_v62 }
0x1161   : > { %14232 = vmatprep.subr.bf16.mxu1 %v18868_v41 }
0x1163   : > { %14270 = vmatpush1.bf16.msra.mxu0 %v18869_v55 }
0x1164   : > { %14271 = vmatprep.subr.bf16.mxu0 %v18877_v33  ;;  %14233 = vmatpush1.bf16.msra.mxu1 %v18866_v17 }
0x1165   : > { %14234 = vmatprep.subr.bf16.mxu1 %v18874_v47 }
0x1167   : > { %14272 = vmatpush1.bf16.msra.mxu0 %v18875_v57 }
0x1168   : > { %14273 = vmatprep.subr.bf16.mxu0 %v18883_v9  ;;  %14235 = vmatpush1.bf16.msra.mxu1 %v18872_v15 }
0x1169   : > { %14236 = vmatprep.subr.bf16.mxu1 %v18880_v26 }
0x116b   : > { %14274 = vmatpush1.bf16.msra.mxu0 %v18881_v14 }
0x116c   : > { %14275 = vmatprep.subr.bf16.mxu0 %v18889_v25  ;;  %14237 = vmatpush1.bf16.msra.mxu1 %v18878_v24 }
0x116d   : > { %14238 = vmatprep.subr.bf16.mxu1 %v18886_v20 }
0x116f   : > { %14276 = vmatpush1.bf16.msra.mxu0 %v18887_v37 }
0x1170   : > { %14277 = vmatprep.subr.bf16.mxu0 %v18895_v42  ;;  %14239 = vmatpush1.bf16.msra.mxu1 %v18884_v54 }
0x1171   : > { %14240 = vmatprep.subr.bf16.mxu1 %v18892_v40 }
0x1173   : > { %14278 = vmatpush1.bf16.msra.mxu0 %v18893_v30 }
0x1174   : > { %14279 = vmatprep.subr.bf16.mxu0 %v18901_v12  ;;  %14241 = vmatpush2.bf16.msra.mxu1 %v18890_v35 }
0x1175   : > { %14242 = vmatprep.subr.bf16.mxu1 %v18898_v29  ;;  %v18949_v29 = vld [vmem:[#allocation17 + $0xccc] ss:$16 sps:$4 sm:$0xff]  }
0x1177   : > { %14280 = vmatpush1.bf16.msra.mxu0 %v18899_v21 }
0x1178   : > { %14281 = vmatprep.subr.bf16.mxu0 %v18907_v31  ;;  %14243 = vmatpush2.bf16.msra.mxu1 %v18896_v16  ;;  %v18941_v31 = vld [vmem:[#allocation17 + $0xce8] ss:$16 sps:$4 sm:$0xff]  }
0x1179   : > { %14244 = vmatprep.subr.bf16.mxu1 %v18904_v58 }
0x117b   : > { %14282 = vmatpush2.bf16.msra.mxu0 %v18905_v1 }
0x117c   : > { %14283 = vmatprep.subr.bf16.mxu0 %v18913_v8  ;;  %14245 = vmatpush2.bf16.msra.mxu1 %v18902_v50 }
0x117d   : > { %14246 = vmatprep.subr.bf16.mxu1 %v18910_v13 }
0x117f   : > { %14284 = vmatpush2.bf16.msra.mxu0 %v18911_v2  ;;  %v18947_v2 = vld [vmem:[#allocation17 + $0xcc8] ss:$16 sps:$4 sm:$0xff]  }
0x1180   : > { %14285 = vmatprep.subr.bf16.mxu0 %v18919_v10  ;;  %14247 = vmatpush2.bf16.msra.mxu1 %v18908_v53  ;;  %v18953_v53 = vld [vmem:[#allocation17 + $0xee8] ss:$16 sps:$4 sm:$0xff]  }
0x1181   : > { %14248 = vmatprep.subr.bf16.mxu1 %v18916_v43 }
0x1183   : > { %14286 = vmatpush2.bf16.msra.mxu0 %v18917_v46  ;;  %v18950_v46 = vld [vmem:[#allocation17 + $0xca8] ss:$16 sps:$4 sm:$0xff]  }
0x1184   : > { %14249 = vmatpush2.bf16.msra.mxu1 %v18914_v38  ;;  %14287 = vmatprep.subr.bf16.mxu0 %v18925_v18  ;;  %v18961_v38 = vld [vmem:[#allocation17 + $0xecc] ss:$16 sps:$4 sm:$0xff]   ;;  %v18959_v18 = vld [vmem:[#allocation17 + $0xec8] ss:$16 sps:$4 sm:$0xff]  }
0x1185   : > { %14250 = vmatprep.subr.bf16.mxu1 %v18922_v6 }
0x1187   : > { %14288 = vmatpush2.bf16.msra.mxu0 %v18923_v22  ;;  %v18956_v22 = vld [vmem:[#allocation17 + $0xc88] ss:$16 sps:$4 sm:$0xff]  }
0x1188   : > { %14251 = vmatpush2.bf16.msra.mxu1 %v18920_v27  ;;  %14289 = vmatprep.subr.bf16.mxu0 %v18931_v28  ;;  %v18965_v28 = vld [vmem:[#allocation17 + $0xea8] ss:$16 sps:$4 sm:$0xff]  }
0x1189   : > { %14252 = vmatprep.subr.bf16.mxu1 %v18928_v11  ;;  %v18967_v11 = vld [vmem:[#allocation17 + $0xeac] ss:$16 sps:$4 sm:$0xff]  }
0x118b   : > { %14290 = vmatpush2.bf16.msra.mxu0 %v18929_v49  ;;  %v18962_v49 = vld [vmem:[#allocation17 + $0xc68] ss:$16 sps:$4 sm:$0xff]  }
0x118c   : > { %14253 = vmatpush2.bf16.msra.mxu1 %v18926_v34  ;;  %14291 = vmatprep.subr.bf16.mxu0 %v18937_v23  ;;  %v18964_v34 = vld [vmem:[#allocation17 + $0xc6c] ss:$16 sps:$4 sm:$0xff]  }
0x118d   : > { %14254 = vmatprep.subr.bf16.mxu1 %v18934_v5  ;;  %v18970_v5 = vld [vmem:[#allocation17 + $0xc4c] ss:$16 sps:$4 sm:$0xff]  }
0x118e   : > { %v18973_v23 = vld [vmem:[#allocation17 + $0xe8c] ss:$16 sps:$4 sm:$0xff]  }
0x118f   : > { %14292 = vmatpush2.bf16.msra.mxu0 %v18935_v44  ;;  %v18971_v44 = vld [vmem:[#allocation17 + $0xe88] ss:$16 sps:$4 sm:$0xff]  }
0x1190   : > { %14255 = vmatpush2.bf16.msra.mxu1 %v18932_v48  ;;  %14293 = vmatprep.subr.bf16.mxu0 %v18940_v45  ;;  %v18968_v48 = vld [vmem:[#allocation17 + $0xc48] ss:$16 sps:$4 sm:$0xff]   ;;  %v18976_v45 = vld [vmem:[#allocation17 + $0xc2c] ss:$16 sps:$4 sm:$0xff]  }
0x1191   : > { %14306 = vmatprep.subr.bf16.mxu1 %v18943_v51  ;;  %v18979_v51 = vld [vmem:[#allocation17 + $0xe6c] ss:$16 sps:$4 sm:$0xff]  }
0x1193   : > { %14294 = vmatpush2.bf16.msra.mxu0 %v18938_v56  ;;  %v18974_v56 = vld [vmem:[#allocation17 + $0xc28] ss:$16 sps:$4 sm:$0xff]  }
0x1194   : > { %14295 = vmatprep.subr.bf16.mxu0 %v18946_v60  ;;  %v18977_v60 = vld [vmem:[#allocation17 + $0xe68] ss:$16 sps:$4 sm:$0xff]  }
0x1197   : > { %14296 = vmatpush2.bf16.msra.mxu0 %v18944_v19  ;;  %v18982_v19 = vld [vmem:[#allocation17 + $0xc0c] ss:$16 sps:$4 sm:$0xff]  }
0x1198   : > { %14347 = vmatprep.subr.bf16.mxu0 %v18955_v59  ;;  %v18985_v59 = vld [vmem:[#allocation17 + $0xe4c] ss:$16 sps:$4 sm:$0xff]  }
0x11ca   : > { %v13228_v0 = vpop.f32.mrf.mxu1 }
0x11cc   : > { %v13230_v52 = vpop.f32.mrf.mxu1 }
0x11ce   : > { %v13232_v55 = vpop.f32.mrf.mxu1 }
0x11cf   : > { %v18988_v55 = vld [vmem:[#allocation17 + $0xdec] ss:$16 sps:$4 sm:$0xff]  }
0x11d0   : > { %v13233_v62 = vpop.f32.mrf.mxu1 }
0x11d1   : > { %v18991_v62 = vld [vmem:[#allocation17 + $0xe2c] ss:$16 sps:$4 sm:$0xff]  }
0x11d2   : > { %v13269_v33 = vpop.f32.mrf.mxu0 }
0x11d3   : > { %v13270_v41 = vadd.f32 %v13269_v33, %v13228_v0  ;;  %v18980_v0 = vld [vmem:[#allocation17 + $0xc08] ss:$16 sps:$4 sm:$0xff]  }
0x11d4   : > { %v13271_v57 = vpop.f32.mrf.mxu0  ;;  %v18986_v33 = vld [vmem:[#allocation17 + $0xde8] ss:$16 sps:$4 sm:$0xff]  }
0x11d5   : > { %v21499_v17 = vadd.f32 %v13270_v41, %v21471_v36  ;;  %v13272_v9 = vadd.f32 %v13271_v57, %v13230_v52  ;;  %v18983_v52 = vld [vmem:[#allocation17 + $0xe48] ss:$16 sps:$4 sm:$0xff]   ;;  %v18994_v57 = vld [vmem:[#allocation17 + $0xdcc] ss:$16 sps:$4 sm:$0xff]  }
0x11d6   : > { %v13273_v47 = vpop.f32.mrf.mxu0  ;;  %v18989_v41 = vld [vmem:[#allocation17 + $0xe28] ss:$16 sps:$4 sm:$0xff]  }
0x11d7   : > { %v21502_v14 = vadd.f32 %v13272_v9, %v21473_v63  ;;  %v18997_v9 = vld [vmem:[#allocation17 + $0xe0c] ss:$16 sps:$4 sm:$0xff]   ;;  %v18992_v47 = vld [vmem:[#allocation17 + $0xdc8] ss:$16 sps:$4 sm:$0xff]  }
0x11d8   : > { %v13274_v15 = vpop.f32.mrf.mxu0 }
0x11d9   : > { %v18995_v15 = vld [vmem:[#allocation17 + $0xe08] ss:$16 sps:$4 sm:$0xff]  }
0x120a   : > { %v13310_v25 = vpop.f32.mrf.mxu1 }
0x120c   : > { %v13312_v26 = vpop.f32.mrf.mxu1 }
0x120e   : > { %v13314_v37 = vpop.f32.mrf.mxu1 }
0x120f   : > { %v18998_v37 = vld [vmem:[#allocation17 + $0xda8] ss:$16 sps:$4 sm:$0xff]  }
0x1210   : > { %v13315_v24 = vpop.f32.mrf.mxu1 }
0x1211   : > { %v19001_v24 = vld [vmem:[#allocation17 + $0xfe8] ss:$16 sps:$4 sm:$0xff]  }
0x1212   : > { %v13351_v42 = vpop.f32.mrf.mxu0  ;;  %v13403_v20 = vpop.f32.mrf.mxu1 }
0x1213   : > { %v13352_v30 = vadd.f32 %v13351_v42, %v13310_v25  ;;  %v21504_v54 = vpack.c.bf16 %v13403_v20, %v13403_v20  ;;  %v19000_v25 = vld [vmem:[#allocation17 + $0xdac] ss:$16 sps:$4 sm:$0xff]  }
0x1214   : > { %v13353_v12 = vpop.f32.mrf.mxu0  ;;  %v13405_v40 = vpop.f32.mrf.mxu1  ;;  %v19006_v42 = vld [vmem:[#allocation17 + $0xd8c] ss:$16 sps:$4 sm:$0xff]  }
0x1215   : > { %v21507_v36 = vadd.f32 %v13352_v30, %v21475_v39  ;;  %v13354_v21 = vadd.f32 %v13353_v12, %v13312_v26  ;;  %v13452_v35 = vpack.c.bf16 %v13405_v40, %v13405_v40  ;;  %v18952_v39 = vld [vmem:[#allocation17 + $0xcac] ss:$16 sps:$4 sm:$0xff]   ;;  %v19004_v30 = vld [vmem:[#allocation17 + $0xd88] ss:$16 sps:$4 sm:$0xff]  }
0x1216   : > { %v13355_v63 = vpop.f32.mrf.mxu0  ;;  %v13407_v1 = vpop.f32.mrf.mxu1  ;;  %v19003_v26 = vld [vmem:[#allocation17 + $0xfec] ss:$16 sps:$4 sm:$0xff]   ;;  %v19007_v12 = vld [vmem:[#allocation17 + $0xfc8] ss:$16 sps:$4 sm:$0xff]  }
0x1217   : > { %v21510_v16 = vadd.f32 %v13354_v21, %v21477_v3  ;;  %14256 = vmatprep.mubr.bf16.mxu1 %v13452_v35  ;;  %v18958_v3 = vld [vmem:[#allocation17 + $0xc8c] ss:$16 sps:$4 sm:$0xff]   ;;  %v19016_v1 = vld [vmem:[#allocation17 + $0xd48] ss:$16 sps:$4 sm:$0xff]  }
0x1218   : > { %v13356_v8 = vpop.f32.mrf.mxu0  ;;  %14257 = vmatmul.mubr.bf16.vlgmr.msra.gmra.mxu1 %v21504_v54  ;;  %v13408_v58 = vpop.f32.mrf.mxu1  ;;  %v19009_v20 = vld [vmem:[#allocation17 + $0xfcc] ss:$16 sps:$4 sm:$0xff]  }
0x1219   : > { %14307 = vmatpush1.bf16.msra.mxu1 %v18941_v31  ;;  %14338 = vmatprep.mubr.bf16.mxu1 %v13452_v35  ;;  %v19012_v40 = vld [vmem:[#allocation17 + $0xd6c] ss:$16 sps:$4 sm:$0xff]   ;;  %v19010_v35 = vld [vmem:[#allocation17 + $0xd68] ss:$16 sps:$4 sm:$0xff]  }
0x121a   : > { %v13444_v50 = vpop.f32.mrf.mxu0  ;;  %14308 = vmatprep.subr.bf16.mxu1 %v18949_v29  ;;  %v19015_v21 = vld [vmem:[#allocation17 + $0xfac] ss:$16 sps:$4 sm:$0xff]   ;;  %v19013_v31 = vld [vmem:[#allocation17 + $0xfa8] ss:$16 sps:$4 sm:$0xff]  }
0x121b   : > { %v21513_v43 = vpack.c.bf16 %v13444_v50, %v13444_v50  ;;  %v19018_v63 = vld [vmem:[#allocation17 + $0xd4c] ss:$16 sps:$4 sm:$0xff]   ;;  %v19019_v8 = vld [vmem:[#allocation17 + $0xf88] ss:$16 sps:$4 sm:$0xff]  }
0x121c   : > { %v13446_v10 = vpop.f32.mrf.mxu0  ;;  %v19021_v29 = vld [vmem:[#allocation17 + $0xf8c] ss:$16 sps:$4 sm:$0xff]   ;;  %v19022_v50 = vld [vmem:[#allocation17 + $0xd28] ss:$16 sps:$4 sm:$0xff]  }
0x121d   : > { %v13454_v13 = vpack.c.bf16 %v13446_v10, %v13446_v10  ;;  %14309 = vmatpush1.bf16.msra.mxu1 %v18947_v2  ;;  %v19024_v58 = vld [vmem:[#allocation17 + $0xd2c] ss:$16 sps:$4 sm:$0xff]  }
0x121e   : > { %14310 = vmatprep.subr.bf16.mxu1 %v18952_v39  ;;  %v13448_v27 = vpop.f32.mrf.mxu0  ;;  %v19027_v2 = vld [vmem:[#allocation17 + $0xf6c] ss:$16 sps:$4 sm:$0xff]   ;;  %v19025_v39 = vld [vmem:[#allocation17 + $0xf68] ss:$16 sps:$4 sm:$0xff]  }
0x121f   : > { %14297 = vmatprep.mubr.bf16.mxu0 %v13454_v13  ;;  %v19030_v10 = vld [vmem:[#allocation17 + $0xd0c] ss:$16 sps:$4 sm:$0xff]   ;;  %v19034_v27 = vld [vmem:[#allocation17 + $0xf28] ss:$16 sps:$4 sm:$0xff]  }
0x1220   : > { %14298 = vmatmul.mubr.bf16.vlgmr.msra.gmra.mxu0 %v21513_v43  ;;  %v13449_v6 = vpop.f32.mrf.mxu0 }
0x1221   : > { %14311 = vmatpush1.bf16.msra.mxu1 %v18950_v46  ;;  %14348 = vmatpush1.bf16.msra.mxu0 %v18953_v53  ;;  %v19028_v46 = vld [vmem:[#allocation17 + $0xd08] ss:$16 sps:$4 sm:$0xff]   ;;  %v19039_v6 = vld [vmem:[#allocation17 + $0xf0c] ss:$16 sps:$4 sm:$0xff]  }
0x1222   : > { %14312 = vmatprep.subr.bf16.mxu1 %v18958_v3  ;;  %14349 = vmatprep.subr.bf16.mxu0 %v18961_v38  ;;  %v19031_v53 = vld [vmem:[#allocation17 + $0xf48] ss:$16 sps:$4 sm:$0xff]   ;;  %v19036_v3 = vld [vmem:[#allocation17 + $0xf2c] ss:$16 sps:$4 sm:$0xff]  }
0x1223   : > { %14379 = vmatprep.mubr.bf16.mxu0 %v13454_v13  ;;  %v19033_v13 = vld [vmem:[#allocation17 + $0xf4c] ss:$16 sps:$4 sm:$0xff]  }
0x1224   : > { %v19040_v38 = vld [vmem:[#allocation20 + $0x78] sm:$0xff]  }
0x1225   : > { %14313 = vmatpush1.bf16.msra.mxu1 %v18956_v22  ;;  %14350 = vmatpush1.bf16.msra.mxu0 %v18959_v18  ;;  %v19037_v22 = vld [vmem:[#allocation17 + $0xf08] ss:$16 sps:$4 sm:$0xff]   ;;  %v19041_v18 = vld [vmem:[#allocation20 + $0x38] sm:$0xff]  }
0x1226   : > { %14314 = vmatprep.subr.bf16.mxu1 %v18964_v34  ;;  %14351 = vmatprep.subr.bf16.mxu0 %v18967_v11  ;;  %v19042_v34 = vld [vmem:[#allocation20 + $0x70] sm:$0xff]  }
0x1227   : > { %v19043_v11 = vld [vmem:[#allocation20 + $0x30] sm:$0xff]  }
0x1229   : > { %14315 = vmatpush1.bf16.msra.mxu1 %v18962_v49  ;;  %14352 = vmatpush1.bf16.msra.mxu0 %v18965_v28  ;;  %v19044_v49 = vld [vmem:[#allocation20 + $0x68] sm:$0xff]  }
0x122a   : > { %14316 = vmatprep.subr.bf16.mxu1 %v18970_v5  ;;  %14353 = vmatprep.subr.bf16.mxu0 %v18973_v23  ;;  %v19045_v28 = vld [vmem:[#allocation20 + $0x28] sm:$0xff]   ;;  %v19046_v5 = vld [vmem:[#allocation20 + $0x60] sm:$0xff]  }
0x122b   : > { %v19047_v23 = vld [vmem:[#allocation20 + $0x20] sm:$0xff]  }
0x122d   : > { %14317 = vmatpush1.bf16.msra.mxu1 %v18968_v48  ;;  %14354 = vmatpush1.bf16.msra.mxu0 %v18971_v44  ;;  %v19049_v48 = vld [vmem:[#allocation20 + $0x18] sm:$0xff]   ;;  %v19050_v44 = vld [vmem:[#allocation20 + $0x50] sm:$0xff]  }
0x122e   : > { %14318 = vmatprep.subr.bf16.mxu1 %v18976_v45  ;;  %14355 = vmatprep.subr.bf16.mxu0 %v18979_v51  ;;  %v19052_v45 = vld [vmem:[#allocation20 + $0x48] sm:$0xff]  }
0x122f   : > { %v19053_v51 = vld [vmem:[#allocation20 + $0x8] sm:$0xff]  }
0x1231   : > { %14319 = vmatpush1.bf16.msra.mxu1 %v18974_v56  ;;  %14356 = vmatpush1.bf16.msra.mxu0 %v18977_v60  ;;  %v19054_v56 = vld [vmem:[#allocation20 + $0x40] sm:$0xff]  }
0x1232   : > { %14320 = vmatprep.subr.bf16.mxu1 %v18982_v19  ;;  %14357 = vmatprep.subr.bf16.mxu0 %v18985_v59  ;;  %v19055_v60 = vld [vmem:[#allocation20] sm:$0xff]   ;;  %v19056_v19 = vld [vmem:[#allocation20 + $0xf8] sm:$0xff]  }
0x1233   : > { %v19057_v59 = vld [vmem:[#allocation20 + $0xb8] sm:$0xff]  }
0x1235   : > { %14321 = vmatpush1.bf16.msra.mxu1 %v18980_v0  ;;  %14358 = vmatpush1.bf16.msra.mxu0 %v18983_v52  ;;  %v19058_v0 = vld [vmem:[#allocation20 + $0xf0] sm:$0xff]  }
0x1236   : > { %14322 = vmatprep.subr.bf16.mxu1 %v18988_v55  ;;  %14359 = vmatprep.subr.bf16.mxu0 %v18991_v62  ;;  %v19059_v52 = vld [vmem:[#allocation20 + $0xb0] sm:$0xff]   ;;  %v19060_v55 = vld [vmem:[#allocation20 + $0xe8] sm:$0xff]  }
0x1237   : > { %v19061_v62 = vld [vmem:[#allocation20 + $0xa8] sm:$0xff]  }
0x1239   : > { %14323 = vmatpush2.bf16.msra.mxu1 %v18986_v33  ;;  %14360 = vmatpush1.bf16.msra.mxu0 %v18989_v41  ;;  %v19062_v33 = vld [vmem:[#allocation20 + $0xe0] sm:$0xff]  }
0x123a   : > { %14324 = vmatprep.subr.bf16.mxu1 %v18994_v57  ;;  %14361 = vmatprep.subr.bf16.mxu0 %v18997_v9  ;;  %v19063_v41 = vld [vmem:[#allocation20 + $0xa0] sm:$0xff]   ;;  %v19064_v57 = vld [vmem:[#allocation20 + $0xd8] sm:$0xff]  }
0x123b   : > { %v19065_v9 = vld [vmem:[#allocation20 + $0x98] sm:$0xff]  }
0x123d   : > { %14325 = vmatpush2.bf16.msra.mxu1 %v18992_v47  ;;  %14362 = vmatpush1.bf16.msra.mxu0 %v18995_v15  ;;  %v19066_v47 = vld [vmem:[#allocation20 + $0xd0] sm:$0xff]  }
0x123e   : > { %14326 = vmatprep.subr.bf16.mxu1 %v19000_v25  ;;  %14363 = vmatprep.subr.bf16.mxu0 %v19003_v26  ;;  %v19067_v15 = vld [vmem:[#allocation20 + $0x90] sm:$0xff]   ;;  %v19068_v25 = vld [vmem:[#allocation20 + $0xc8] sm:$0xff]  }
0x123f   : > { %v19069_v26 = vld [vmem:[#allocation20 + $0x88] sm:$0xff]  }
0x1241   : > { %14327 = vmatpush2.bf16.msra.mxu1 %v18998_v37  ;;  %14364 = vmatpush2.bf16.msra.mxu0 %v19001_v24  ;;  %v19070_v37 = vld [vmem:[#allocation20 + $0xc0] sm:$0xff]  }
0x1242   : > { %14328 = vmatprep.subr.bf16.mxu1 %v19006_v42  ;;  %14365 = vmatprep.subr.bf16.mxu0 %v19009_v20  ;;  %v19071_v24 = vld [vmem:[#allocation20 + $0x80] sm:$0xff]  }
0x1245   : > { %14329 = vmatpush2.bf16.msra.mxu1 %v19004_v30  ;;  %14366 = vmatpush2.bf16.msra.mxu0 %v19007_v12  ;;  %v14392_v12 = vld [vmem:[#allocation19] sm:$0xf] }
0x1246   : > { %14330 = vmatprep.subr.bf16.mxu1 %v19012_v40  ;;  %14367 = vmatprep.subr.bf16.mxu0 %v19015_v21 }
0x1249   : > { %14331 = vmatpush2.bf16.msra.mxu1 %v19010_v35  ;;  %14368 = vmatpush2.bf16.msra.mxu0 %v19013_v31  ;;  %v14397_v31 = vrot.slane %v14392_v12, %v21960_v4 }
0x124a   : > { %14332 = vmatprep.subr.bf16.mxu1 %v19018_v63  ;;  %14369 = vmatprep.subr.bf16.mxu0 %v19021_v29 }
0x124d   : > { %14333 = vmatpush2.bf16.msra.mxu1 %v19016_v1  ;;  %14370 = vmatpush2.bf16.msra.mxu0 %v19019_v8  ;;  %v14401_v8 = vrot.slane %v14392_v12, %v21034_v7 }
0x124e   : > { %14334 = vmatprep.subr.bf16.mxu1 %v19024_v58  ;;  %14371 = vmatprep.subr.bf16.mxu0 %v19027_v2 }
0x1251   : > { %14335 = vmatpush2.bf16.msra.mxu1 %v19022_v50  ;;  %14372 = vmatpush2.bf16.msra.mxu0 %v19025_v39 }
0x1252   : > { %14336 = vmatprep.subr.bf16.mxu1 %v19030_v10  ;;  %14373 = vmatprep.subr.bf16.mxu0 %v19033_v13 }
0x1255   : > { %14337 = vmatpush2.bf16.msra.mxu1 %v19028_v46  ;;  %14374 = vmatpush2.bf16.msra.mxu0 %v19031_v53 }
0x1256   : > { %14375 = vmatprep.subr.bf16.mxu0 %v19036_v3  ;;  %16614 = vmatprep.subr.bf16.mxu1 %v19040_v38 }
0x1258   : > { %14339 = vmatmul.mubr.bf16.vlgmr.msra.gmra.mxu1 %v21504_v54  ;;  %v19048_v54 = vld [vmem:[#allocation20 + $0x58] sm:$0xff]  }
0x1259   : > { %14376 = vmatpush2.bf16.msra.mxu0 %v19034_v27  ;;  %16615 = vmatpush3.bf16.msra.mxu1 %v19041_v18 }
0x125a   : > { %14377 = vmatprep.subr.bf16.mxu0 %v19039_v6  ;;  %16616 = vmatprep.subr.bf16.mxu1 %v19042_v34 }
0x125d   : > { %14378 = vmatpush2.bf16.msra.mxu0 %v19037_v22  ;;  %16617 = vmatpush3.bf16.msra.mxu1 %v19043_v11 }
0x125e   : > { %16618 = vmatprep.subr.bf16.mxu1 %v19044_v49  ;;  %16636 = vmatprep.subr.bf16.mxu0 %v19056_v19 }
0x1260   : > { %14380 = vmatmul.mubr.bf16.vlgmr.msra.gmra.mxu0 %v21513_v43  ;;  %v19051_v43 = vld [vmem:[#allocation20 + $0x10] sm:$0xff]  }
0x1261   : > { %16619 = vmatpush3.bf16.msra.mxu1 %v19045_v28  ;;  %16637 = vmatpush3.bf16.msra.mxu0 %v19057_v59  ;;  %v14405_v59 = vrot.slane %v14392_v12, %v21092_v61 }
0x1262   : > { %16620 = vmatprep.subr.bf16.mxu1 %v19046_v5  ;;  %16638 = vmatprep.subr.bf16.mxu0 %v19058_v0 }
0x1265   : > { %16621 = vmatpush3.bf16.msra.mxu1 %v19047_v23  ;;  %16639 = vmatpush3.bf16.msra.mxu0 %v19059_v52 }
0x1266   : > { %16622 = vmatprep.subr.bf16.mxu1 %v19048_v54  ;;  %16640 = vmatprep.subr.bf16.mxu0 %v19060_v55 }
0x1269   : > { %16623 = vmatpush3.bf16.msra.mxu1 %v19049_v48  ;;  %16641 = vmatpush3.bf16.msra.mxu0 %v19061_v62  ;;  %v14409_v62 = vrot.slane %v14392_v12, %v21160_v32 }
0x126a   : > { %16624 = vmatprep.subr.bf16.mxu1 %v19050_v44  ;;  %16642 = vmatprep.subr.bf16.mxu0 %v19062_v33 }
0x126d   : > { %16625 = vmatpush3.bf16.msra.mxu1 %v19051_v43  ;;  %16643 = vmatpush3.bf16.msra.mxu0 %v19063_v41 }
0x126e   : > { %16626 = vmatprep.subr.bf16.mxu1 %v19052_v45  ;;  %16644 = vmatprep.subr.bf16.mxu0 %v19064_v57 }
0x1271   : > { %16627 = vmatpush3.bf16.msra.mxu1 %v19053_v51  ;;  %16645 = vmatpush3.bf16.msra.mxu0 %v19065_v9 }
0x1272   : > { %16628 = vmatprep.subr.bf16.mxu1 %v19054_v56  ;;  %16646 = vmatprep.subr.bf16.mxu0 %v19066_v47 }
0x1275   : > { %16629 = vmatpush3.bf16.msra.mxu1 %v19055_v60  ;;  %16647 = vmatpush3.bf16.msra.mxu0 %v19067_v15 }
0x1276   : > { %16648 = vmatprep.subr.bf16.mxu0 %v19068_v25 }
0x1279   : > { %16649 = vmatpush3.bf16.msra.mxu0 %v19069_v26 }
0x127a   : > { %16650 = vmatprep.subr.bf16.mxu0 %v19070_v37 }
0x127d   : > { %16651 = vmatpush3.bf16.msra.mxu0 %v19071_v24 }
0x12d8   : > { %v14258_v42 = vpop.f32.mrf.mxu1 }
0x12da   : > { %v14260_v20 = vpop.f32.mrf.mxu1 }
0x12dc   : > { %v14262_v30 = vpop.f32.mrf.mxu1 }
0x12de   : > { %v14263_v40 = vpop.f32.mrf.mxu1 }
0x12e0   : > { %v14299_v21 = vpop.f32.mrf.mxu0 }
0x12e1   : > { %v14300_v35 = vadd.f32 %v14299_v21, %v14258_v42 }
0x12e2   : > { %v14301_v63 = vpop.f32.mrf.mxu0 }
0x12e3   : > { %v14388_v29 = vadd.f32 %v14300_v35, %v21499_v17  ;;  %v14302_v1 = vadd.f32 %v14301_v63, %v14260_v20 }
0x12e4   : > { %v14303_v58 = vpop.f32.mrf.mxu0 }
0x12e5   : > { %v14414_v2 = vadd.f32 %v14397_v31, %v14388_v29  ;;  %v14389_v50 = vadd.f32 %v14302_v1, %v21502_v14 }
0x12e6   : > { %v14304_v39 = vpop.f32.mrf.mxu0 }
0x12e7   : > { %v14418_v10 = vmax.f32 %v14414_v2, 0.0  ;;  %v14415_v13 = vadd.f32 %v14401_v8, %v14389_v50 }
0x12e9   : > { %v14422_v46 = vpack.c.bf16 %v14418_v10, %v14418_v10  ;;  %v14419_v53 = vmax.f32 %v14415_v13, 0.0 }
0x12eb   : > { %v14426_v3 = vunpack.c.l.bf16 %v14422_v46  ;;  %v14423_v38 = vpack.c.bf16 %v14419_v53, %v14419_v53  ;;  %v14526_v46 = vld [vmem:[#allocation22] sm:$0x1] }
0x12ed   : > { %v14430_v27 = vsel %vm1241_vm1, %v14426_v3, -inf  ;;  %v14427_v4 = vunpack.c.l.bf16 %v14423_v38 }
0x12ee   : > { %v14431_v6 = vrot.slane %v14430_v27, 4 }
0x12ef   : > { %v14437_v17 = vsel %vm1241_vm1, %v14427_v4, -inf }
0x12f0   : > { %v14432_v22 = vmax.f32 %v14430_v27, %v14431_v6  ;;  %v14438_v18 = vrot.slane %v14437_v17, 4 }
0x12f2   : > { %v14433_v7 = vrot.slane %v14432_v22, 2  ;;  %v14439_v34 = vmax.f32 %v14437_v17, %v14438_v18 }
0x12f4   : > { %v14434_v11 = vmax.f32 %v14432_v22, %v14433_v7  ;;  %v14440_v49 = vrot.slane %v14439_v34, 2 }
0x12f6   : > { %v14435_v14 = vrot.slane %v14434_v11, 1  ;;  %v14441_v28 = vmax.f32 %v14439_v34, %v14440_v49 }
0x12f8   : > { %v14442_v5 = vrot.slane %v14441_v28, 1  ;;  %v14436_v23 = vmax.f32 %v14434_v11, %v14435_v14 }
0x12fa   : > { %v14443_v54 = vmax.f32 %v14441_v28, %v14442_v5  ;;  %v14458_v44 = vpack.c.bf16 %v14436_v23, %v14436_v23 }
0x12fc   : > { %v14459_v48 = vpack.c.bf16 %v14443_v54, %v14443_v54 }
0x12fe   : > { %14751 = vmatprep.mubr.bf16.mxu1 %v14459_v48 }
0x12ff   : > { %14752 = vmatmul.mubr.bf16.vlgmr.msra.gmra.mxu1 %v14458_v44 }
0x1318   : > { %v14340_v43 = vpop.f32.mrf.mxu1 }
0x131a   : > { %v14342_v45 = vpop.f32.mrf.mxu1 }
0x131c   : > { %v14344_v51 = vpop.f32.mrf.mxu1 }
0x131e   : > { %v14345_v56 = vpop.f32.mrf.mxu1 }
0x1320   : > { %v14381_v60 = vpop.f32.mrf.mxu0 }
0x1321   : > { %v14382_v19 = vadd.f32 %v14381_v60, %v14340_v43 }
0x1322   : > { %v14383_v0 = vpop.f32.mrf.mxu0 }
0x1323   : > { %v14390_v52 = vadd.f32 %v14382_v19, %v21507_v36  ;;  %v14384_v55 = vadd.f32 %v14383_v0, %v14342_v45 }
0x1324   : > { %v14385_v33 = vpop.f32.mrf.mxu0 }
0x1325   : > { %v14416_v41 = vadd.f32 %v14405_v59, %v14390_v52  ;;  %v14391_v57 = vadd.f32 %v14384_v55, %v21510_v16 }
0x1326   : > { %v14386_v9 = vpop.f32.mrf.mxu0 }
0x1327   : > { %v14420_v47 = vmax.f32 %v14416_v41, 0.0  ;;  %v14417_v15 = vadd.f32 %v14409_v62, %v14391_v57 }
0x1329   : > { %v14424_v25 = vpack.c.bf16 %v14420_v47, %v14420_v47  ;;  %v14421_v26 = vmax.f32 %v14417_v15, 0.0 }
0x132b   : > { %v14428_v37 = vunpack.c.l.bf16 %v14424_v25  ;;  %v14425_v24 = vpack.c.bf16 %v14421_v26, %v14421_v26 }
0x132d   : > { %v14444_v42 = vsel %vm1241_vm1, %v14428_v37, -inf  ;;  %v14429_v61 = vunpack.c.l.bf16 %v14425_v24 }
0x132e   : > { %v14445_v20 = vrot.slane %v14444_v42, 4 }
0x132f   : > { %v14451_v36 = vsel %vm1241_vm1, %v14429_v61, -inf  ;;  %vm14799_vm1 = vcmask 516096  }
0x1330   : > { %v14446_v30 = vmax.f32 %v14444_v42, %v14445_v20  ;;  %v14452_v40 = vrot.slane %v14451_v36, 4 }
0x1332   : > { %v14447_v32 = vrot.slane %v14446_v30, 2  ;;  %v14453_v12 = vmax.f32 %v14451_v36, %v14452_v40 }
0x1334   : > { %v14448_v21 = vmax.f32 %v14446_v30, %v14447_v32  ;;  %v14454_v16 = vrot.slane %v14453_v12, 2 }
0x1336   : > { %v14449_v35 = vrot.slane %v14448_v21, 1  ;;  %v14455_v31 = vmax.f32 %v14453_v12, %v14454_v16 }
0x1338   : > { %v14456_v63 = vrot.slane %v14455_v31, 1  ;;  %v14450_v29 = vmax.f32 %v14448_v21, %v14449_v35 }
0x133a   : > { %v14457_v1 = vmax.f32 %v14455_v31, %v14456_v63  ;;  %v14460_v58 = vpack.c.bf16 %v14450_v29, %v14450_v29 }
0x133c   : > { %v14461_v8 = vpack.c.bf16 %v14457_v1, %v14457_v1 }
0x133e   : > { %14791 = vmatprep.mubr.bf16.mxu0 %v14461_v8 }
0x133f   : > { %14792 = vmatmul.mubr.bf16.vlgmr.msra.gmra.mxu0 %v14460_v58 }
0x13bf   : > { %v16630_v2 = vpop.f32.mrf.mxu1 }
0x13c1   : > { %v16631_v50 = vpop.f32.mrf.mxu1 }
0x13c2   : > { %v16632_v13 = vadd.f32 %v16631_v50, %v16630_v2 }
0x13c3   : > { %v16633_v39 = vpop.f32.mrf.mxu1 }
0x13c4   : > { %v14754_v38 = vadd.f32 %v16632_v13, %v14526_v46 }
0x13c5   : > { %v16634_v10 = vpop.f32.mrf.mxu1 }
0x13ff   : > { %v16652_v53 = vpop.f32.mrf.mxu0 }
0x1401   : > { %v16653_v3 = vpop.f32.mrf.mxu0 }
0x1402   : > { %v16654_v27 = vadd.f32 %v16653_v3, %v16652_v53 }
0x1403   : > { %v16655_v4 = vpop.f32.mrf.mxu0 }
0x1404   : > { %v14794_v6 = vadd.f32 %v16654_v27, %v14754_v38 }
0x1405   : > { %v16656_v17 = vpop.f32.mrf.mxu0 }
0x1406   : > { %14800 = vst.msk [vmem:[%s636_s22] sm:$0x1] %vm14799_vm1, %v14794_v6 }
0x1407   : > { %19423 = shalt.err (!%p19420_p8)
}
0x1408   : > { %s19424_s28 = scalar_lea.hbm %s21535_s15, 16  ;;  %s19428_s16 = scalar_lea.hbm %s21967_s14, 32 }
0x1409   : > { %p19425_p11 = scmp.ne.s32.totalorder %s21535_s15, %s19424_s28  ;;  %p19429_p9 = scmp.lt.s32.totalorder %s21535_s15, %s21967_s14 }
0x140a   : > { %p19430_p10 = scmp.lt.s32.totalorder %s19428_s16, %s19424_s28 }
0x140b   : > { %p19426_p5 = pnand %p19425_p11, %p21968_p1 }
0x140c   : > { %p19431_p0 = por %p19430_p10, %p19429_p9 }
0x140d   : > { %p19427_p6 = pneg %p19426_p5 }
0x140f   : > { %p19432_p13 = pnand %p19431_p0, %p19427_p6 }
0x1411   : > { %19435 = shalt.err (!%p19432_p13)
}
0x1412   : > { %16711 = dma.vmem_to_hbm [thread:$0]  (%p21968_p1), %s14815_s26, 16, %s21535_s15, %s14802_s27  }
0x1413 PF: > { %s21969_s22 = sld [smem:[#allocation34_spill]] }
0x1414   : > { %s21970_s2 = sld [smem:[#allocation32_spill]] }
0x1415   : > { %s21971_s24 = sld [smem:[#allocation37_spill]] }
0x1419   : > { %p16783_p3 = scmp.ge.s32.totalorder %s21969_s22, 2 }
0x141a   : > { %s14826_s4 = sand.u32 1, %s21970_s2  }
0x141b   : > { %p21972_p2 = scmp.ne.s32.totalorder %s21971_s24, 0  ;;  %s14827_s17 = scalar_lea.sflag [#allocation4], %s14826_s4 }
0x141d   : > { %p16754_p12 = pnand %p16783_p3, %p21972_p2 }
0x141f   : > { %p16755_p4 = pneg %p16754_p12 }
0x1421   : > { %19481 = dma.done.wait (%p16755_p4), %s14827_s17, 16  }
0x1422   : > { %19483 = vsyncadd (%p16755_p4), %s14827_s17, 4294967280  ;;  %s21973_s16 = sld [smem:[#allocation35_spill]]  ;;  %s21976_s29 = smov %s19490_s30 }
0x1423   : > { %s21974_s25 = sld [smem:[#allocation33_spill]] }
0x1424   : > { %s21975_s15 = sld [smem:[#allocation36_spill]] }
0x1428   : > { %p31_p7 = scmp.ge.s32.totalorder %s21973_s16, 4  }
0x1429   : > { %s21977_s30 = smov %s21974_s25 }
0x142a   :  { %33 = sbr.rel (!%p31_p7) target bundleno = 14 (0xe), region = 175 }
0x142f   :  { %14831 = vsyncpa [#allocation3], 1 }
0x1430   :  { %14833 = vsyncpa [#allocation3 + $0x1], 1 }
0x1431   :  { %14834 = vsyncpa [#allocation6], 1 }
0x1432   :  { %14835 = vsyncpa [#allocation9], 1 }
0x1433   :  { %14836 = vsyncpa [#allocation12], 1 }
0x1434   :  { %14837 = vsyncpa [#allocation15], 1 }
0x1435   :  { %14838 = vsyncpa [#allocation18], 1 }
0x1436   :  { %14839 = vsyncpa [#allocation21], 1 }
0x1437   :  { %14840 = vsyncpa [#allocation4], 1 }
0x1438   :  { %14842 = vsyncpa [#allocation4 + $0x1], 1 }

</bundles_post_ra>
